<compile_context>
chip_gen: v7x
topology: tpu7x:2x2x1
jax: 0.10.0
libtpu: 0.0.40
codegen_flags: <defaults>
</compile_context>

<pallas_src>
import functools
import math

import jax
import jax.numpy as jnp
from jax.experimental import pallas as pl
from jax.experimental.pallas import tpu as pltpu


# ----------------------------------------------------------------------------
# Pallas kernels
# ----------------------------------------------------------------------------
def _matmul_bias_act_kernel(x_ref, w_ref, b_ref, o_ref, *, apply_relu):
    """Tiled matmul accumulating directly into the resident f32 output block.

    Grid = (M blocks, N blocks, K blocks); K is the innermost (reduction) axis,
    so the output block stays resident in VMEM across it.  Bias (+ optional
    ReLU) is fused into the epilogue on the last K step.
    """
    k = pl.program_id(2)

    @pl.when(k == 0)
    def _():
        o_ref[...] = jnp.zeros_like(o_ref)

    o_ref[...] += jnp.dot(x_ref[...], w_ref[...],
                          preferred_element_type=jnp.float32)

    @pl.when(k == pl.num_programs(2) - 1)
    def _():
        out = o_ref[...] + b_ref[...]
        if apply_relu:
            out = jnp.maximum(out, 0.0)
        o_ref[...] = out


def _maxpool_kernel(win_ref, o_ref):
    # win_ref: (KK, tm, C) stacked pooling windows -> max over window axis.
    o_ref[...] = jnp.max(win_ref[...], axis=0)


def _log_softmax_kernel(x_ref, o_ref):
    x = x_ref[...]
    m = jnp.max(x, axis=-1, keepdims=True)
    s = x - m
    lse = jnp.log(jnp.sum(jnp.exp(s), axis=-1, keepdims=True))
    o_ref[...] = s - lse


# ----------------------------------------------------------------------------
# Tiling helpers
# ----------------------------------------------------------------------------
def _round_up(x, m):
    return ((x + m - 1) // m) * m


def _kn_padding(K, N):
    """Padded (Kp, Np) such that tk = min(1024, Kp), tn = min(512, Np) divide."""
    kp0 = _round_up(K, 512)
    tk = min(1024, kp0)
    Kp = _round_up(K, tk)
    Np = _round_up(N, 512) if N >= 512 else _round_up(N, 128)
    return Kp, Np


def prepare_matmul_operand(w_kn, b_n):
    """Pad + cast a (K, N) weight and (N,) bias once, outside jit."""
    K, N = w_kn.shape
    Kp, Np = _kn_padding(K, N)
    wp = jnp.pad(w_kn.astype(jnp.bfloat16), ((0, Kp - K), (0, Np - N)))
    bp = jnp.pad(b_n.astype(jnp.float32), (0, Np - N)).reshape(1, Np)
    return wp, bp


# ----------------------------------------------------------------------------
# Pallas wrappers
# ----------------------------------------------------------------------------
def matmul_bias_act(x, wp, bp, n_out, *, apply_relu):
    """x:(M,K) f32 @ pre-padded bf16 wp:(Kp,Np) + bias, optional ReLU.

    Returns the (M, n_out) f32 result.
    """
    M, K = x.shape
    Kp, Np = wp.shape
    tk = min(1024, Kp)          # multiple of 256 whenever Kp >= 256
    tn = min(512, Np)           # multiple of 256 whenever Np >= 256
    tm = min(256, _round_up(M, 16))
    Mp = _round_up(M, tm)

    xb = x.astype(jnp.bfloat16)
    if Mp != M or Kp != K:
        xb = jnp.pad(xb, ((0, Mp - M), (0, Kp - K)))

    grid = (Mp // tm, Np // tn, Kp // tk)
    kernel = functools.partial(_matmul_bias_act_kernel, apply_relu=apply_relu)

    out = pl.pallas_call(
        kernel,
        out_shape=jax.ShapeDtypeStruct((Mp, Np), jnp.float32),
        grid_spec=pltpu.PrefetchScalarGridSpec(
            num_scalar_prefetch=0,
            grid=grid,
            in_specs=[
                pl.BlockSpec((tm, tk), lambda i, j, k: (i, k)),
                pl.BlockSpec((tk, tn), lambda i, j, k: (k, j)),
                pl.BlockSpec((1, tn), lambda i, j, k: (0, j)),
            ],
            out_specs=pl.BlockSpec((tm, tn), lambda i, j, k: (i, j)),
        ),
        compiler_params=pltpu.CompilerParams(
            dimension_semantics=("parallel", "parallel", "arbitrary"),
            # ~5 MiB actually needed with the largest tiles; 32 MiB keeps
            # headroom yet stays within the v7x scoped default (64 MiB phys).
            vmem_limit_bytes=32 * 1024 * 1024),
    )(xb, wp, bp)
    return out[:M, :n_out]


def maxpool_windows_pallas(win):
    """win: (KK, M, C) -> (M, C) max over KK, tiled (pipelined) over M."""
    kk, m, c = win.shape
    tm = min(512, _round_up(m, 8))
    mp = _round_up(m, tm)
    if mp != m:
        win = jnp.pad(win, ((0, 0), (0, mp - m), (0, 0)))
    out = pl.pallas_call(
        _maxpool_kernel,
        out_shape=jax.ShapeDtypeStruct((mp, c), win.dtype),
        grid=(mp // tm,),
        in_specs=[pl.BlockSpec((kk, tm, c), lambda i: (0, i, 0))],
        out_specs=pl.BlockSpec((tm, c), lambda i: (i, 0)),
        compiler_params=pltpu.CompilerParams(
            dimension_semantics=("parallel",)),
    )(win)
    return out[:m]


def log_softmax_pallas(x):
    b, n = x.shape
    return pl.pallas_call(
        _log_softmax_kernel,
        out_shape=jax.ShapeDtypeStruct((b, n), x.dtype),
        grid=(1,),
        in_specs=[pl.BlockSpec((b, n), lambda i: (0, 0))],
        out_specs=pl.BlockSpec((b, n), lambda i: (0, 0)),
    )(x)


# ----------------------------------------------------------------------------
# JAX glue: patch extraction / pooling-window extraction / adaptive avg pool
# ----------------------------------------------------------------------------
def conv2d_relu(x, wp, bp, cout, k, *, stride, pad):
    """NHWC conv + bias + ReLU; the matmul runs in the Pallas kernel.

    Patch extraction uses lax.conv_general_dilated_patches (single fused XLA
    op, feature ordering (Cin, KH, KW) -> matches the prepared weight layout).
    """
    # TODO(synk): fold the patch gather into the matmul kernel via manual DMA
    # to avoid materializing the patches tensor entirely.
    n = x.shape[0]
    patches = jax.lax.conv_general_dilated_patches(
        x,
        filter_shape=(k, k),
        window_strides=(stride, stride),
        padding=((pad, pad), (pad, pad)),
        dimension_numbers=("NHWC", "HWIO", "NHWC"))
    _, oh, ow, kfeat = patches.shape
    out = matmul_bias_act(patches.reshape(n * oh * ow, kfeat), wp, bp, cout,
                          apply_relu=True)
    return out.reshape(n, oh, ow, cout)


def maxpool2d(x, k, s):
    n, h, w, c = x.shape
    oh = (h - k) // s + 1
    ow = (w - k) // s + 1
    wins = []
    for i in range(k):
        for j in range(k):
            wins.append(x[:, i:i + s * (oh - 1) + 1:s,
                          j:j + s * (ow - 1) + 1:s, :].reshape(n * oh * ow, c))
    win = jnp.stack(wins, axis=0)                  # (k*k, N*OH*OW, C) -- small
    out = maxpool_windows_pallas(win)
    return out.reshape(n, oh, ow, c)


def adaptive_avg_pool(x, out_h, out_w):
    # PyTorch AdaptiveAvgPool2d semantics; trivial (1x1 -> 6x6 broadcast) at
    # the small spatial size used here, so kept as plain-JAX glue.
    n, h, w, c = x.shape
    rows = []
    for i in range(out_h):
        h0 = (i * h) // out_h
        h1 = -(-((i + 1) * h) // out_h)
        cols = []
        for j in range(out_w):
            w0 = (j * w) // out_w
            w1 = -(-((j + 1) * w) // out_w)
            cols.append(jnp.mean(x[:, h0:h1, w0:w1, :], axis=(1, 2)))
        rows.append(jnp.stack(cols, axis=1))
    return jnp.stack(rows, axis=1)                 # (N, out_h, out_w, C)


# ----------------------------------------------------------------------------
# Model definition / parameters
# ----------------------------------------------------------------------------
_N_START = 64
_C1, _C2 = _N_START, _N_START * 3
_C3 = _N_START * 3 * 2
_C4 = int(_N_START * 3 * 2 * (2 / 3))
_C5 = _C4
# (name, cout, cin, k, stride, pad, pool)
_CONV_LAYERS = [
    ("c1", _C1, 3, 11, 4, 2, (3, 2)),
    ("c2", _C2, _C1, 5, 1, 2, (3, 2)),
    ("c3", _C3, _C2, 3, 1, 1, None),
    ("c4", _C4, _C3, 3, 1, 1, None),
    ("c5", _C5, _C4, 3, 1, 1, (3, 2)),
]
_FC1_IN = _C5 * 6 * 6   # 9216


def init_params(key, n_classes):
    """Deterministic PyTorch-style uniform(-1/sqrt(fan_in), ...) params."""
    fc_cfgs = [(4096, _FC1_IN), (4096, 4096), (n_classes, 4096)]
    params = {}
    keys = jax.random.split(key, 2 * (len(_CONV_LAYERS) + len(fc_cfgs)))
    ki = 0
    for (name, cout, cin, k, _, _, _) in _CONV_LAYERS:
        bound = 1.0 / math.sqrt(cin * k * k)
        params[f"{name}_w"] = jax.random.uniform(
            keys[ki], (cout, cin, k, k), jnp.float32, -bound, bound)
        params[f"{name}_b"] = jax.random.uniform(
            keys[ki + 1], (cout,), jnp.float32, -bound, bound)
        ki += 2
    for li, (out_f, in_f) in enumerate(fc_cfgs, start=1):
        bound = 1.0 / math.sqrt(in_f)
        params[f"fc{li}_w"] = jax.random.uniform(
            keys[ki], (out_f, in_f), jnp.float32, -bound, bound)
        params[f"fc{li}_b"] = jax.random.uniform(
            keys[ki + 1], (out_f,), jnp.float32, -bound, bound)
        ki += 2
    return params


def prepare_params(params):
    """One-time (outside jit) conversion to padded bf16 matmul operands."""
    prep = {}
    for (name, cout, cin, k, _, _, _) in _CONV_LAYERS:
        w = params[f"{name}_w"]                    # (cout, cin, kh, kw) OIHW
        # Match conv_general_dilated_patches feature ordering (Cin, KH, KW).
        wmat = jnp.transpose(w, (1, 2, 3, 0)).reshape(cin * k * k, cout)
        prep[name] = prepare_matmul_operand(wmat, params[f"{name}_b"])
    for li in range(1, 4):
        w = params[f"fc{li}_w"]                    # torch (out, in)
        prep[f"fc{li}"] = prepare_matmul_operand(w.T, params[f"fc{li}_b"])
    return prep


# ----------------------------------------------------------------------------
# Full forward pass
# ----------------------------------------------------------------------------
def net_conv_forward(x_nchw, prep, n_classes):
    x = jnp.transpose(x_nchw, (0, 2, 3, 1))        # NCHW -> NHWC

    for (name, cout, _, k, s, p, pool) in _CONV_LAYERS:
        wp, bp = prep[name]
        x = conv2d_relu(x, wp, bp, cout, k, stride=s, pad=p)
        if pool is not None:
            x = maxpool2d(x, pool[0], pool[1])

    x = adaptive_avg_pool(x, 6, 6)                 # (N, 6, 6, 256)
    # match torch x.view(N, -1) on NCHW (flatten order = C, H, W)
    x = jnp.transpose(x, (0, 3, 1, 2)).reshape(x.shape[0], -1)

    # classifier; Dropout(0.25) is identity at inference time
    wp, bp = prep["fc1"]
    x = matmul_bias_act(x, wp, bp, 4096, apply_relu=True)
    wp, bp = prep["fc2"]
    x = matmul_bias_act(x, wp, bp, 4096, apply_relu=True)
    wp, bp = prep["fc3"]
    x = matmul_bias_act(x, wp, bp, n_classes, apply_relu=False)

    return log_softmax_pallas(x)                   # (N, n_classes)


# ----------------------------------------------------------------------------
if __name__ == "__main__":
    n_classes = 10
    batch = 2
    key = jax.random.PRNGKey(0)
    k_params, k_x = jax.random.split(key)

    params = init_params(k_params, n_classes)
    prep = prepare_params(params)                  # padded bf16 weights, once
    x = jax.random.normal(k_x, (batch, 3, 64, 64), jnp.float32)  # NCHW input

    fwd = jax.jit(functools.partial(net_conv_forward, n_classes=n_classes))
    out = fwd(x, prep)
    out = jax.block_until_ready(out)

    assert out.shape == (batch, n_classes)
    print("KERNEL_OK")
</pallas_src>

<mosaic_0001>
module attributes {stable_mosaic.version = 11 : i64} {
  func.func @_matmul_bias_act_kernel(%arg0: i32, %arg1: i32, %arg2: i32, %arg3: memref<256x512xbf16, #tpu.memory_space<vmem>>, %arg4: memref<512x128xbf16, #tpu.memory_space<vmem>>, %arg5: memref<1x128xf32, #tpu.memory_space<vmem>>, %arg6: memref<256x128xf32, #tpu.memory_space<vmem>>) attributes {dimension_semantics = [#tpu.dimension_semantics<parallel>, #tpu.dimension_semantics<parallel>, #tpu.dimension_semantics<arbitrary>], iteration_bounds = array<i64: 2, 1, 1>, scalar_prefetch = 0 : i64, scratch_operands = 0 : i64, tpu.core_type = #tpu.core_type<tc>, window_params = [{transform_indices = @transform_0, window_bounds = array<i64: 256, 512>}, {transform_indices = @transform_1, window_bounds = array<i64: 512, 128>}, {transform_indices = @transform_2, window_bounds = array<i64: 1, 128>}, {transform_indices = @transform_3, window_bounds = array<i64: 256, 128>}]} {
    %c0_i32 = arith.constant 0 : i32
    %0 = arith.cmpi eq, %arg2, %c0_i32 : i32
    %1 = arith.extui %0 : i1 to i32
    %c0_i32_0 = arith.constant 0 : i32
    %2 = arith.cmpi ne, %1, %c0_i32_0 : i32
    scf.if %2 {
      %cst_10 = arith.constant 0.000000e+00 : f32
      %12 = vector.broadcast %cst_10 : f32 to vector<256x128xf32>
      %c0_11 = arith.constant 0 : index
      %c0_12 = arith.constant 0 : index
      %13 = vector.load %arg6[%c0_11, %c0_12] : memref<256x128xf32, #tpu.memory_space<vmem>>, vector<256x128xf32>
      tpu.vector_store %arg6[%c0_11, %c0_12], %12 {strides = array<i32>} : memref<256x128xf32, #tpu.memory_space<vmem>>, vector<256x128xf32>,
    } else {
    }
    %c0 = arith.constant 0 : index
    %c0_1 = arith.constant 0 : index
    %3 = vector.load %arg6[%c0, %c0_1] : memref<256x128xf32, #tpu.memory_space<vmem>>, vector<256x128xf32>
    %c0_2 = arith.constant 0 : index
    %c0_3 = arith.constant 0 : index
    %4 = vector.load %arg3[%c0_2, %c0_3] : memref<256x512xbf16, #tpu.memory_space<vmem>>, vector<256x512xbf16>
    %c0_4 = arith.constant 0 : index
    %c0_5 = arith.constant 0 : index
    %5 = vector.load %arg4[%c0_4, %c0_5] : memref<512x128xbf16, #tpu.memory_space<vmem>>, vector<512x128xbf16>
    %cst = arith.constant dense<0.000000e+00> : vector<256x128xf32>
    %6 = tpu.matmul %4, %5, %cst {dimension_numbers = #tpu.dot_dimension_numbers<[1], [0], [0], [1], [0, 0, 1, 1], [], []>} : vector<256x512xbf16>, vector<512x128xbf16>, vector<256x128xf32> -> vector<256x128xf32>
    %7 = arith.addf %3, %6 : vector<256x128xf32>
    %c0_6 = arith.constant 0 : index
    %c0_7 = arith.constant 0 : index
    %8 = vector.load %arg6[%c0_6, %c0_7] : memref<256x128xf32, #tpu.memory_space<vmem>>, vector<256x128xf32>
    tpu.vector_store %arg6[%c0_6, %c0_7], %7 {strides = array<i32>} : memref<256x128xf32, #tpu.memory_space<vmem>>, vector<256x128xf32>,
    %c0_i32_8 = arith.constant 0 : i32
    %9 = arith.cmpi eq, %arg2, %c0_i32_8 : i32
    %10 = arith.extui %9 : i1 to i32
    %c0_i32_9 = arith.constant 0 : i32
    %11 = arith.cmpi ne, %10, %c0_i32_9 : i32
    scf.if %11 {
      %c0_10 = arith.constant 0 : index
      %c0_11 = arith.constant 0 : index
      %12 = vector.load %arg6[%c0_10, %c0_11] : memref<256x128xf32, #tpu.memory_space<vmem>>, vector<256x128xf32>
      %c0_12 = arith.constant 0 : index
      %c0_13 = arith.constant 0 : index
      %13 = vector.load %arg5[%c0_12, %c0_13] : memref<1x128xf32, #tpu.memory_space<vmem>>, vector<1x128xf32>
      %14 = vector.broadcast %13 : vector<1x128xf32> to vector<256x128xf32>
      %15 = arith.addf %12, %14 : vector<256x128xf32>
      %cst_14 = arith.constant 0.000000e+00 : f32
      %16 = vector.broadcast %cst_14 : f32 to vector<256x128xf32>
      %17 = arith.maximumf %15, %16 : vector<256x128xf32>
      %c0_15 = arith.constant 0 : index
      %c0_16 = arith.constant 0 : index
      %18 = vector.load %arg6[%c0_15, %c0_16] : memref<256x128xf32, #tpu.memory_space<vmem>>, vector<256x128xf32>
      tpu.vector_store %arg6[%c0_15, %c0_16], %17 {strides = array<i32>} : memref<256x128xf32, #tpu.memory_space<vmem>>, vector<256x128xf32>,
    } else {
    }
    return
  }
  func.func @transform_0(%arg0: i32, %arg1: i32, %arg2: i32) -> (i32, i32) {
    %c0_i32 = arith.constant 0 : i32
    return %arg0, %arg2 : i32, i32
  }
  func.func @transform_1(%arg0: i32, %arg1: i32, %arg2: i32) -> (i32, i32) {
    %c0_i32 = arith.constant 0 : i32
    return %arg2, %arg1 : i32, i32
  }
  func.func @transform_2(%arg0: i32, %arg1: i32, %arg2: i32) -> (i32, i32) {
    %c0_i32 = arith.constant 0 : i32
    %c0_i32_0 = arith.constant 0 : i32
    return %c0_i32, %arg1 : i32, i32
  }
  func.func @transform_3(%arg0: i32, %arg1: i32, %arg2: i32) -> (i32, i32) {
    %c0_i32 = arith.constant 0 : i32
    return %arg0, %arg1 : i32, i32
  }
}

module attributes {stable_mosaic.version = 11 : i64} {
  func.func @_maxpool_kernel(%arg0: i32, %arg1: memref<9x104x64xf32, #tpu.memory_space<vmem>>, %arg2: memref<104x64xf32, #tpu.memory_space<vmem>>) attributes {dimension_semantics = [#tpu.dimension_semantics<parallel>], iteration_bounds = array<i64: 1>, scalar_prefetch = 0 : i64, scratch_operands = 0 : i64, tpu.core_type = #tpu.core_type<tc>, window_params = [{transform_indices = @transform_0, window_bounds = array<i64: 9, 104, 64>}, {transform_indices = @transform_1, window_bounds = array<i64: 104, 64>}]} {
    %c0 = arith.constant 0 : index
    %c0_0 = arith.constant 0 : index
    %c0_1 = arith.constant 0 : index
    %0 = vector.load %arg1[%c0, %c0_0, %c0_1] : memref<9x104x64xf32, #tpu.memory_space<vmem>>, vector<9x104x64xf32>
    %cst = arith.constant dense<0xFF800000> : vector<104x64xf32>
    %1 = vector.multi_reduction <maximumf>, %0, %cst [0] : vector<9x104x64xf32> to vector<104x64xf32>
    %c0_2 = arith.constant 0 : index
    %c0_3 = arith.constant 0 : index
    %2 = vector.load %arg2[%c0_2, %c0_3] : memref<104x64xf32, #tpu.memory_space<vmem>>, vector<104x64xf32>
    tpu.vector_store %arg2[%c0_2, %c0_3], %1 {strides = array<i32>} : memref<104x64xf32, #tpu.memory_space<vmem>>, vector<104x64xf32>,
    return
  }
  func.func @transform_0(%arg0: i32) -> (i32, i32, i32) {
    %c0_i32 = arith.constant 0 : i32
    %c0_i32_0 = arith.constant 0 : i32
    %c0_i32_1 = arith.constant 0 : i32
    return %c0_i32, %arg0, %c0_i32_0 : i32, i32, i32
  }
  func.func @transform_1(%arg0: i32) -> (i32, i32) {
    %c0_i32 = arith.constant 0 : i32
    %c0_i32_0 = arith.constant 0 : i32
    return %arg0, %c0_i32 : i32, i32
  }
}

module attributes {stable_mosaic.version = 11 : i64} {
  func.func @_matmul_bias_act_kernel(%arg0: i32, %arg1: i32, %arg2: i32, %arg3: memref<112x1024xbf16, #tpu.memory_space<vmem>>, %arg4: memref<1024x256xbf16, #tpu.memory_space<vmem>>, %arg5: memref<1x256xf32, #tpu.memory_space<vmem>>, %arg6: memref<112x256xf32, #tpu.memory_space<vmem>>) attributes {dimension_semantics = [#tpu.dimension_semantics<parallel>, #tpu.dimension_semantics<parallel>, #tpu.dimension_semantics<arbitrary>], iteration_bounds = array<i64: 1, 1, 2>, scalar_prefetch = 0 : i64, scratch_operands = 0 : i64, tpu.core_type = #tpu.core_type<tc>, window_params = [{transform_indices = @transform_0, window_bounds = array<i64: 112, 1024>}, {transform_indices = @transform_1, window_bounds = array<i64: 1024, 256>}, {transform_indices = @transform_2, window_bounds = array<i64: 1, 256>}, {transform_indices = @transform_3, window_bounds = array<i64: 112, 256>}]} {
    %c0_i32 = arith.constant 0 : i32
    %0 = arith.cmpi eq, %arg2, %c0_i32 : i32
    %1 = arith.extui %0 : i1 to i32
    %c0_i32_0 = arith.constant 0 : i32
    %2 = arith.cmpi ne, %1, %c0_i32_0 : i32
    scf.if %2 {
      %cst_9 = arith.constant 0.000000e+00 : f32
      %12 = vector.broadcast %cst_9 : f32 to vector<112x256xf32>
      %c0_10 = arith.constant 0 : index
      %c0_11 = arith.constant 0 : index
      %13 = vector.load %arg6[%c0_10, %c0_11] : memref<112x256xf32, #tpu.memory_space<vmem>>, vector<112x256xf32>
      tpu.vector_store %arg6[%c0_10, %c0_11], %12 {strides = array<i32>} : memref<112x256xf32, #tpu.memory_space<vmem>>, vector<112x256xf32>,
    } else {
    }
    %c0 = arith.constant 0 : index
    %c0_1 = arith.constant 0 : index
    %3 = vector.load %arg6[%c0, %c0_1] : memref<112x256xf32, #tpu.memory_space<vmem>>, vector<112x256xf32>
    %c0_2 = arith.constant 0 : index
    %c0_3 = arith.constant 0 : index
    %4 = vector.load %arg3[%c0_2, %c0_3] : memref<112x1024xbf16, #tpu.memory_space<vmem>>, vector<112x1024xbf16>
    %c0_4 = arith.constant 0 : index
    %c0_5 = arith.constant 0 : index
    %5 = vector.load %arg4[%c0_4, %c0_5] : memref<1024x256xbf16, #tpu.memory_space<vmem>>, vector<1024x256xbf16>
    %cst = arith.constant dense<0.000000e+00> : vector<112x256xf32>
    %6 = tpu.matmul %4, %5, %cst {dimension_numbers = #tpu.dot_dimension_numbers<[1], [0], [0], [1], [0, 0, 1, 1], [], []>} : vector<112x1024xbf16>, vector<1024x256xbf16>, vector<112x256xf32> -> vector<112x256xf32>
    %7 = arith.addf %3, %6 : vector<112x256xf32>
    %c0_6 = arith.constant 0 : index
    %c0_7 = arith.constant 0 : index
    %8 = vector.load %arg6[%c0_6, %c0_7] : memref<112x256xf32, #tpu.memory_space<vmem>>, vector<112x256xf32>
    tpu.vector_store %arg6[%c0_6, %c0_7], %7 {strides = array<i32>} : memref<112x256xf32, #tpu.memory_space<vmem>>, vector<112x256xf32>,
    %c1_i32 = arith.constant 1 : i32
    %9 = arith.cmpi eq, %arg2, %c1_i32 : i32
    %10 = arith.extui %9 : i1 to i32
    %c0_i32_8 = arith.constant 0 : i32
    %11 = arith.cmpi ne, %10, %c0_i32_8 : i32
    scf.if %11 {
      %c0_9 = arith.constant 0 : index
      %c0_10 = arith.constant 0 : index
      %12 = vector.load %arg6[%c0_9, %c0_10] : memref<112x256xf32, #tpu.memory_space<vmem>>, vector<112x256xf32>
      %c0_11 = arith.constant 0 : index
      %c0_12 = arith.constant 0 : index
      %13 = vector.load %arg5[%c0_11, %c0_12] : memref<1x256xf32, #tpu.memory_space<vmem>>, vector<1x256xf32>
      %14 = vector.broadcast %13 : vector<1x256xf32> to vector<112x256xf32>
      %15 = arith.addf %12, %14 : vector<112x256xf32>
      %cst_13 = arith.constant 0.000000e+00 : f32
      %16 = vector.broadcast %cst_13 : f32 to vector<112x256xf32>
      %17 = arith.maximumf %15, %16 : vector<112x256xf32>
      %c0_14 = arith.constant 0 : index
      %c0_15 = arith.constant 0 : index
      %18 = vector.load %arg6[%c0_14, %c0_15] : memref<112x256xf32, #tpu.memory_space<vmem>>, vector<112x256xf32>
      tpu.vector_store %arg6[%c0_14, %c0_15], %17 {strides = array<i32>} : memref<112x256xf32, #tpu.memory_space<vmem>>, vector<112x256xf32>,
    } else {
    }
    return
  }
  func.func @transform_0(%arg0: i32, %arg1: i32, %arg2: i32) -> (i32, i32) {
    %c0_i32 = arith.constant 0 : i32
    return %arg0, %arg2 : i32, i32
  }
  func.func @transform_1(%arg0: i32, %arg1: i32, %arg2: i32) -> (i32, i32) {
    %c0_i32 = arith.constant 0 : i32
    return %arg2, %arg1 : i32, i32
  }
  func.func @transform_2(%arg0: i32, %arg1: i32, %arg2: i32) -> (i32, i32) {
    %c0_i32 = arith.constant 0 : i32
    %c0_i32_0 = arith.constant 0 : i32
    return %c0_i32, %arg1 : i32, i32
  }
  func.func @transform_3(%arg0: i32, %arg1: i32, %arg2: i32) -> (i32, i32) {
    %c0_i32 = arith.constant 0 : i32
    return %arg0, %arg1 : i32, i32
  }
}

module attributes {stable_mosaic.version = 11 : i64} {
  func.func @_maxpool_kernel(%arg0: i32, %arg1: memref<9x24x192xf32, #tpu.memory_space<vmem>>, %arg2: memref<24x192xf32, #tpu.memory_space<vmem>>) attributes {dimension_semantics = [#tpu.dimension_semantics<parallel>], iteration_bounds = array<i64: 1>, scalar_prefetch = 0 : i64, scratch_operands = 0 : i64, tpu.core_type = #tpu.core_type<tc>, window_params = [{transform_indices = @transform_0, window_bounds = array<i64: 9, 24, 192>}, {transform_indices = @transform_1, window_bounds = array<i64: 24, 192>}]} {
    %c0 = arith.constant 0 : index
    %c0_0 = arith.constant 0 : index
    %c0_1 = arith.constant 0 : index
    %0 = vector.load %arg1[%c0, %c0_0, %c0_1] : memref<9x24x192xf32, #tpu.memory_space<vmem>>, vector<9x24x192xf32>
    %cst = arith.constant dense<0xFF800000> : vector<24x192xf32>
    %1 = vector.multi_reduction <maximumf>, %0, %cst [0] : vector<9x24x192xf32> to vector<24x192xf32>
    %c0_2 = arith.constant 0 : index
    %c0_3 = arith.constant 0 : index
    %2 = vector.load %arg2[%c0_2, %c0_3] : memref<24x192xf32, #tpu.memory_space<vmem>>, vector<24x192xf32>
    tpu.vector_store %arg2[%c0_2, %c0_3], %1 {strides = array<i32>} : memref<24x192xf32, #tpu.memory_space<vmem>>, vector<24x192xf32>,
    return
  }
  func.func @transform_0(%arg0: i32) -> (i32, i32, i32) {
    %c0_i32 = arith.constant 0 : i32
    %c0_i32_0 = arith.constant 0 : i32
    %c0_i32_1 = arith.constant 0 : i32
    return %c0_i32, %arg0, %c0_i32_0 : i32, i32, i32
  }
  func.func @transform_1(%arg0: i32) -> (i32, i32) {
    %c0_i32 = arith.constant 0 : i32
    %c0_i32_0 = arith.constant 0 : i32
    return %arg0, %c0_i32 : i32, i32
  }
}

module attributes {stable_mosaic.version = 11 : i64} {
  func.func @_matmul_bias_act_kernel(%arg0: i32, %arg1: i32, %arg2: i32, %arg3: memref<32x1024xbf16, #tpu.memory_space<vmem>>, %arg4: memref<1024x384xbf16, #tpu.memory_space<vmem>>, %arg5: memref<1x384xf32, #tpu.memory_space<vmem>>, %arg6: memref<32x384xf32, #tpu.memory_space<vmem>>) attributes {dimension_semantics = [#tpu.dimension_semantics<parallel>, #tpu.dimension_semantics<parallel>, #tpu.dimension_semantics<arbitrary>], iteration_bounds = array<i64: 1, 1, 2>, scalar_prefetch = 0 : i64, scratch_operands = 0 : i64, tpu.core_type = #tpu.core_type<tc>, window_params = [{transform_indices = @transform_0, window_bounds = array<i64: 32, 1024>}, {transform_indices = @transform_1, window_bounds = array<i64: 1024, 384>}, {transform_indices = @transform_2, window_bounds = array<i64: 1, 384>}, {transform_indices = @transform_3, window_bounds = array<i64: 32, 384>}]} {
    %c0_i32 = arith.constant 0 : i32
    %0 = arith.cmpi eq, %arg2, %c0_i32 : i32
    %1 = arith.extui %0 : i1 to i32
    %c0_i32_0 = arith.constant 0 : i32
    %2 = arith.cmpi ne, %1, %c0_i32_0 : i32
    scf.if %2 {
      %cst_9 = arith.constant 0.000000e+00 : f32
      %12 = vector.broadcast %cst_9 : f32 to vector<32x384xf32>
      %c0_10 = arith.constant 0 : index
      %c0_11 = arith.constant 0 : index
      %13 = vector.load %arg6[%c0_10, %c0_11] : memref<32x384xf32, #tpu.memory_space<vmem>>, vector<32x384xf32>
      tpu.vector_store %arg6[%c0_10, %c0_11], %12 {strides = array<i32>} : memref<32x384xf32, #tpu.memory_space<vmem>>, vector<32x384xf32>,
    } else {
    }
    %c0 = arith.constant 0 : index
    %c0_1 = arith.constant 0 : index
    %3 = vector.load %arg6[%c0, %c0_1] : memref<32x384xf32, #tpu.memory_space<vmem>>, vector<32x384xf32>
    %c0_2 = arith.constant 0 : index
    %c0_3 = arith.constant 0 : index
    %4 = vector.load %arg3[%c0_2, %c0_3] : memref<32x1024xbf16, #tpu.memory_space<vmem>>, vector<32x1024xbf16>
    %c0_4 = arith.constant 0 : index
    %c0_5 = arith.constant 0 : index
    %5 = vector.load %arg4[%c0_4, %c0_5] : memref<1024x384xbf16, #tpu.memory_space<vmem>>, vector<1024x384xbf16>
    %cst = arith.constant dense<0.000000e+00> : vector<32x384xf32>
    %6 = tpu.matmul %4, %5, %cst {dimension_numbers = #tpu.dot_dimension_numbers<[1], [0], [0], [1], [0, 0, 1, 1], [], []>} : vector<32x1024xbf16>, vector<1024x384xbf16>, vector<32x384xf32> -> vector<32x384xf32>
    %7 = arith.addf %3, %6 : vector<32x384xf32>
    %c0_6 = arith.constant 0 : index
    %c0_7 = arith.constant 0 : index
    %8 = vector.load %arg6[%c0_6, %c0_7] : memref<32x384xf32, #tpu.memory_space<vmem>>, vector<32x384xf32>
    tpu.vector_store %arg6[%c0_6, %c0_7], %7 {strides = array<i32>} : memref<32x384xf32, #tpu.memory_space<vmem>>, vector<32x384xf32>,
    %c1_i32 = arith.constant 1 : i32
    %9 = arith.cmpi eq, %arg2, %c1_i32 : i32
    %10 = arith.extui %9 : i1 to i32
    %c0_i32_8 = arith.constant 0 : i32
    %11 = arith.cmpi ne, %10, %c0_i32_8 : i32
    scf.if %11 {
      %c0_9 = arith.constant 0 : index
      %c0_10 = arith.constant 0 : index
      %12 = vector.load %arg6[%c0_9, %c0_10] : memref<32x384xf32, #tpu.memory_space<vmem>>, vector<32x384xf32>
      %c0_11 = arith.constant 0 : index
      %c0_12 = arith.constant 0 : index
      %13 = vector.load %arg5[%c0_11, %c0_12] : memref<1x384xf32, #tpu.memory_space<vmem>>, vector<1x384xf32>
      %14 = vector.broadcast %13 : vector<1x384xf32> to vector<32x384xf32>
      %15 = arith.addf %12, %14 : vector<32x384xf32>
      %cst_13 = arith.constant 0.000000e+00 : f32
      %16 = vector.broadcast %cst_13 : f32 to vector<32x384xf32>
      %17 = arith.maximumf %15, %16 : vector<32x384xf32>
      %c0_14 = arith.constant 0 : index
      %c0_15 = arith.constant 0 : index
      %18 = vector.load %arg6[%c0_14, %c0_15] : memref<32x384xf32, #tpu.memory_space<vmem>>, vector<32x384xf32>
      tpu.vector_store %arg6[%c0_14, %c0_15], %17 {strides = array<i32>} : memref<32x384xf32, #tpu.memory_space<vmem>>, vector<32x384xf32>,
    } else {
    }
    return
  }
  func.func @transform_0(%arg0: i32, %arg1: i32, %arg2: i32) -> (i32, i32) {
    %c0_i32 = arith.constant 0 : i32
    return %arg0, %arg2 : i32, i32
  }
  func.func @transform_1(%arg0: i32, %arg1: i32, %arg2: i32) -> (i32, i32) {
    %c0_i32 = arith.constant 0 : i32
    return %arg2, %arg1 : i32, i32
  }
  func.func @transform_2(%arg0: i32, %arg1: i32, %arg2: i32) -> (i32, i32) {
    %c0_i32 = arith.constant 0 : i32
    %c0_i32_0 = arith.constant 0 : i32
    return %c0_i32, %arg1 : i32, i32
  }
  func.func @transform_3(%arg0: i32, %arg1: i32, %arg2: i32) -> (i32, i32) {
    %c0_i32 = arith.constant 0 : i32
    return %arg0, %arg1 : i32, i32
  }
}

module attributes {stable_mosaic.version = 11 : i64} {
  func.func @_matmul_bias_act_kernel(%arg0: i32, %arg1: i32, %arg2: i32, %arg3: memref<32x1024xbf16, #tpu.memory_space<vmem>>, %arg4: memref<1024x256xbf16, #tpu.memory_space<vmem>>, %arg5: memref<1x256xf32, #tpu.memory_space<vmem>>, %arg6: memref<32x256xf32, #tpu.memory_space<vmem>>) attributes {dimension_semantics = [#tpu.dimension_semantics<parallel>, #tpu.dimension_semantics<parallel>, #tpu.dimension_semantics<arbitrary>], iteration_bounds = array<i64: 1, 1, 4>, scalar_prefetch = 0 : i64, scratch_operands = 0 : i64, tpu.core_type = #tpu.core_type<tc>, window_params = [{transform_indices = @transform_0, window_bounds = array<i64: 32, 1024>}, {transform_indices = @transform_1, window_bounds = array<i64: 1024, 256>}, {transform_indices = @transform_2, window_bounds = array<i64: 1, 256>}, {transform_indices = @transform_3, window_bounds = array<i64: 32, 256>}]} {
    %c0_i32 = arith.constant 0 : i32
    %0 = arith.cmpi eq, %arg2, %c0_i32 : i32
    %1 = arith.extui %0 : i1 to i32
    %c0_i32_0 = arith.constant 0 : i32
    %2 = arith.cmpi ne, %1, %c0_i32_0 : i32
    scf.if %2 {
      %cst_9 = arith.constant 0.000000e+00 : f32
      %12 = vector.broadcast %cst_9 : f32 to vector<32x256xf32>
      %c0_10 = arith.constant 0 : index
      %c0_11 = arith.constant 0 : index
      %13 = vector.load %arg6[%c0_10, %c0_11] : memref<32x256xf32, #tpu.memory_space<vmem>>, vector<32x256xf32>
      tpu.vector_store %arg6[%c0_10, %c0_11], %12 {strides = array<i32>} : memref<32x256xf32, #tpu.memory_space<vmem>>, vector<32x256xf32>,
    } else {
    }
    %c0 = arith.constant 0 : index
    %c0_1 = arith.constant 0 : index
    %3 = vector.load %arg6[%c0, %c0_1] : memref<32x256xf32, #tpu.memory_space<vmem>>, vector<32x256xf32>
    %c0_2 = arith.constant 0 : index
    %c0_3 = arith.constant 0 : index
    %4 = vector.load %arg3[%c0_2, %c0_3] : memref<32x1024xbf16, #tpu.memory_space<vmem>>, vector<32x1024xbf16>
    %c0_4 = arith.constant 0 : index
    %c0_5 = arith.constant 0 : index
    %5 = vector.load %arg4[%c0_4, %c0_5] : memref<1024x256xbf16, #tpu.memory_space<vmem>>, vector<1024x256xbf16>
    %cst = arith.constant dense<0.000000e+00> : vector<32x256xf32>
    %6 = tpu.matmul %4, %5, %cst {dimension_numbers = #tpu.dot_dimension_numbers<[1], [0], [0], [1], [0, 0, 1, 1], [], []>} : vector<32x1024xbf16>, vector<1024x256xbf16>, vector<32x256xf32> -> vector<32x256xf32>
    %7 = arith.addf %3, %6 : vector<32x256xf32>
    %c0_6 = arith.constant 0 : index
    %c0_7 = arith.constant 0 : index
    %8 = vector.load %arg6[%c0_6, %c0_7] : memref<32x256xf32, #tpu.memory_space<vmem>>, vector<32x256xf32>
    tpu.vector_store %arg6[%c0_6, %c0_7], %7 {strides = array<i32>} : memref<32x256xf32, #tpu.memory_space<vmem>>, vector<32x256xf32>,
    %c3_i32 = arith.constant 3 : i32
    %9 = arith.cmpi eq, %arg2, %c3_i32 : i32
    %10 = arith.extui %9 : i1 to i32
    %c0_i32_8 = arith.constant 0 : i32
    %11 = arith.cmpi ne, %10, %c0_i32_8 : i32
    scf.if %11 {
      %c0_9 = arith.constant 0 : index
      %c0_10 = arith.constant 0 : index
      %12 = vector.load %arg6[%c0_9, %c0_10] : memref<32x256xf32, #tpu.memory_space<vmem>>, vector<32x256xf32>
      %c0_11 = arith.constant 0 : index
      %c0_12 = arith.constant 0 : index
      %13 = vector.load %arg5[%c0_11, %c0_12] : memref<1x256xf32, #tpu.memory_space<vmem>>, vector<1x256xf32>
      %14 = vector.broadcast %13 : vector<1x256xf32> to vector<32x256xf32>
      %15 = arith.addf %12, %14 : vector<32x256xf32>
      %cst_13 = arith.constant 0.000000e+00 : f32
      %16 = vector.broadcast %cst_13 : f32 to vector<32x256xf32>
      %17 = arith.maximumf %15, %16 : vector<32x256xf32>
      %c0_14 = arith.constant 0 : index
      %c0_15 = arith.constant 0 : index
      %18 = vector.load %arg6[%c0_14, %c0_15] : memref<32x256xf32, #tpu.memory_space<vmem>>, vector<32x256xf32>
      tpu.vector_store %arg6[%c0_14, %c0_15], %17 {strides = array<i32>} : memref<32x256xf32, #tpu.memory_space<vmem>>, vector<32x256xf32>,
    } else {
    }
    return
  }
  func.func @transform_0(%arg0: i32, %arg1: i32, %arg2: i32) -> (i32, i32) {
    %c0_i32 = arith.constant 0 : i32
    return %arg0, %arg2 : i32, i32
  }
  func.func @transform_1(%arg0: i32, %arg1: i32, %arg2: i32) -> (i32, i32) {
    %c0_i32 = arith.constant 0 : i32
    return %arg2, %arg1 : i32, i32
  }
  func.func @transform_2(%arg0: i32, %arg1: i32, %arg2: i32) -> (i32, i32) {
    %c0_i32 = arith.constant 0 : i32
    %c0_i32_0 = arith.constant 0 : i32
    return %c0_i32, %arg1 : i32, i32
  }
  func.func @transform_3(%arg0: i32, %arg1: i32, %arg2: i32) -> (i32, i32) {
    %c0_i32 = arith.constant 0 : i32
    return %arg0, %arg1 : i32, i32
  }
}

module attributes {stable_mosaic.version = 11 : i64} {
  func.func @_matmul_bias_act_kernel(%arg0: i32, %arg1: i32, %arg2: i32, %arg3: memref<32x1024xbf16, #tpu.memory_space<vmem>>, %arg4: memref<1024x256xbf16, #tpu.memory_space<vmem>>, %arg5: memref<1x256xf32, #tpu.memory_space<vmem>>, %arg6: memref<32x256xf32, #tpu.memory_space<vmem>>) attributes {dimension_semantics = [#tpu.dimension_semantics<parallel>, #tpu.dimension_semantics<parallel>, #tpu.dimension_semantics<arbitrary>], iteration_bounds = array<i64: 1, 1, 3>, scalar_prefetch = 0 : i64, scratch_operands = 0 : i64, tpu.core_type = #tpu.core_type<tc>, window_params = [{transform_indices = @transform_0, window_bounds = array<i64: 32, 1024>}, {transform_indices = @transform_1, window_bounds = array<i64: 1024, 256>}, {transform_indices = @transform_2, window_bounds = array<i64: 1, 256>}, {transform_indices = @transform_3, window_bounds = array<i64: 32, 256>}]} {
    %c0_i32 = arith.constant 0 : i32
    %0 = arith.cmpi eq, %arg2, %c0_i32 : i32
    %1 = arith.extui %0 : i1 to i32
    %c0_i32_0 = arith.constant 0 : i32
    %2 = arith.cmpi ne, %1, %c0_i32_0 : i32
    scf.if %2 {
      %cst_9 = arith.constant 0.000000e+00 : f32
      %12 = vector.broadcast %cst_9 : f32 to vector<32x256xf32>
      %c0_10 = arith.constant 0 : index
      %c0_11 = arith.constant 0 : index
      %13 = vector.load %arg6[%c0_10, %c0_11] : memref<32x256xf32, #tpu.memory_space<vmem>>, vector<32x256xf32>
      tpu.vector_store %arg6[%c0_10, %c0_11], %12 {strides = array<i32>} : memref<32x256xf32, #tpu.memory_space<vmem>>, vector<32x256xf32>,
    } else {
    }
    %c0 = arith.constant 0 : index
    %c0_1 = arith.constant 0 : index
    %3 = vector.load %arg6[%c0, %c0_1] : memref<32x256xf32, #tpu.memory_space<vmem>>, vector<32x256xf32>
    %c0_2 = arith.constant 0 : index
    %c0_3 = arith.constant 0 : index
    %4 = vector.load %arg3[%c0_2, %c0_3] : memref<32x1024xbf16, #tpu.memory_space<vmem>>, vector<32x1024xbf16>
    %c0_4 = arith.constant 0 : index
    %c0_5 = arith.constant 0 : index
    %5 = vector.load %arg4[%c0_4, %c0_5] : memref<1024x256xbf16, #tpu.memory_space<vmem>>, vector<1024x256xbf16>
    %cst = arith.constant dense<0.000000e+00> : vector<32x256xf32>
    %6 = tpu.matmul %4, %5, %cst {dimension_numbers = #tpu.dot_dimension_numbers<[1], [0], [0], [1], [0, 0, 1, 1], [], []>} : vector<32x1024xbf16>, vector<1024x256xbf16>, vector<32x256xf32> -> vector<32x256xf32>
    %7 = arith.addf %3, %6 : vector<32x256xf32>
    %c0_6 = arith.constant 0 : index
    %c0_7 = arith.constant 0 : index
    %8 = vector.load %arg6[%c0_6, %c0_7] : memref<32x256xf32, #tpu.memory_space<vmem>>, vector<32x256xf32>
    tpu.vector_store %arg6[%c0_6, %c0_7], %7 {strides = array<i32>} : memref<32x256xf32, #tpu.memory_space<vmem>>, vector<32x256xf32>,
    %c2_i32 = arith.constant 2 : i32
    %9 = arith.cmpi eq, %arg2, %c2_i32 : i32
    %10 = arith.extui %9 : i1 to i32
    %c0_i32_8 = arith.constant 0 : i32
    %11 = arith.cmpi ne, %10, %c0_i32_8 : i32
    scf.if %11 {
      %c0_9 = arith.constant 0 : index
      %c0_10 = arith.constant 0 : index
      %12 = vector.load %arg6[%c0_9, %c0_10] : memref<32x256xf32, #tpu.memory_space<vmem>>, vector<32x256xf32>
      %c0_11 = arith.constant 0 : index
      %c0_12 = arith.constant 0 : index
      %13 = vector.load %arg5[%c0_11, %c0_12] : memref<1x256xf32, #tpu.memory_space<vmem>>, vector<1x256xf32>
      %14 = vector.broadcast %13 : vector<1x256xf32> to vector<32x256xf32>
      %15 = arith.addf %12, %14 : vector<32x256xf32>
      %cst_13 = arith.constant 0.000000e+00 : f32
      %16 = vector.broadcast %cst_13 : f32 to vector<32x256xf32>
      %17 = arith.maximumf %15, %16 : vector<32x256xf32>
      %c0_14 = arith.constant 0 : index
      %c0_15 = arith.constant 0 : index
      %18 = vector.load %arg6[%c0_14, %c0_15] : memref<32x256xf32, #tpu.memory_space<vmem>>, vector<32x256xf32>
      tpu.vector_store %arg6[%c0_14, %c0_15], %17 {strides = array<i32>} : memref<32x256xf32, #tpu.memory_space<vmem>>, vector<32x256xf32>,
    } else {
    }
    return
  }
  func.func @transform_0(%arg0: i32, %arg1: i32, %arg2: i32) -> (i32, i32) {
    %c0_i32 = arith.constant 0 : i32
    return %arg0, %arg2 : i32, i32
  }
  func.func @transform_1(%arg0: i32, %arg1: i32, %arg2: i32) -> (i32, i32) {
    %c0_i32 = arith.constant 0 : i32
    return %arg2, %arg1 : i32, i32
  }
  func.func @transform_2(%arg0: i32, %arg1: i32, %arg2: i32) -> (i32, i32) {
    %c0_i32 = arith.constant 0 : i32
    %c0_i32_0 = arith.constant 0 : i32
    return %c0_i32, %arg1 : i32, i32
  }
  func.func @transform_3(%arg0: i32, %arg1: i32, %arg2: i32) -> (i32, i32) {
    %c0_i32 = arith.constant 0 : i32
    return %arg0, %arg1 : i32, i32
  }
}

module attributes {stable_mosaic.version = 11 : i64} {
  func.func @_maxpool_kernel(%arg0: i32, %arg1: memref<9x8x256xf32, #tpu.memory_space<vmem>>, %arg2: memref<8x256xf32, #tpu.memory_space<vmem>>) attributes {dimension_semantics = [#tpu.dimension_semantics<parallel>], iteration_bounds = array<i64: 1>, scalar_prefetch = 0 : i64, scratch_operands = 0 : i64, tpu.core_type = #tpu.core_type<tc>, window_params = [{transform_indices = @transform_0, window_bounds = array<i64: 9, 8, 256>}, {transform_indices = @transform_1, window_bounds = array<i64: 8, 256>}]} {
    %c0 = arith.constant 0 : index
    %c0_0 = arith.constant 0 : index
    %c0_1 = arith.constant 0 : index
    %0 = vector.load %arg1[%c0, %c0_0, %c0_1] : memref<9x8x256xf32, #tpu.memory_space<vmem>>, vector<9x8x256xf32>
    %cst = arith.constant dense<0xFF800000> : vector<8x256xf32>
    %1 = vector.multi_reduction <maximumf>, %0, %cst [0] : vector<9x8x256xf32> to vector<8x256xf32>
    %c0_2 = arith.constant 0 : index
    %c0_3 = arith.constant 0 : index
    %2 = vector.load %arg2[%c0_2, %c0_3] : memref<8x256xf32, #tpu.memory_space<vmem>>, vector<8x256xf32>
    tpu.vector_store %arg2[%c0_2, %c0_3], %1 {strides = array<i32>} : memref<8x256xf32, #tpu.memory_space<vmem>>, vector<8x256xf32>,
    return
  }
  func.func @transform_0(%arg0: i32) -> (i32, i32, i32) {
    %c0_i32 = arith.constant 0 : i32
    %c0_i32_0 = arith.constant 0 : i32
    %c0_i32_1 = arith.constant 0 : i32
    return %c0_i32, %arg0, %c0_i32_0 : i32, i32, i32
  }
  func.func @transform_1(%arg0: i32) -> (i32, i32) {
    %c0_i32 = arith.constant 0 : i32
    %c0_i32_0 = arith.constant 0 : i32
    return %arg0, %c0_i32 : i32, i32
  }
}

module attributes {stable_mosaic.version = 11 : i64} {
  func.func @_matmul_bias_act_kernel(%arg0: i32, %arg1: i32, %arg2: i32, %arg3: memref<16x1024xbf16, #tpu.memory_space<vmem>>, %arg4: memref<1024x512xbf16, #tpu.memory_space<vmem>>, %arg5: memref<1x512xf32, #tpu.memory_space<vmem>>, %arg6: memref<16x512xf32, #tpu.memory_space<vmem>>) attributes {dimension_semantics = [#tpu.dimension_semantics<parallel>, #tpu.dimension_semantics<parallel>, #tpu.dimension_semantics<arbitrary>], iteration_bounds = array<i64: 1, 8, 9>, scalar_prefetch = 0 : i64, scratch_operands = 0 : i64, tpu.core_type = #tpu.core_type<tc>, window_params = [{transform_indices = @transform_0, window_bounds = array<i64: 16, 1024>}, {transform_indices = @transform_1, window_bounds = array<i64: 1024, 512>}, {transform_indices = @transform_2, window_bounds = array<i64: 1, 512>}, {transform_indices = @transform_3, window_bounds = array<i64: 16, 512>}]} {
    %c0_i32 = arith.constant 0 : i32
    %0 = arith.cmpi eq, %arg2, %c0_i32 : i32
    %1 = arith.extui %0 : i1 to i32
    %c0_i32_0 = arith.constant 0 : i32
    %2 = arith.cmpi ne, %1, %c0_i32_0 : i32
    scf.if %2 {
      %cst_9 = arith.constant 0.000000e+00 : f32
      %12 = vector.broadcast %cst_9 : f32 to vector<16x512xf32>
      %c0_10 = arith.constant 0 : index
      %c0_11 = arith.constant 0 : index
      %13 = vector.load %arg6[%c0_10, %c0_11] : memref<16x512xf32, #tpu.memory_space<vmem>>, vector<16x512xf32>
      tpu.vector_store %arg6[%c0_10, %c0_11], %12 {strides = array<i32>} : memref<16x512xf32, #tpu.memory_space<vmem>>, vector<16x512xf32>,
    } else {
    }
    %c0 = arith.constant 0 : index
    %c0_1 = arith.constant 0 : index
    %3 = vector.load %arg6[%c0, %c0_1] : memref<16x512xf32, #tpu.memory_space<vmem>>, vector<16x512xf32>
    %c0_2 = arith.constant 0 : index
    %c0_3 = arith.constant 0 : index
    %4 = vector.load %arg3[%c0_2, %c0_3] : memref<16x1024xbf16, #tpu.memory_space<vmem>>, vector<16x1024xbf16>
    %c0_4 = arith.constant 0 : index
    %c0_5 = arith.constant 0 : index
    %5 = vector.load %arg4[%c0_4, %c0_5] : memref<1024x512xbf16, #tpu.memory_space<vmem>>, vector<1024x512xbf16>
    %cst = arith.constant dense<0.000000e+00> : vector<16x512xf32>
    %6 = tpu.matmul %4, %5, %cst {dimension_numbers = #tpu.dot_dimension_numbers<[1], [0], [0], [1], [0, 0, 1, 1], [], []>} : vector<16x1024xbf16>, vector<1024x512xbf16>, vector<16x512xf32> -> vector<16x512xf32>
    %7 = arith.addf %3, %6 : vector<16x512xf32>
    %c0_6 = arith.constant 0 : index
    %c0_7 = arith.constant 0 : index
    %8 = vector.load %arg6[%c0_6, %c0_7] : memref<16x512xf32, #tpu.memory_space<vmem>>, vector<16x512xf32>
    tpu.vector_store %arg6[%c0_6, %c0_7], %7 {strides = array<i32>} : memref<16x512xf32, #tpu.memory_space<vmem>>, vector<16x512xf32>,
    %c8_i32 = arith.constant 8 : i32
    %9 = arith.cmpi eq, %arg2, %c8_i32 : i32
    %10 = arith.extui %9 : i1 to i32
    %c0_i32_8 = arith.constant 0 : i32
    %11 = arith.cmpi ne, %10, %c0_i32_8 : i32
    scf.if %11 {
      %c0_9 = arith.constant 0 : index
      %c0_10 = arith.constant 0 : index
      %12 = vector.load %arg6[%c0_9, %c0_10] : memref<16x512xf32, #tpu.memory_space<vmem>>, vector<16x512xf32>
      %c0_11 = arith.constant 0 : index
      %c0_12 = arith.constant 0 : index
      %13 = vector.load %arg5[%c0_11, %c0_12] : memref<1x512xf32, #tpu.memory_space<vmem>>, vector<1x512xf32>
      %14 = vector.broadcast %13 : vector<1x512xf32> to vector<16x512xf32>
      %15 = arith.addf %12, %14 : vector<16x512xf32>
      %cst_13 = arith.constant 0.000000e+00 : f32
      %16 = vector.broadcast %cst_13 : f32 to vector<16x512xf32>
      %17 = arith.maximumf %15, %16 : vector<16x512xf32>
      %c0_14 = arith.constant 0 : index
      %c0_15 = arith.constant 0 : index
      %18 = vector.load %arg6[%c0_14, %c0_15] : memref<16x512xf32, #tpu.memory_space<vmem>>, vector<16x512xf32>
      tpu.vector_store %arg6[%c0_14, %c0_15], %17 {strides = array<i32>} : memref<16x512xf32, #tpu.memory_space<vmem>>, vector<16x512xf32>,
    } else {
    }
    return
  }
  func.func @transform_0(%arg0: i32, %arg1: i32, %arg2: i32) -> (i32, i32) {
    %c0_i32 = arith.constant 0 : i32
    return %arg0, %arg2 : i32, i32
  }
  func.func @transform_1(%arg0: i32, %arg1: i32, %arg2: i32) -> (i32, i32) {
    %c0_i32 = arith.constant 0 : i32
    return %arg2, %arg1 : i32, i32
  }
  func.func @transform_2(%arg0: i32, %arg1: i32, %arg2: i32) -> (i32, i32) {
    %c0_i32 = arith.constant 0 : i32
    %c0_i32_0 = arith.constant 0 : i32
    return %c0_i32, %arg1 : i32, i32
  }
  func.func @transform_3(%arg0: i32, %arg1: i32, %arg2: i32) -> (i32, i32) {
    %c0_i32 = arith.constant 0 : i32
    return %arg0, %arg1 : i32, i32
  }
}

module attributes {stable_mosaic.version = 11 : i64} {
  func.func @_matmul_bias_act_kernel(%arg0: i32, %arg1: i32, %arg2: i32, %arg3: memref<16x1024xbf16, #tpu.memory_space<vmem>>, %arg4: memref<1024x512xbf16, #tpu.memory_space<vmem>>, %arg5: memref<1x512xf32, #tpu.memory_space<vmem>>, %arg6: memref<16x512xf32, #tpu.memory_space<vmem>>) attributes {dimension_semantics = [#tpu.dimension_semantics<parallel>, #tpu.dimension_semantics<parallel>, #tpu.dimension_semantics<arbitrary>], iteration_bounds = array<i64: 1, 8, 4>, scalar_prefetch = 0 : i64, scratch_operands = 0 : i64, tpu.core_type = #tpu.core_type<tc>, window_params = [{transform_indices = @transform_0, window_bounds = array<i64: 16, 1024>}, {transform_indices = @transform_1, window_bounds = array<i64: 1024, 512>}, {transform_indices = @transform_2, window_bounds = array<i64: 1, 512>}, {transform_indices = @transform_3, window_bounds = array<i64: 16, 512>}]} {
    %c0_i32 = arith.constant 0 : i32
    %0 = arith.cmpi eq, %arg2, %c0_i32 : i32
    %1 = arith.extui %0 : i1 to i32
    %c0_i32_0 = arith.constant 0 : i32
    %2 = arith.cmpi ne, %1, %c0_i32_0 : i32
    scf.if %2 {
      %cst_9 = arith.constant 0.000000e+00 : f32
      %12 = vector.broadcast %cst_9 : f32 to vector<16x512xf32>
      %c0_10 = arith.constant 0 : index
      %c0_11 = arith.constant 0 : index
      %13 = vector.load %arg6[%c0_10, %c0_11] : memref<16x512xf32, #tpu.memory_space<vmem>>, vector<16x512xf32>
      tpu.vector_store %arg6[%c0_10, %c0_11], %12 {strides = array<i32>} : memref<16x512xf32, #tpu.memory_space<vmem>>, vector<16x512xf32>,
    } else {
    }
    %c0 = arith.constant 0 : index
    %c0_1 = arith.constant 0 : index
    %3 = vector.load %arg6[%c0, %c0_1] : memref<16x512xf32, #tpu.memory_space<vmem>>, vector<16x512xf32>
    %c0_2 = arith.constant 0 : index
    %c0_3 = arith.constant 0 : index
    %4 = vector.load %arg3[%c0_2, %c0_3] : memref<16x1024xbf16, #tpu.memory_space<vmem>>, vector<16x1024xbf16>
    %c0_4 = arith.constant 0 : index
    %c0_5 = arith.constant 0 : index
    %5 = vector.load %arg4[%c0_4, %c0_5] : memref<1024x512xbf16, #tpu.memory_space<vmem>>, vector<1024x512xbf16>
    %cst = arith.constant dense<0.000000e+00> : vector<16x512xf32>
    %6 = tpu.matmul %4, %5, %cst {dimension_numbers = #tpu.dot_dimension_numbers<[1], [0], [0], [1], [0, 0, 1, 1], [], []>} : vector<16x1024xbf16>, vector<1024x512xbf16>, vector<16x512xf32> -> vector<16x512xf32>
    %7 = arith.addf %3, %6 : vector<16x512xf32>
    %c0_6 = arith.constant 0 : index
    %c0_7 = arith.constant 0 : index
    %8 = vector.load %arg6[%c0_6, %c0_7] : memref<16x512xf32, #tpu.memory_space<vmem>>, vector<16x512xf32>
    tpu.vector_store %arg6[%c0_6, %c0_7], %7 {strides = array<i32>} : memref<16x512xf32, #tpu.memory_space<vmem>>, vector<16x512xf32>,
    %c3_i32 = arith.constant 3 : i32
    %9 = arith.cmpi eq, %arg2, %c3_i32 : i32
    %10 = arith.extui %9 : i1 to i32
    %c0_i32_8 = arith.constant 0 : i32
    %11 = arith.cmpi ne, %10, %c0_i32_8 : i32
    scf.if %11 {
      %c0_9 = arith.constant 0 : index
      %c0_10 = arith.constant 0 : index
      %12 = vector.load %arg6[%c0_9, %c0_10] : memref<16x512xf32, #tpu.memory_space<vmem>>, vector<16x512xf32>
      %c0_11 = arith.constant 0 : index
      %c0_12 = arith.constant 0 : index
      %13 = vector.load %arg5[%c0_11, %c0_12] : memref<1x512xf32, #tpu.memory_space<vmem>>, vector<1x512xf32>
      %14 = vector.broadcast %13 : vector<1x512xf32> to vector<16x512xf32>
      %15 = arith.addf %12, %14 : vector<16x512xf32>
      %cst_13 = arith.constant 0.000000e+00 : f32
      %16 = vector.broadcast %cst_13 : f32 to vector<16x512xf32>
      %17 = arith.maximumf %15, %16 : vector<16x512xf32>
      %c0_14 = arith.constant 0 : index
      %c0_15 = arith.constant 0 : index
      %18 = vector.load %arg6[%c0_14, %c0_15] : memref<16x512xf32, #tpu.memory_space<vmem>>, vector<16x512xf32>
      tpu.vector_store %arg6[%c0_14, %c0_15], %17 {strides = array<i32>} : memref<16x512xf32, #tpu.memory_space<vmem>>, vector<16x512xf32>,
    } else {
    }
    return
  }
  func.func @transform_0(%arg0: i32, %arg1: i32, %arg2: i32) -> (i32, i32) {
    %c0_i32 = arith.constant 0 : i32
    return %arg0, %arg2 : i32, i32
  }
  func.func @transform_1(%arg0: i32, %arg1: i32, %arg2: i32) -> (i32, i32) {
    %c0_i32 = arith.constant 0 : i32
    return %arg2, %arg1 : i32, i32
  }
  func.func @transform_2(%arg0: i32, %arg1: i32, %arg2: i32) -> (i32, i32) {
    %c0_i32 = arith.constant 0 : i32
    %c0_i32_0 = arith.constant 0 : i32
    return %c0_i32, %arg1 : i32, i32
  }
  func.func @transform_3(%arg0: i32, %arg1: i32, %arg2: i32) -> (i32, i32) {
    %c0_i32 = arith.constant 0 : i32
    return %arg0, %arg1 : i32, i32
  }
}

module attributes {stable_mosaic.version = 11 : i64} {
  func.func @_matmul_bias_act_kernel(%arg0: i32, %arg1: i32, %arg2: i32, %arg3: memref<16x1024xbf16, #tpu.memory_space<vmem>>, %arg4: memref<1024x128xbf16, #tpu.memory_space<vmem>>, %arg5: memref<1x128xf32, #tpu.memory_space<vmem>>, %arg6: memref<16x128xf32, #tpu.memory_space<vmem>>) attributes {dimension_semantics = [#tpu.dimension_semantics<parallel>, #tpu.dimension_semantics<parallel>, #tpu.dimension_semantics<arbitrary>], iteration_bounds = array<i64: 1, 1, 4>, scalar_prefetch = 0 : i64, scratch_operands = 0 : i64, tpu.core_type = #tpu.core_type<tc>, window_params = [{transform_indices = @transform_0, window_bounds = array<i64: 16, 1024>}, {transform_indices = @transform_1, window_bounds = array<i64: 1024, 128>}, {transform_indices = @transform_2, window_bounds = array<i64: 1, 128>}, {transform_indices = @transform_3, window_bounds = array<i64: 16, 128>}]} {
    %c0_i32 = arith.constant 0 : i32
    %0 = arith.cmpi eq, %arg2, %c0_i32 : i32
    %1 = arith.extui %0 : i1 to i32
    %c0_i32_0 = arith.constant 0 : i32
    %2 = arith.cmpi ne, %1, %c0_i32_0 : i32
    scf.if %2 {
      %cst_9 = arith.constant 0.000000e+00 : f32
      %12 = vector.broadcast %cst_9 : f32 to vector<16x128xf32>
      %c0_10 = arith.constant 0 : index
      %c0_11 = arith.constant 0 : index
      %13 = vector.load %arg6[%c0_10, %c0_11] : memref<16x128xf32, #tpu.memory_space<vmem>>, vector<16x128xf32>
      tpu.vector_store %arg6[%c0_10, %c0_11], %12 {strides = array<i32>} : memref<16x128xf32, #tpu.memory_space<vmem>>, vector<16x128xf32>,
    } else {
    }
    %c0 = arith.constant 0 : index
    %c0_1 = arith.constant 0 : index
    %3 = vector.load %arg6[%c0, %c0_1] : memref<16x128xf32, #tpu.memory_space<vmem>>, vector<16x128xf32>
    %c0_2 = arith.constant 0 : index
    %c0_3 = arith.constant 0 : index
    %4 = vector.load %arg3[%c0_2, %c0_3] : memref<16x1024xbf16, #tpu.memory_space<vmem>>, vector<16x1024xbf16>
    %c0_4 = arith.constant 0 : index
    %c0_5 = arith.constant 0 : index
    %5 = vector.load %arg4[%c0_4, %c0_5] : memref<1024x128xbf16, #tpu.memory_space<vmem>>, vector<1024x128xbf16>
    %cst = arith.constant dense<0.000000e+00> : vector<16x128xf32>
    %6 = tpu.matmul %4, %5, %cst {dimension_numbers = #tpu.dot_dimension_numbers<[1], [0], [0], [1], [0, 0, 1, 1], [], []>} : vector<16x1024xbf16>, vector<1024x128xbf16>, vector<16x128xf32> -> vector<16x128xf32>
    %7 = arith.addf %3, %6 : vector<16x128xf32>
    %c0_6 = arith.constant 0 : index
    %c0_7 = arith.constant 0 : index
    %8 = vector.load %arg6[%c0_6, %c0_7] : memref<16x128xf32, #tpu.memory_space<vmem>>, vector<16x128xf32>
    tpu.vector_store %arg6[%c0_6, %c0_7], %7 {strides = array<i32>} : memref<16x128xf32, #tpu.memory_space<vmem>>, vector<16x128xf32>,
    %c3_i32 = arith.constant 3 : i32
    %9 = arith.cmpi eq, %arg2, %c3_i32 : i32
    %10 = arith.extui %9 : i1 to i32
    %c0_i32_8 = arith.constant 0 : i32
    %11 = arith.cmpi ne, %10, %c0_i32_8 : i32
    scf.if %11 {
      %c0_9 = arith.constant 0 : index
      %c0_10 = arith.constant 0 : index
      %12 = vector.load %arg6[%c0_9, %c0_10] : memref<16x128xf32, #tpu.memory_space<vmem>>, vector<16x128xf32>
      %c0_11 = arith.constant 0 : index
      %c0_12 = arith.constant 0 : index
      %13 = vector.load %arg5[%c0_11, %c0_12] : memref<1x128xf32, #tpu.memory_space<vmem>>, vector<1x128xf32>
      %14 = vector.broadcast %13 : vector<1x128xf32> to vector<16x128xf32>
      %15 = arith.addf %12, %14 : vector<16x128xf32>
      %c0_13 = arith.constant 0 : index
      %c0_14 = arith.constant 0 : index
      %16 = vector.load %arg6[%c0_13, %c0_14] : memref<16x128xf32, #tpu.memory_space<vmem>>, vector<16x128xf32>
      tpu.vector_store %arg6[%c0_13, %c0_14], %15 {strides = array<i32>} : memref<16x128xf32, #tpu.memory_space<vmem>>, vector<16x128xf32>,
    } else {
    }
    return
  }
  func.func @transform_0(%arg0: i32, %arg1: i32, %arg2: i32) -> (i32, i32) {
    %c0_i32 = arith.constant 0 : i32
    return %arg0, %arg2 : i32, i32
  }
  func.func @transform_1(%arg0: i32, %arg1: i32, %arg2: i32) -> (i32, i32) {
    %c0_i32 = arith.constant 0 : i32
    return %arg2, %arg1 : i32, i32
  }
  func.func @transform_2(%arg0: i32, %arg1: i32, %arg2: i32) -> (i32, i32) {
    %c0_i32 = arith.constant 0 : i32
    %c0_i32_0 = arith.constant 0 : i32
    return %c0_i32, %arg1 : i32, i32
  }
  func.func @transform_3(%arg0: i32, %arg1: i32, %arg2: i32) -> (i32, i32) {
    %c0_i32 = arith.constant 0 : i32
    return %arg0, %arg1 : i32, i32
  }
}

module attributes {stable_mosaic.version = 11 : i64} {
  func.func @_log_softmax_kernel(%arg0: i32, %arg1: memref<2x10xf32, #tpu.memory_space<vmem>>, %arg2: memref<2x10xf32, #tpu.memory_space<vmem>>) attributes {dimension_semantics = [#tpu.dimension_semantics<arbitrary>], iteration_bounds = array<i64: 1>, scalar_prefetch = 0 : i64, scratch_operands = 0 : i64, tpu.core_type = #tpu.core_type<tc>, window_params = [{pipeline_mode = #tpu.pipeline_mode<synchronous>, transform_indices = @transform_0, window_bounds = array<i64: 2, 10>}, {pipeline_mode = #tpu.pipeline_mode<synchronous>, transform_indices = @transform_1, window_bounds = array<i64: 2, 10>}]} {
    %c0 = arith.constant 0 : index
    %c0_0 = arith.constant 0 : index
    %0 = vector.load %arg1[%c0, %c0_0] : memref<2x10xf32, #tpu.memory_space<vmem>>, vector<2x10xf32>
    %cst = arith.constant dense<0xFF800000> : vector<2xf32>
    %1 = vector.multi_reduction <maximumf>, %0, %cst [1] : vector<2x10xf32> to vector<2xf32>
    %2 = vector.shape_cast %1 : vector<2xf32> to vector<2x1xf32>
    %3 = vector.broadcast %2 : vector<2x1xf32> to vector<2x10xf32>
    %4 = arith.subf %0, %3 : vector<2x10xf32>
    %5 = math.exp %4 : vector<2x10xf32>
    %cst_1 = arith.constant dense<0.000000e+00> : vector<2xf32>
    %6 = vector.multi_reduction <add>, %5, %cst_1 [1] : vector<2x10xf32> to vector<2xf32>
    %7 = vector.shape_cast %6 : vector<2xf32> to vector<2x1xf32>
    %8 = math.log %7 : vector<2x1xf32>
    %9 = vector.broadcast %8 : vector<2x1xf32> to vector<2x10xf32>
    %10 = arith.subf %4, %9 : vector<2x10xf32>
    %c0_2 = arith.constant 0 : index
    %c0_3 = arith.constant 0 : index
    %11 = vector.load %arg2[%c0_2, %c0_3] : memref<2x10xf32, #tpu.memory_space<vmem>>, vector<2x10xf32>
    tpu.vector_store %arg2[%c0_2, %c0_3], %10 {strides = array<i32>} : memref<2x10xf32, #tpu.memory_space<vmem>>, vector<2x10xf32>,
    return
  }
  func.func @transform_0(%arg0: i32) -> (i32, i32) {
    %c0_i32 = arith.constant 0 : i32
    %c0_i32_0 = arith.constant 0 : i32
    %c0_i32_1 = arith.constant 0 : i32
    return %c0_i32, %c0_i32_0 : i32, i32
  }
  func.func @transform_1(%arg0: i32) -> (i32, i32) {
    %c0_i32 = arith.constant 0 : i32
    %c0_i32_0 = arith.constant 0 : i32
    %c0_i32_1 = arith.constant 0 : i32
    return %c0_i32, %c0_i32_0 : i32, i32
  }
}

</mosaic_0001>

<bundles_post_ra>
// kernel: net_conv_forward.12
= control target key start
LH: loop header
LB: loop body
LE: loop exit
PB: predicated region body
PF: predicated region fallthrough
CT: control target
= control target key end

     0   :  { %s2147_s12 = smov 0   ;;  %s2149_s13 = smov 0   ;;  %s2420_s0 = inlined_call_operand.vmem [shape: bf16[512,512], index: 0, kind: input, shape index: {}]   ;;  %s2421_s1 = inlined_call_operand.vmem [shape: bf16[512,128], index: 1, kind: input, shape index: {}]   ;;  %s2422_s2 = inlined_call_operand.vmem [shape: f32[1,128], index: 2, kind: input, shape index: {}]   ;;  %s2423_s3 = inlined_call_operand.vmem [shape: f32[512,128], index: 3, kind: output, shape index: {}]  }
   0x1   :  { %s2151_s14 = smov 0  }
   0x2 LB: > { %s32_s15 = sadd.s32 1, %s2121_s13  ;;  %p1620_p0 = scmp.ge.s32.totalorder %s2125_s14, 1  ;;  %s2125_s14 = sphi %s2151_s14, %s13_s14   ;;  %s2121_s13 = sphi %s2149_s13, %s2425_s13   ;;  %s2117_s12 = sphi %s2147_s12, %s2424_s12  }
   0x3   : > { %p34_p1 = scmp.ge.s32.totalorder %s32_s15, 2  ;;  %p191_p2 = scmp.lt.s32.totalorder %s2125_s14, 3 }
   0x5   : > { %s2427_s15 = smov (%p34_p1, %s32_s15), 0  ;;  %p192_p3 = pnand %p1620_p0, %p191_p2 }
   0x6   : > { %v1975_v0 = vld [vmem:[%s2421_s1 + $0x40] sm:$0xff] (!%p192_p3)   ;;  %v1979_v4 = vld [vmem:[%s2421_s1 + $0x48] sm:$0xff] (!%p192_p3)   ;;  %v1983_v8 = vld [vmem:[%s2421_s1 + $0x50] sm:$0xff] (!%p192_p3)   ;;  %s1621_s25 = sshll.u32 (!%p192_p3), %s2117_s12, 5 }
   0x7   : > { %195 = sbr.rel (%p192_p3) target bundleno = 385 (0x181), region = 32  ;;  %v1976_v1 = vld [vmem:[%s2421_s1 + $0xc0] sm:$0xff] (!%p192_p3)   ;;  %1726 = vmatprep.subr.bf16.mxu0 (!%p192_p3), %v1975_v0  ;;  %v1980_v5 = vld [vmem:[%s2421_s1 + $0xc8] sm:$0xff] (!%p192_p3)   ;;  %v1984_v9 = vld [vmem:[%s2421_s1 + $0xd0] sm:$0xff] (!%p192_p3)   ;;  %p236_p4 = scmp.lt.s32.totalorder (!%p192_p3), %s1621_s25, 63 }
   0x8   : > { %v1977_v2 = vld [vmem:[%s2421_s1] sm:$0xff] (!%p192_p3)   ;;  %1838 = vmatprep.subr.bf16.mxu1 (!%p192_p3), %v1976_v1  ;;  %v1981_v6 = vld [vmem:[%s2421_s1 + $0x8] sm:$0xff] (!%p192_p3)   ;;  %v1985_v10 = vld [vmem:[%s2421_s1 + $0x10] sm:$0xff] (!%p192_p3)  }
   0x9   : > { %v1978_v3 = vld [vmem:[%s2421_s1 + $0x80] sm:$0xff] (!%p192_p3)   ;;  %1727 = vmatpush3.bf16.msra.mxu0 (!%p192_p3), %v1977_v2  ;;  %v1982_v7 = vld [vmem:[%s2421_s1 + $0x88] sm:$0xff] (!%p192_p3)   ;;  %v1986_v11 = vld [vmem:[%s2421_s1 + $0x90] sm:$0xff] (!%p192_p3)  }
   0xa   : > { %1839 = vmatpush3.bf16.msra.mxu1 (!%p192_p3), %v1978_v3  ;;  %1728 = vmatprep.subr.bf16.mxu0 (!%p192_p3), %v1979_v4  ;;  %v1987_v12 = vld [vmem:[%s2421_s1 + $0x58] sm:$0xff] (!%p192_p3)   ;;  %v1991_v16 = vld [vmem:[%s2421_s1 + $0x60] sm:$0xff] (!%p192_p3)   ;;  %v1995_v20 = vld [vmem:[%s2421_s1 + $0x68] sm:$0xff] (!%p192_p3)  }
   0xb   : > { %1840 = vmatprep.subr.bf16.mxu1 (!%p192_p3), %v1980_v5  ;;  %v1988_v13 = vld [vmem:[%s2421_s1 + $0xd8] sm:$0xff] (!%p192_p3)   ;;  %v1992_v17 = vld [vmem:[%s2421_s1 + $0xe0] sm:$0xff] (!%p192_p3)   ;;  %v1996_v21 = vld [vmem:[%s2421_s1 + $0xe8] sm:$0xff] (!%p192_p3)  }
   0xc   : > { %v1989_v14 = vld [vmem:[%s2421_s1 + $0x18] sm:$0xff] (!%p192_p3)   ;;  %v1993_v18 = vld [vmem:[%s2421_s1 + $0x20] sm:$0xff] (!%p192_p3)   ;;  %v1997_v22 = vld [vmem:[%s2421_s1 + $0x28] sm:$0xff] (!%p192_p3)  }
   0xd   : > { %1729 = vmatpush3.bf16.msra.mxu0 (!%p192_p3), %v1981_v6  ;;  %v1990_v15 = vld [vmem:[%s2421_s1 + $0x98] sm:$0xff] (!%p192_p3)   ;;  %v1994_v19 = vld [vmem:[%s2421_s1 + $0xa0] sm:$0xff] (!%p192_p3)   ;;  %v1998_v23 = vld [vmem:[%s2421_s1 + $0xa8] sm:$0xff] (!%p192_p3)  }
   0xe   : > { %1841 = vmatpush3.bf16.msra.mxu1 %v1982_v7  ;;  %1730 = vmatprep.subr.bf16.mxu0 %v1983_v8  ;;  %s2429_s25 = smov (!%p236_p4, %s1621_s25), 63  ;;  %v1999_v24 = vld [vmem:[%s2421_s1 + $0x70] sm:$0xff]   ;;  %v2003_v28 = vld [vmem:[%s2421_s1 + $0x78] sm:$0xff]  }
   0xf   : > { %1842 = vmatprep.subr.bf16.mxu1 %v1984_v9  ;;  %v2000_v25 = vld [vmem:[%s2421_s1 + $0xf0] sm:$0xff]   ;;  %s1725_s24 = sshll.u32 %s2429_s25, 4  ;;  %v2004_v29 = vld [vmem:[%s2421_s1 + $0xf8] sm:$0xff]   ;;  %s1625_s17 = sshll.u32 %s2429_s25, 3 }
  0x10   : > { %v2001_v26 = vld [vmem:[%s2421_s1 + $0x30] sm:$0xff]   ;;  %s2264_s12 = scalar_lea.vmem %s2420_s0, %s1725_s24  ;;  %v2005_v30 = vld [vmem:[%s2421_s1 + $0x38] sm:$0xff]   ;;  %s2346_s20 = scalar_lea.vmem %s2423_s3, %s1625_s17 }
  0x11   : > { %1731 = vmatpush3.bf16.msra.mxu0 %v1985_v10  ;;  %v2002_v27 = vld [vmem:[%s2421_s1 + $0xb0] sm:$0xff]   ;;  %v2006_v31 = vld [vmem:[%s2421_s1 + $0xb8] sm:$0xff]  }
  0x12   : > { %1843 = vmatpush3.bf16.msra.mxu1 %v1986_v11  ;;  %1732 = vmatprep.subr.bf16.mxu0 %v1987_v12  ;;  %v2007_v32 = vld [vmem:[%s2264_s12] ss:$16 sps:$4 sm:$0xff]   ;;  %v2009_v33 = vld [vmem:[%s2264_s12 + $0x4] ss:$16 sps:$4 sm:$0xff]   ;;  %v2010_v34 = vld [vmem:[%s2264_s12 + $0x8] ss:$16 sps:$4 sm:$0xff]  }
  0x13   : > { %1844 = vmatprep.subr.bf16.mxu1 %v1988_v13  ;;  %v2012_v35 = vld [vmem:[%s2264_s12 + $0xc] ss:$16 sps:$4 sm:$0xff]   ;;  %1008 = vmatprep.mubr.bf16.mxu0 %v2009_v33  ;;  %v2013_v36 = vld [vmem:[%s2264_s12 + $0x24] ss:$16 sps:$4 sm:$0xff]   ;;  %v2017_v38 = vld [vmem:[%s2264_s12 + $0x20] ss:$16 sps:$4 sm:$0xff]  }
  0x14   : > { %1169 = vmatprep.mubr.bf16.mxu1 %v2012_v35  ;;  %v2015_v37 = vld [vmem:[%s2264_s12 + $0x2c] ss:$16 sps:$4 sm:$0xff]   ;;  %v2018_v39 = vld [vmem:[%s2264_s12 + $0x28] ss:$16 sps:$4 sm:$0xff]   ;;  %v2019_v40 = vld [vmem:[%s2264_s12 + $0x44] ss:$16 sps:$4 sm:$0xff]  }
  0x15   : > { %1733 = vmatpush3.bf16.msra.mxu0 %v1989_v14  ;;  %v2021_v41 = vld [vmem:[%s2264_s12 + $0x4c] ss:$16 sps:$4 sm:$0xff]   ;;  %v2023_v42 = vld [vmem:[%s2264_s12 + $0x40] ss:$16 sps:$4 sm:$0xff]   ;;  %v2024_v43 = vld [vmem:[%s2264_s12 + $0x48] ss:$16 sps:$4 sm:$0xff]  }
  0x16   : > { %1845 = vmatpush3.bf16.msra.mxu1 %v1990_v15  ;;  %1734 = vmatprep.subr.bf16.mxu0 %v1991_v16  ;;  %v2025_v44 = vld [vmem:[%s2264_s12 + $0x64] ss:$16 sps:$4 sm:$0xff]   ;;  %v2027_v45 = vld [vmem:[%s2264_s12 + $0x6c] ss:$16 sps:$4 sm:$0xff]   ;;  %v2029_v46 = vld [vmem:[%s2264_s12 + $0x60] ss:$16 sps:$4 sm:$0xff]  }
  0x17   : > { %1846 = vmatprep.subr.bf16.mxu1 %v1992_v17  ;;  %v2030_v47 = vld [vmem:[%s2264_s12 + $0x68] ss:$16 sps:$4 sm:$0xff]   ;;  %v2031_v48 = vld [vmem:[%s2264_s12 + $0x84] ss:$16 sps:$4 sm:$0xff]   ;;  %v2033_v49 = vld [vmem:[%s2264_s12 + $0x8c] ss:$16 sps:$4 sm:$0xff]  }
  0x18   : > { %v2035_v50 = vld [vmem:[%s2264_s12 + $0x80] ss:$16 sps:$4 sm:$0xff]   ;;  %v2036_v51 = vld [vmem:[%s2264_s12 + $0x88] ss:$16 sps:$4 sm:$0xff]   ;;  %v2037_v52 = vld [vmem:[%s2264_s12 + $0xa4] ss:$16 sps:$4 sm:$0xff]  }
  0x19   : > { %1735 = vmatpush3.bf16.msra.mxu0 %v1993_v18  ;;  %v2039_v53 = vld [vmem:[%s2264_s12 + $0xac] ss:$16 sps:$4 sm:$0xff]   ;;  %v2041_v54 = vld [vmem:[%s2264_s12 + $0xa0] ss:$16 sps:$4 sm:$0xff]   ;;  %v2042_v55 = vld [vmem:[%s2264_s12 + $0xa8] ss:$16 sps:$4 sm:$0xff]  }
  0x1a   : > { %1847 = vmatpush3.bf16.msra.mxu1 %v1994_v19  ;;  %1736 = vmatprep.subr.bf16.mxu0 %v1995_v20  ;;  %v2043_v56 = vld [vmem:[%s2264_s12 + $0xc4] ss:$16 sps:$4 sm:$0xff]   ;;  %v2045_v57 = vld [vmem:[%s2264_s12 + $0xcc] ss:$16 sps:$4 sm:$0xff]   ;;  %v2047_v58 = vld [vmem:[%s2264_s12 + $0xc0] ss:$16 sps:$4 sm:$0xff]  }
  0x1b   : > { %1848 = vmatprep.subr.bf16.mxu1 %v1996_v21  ;;  %v2048_v59 = vld [vmem:[%s2264_s12 + $0xc8] ss:$16 sps:$4 sm:$0xff]   ;;  %v2049_v60 = vld [vmem:[%s2264_s12 + $0xe4] ss:$16 sps:$4 sm:$0xff]   ;;  %v2051_v61 = vld [vmem:[%s2264_s12 + $0xec] ss:$16 sps:$4 sm:$0xff]  }
  0x1c   : > { %v2053_v62 = vld [vmem:[%s2264_s12 + $0xe0] ss:$16 sps:$4 sm:$0xff]   ;;  %v2054_v63 = vld [vmem:[%s2264_s12 + $0xe8] ss:$16 sps:$4 sm:$0xff]   ;;  %v2055_v0 = vld [vmem:[%s2264_s12 + $0x104] ss:$16 sps:$4 sm:$0xff]  }
  0x1d   : > { %1737 = vmatpush3.bf16.msra.mxu0 %v1997_v22  ;;  %v2057_v1 = vld [vmem:[%s2264_s12 + $0x10c] ss:$16 sps:$4 sm:$0xff]   ;;  %v2059_v2 = vld [vmem:[%s2264_s12 + $0x100] ss:$16 sps:$4 sm:$0xff]   ;;  %v2060_v3 = vld [vmem:[%s2264_s12 + $0x108] ss:$16 sps:$4 sm:$0xff]  }
  0x1e   : > { %1849 = vmatpush3.bf16.msra.mxu1 %v1998_v23  ;;  %1738 = vmatprep.subr.bf16.mxu0 %v1999_v24  ;;  %v2061_v4 = vld [vmem:[%s2264_s12 + $0x124] ss:$16 sps:$4 sm:$0xff]   ;;  %v2063_v5 = vld [vmem:[%s2264_s12 + $0x12c] ss:$16 sps:$4 sm:$0xff]   ;;  %v2065_v6 = vld [vmem:[%s2264_s12 + $0x120] ss:$16 sps:$4 sm:$0xff]  }
  0x1f   : > { %1850 = vmatprep.subr.bf16.mxu1 %v2000_v25  ;;  %v2066_v7 = vld [vmem:[%s2264_s12 + $0x128] ss:$16 sps:$4 sm:$0xff]   ;;  %v2067_v8 = vld [vmem:[%s2264_s12 + $0x144] ss:$16 sps:$4 sm:$0xff]   ;;  %v2069_v9 = vld [vmem:[%s2264_s12 + $0x14c] ss:$16 sps:$4 sm:$0xff]  }
  0x20   : > { %v2071_v10 = vld [vmem:[%s2264_s12 + $0x140] ss:$16 sps:$4 sm:$0xff]   ;;  %v2072_v11 = vld [vmem:[%s2264_s12 + $0x148] ss:$16 sps:$4 sm:$0xff]   ;;  %v2073_v12 = vld [vmem:[%s2264_s12 + $0x164] ss:$16 sps:$4 sm:$0xff]  }
  0x21   : > { %1739 = vmatpush3.bf16.msra.mxu0 %v2001_v26  ;;  %v2075_v13 = vld [vmem:[%s2264_s12 + $0x16c] ss:$16 sps:$4 sm:$0xff]   ;;  %v2077_v14 = vld [vmem:[%s2264_s12 + $0x160] ss:$16 sps:$4 sm:$0xff]   ;;  %v2078_v15 = vld [vmem:[%s2264_s12 + $0x168] ss:$16 sps:$4 sm:$0xff]  }
  0x22   : > { %1851 = vmatpush3.bf16.msra.mxu1 %v2002_v27  ;;  %1740 = vmatprep.subr.bf16.mxu0 %v2003_v28  ;;  %v2079_v16 = vld [vmem:[%s2264_s12 + $0x184] ss:$16 sps:$4 sm:$0xff]   ;;  %v2081_v17 = vld [vmem:[%s2264_s12 + $0x18c] ss:$16 sps:$4 sm:$0xff]   ;;  %v2083_v18 = vld [vmem:[%s2264_s12 + $0x180] ss:$16 sps:$4 sm:$0xff]  }
  0x23   : > { %1852 = vmatprep.subr.bf16.mxu1 %v2004_v29  ;;  %v2084_v19 = vld [vmem:[%s2264_s12 + $0x188] ss:$16 sps:$4 sm:$0xff]   ;;  %v2085_v20 = vld [vmem:[%s2264_s12 + $0x1a4] ss:$16 sps:$4 sm:$0xff]   ;;  %v2087_v21 = vld [vmem:[%s2264_s12 + $0x1ac] ss:$16 sps:$4 sm:$0xff]  }
  0x24   : > { %v2089_v22 = vld [vmem:[%s2264_s12 + $0x1a0] ss:$16 sps:$4 sm:$0xff]   ;;  %v2090_v23 = vld [vmem:[%s2264_s12 + $0x1a8] ss:$16 sps:$4 sm:$0xff]   ;;  %v2091_v24 = vld [vmem:[%s2264_s12 + $0x1c4] ss:$16 sps:$4 sm:$0xff]  }
  0x25   : > { %1741 = vmatpush3.bf16.msra.mxu0 %v2005_v30  ;;  %v2093_v25 = vld [vmem:[%s2264_s12 + $0x1cc] ss:$16 sps:$4 sm:$0xff]   ;;  %v2095_v26 = vld [vmem:[%s2264_s12 + $0x1c0] ss:$16 sps:$4 sm:$0xff]   ;;  %v2096_v27 = vld [vmem:[%s2264_s12 + $0x1c8] ss:$16 sps:$4 sm:$0xff]  }
  0x26   : > { %1853 = vmatpush3.bf16.msra.mxu1 %v2006_v31  ;;  %v2097_v28 = vld [vmem:[%s2264_s12 + $0x1e4] ss:$16 sps:$4 sm:$0xff]   ;;  %v2099_v29 = vld [vmem:[%s2264_s12 + $0x1ec] ss:$16 sps:$4 sm:$0xff]   ;;  %v2101_v30 = vld [vmem:[%s2264_s12 + $0x1e0] ss:$16 sps:$4 sm:$0xff]  }
  0x27   : > { %v2102_v31 = vld [vmem:[%s2264_s12 + $0x1e8] ss:$16 sps:$4 sm:$0xff]  }
  0x28   : > { %1009 = vmatmul.mubr.bf16.vlgmr.msra.gmra.mrb[0].mxu0 %v2007_v32 }
  0x29   : > { %1170 = vmatmul.mubr.bf16.vlgmr.msra.gmra.mrb[0].mxu1 %v2010_v34  ;;  %1016 = vmatprep.mubr.bf16.mxu0 %v2013_v36 }
  0x2a   : > { %1177 = vmatprep.mubr.bf16.mxu1 %v2015_v37 }
  0x30   : > { %1017 = vmatmul.mubr.bf16.gmra.mrb[4].mxu0 %v2017_v38 }
  0x31   : > { %1178 = vmatmul.mubr.bf16.gmra.mrb[4].mxu1 %v2018_v39  ;;  %1024 = vmatprep.mubr.bf16.mxu0 %v2019_v40 }
  0x32   : > { %1185 = vmatprep.mubr.bf16.mxu1 %v2021_v41 }
  0x38   : > { %1025 = vmatmul.mubr.bf16.gmra.mrb[8].mxu0 %v2023_v42 }
  0x39   : > { %1186 = vmatmul.mubr.bf16.gmra.mrb[8].mxu1 %v2024_v43  ;;  %1032 = vmatprep.mubr.bf16.mxu0 %v2025_v44 }
  0x3a   : > { %1193 = vmatprep.mubr.bf16.mxu1 %v2027_v45  ;;  %v2339_v45 = vld [vmem:[%s2422_s2] ss:$0 sm:$0xff] }
  0x40   : > { %1033 = vmatmul.mubr.bf16.gmra.mrb[12].mxu0 %v2029_v46 }
  0x41   : > { %1194 = vmatmul.mubr.bf16.gmra.mrb[12].mxu1 %v2030_v47  ;;  %1040 = vmatprep.mubr.bf16.mxu0 %v2031_v48 }
  0x42   : > { %1201 = vmatprep.mubr.bf16.mxu1 %v2033_v49 }
  0x48   : > { %1041 = vmatmul.mubr.bf16.gmra.mrb[16].mxu0 %v2035_v50 }
  0x49   : > { %1202 = vmatmul.mubr.bf16.gmra.mrb[16].mxu1 %v2036_v51  ;;  %1048 = vmatprep.mubr.bf16.mxu0 %v2037_v52 }
  0x4a   : > { %1209 = vmatprep.mubr.bf16.mxu1 %v2039_v53 }
  0x50   : > { %1049 = vmatmul.mubr.bf16.gmra.mrb[20].mxu0 %v2041_v54 }
  0x51   : > { %1210 = vmatmul.mubr.bf16.gmra.mrb[20].mxu1 %v2042_v55  ;;  %1056 = vmatprep.mubr.bf16.mxu0 %v2043_v56 }
  0x52   : > { %1217 = vmatprep.mubr.bf16.mxu1 %v2045_v57 }
  0x58   : > { %1057 = vmatmul.mubr.bf16.gmra.mrb[24].mxu0 %v2047_v58 }
  0x59   : > { %1218 = vmatmul.mubr.bf16.gmra.mrb[24].mxu1 %v2048_v59  ;;  %1064 = vmatprep.mubr.bf16.mxu0 %v2049_v60 }
  0x5a   : > { %1225 = vmatprep.mubr.bf16.mxu1 %v2051_v61 }
  0x60   : > { %1065 = vmatmul.mubr.bf16.gmra.mrb[28].mxu0 %v2053_v62 }
  0x61   : > { %1226 = vmatmul.mubr.bf16.gmra.mrb[28].mxu1 %v2054_v63  ;;  %1072 = vmatprep.mubr.bf16.mxu0 %v2055_v0 }
  0x62   : > { %1233 = vmatprep.mubr.bf16.mxu1 %v2057_v1 }
  0x68   : > { %1073 = vmatmul.mubr.bf16.gmra.mrb[32].mxu0 %v2059_v2 }
  0x69   : > { %1234 = vmatmul.mubr.bf16.gmra.mrb[32].mxu1 %v2060_v3  ;;  %1080 = vmatprep.mubr.bf16.mxu0 %v2061_v4 }
  0x6a   : > { %1241 = vmatprep.mubr.bf16.mxu1 %v2063_v5 }
  0x70   : > { %1081 = vmatmul.mubr.bf16.gmra.mrb[36].mxu0 %v2065_v6 }
  0x71   : > { %1242 = vmatmul.mubr.bf16.gmra.mrb[36].mxu1 %v2066_v7  ;;  %1088 = vmatprep.mubr.bf16.mxu0 %v2067_v8 }
  0x72   : > { %1249 = vmatprep.mubr.bf16.mxu1 %v2069_v9 }
  0x78   : > { %1089 = vmatmul.mubr.bf16.gmra.mrb[40].mxu0 %v2071_v10 }
  0x79   : > { %1250 = vmatmul.mubr.bf16.gmra.mrb[40].mxu1 %v2072_v11  ;;  %1096 = vmatprep.mubr.bf16.mxu0 %v2073_v12 }
  0x7a   : > { %1257 = vmatprep.mubr.bf16.mxu1 %v2075_v13 }
  0x80   : > { %1097 = vmatmul.mubr.bf16.gmra.mrb[44].mxu0 %v2077_v14 }
  0x81   : > { %1258 = vmatmul.mubr.bf16.gmra.mrb[44].mxu1 %v2078_v15  ;;  %1104 = vmatprep.mubr.bf16.mxu0 %v2079_v16 }
  0x82   : > { %1265 = vmatprep.mubr.bf16.mxu1 %v2081_v17 }
  0x88   : > { %1105 = vmatmul.mubr.bf16.gmra.mrb[48].mxu0 %v2083_v18 }
  0x89   : > { %1266 = vmatmul.mubr.bf16.gmra.mrb[48].mxu1 %v2084_v19  ;;  %1112 = vmatprep.mubr.bf16.mxu0 %v2085_v20 }
  0x8a   : > { %1273 = vmatprep.mubr.bf16.mxu1 %v2087_v21 }
  0x90   : > { %1113 = vmatmul.mubr.bf16.gmra.mrb[52].mxu0 %v2089_v22 }
  0x91   : > { %1274 = vmatmul.mubr.bf16.gmra.mrb[52].mxu1 %v2090_v23  ;;  %1120 = vmatprep.mubr.bf16.mxu0 %v2091_v24 }
  0x92   : > { %1281 = vmatprep.mubr.bf16.mxu1 %v2093_v25 }
  0x98   : > { %1121 = vmatmul.mubr.bf16.gmra.mrb[56].mxu0 %v2095_v26 }
  0x99   : > { %1282 = vmatmul.mubr.bf16.gmra.mrb[56].mxu1 %v2096_v27  ;;  %1128 = vmatprep.mubr.bf16.mxu0 %v2097_v28 }
  0x9a   : > { %1289 = vmatprep.mubr.bf16.mxu1 %v2099_v29 }
  0xa0   : > { %1129 = vmatmul.mubr.bf16.gmra.mrb[60].mxu0 %v2101_v30 }
  0xa1   : > { %1290 = vmatmul.mubr.bf16.gmra.mrb[60].mxu1 %v2102_v31 }
  0xfb   : > { %v1742_v32 = vpop.f32.mrb[0].mxu0 }
  0xfc   : > { %v1854_v33 = vpop.f32.mrb[0].mxu1  ;;  %v1743_v34 = vpop.f32.mrb[1].mxu0 }
  0xfd   : > { %v1744_v35 = vadd.f32 %v1743_v34, %v1742_v32  ;;  %v1855_v36 = vpop.f32.mrb[1].mxu1  ;;  %v1745_v37 = vpop.f32.mrb[2].mxu0 }
  0xfe   : > { %v1856_v38 = vadd.f32 %v1855_v36, %v1854_v33  ;;  %v1857_v39 = vpop.f32.mrb[2].mxu1  ;;  %v1746_v40 = vpop.f32.mrb[3].mxu0 }
  0xff   : > { %v1747_v41 = vadd.f32 %v1746_v40, %v1745_v37  ;;  %v1858_v42 = vpop.f32.mrb[3].mxu1 }
 0x100   : > { %v1172_v43 = vadd.f32 %v1856_v38, %v1744_v35  ;;  %v1859_v44 = vadd.f32 %v1858_v42, %v1857_v39 }
 0x102   : > { %v1175_v46 = vadd.f32 %v1859_v44, %v1747_v41  ;;  %v1404_v48 = vadd.f32 %v2339_v45, %v1172_v43 }
 0x103   : > { %v1748_v47 = vpop.f32.mrb[4].mxu0 }
 0x104   : > { %v1860_v49 = vpop.f32.mrb[4].mxu1  ;;  %v1749_v50 = vpop.f32.mrb[5].mxu0  ;;  %v1436_v54 = vmax.f32 %v1404_v48, 0.0  ;;  %v1405_v55 = vadd.f32 %v2339_v45, %v1175_v46 }
 0x105   : > { %v1750_v51 = vadd.f32 %v1749_v50, %v1748_v47  ;;  %v1861_v52 = vpop.f32.mrb[5].mxu1  ;;  %v1751_v53 = vpop.f32.mrb[6].mxu0 }
 0x106   : > { %v1862_v56 = vadd.f32 %v1861_v52, %v1860_v49  ;;  %v1863_v57 = vpop.f32.mrb[6].mxu1  ;;  %v1752_v58 = vpop.f32.mrb[7].mxu0  ;;  %1468 = vst [vmem:[%s2346_s20] sm:$0xff] %v1436_v54  ;;  %v1437_v61 = vmax.f32 %v1405_v55, 0.0 }
 0x107   : > { %v1753_v59 = vadd.f32 %v1752_v58, %v1751_v53  ;;  %v1864_v60 = vpop.f32.mrb[7].mxu1 }
 0x108   : > { %v1180_v62 = vadd.f32 %v1862_v56, %v1750_v51  ;;  %v1865_v63 = vadd.f32 %v1864_v60, %v1863_v57  ;;  %1469 = vst [vmem:[%s2346_s20 + $0x8] sm:$0xff] %v1437_v61 }
 0x10a   : > { %v1183_v0 = vadd.f32 %v1865_v63, %v1753_v59  ;;  %v1406_v2 = vadd.f32 %v2339_v45, %v1180_v62 }
 0x10b   : > { %v1754_v1 = vpop.f32.mrb[8].mxu0 }
 0x10c   : > { %v1866_v3 = vpop.f32.mrb[8].mxu1  ;;  %v1755_v4 = vpop.f32.mrb[9].mxu0  ;;  %v1438_v8 = vmax.f32 %v1406_v2, 0.0  ;;  %v1407_v9 = vadd.f32 %v2339_v45, %v1183_v0 }
 0x10d   : > { %v1756_v5 = vadd.f32 %v1755_v4, %v1754_v1  ;;  %v1867_v6 = vpop.f32.mrb[9].mxu1  ;;  %v1757_v7 = vpop.f32.mrb[10].mxu0 }
 0x10e   : > { %v1868_v10 = vadd.f32 %v1867_v6, %v1866_v3  ;;  %v1869_v11 = vpop.f32.mrb[10].mxu1  ;;  %v1758_v12 = vpop.f32.mrb[11].mxu0  ;;  %1470 = vst [vmem:[%s2346_s20 + $0x10] sm:$0xff] %v1438_v8  ;;  %v1439_v15 = vmax.f32 %v1407_v9, 0.0 }
 0x10f   : > { %v1759_v13 = vadd.f32 %v1758_v12, %v1757_v7  ;;  %v1870_v14 = vpop.f32.mrb[11].mxu1 }
 0x110   : > { %v1188_v16 = vadd.f32 %v1868_v10, %v1756_v5  ;;  %v1871_v17 = vadd.f32 %v1870_v14, %v1869_v11  ;;  %1471 = vst [vmem:[%s2346_s20 + $0x18] sm:$0xff] %v1439_v15 }
 0x112   : > { %v1191_v18 = vadd.f32 %v1871_v17, %v1759_v13  ;;  %v1408_v20 = vadd.f32 %v2339_v45, %v1188_v16 }
 0x113   : > { %v1760_v19 = vpop.f32.mrb[12].mxu0 }
 0x114   : > { %v1872_v21 = vpop.f32.mrb[12].mxu1  ;;  %v1761_v22 = vpop.f32.mrb[13].mxu0  ;;  %v1440_v26 = vmax.f32 %v1408_v20, 0.0  ;;  %v1409_v27 = vadd.f32 %v2339_v45, %v1191_v18 }
 0x115   : > { %v1762_v23 = vadd.f32 %v1761_v22, %v1760_v19  ;;  %v1873_v24 = vpop.f32.mrb[13].mxu1  ;;  %v1763_v25 = vpop.f32.mrb[14].mxu0 }
 0x116   : > { %v1874_v28 = vadd.f32 %v1873_v24, %v1872_v21  ;;  %v1875_v29 = vpop.f32.mrb[14].mxu1  ;;  %v1764_v30 = vpop.f32.mrb[15].mxu0  ;;  %1472 = vst [vmem:[%s2346_s20 + $0x20] sm:$0xff] %v1440_v26  ;;  %v1441_v33 = vmax.f32 %v1409_v27, 0.0 }
 0x117   : > { %v1765_v31 = vadd.f32 %v1764_v30, %v1763_v25  ;;  %v1876_v32 = vpop.f32.mrb[15].mxu1 }
 0x118   : > { %v1196_v34 = vadd.f32 %v1874_v28, %v1762_v23  ;;  %v1877_v35 = vadd.f32 %v1876_v32, %v1875_v29  ;;  %1473 = vst [vmem:[%s2346_s20 + $0x28] sm:$0xff] %v1441_v33 }
 0x11a   : > { %v1199_v36 = vadd.f32 %v1877_v35, %v1765_v31  ;;  %v1410_v38 = vadd.f32 %v2339_v45, %v1196_v34 }
 0x11b   : > { %v1766_v37 = vpop.f32.mrb[16].mxu0 }
 0x11c   : > { %v1878_v39 = vpop.f32.mrb[16].mxu1  ;;  %v1767_v40 = vpop.f32.mrb[17].mxu0  ;;  %v1442_v44 = vmax.f32 %v1410_v38, 0.0  ;;  %v1411_v46 = vadd.f32 %v2339_v45, %v1199_v36 }
 0x11d   : > { %v1768_v41 = vadd.f32 %v1767_v40, %v1766_v37  ;;  %v1879_v42 = vpop.f32.mrb[17].mxu1  ;;  %v1769_v43 = vpop.f32.mrb[18].mxu0 }
 0x11e   : > { %v1880_v47 = vadd.f32 %v1879_v42, %v1878_v39  ;;  %v1881_v48 = vpop.f32.mrb[18].mxu1  ;;  %v1770_v49 = vpop.f32.mrb[19].mxu0  ;;  %1474 = vst [vmem:[%s2346_s20 + $0x30] sm:$0xff] %v1442_v44  ;;  %v1443_v52 = vmax.f32 %v1411_v46, 0.0 }
 0x11f   : > { %v1771_v50 = vadd.f32 %v1770_v49, %v1769_v43  ;;  %v1882_v51 = vpop.f32.mrb[19].mxu1 }
 0x120   : > { %v1204_v53 = vadd.f32 %v1880_v47, %v1768_v41  ;;  %v1883_v54 = vadd.f32 %v1882_v51, %v1881_v48  ;;  %1475 = vst [vmem:[%s2346_s20 + $0x38] sm:$0xff] %v1443_v52 }
 0x122   : > { %v1207_v55 = vadd.f32 %v1883_v54, %v1771_v50  ;;  %v1412_v57 = vadd.f32 %v2339_v45, %v1204_v53 }
 0x123   : > { %v1772_v56 = vpop.f32.mrb[20].mxu0 }
 0x124   : > { %v1884_v58 = vpop.f32.mrb[20].mxu1  ;;  %v1773_v59 = vpop.f32.mrb[21].mxu0  ;;  %v1444_v63 = vmax.f32 %v1412_v57, 0.0  ;;  %v1413_v0 = vadd.f32 %v2339_v45, %v1207_v55 }
 0x125   : > { %v1774_v60 = vadd.f32 %v1773_v59, %v1772_v56  ;;  %v1885_v61 = vpop.f32.mrb[21].mxu1  ;;  %v1775_v62 = vpop.f32.mrb[22].mxu0 }
 0x126   : > { %v1886_v1 = vadd.f32 %v1885_v61, %v1884_v58  ;;  %v1887_v2 = vpop.f32.mrb[22].mxu1  ;;  %v1776_v3 = vpop.f32.mrb[23].mxu0  ;;  %1476 = vst [vmem:[%s2346_s20 + $0x40] sm:$0xff] %v1444_v63  ;;  %v1445_v6 = vmax.f32 %v1413_v0, 0.0 }
 0x127   : > { %v1777_v4 = vadd.f32 %v1776_v3, %v1775_v62  ;;  %v1888_v5 = vpop.f32.mrb[23].mxu1 }
 0x128   : > { %v1212_v7 = vadd.f32 %v1886_v1, %v1774_v60  ;;  %v1889_v8 = vadd.f32 %v1888_v5, %v1887_v2  ;;  %1477 = vst [vmem:[%s2346_s20 + $0x48] sm:$0xff] %v1445_v6 }
 0x12a   : > { %v1215_v9 = vadd.f32 %v1889_v8, %v1777_v4  ;;  %v1414_v11 = vadd.f32 %v2339_v45, %v1212_v7 }
 0x12b   : > { %v1778_v10 = vpop.f32.mrb[24].mxu0 }
 0x12c   : > { %v1890_v12 = vpop.f32.mrb[24].mxu1  ;;  %v1779_v13 = vpop.f32.mrb[25].mxu0  ;;  %v1446_v17 = vmax.f32 %v1414_v11, 0.0  ;;  %v1415_v18 = vadd.f32 %v2339_v45, %v1215_v9 }
 0x12d   : > { %v1780_v14 = vadd.f32 %v1779_v13, %v1778_v10  ;;  %v1891_v15 = vpop.f32.mrb[25].mxu1  ;;  %v1781_v16 = vpop.f32.mrb[26].mxu0 }
 0x12e   : > { %v1892_v19 = vadd.f32 %v1891_v15, %v1890_v12  ;;  %v1893_v20 = vpop.f32.mrb[26].mxu1  ;;  %v1782_v21 = vpop.f32.mrb[27].mxu0  ;;  %1478 = vst [vmem:[%s2346_s20 + $0x50] sm:$0xff] %v1446_v17  ;;  %v1447_v24 = vmax.f32 %v1415_v18, 0.0 }
 0x12f   : > { %v1783_v22 = vadd.f32 %v1782_v21, %v1781_v16  ;;  %v1894_v23 = vpop.f32.mrb[27].mxu1 }
 0x130   : > { %v1220_v25 = vadd.f32 %v1892_v19, %v1780_v14  ;;  %v1895_v26 = vadd.f32 %v1894_v23, %v1893_v20  ;;  %1479 = vst [vmem:[%s2346_s20 + $0x58] sm:$0xff] %v1447_v24 }
 0x132   : > { %v1223_v27 = vadd.f32 %v1895_v26, %v1783_v22  ;;  %v1416_v29 = vadd.f32 %v2339_v45, %v1220_v25 }
 0x133   : > { %v1784_v28 = vpop.f32.mrb[28].mxu0 }
 0x134   : > { %v1896_v30 = vpop.f32.mrb[28].mxu1  ;;  %v1785_v31 = vpop.f32.mrb[29].mxu0  ;;  %v1448_v35 = vmax.f32 %v1416_v29, 0.0  ;;  %v1417_v36 = vadd.f32 %v2339_v45, %v1223_v27 }
 0x135   : > { %v1786_v32 = vadd.f32 %v1785_v31, %v1784_v28  ;;  %v1897_v33 = vpop.f32.mrb[29].mxu1  ;;  %v1787_v34 = vpop.f32.mrb[30].mxu0 }
 0x136   : > { %v1898_v37 = vadd.f32 %v1897_v33, %v1896_v30  ;;  %v1899_v38 = vpop.f32.mrb[30].mxu1  ;;  %v1788_v39 = vpop.f32.mrb[31].mxu0  ;;  %1480 = vst [vmem:[%s2346_s20 + $0x60] sm:$0xff] %v1448_v35  ;;  %v1449_v42 = vmax.f32 %v1417_v36, 0.0 }
 0x137   : > { %v1789_v40 = vadd.f32 %v1788_v39, %v1787_v34  ;;  %v1900_v41 = vpop.f32.mrb[31].mxu1 }
 0x138   : > { %v1228_v43 = vadd.f32 %v1898_v37, %v1786_v32  ;;  %v1901_v44 = vadd.f32 %v1900_v41, %v1899_v38  ;;  %1481 = vst [vmem:[%s2346_s20 + $0x68] sm:$0xff] %v1449_v42 }
 0x13a   : > { %v1231_v46 = vadd.f32 %v1901_v44, %v1789_v40  ;;  %v1418_v48 = vadd.f32 %v2339_v45, %v1228_v43 }
 0x13b   : > { %v1790_v47 = vpop.f32.mrb[32].mxu0 }
 0x13c   : > { %v1902_v49 = vpop.f32.mrb[32].mxu1  ;;  %v1791_v50 = vpop.f32.mrb[33].mxu0  ;;  %v1450_v54 = vmax.f32 %v1418_v48, 0.0  ;;  %v1419_v55 = vadd.f32 %v2339_v45, %v1231_v46 }
 0x13d   : > { %v1792_v51 = vadd.f32 %v1791_v50, %v1790_v47  ;;  %v1903_v52 = vpop.f32.mrb[33].mxu1  ;;  %v1793_v53 = vpop.f32.mrb[34].mxu0 }
 0x13e   : > { %v1904_v56 = vadd.f32 %v1903_v52, %v1902_v49  ;;  %v1905_v57 = vpop.f32.mrb[34].mxu1  ;;  %v1794_v58 = vpop.f32.mrb[35].mxu0  ;;  %1482 = vst [vmem:[%s2346_s20 + $0x70] sm:$0xff] %v1450_v54  ;;  %v1451_v61 = vmax.f32 %v1419_v55, 0.0 }
 0x13f   : > { %v1795_v59 = vadd.f32 %v1794_v58, %v1793_v53  ;;  %v1906_v60 = vpop.f32.mrb[35].mxu1 }
 0x140   : > { %v1236_v62 = vadd.f32 %v1904_v56, %v1792_v51  ;;  %v1907_v63 = vadd.f32 %v1906_v60, %v1905_v57  ;;  %1483 = vst [vmem:[%s2346_s20 + $0x78] sm:$0xff] %v1451_v61 }
 0x142   : > { %v1239_v0 = vadd.f32 %v1907_v63, %v1795_v59  ;;  %v1420_v2 = vadd.f32 %v2339_v45, %v1236_v62 }
 0x143   : > { %v1796_v1 = vpop.f32.mrb[36].mxu0 }
 0x144   : > { %v1908_v3 = vpop.f32.mrb[36].mxu1  ;;  %v1797_v4 = vpop.f32.mrb[37].mxu0  ;;  %v1452_v8 = vmax.f32 %v1420_v2, 0.0  ;;  %v1421_v9 = vadd.f32 %v2339_v45, %v1239_v0 }
 0x145   : > { %v1798_v5 = vadd.f32 %v1797_v4, %v1796_v1  ;;  %v1909_v6 = vpop.f32.mrb[37].mxu1  ;;  %v1799_v7 = vpop.f32.mrb[38].mxu0 }
 0x146   : > { %v1910_v10 = vadd.f32 %v1909_v6, %v1908_v3  ;;  %v1911_v11 = vpop.f32.mrb[38].mxu1  ;;  %v1800_v12 = vpop.f32.mrb[39].mxu0  ;;  %1484 = vst [vmem:[%s2346_s20 + $0x80] sm:$0xff] %v1452_v8  ;;  %v1453_v15 = vmax.f32 %v1421_v9, 0.0 }
 0x147   : > { %v1801_v13 = vadd.f32 %v1800_v12, %v1799_v7  ;;  %v1912_v14 = vpop.f32.mrb[39].mxu1 }
 0x148   : > { %v1244_v16 = vadd.f32 %v1910_v10, %v1798_v5  ;;  %v1913_v17 = vadd.f32 %v1912_v14, %v1911_v11  ;;  %1485 = vst [vmem:[%s2346_s20 + $0x88] sm:$0xff] %v1453_v15 }
 0x14a   : > { %v1247_v18 = vadd.f32 %v1913_v17, %v1801_v13  ;;  %v1422_v20 = vadd.f32 %v2339_v45, %v1244_v16 }
 0x14b   : > { %v1802_v19 = vpop.f32.mrb[40].mxu0 }
 0x14c   : > { %v1914_v21 = vpop.f32.mrb[40].mxu1  ;;  %v1803_v22 = vpop.f32.mrb[41].mxu0  ;;  %v1454_v26 = vmax.f32 %v1422_v20, 0.0  ;;  %v1423_v27 = vadd.f32 %v2339_v45, %v1247_v18 }
 0x14d   : > { %v1804_v23 = vadd.f32 %v1803_v22, %v1802_v19  ;;  %v1915_v24 = vpop.f32.mrb[41].mxu1  ;;  %v1805_v25 = vpop.f32.mrb[42].mxu0 }
 0x14e   : > { %v1916_v28 = vadd.f32 %v1915_v24, %v1914_v21  ;;  %v1917_v29 = vpop.f32.mrb[42].mxu1  ;;  %v1806_v30 = vpop.f32.mrb[43].mxu0  ;;  %1486 = vst [vmem:[%s2346_s20 + $0x90] sm:$0xff] %v1454_v26  ;;  %v1455_v33 = vmax.f32 %v1423_v27, 0.0 }
 0x14f   : > { %v1807_v31 = vadd.f32 %v1806_v30, %v1805_v25  ;;  %v1918_v32 = vpop.f32.mrb[43].mxu1 }
 0x150   : > { %v1252_v34 = vadd.f32 %v1916_v28, %v1804_v23  ;;  %v1919_v35 = vadd.f32 %v1918_v32, %v1917_v29  ;;  %1487 = vst [vmem:[%s2346_s20 + $0x98] sm:$0xff] %v1455_v33 }
 0x152   : > { %v1255_v36 = vadd.f32 %v1919_v35, %v1807_v31  ;;  %v1424_v38 = vadd.f32 %v2339_v45, %v1252_v34 }
 0x153   : > { %v1808_v37 = vpop.f32.mrb[44].mxu0 }
 0x154   : > { %v1920_v39 = vpop.f32.mrb[44].mxu1  ;;  %v1809_v40 = vpop.f32.mrb[45].mxu0  ;;  %v1456_v44 = vmax.f32 %v1424_v38, 0.0  ;;  %v1425_v46 = vadd.f32 %v2339_v45, %v1255_v36 }
 0x155   : > { %v1810_v41 = vadd.f32 %v1809_v40, %v1808_v37  ;;  %v1921_v42 = vpop.f32.mrb[45].mxu1  ;;  %v1811_v43 = vpop.f32.mrb[46].mxu0 }
 0x156   : > { %v1922_v47 = vadd.f32 %v1921_v42, %v1920_v39  ;;  %v1923_v48 = vpop.f32.mrb[46].mxu1  ;;  %v1812_v49 = vpop.f32.mrb[47].mxu0  ;;  %1488 = vst [vmem:[%s2346_s20 + $0xa0] sm:$0xff] %v1456_v44  ;;  %v1457_v52 = vmax.f32 %v1425_v46, 0.0 }
 0x157   : > { %v1813_v50 = vadd.f32 %v1812_v49, %v1811_v43  ;;  %v1924_v51 = vpop.f32.mrb[47].mxu1 }
 0x158   : > { %v1260_v53 = vadd.f32 %v1922_v47, %v1810_v41  ;;  %v1925_v54 = vadd.f32 %v1924_v51, %v1923_v48  ;;  %1489 = vst [vmem:[%s2346_s20 + $0xa8] sm:$0xff] %v1457_v52 }
 0x15a   : > { %v1263_v55 = vadd.f32 %v1925_v54, %v1813_v50  ;;  %v1426_v57 = vadd.f32 %v2339_v45, %v1260_v53 }
 0x15b   : > { %v1814_v56 = vpop.f32.mrb[48].mxu0 }
 0x15c   : > { %v1926_v58 = vpop.f32.mrb[48].mxu1  ;;  %v1815_v59 = vpop.f32.mrb[49].mxu0  ;;  %v1458_v63 = vmax.f32 %v1426_v57, 0.0  ;;  %v1427_v0 = vadd.f32 %v2339_v45, %v1263_v55 }
 0x15d   : > { %v1816_v60 = vadd.f32 %v1815_v59, %v1814_v56  ;;  %v1927_v61 = vpop.f32.mrb[49].mxu1  ;;  %v1817_v62 = vpop.f32.mrb[50].mxu0 }
 0x15e   : > { %v1928_v1 = vadd.f32 %v1927_v61, %v1926_v58  ;;  %v1929_v2 = vpop.f32.mrb[50].mxu1  ;;  %v1818_v3 = vpop.f32.mrb[51].mxu0  ;;  %1490 = vst [vmem:[%s2346_s20 + $0xb0] sm:$0xff] %v1458_v63  ;;  %v1459_v6 = vmax.f32 %v1427_v0, 0.0 }
 0x15f   : > { %v1819_v4 = vadd.f32 %v1818_v3, %v1817_v62  ;;  %v1930_v5 = vpop.f32.mrb[51].mxu1 }
 0x160   : > { %v1268_v7 = vadd.f32 %v1928_v1, %v1816_v60  ;;  %v1931_v8 = vadd.f32 %v1930_v5, %v1929_v2  ;;  %1491 = vst [vmem:[%s2346_s20 + $0xb8] sm:$0xff] %v1459_v6 }
 0x162   : > { %v1271_v9 = vadd.f32 %v1931_v8, %v1819_v4  ;;  %v1428_v11 = vadd.f32 %v2339_v45, %v1268_v7 }
 0x163   : > { %v1820_v10 = vpop.f32.mrb[52].mxu0 }
 0x164   : > { %v1932_v12 = vpop.f32.mrb[52].mxu1  ;;  %v1821_v13 = vpop.f32.mrb[53].mxu0  ;;  %v1460_v17 = vmax.f32 %v1428_v11, 0.0  ;;  %v1429_v18 = vadd.f32 %v2339_v45, %v1271_v9 }
 0x165   : > { %v1822_v14 = vadd.f32 %v1821_v13, %v1820_v10  ;;  %v1933_v15 = vpop.f32.mrb[53].mxu1  ;;  %v1823_v16 = vpop.f32.mrb[54].mxu0 }
 0x166   : > { %v1934_v19 = vadd.f32 %v1933_v15, %v1932_v12  ;;  %v1935_v20 = vpop.f32.mrb[54].mxu1  ;;  %v1824_v21 = vpop.f32.mrb[55].mxu0  ;;  %1492 = vst [vmem:[%s2346_s20 + $0xc0] sm:$0xff] %v1460_v17  ;;  %v1461_v24 = vmax.f32 %v1429_v18, 0.0 }
 0x167   : > { %v1825_v22 = vadd.f32 %v1824_v21, %v1823_v16  ;;  %v1936_v23 = vpop.f32.mrb[55].mxu1 }
 0x168   : > { %v1276_v25 = vadd.f32 %v1934_v19, %v1822_v14  ;;  %v1937_v26 = vadd.f32 %v1936_v23, %v1935_v20  ;;  %1493 = vst [vmem:[%s2346_s20 + $0xc8] sm:$0xff] %v1461_v24 }
 0x16a   : > { %v1279_v27 = vadd.f32 %v1937_v26, %v1825_v22  ;;  %v1430_v29 = vadd.f32 %v2339_v45, %v1276_v25 }
 0x16b   : > { %v1826_v28 = vpop.f32.mrb[56].mxu0 }
 0x16c   : > { %v1938_v30 = vpop.f32.mrb[56].mxu1  ;;  %v1827_v31 = vpop.f32.mrb[57].mxu0  ;;  %v1462_v35 = vmax.f32 %v1430_v29, 0.0  ;;  %v1431_v36 = vadd.f32 %v2339_v45, %v1279_v27 }
 0x16d   : > { %v1828_v32 = vadd.f32 %v1827_v31, %v1826_v28  ;;  %v1939_v33 = vpop.f32.mrb[57].mxu1  ;;  %v1829_v34 = vpop.f32.mrb[58].mxu0 }
 0x16e   : > { %v1940_v37 = vadd.f32 %v1939_v33, %v1938_v30  ;;  %v1941_v38 = vpop.f32.mrb[58].mxu1  ;;  %v1830_v39 = vpop.f32.mrb[59].mxu0  ;;  %1494 = vst [vmem:[%s2346_s20 + $0xd0] sm:$0xff] %v1462_v35  ;;  %v1463_v42 = vmax.f32 %v1431_v36, 0.0 }
 0x16f   : > { %v1831_v40 = vadd.f32 %v1830_v39, %v1829_v34  ;;  %v1942_v41 = vpop.f32.mrb[59].mxu1 }
 0x170   : > { %v1284_v43 = vadd.f32 %v1940_v37, %v1828_v32  ;;  %v1943_v44 = vadd.f32 %v1942_v41, %v1941_v38  ;;  %1495 = vst [vmem:[%s2346_s20 + $0xd8] sm:$0xff] %v1463_v42 }
 0x172   : > { %v1287_v46 = vadd.f32 %v1943_v44, %v1831_v40  ;;  %v1432_v48 = vadd.f32 %v2339_v45, %v1284_v43 }
 0x173   : > { %v1832_v47 = vpop.f32.mrb[60].mxu0 }
 0x174   : > { %v1944_v49 = vpop.f32.mrb[60].mxu1  ;;  %v1833_v50 = vpop.f32.mrb[61].mxu0  ;;  %v1464_v54 = vmax.f32 %v1432_v48, 0.0  ;;  %v1433_v55 = vadd.f32 %v2339_v45, %v1287_v46 }
 0x175   : > { %v1834_v51 = vadd.f32 %v1833_v50, %v1832_v47  ;;  %v1945_v52 = vpop.f32.mrb[61].mxu1  ;;  %v1835_v53 = vpop.f32.mrb[62].mxu0 }
 0x176   : > { %v1946_v56 = vadd.f32 %v1945_v52, %v1944_v49  ;;  %v1947_v57 = vpop.f32.mrb[62].mxu1  ;;  %v1836_v58 = vpop.f32.mrb[63].mxu0  ;;  %1496 = vst [vmem:[%s2346_s20 + $0xe0] sm:$0xff] %v1464_v54  ;;  %v1465_v61 = vmax.f32 %v1433_v55, 0.0 }
 0x177   : > { %v1837_v59 = vadd.f32 %v1836_v58, %v1835_v53  ;;  %v1948_v60 = vpop.f32.mrb[63].mxu1 }
 0x178   : > { %v1292_v62 = vadd.f32 %v1946_v56, %v1834_v51  ;;  %v1949_v63 = vadd.f32 %v1948_v60, %v1947_v57  ;;  %1497 = vst [vmem:[%s2346_s20 + $0xe8] sm:$0xff] %v1465_v61 }
 0x17a   : > { %v1295_v0 = vadd.f32 %v1949_v63, %v1837_v59  ;;  %v1434_v1 = vadd.f32 %v2339_v45, %v1292_v62 }
 0x17c   : > { %v1466_v2 = vmax.f32 %v1434_v1, 0.0  ;;  %v1435_v3 = vadd.f32 %v2339_v45, %v1295_v0 }
 0x17e   : > { %1498 = vst [vmem:[%s2346_s20 + $0xf0] sm:$0xff] %v1466_v2  ;;  %v1467_v4 = vmax.f32 %v1435_v3, 0.0 }
 0x180   : > { %1499 = vst [vmem:[%s2346_s20 + $0xf8] sm:$0xff] %v1467_v4 }
 0x181 PF: > { %s13_s14 = sadd.s32 1, %s2125_s14   ;;  %s2424_s12 = smov %s2121_s13 }
 0x182   : > { %p10_p5 = scmp.ge.s32.totalorder %s13_s14, 4   ;;  %s2425_s13 = smov %s2427_s15 }
 0x184   :  { %12 = sbr.rel (!%p10_p5) target bundleno = 2 (0x2), region = 76 }

// kernel: net_conv_forward.13
= control target key start
LH: loop header
LB: loop body
LE: loop exit
PB: predicated region body
PF: predicated region fallthrough
CT: control target
= control target key end

     0   :  { %vm125_vm0 = vcmask 523264   ;;  %s894_s0 = inlined_call_operand.vmem [shape: f32[9,104,64], index: 0, kind: input, shape index: {}]   ;;  %s895_s1 = inlined_call_operand.vmem [shape: f32[104,64], index: 1, kind: output, shape index: {}]  }
   0x1   :  { %v8_v0 = vld [vmem:[%s894_s0] sm:$0xff]  ;;  %v21_v1 = vld [vmem:[%s894_s0 + $0x68] sm:$0xff]  ;;  %v34_v2 = vld [vmem:[%s894_s0 + $0xd0] sm:$0xff] }
   0x2   :  { %v47_v3 = vld [vmem:[%s894_s0 + $0x138] sm:$0xff]  ;;  %v60_v4 = vld [vmem:[%s894_s0 + $0x1a0] sm:$0xff]  ;;  %v126_v5 = vsel %vm125_vm0, %v8_v0, -inf  ;;  %v127_v6 = vsel %vm125_vm0, %v21_v1, -inf  ;;  %v129_v7 = vsel %vm125_vm0, %v34_v2, -inf  ;;  %v73_v8 = vld [vmem:[%s894_s0 + $0x208] sm:$0xff] }
   0x3   :  { %v86_v9 = vld [vmem:[%s894_s0 + $0x270] sm:$0xff]  ;;  %v99_v10 = vld [vmem:[%s894_s0 + $0x2d8] sm:$0xff]  ;;  %v128_v11 = vmax.f32 %v126_v5, %v127_v6  ;;  %v131_v12 = vsel %vm125_vm0, %v47_v3, -inf  ;;  %v9_v13 = vld [vmem:[%s894_s0 + $0x8] sm:$0xff]  ;;  %v133_v22 = vsel %vm125_vm0, %v60_v4, -inf  ;;  %v135_v23 = vsel %vm125_vm0, %v73_v8, -inf }
   0x4   :  { %v22_v14 = vld [vmem:[%s894_s0 + $0x70] sm:$0xff]  ;;  %v35_v15 = vld [vmem:[%s894_s0 + $0xd8] sm:$0xff]  ;;  %v112_v16 = vld [vmem:[%s894_s0 + $0x340] sm:$0xff]  ;;  %v143_v19 = vsel %vm125_vm0, %v9_v13, -inf  ;;  %v137_v29 = vsel %vm125_vm0, %v86_v9, -inf  ;;  %v139_v30 = vsel %vm125_vm0, %v99_v10, -inf }
   0x5   :  { %v130_v17 = vmax.f32 %v128_v11, %v129_v7  ;;  %v48_v18 = vld [vmem:[%s894_s0 + $0x140] sm:$0xff]  ;;  %v144_v20 = vsel %vm125_vm0, %v22_v14, -inf  ;;  %v146_v21 = vsel %vm125_vm0, %v35_v15, -inf  ;;  %v61_v24 = vld [vmem:[%s894_s0 + $0x1a8] sm:$0xff]  ;;  %v74_v25 = vld [vmem:[%s894_s0 + $0x210] sm:$0xff]  ;;  %v141_v42 = vsel %vm125_vm0, %v112_v16, -inf }
   0x6   :  { %v87_v26 = vld [vmem:[%s894_s0 + $0x278] sm:$0xff]  ;;  %v145_v27 = vmax.f32 %v143_v19, %v144_v20  ;;  %v148_v31 = vsel %vm125_vm0, %v48_v18, -inf  ;;  %v10_v32 = vld [vmem:[%s894_s0 + $0x10] sm:$0xff]  ;;  %v36_v34 = vld [vmem:[%s894_s0 + $0xe0] sm:$0xff]  ;;  %v150_v44 = vsel %vm125_vm0, %v61_v24, -inf  ;;  %v152_v48 = vsel %vm125_vm0, %v74_v25, -inf }
   0x7   :  { %v132_v28 = vmax.f32 %v130_v17, %v131_v12  ;;  %v23_v33 = vld [vmem:[%s894_s0 + $0x78] sm:$0xff]  ;;  %v100_v35 = vld [vmem:[%s894_s0 + $0x2e0] sm:$0xff]  ;;  %v49_v37 = vld [vmem:[%s894_s0 + $0x148] sm:$0xff]  ;;  %v160_v38 = vsel %vm125_vm0, %v10_v32, -inf  ;;  %v163_v40 = vsel %vm125_vm0, %v36_v34, -inf  ;;  %v154_v49 = vsel %vm125_vm0, %v87_v26, -inf }
   0x8   :  { %v147_v36 = vmax.f32 %v145_v27, %v146_v21  ;;  %v161_v39 = vsel %vm125_vm0, %v23_v33, -inf  ;;  %v113_v43 = vld [vmem:[%s894_s0 + $0x348] sm:$0xff]  ;;  %v62_v45 = vld [vmem:[%s894_s0 + $0x1b0] sm:$0xff]  ;;  %v165_v50 = vsel %vm125_vm0, %v49_v37, -inf  ;;  %v11_v51 = vld [vmem:[%s894_s0 + $0x18] sm:$0xff]  ;;  %v156_v55 = vsel %vm125_vm0, %v100_v35, -inf }
   0x9   :  { %v134_v41 = vmax.f32 %v132_v28, %v133_v22  ;;  %v162_v46 = vmax.f32 %v160_v38, %v161_v39  ;;  %v24_v52 = vld [vmem:[%s894_s0 + $0x80] sm:$0xff]  ;;  %v37_v53 = vld [vmem:[%s894_s0 + $0xe8] sm:$0xff]  ;;  %v75_v56 = vld [vmem:[%s894_s0 + $0x218] sm:$0xff]  ;;  %v177_v60 = vsel %vm125_vm0, %v11_v51, -inf  ;;  %v167_v62 = vsel %vm125_vm0, %v62_v45, -inf }
   0xa   :  { %v149_v47 = vmax.f32 %v147_v36, %v148_v31  ;;  %v88_v57 = vld [vmem:[%s894_s0 + $0x280] sm:$0xff]  ;;  %v50_v59 = vld [vmem:[%s894_s0 + $0x150] sm:$0xff]  ;;  %v63_v63 = vld [vmem:[%s894_s0 + $0x1b8] sm:$0xff]  ;;  %v178_v0 = vsel %vm125_vm0, %v24_v52, -inf  ;;  %v180_v1 = vsel %vm125_vm0, %v37_v53, -inf  ;;  %v158_v3 = vsel %vm125_vm0, %v113_v43, -inf }
   0xb   :  { %v136_v54 = vmax.f32 %v134_v41, %v135_v23  ;;  %v164_v58 = vmax.f32 %v162_v46, %v163_v40  ;;  %v179_v5 = vmax.f32 %v177_v60, %v178_v0  ;;  %v12_v6 = vld [vmem:[%s894_s0 + $0x20] sm:$0xff]  ;;  %v25_v7 = vld [vmem:[%s894_s0 + $0x88] sm:$0xff]  ;;  %v38_v8 = vld [vmem:[%s894_s0 + $0xf0] sm:$0xff]  ;;  %v169_v10 = vsel %vm125_vm0, %v75_v56, -inf }
   0xc   :  { %v151_v61 = vmax.f32 %v149_v47, %v150_v44  ;;  %v171_v11 = vsel %vm125_vm0, %v88_v57, -inf  ;;  %v182_v12 = vsel %vm125_vm0, %v50_v59, -inf  ;;  %v101_v14 = vld [vmem:[%s894_s0 + $0x2e8] sm:$0xff]  ;;  %v76_v16 = vld [vmem:[%s894_s0 + $0x220] sm:$0xff]  ;;  %v184_v18 = vsel %vm125_vm0, %v63_v63, -inf  ;;  %v51_v19 = vld [vmem:[%s894_s0 + $0x158] sm:$0xff] }
   0xd   :  { %v138_v2 = vmax.f32 %v136_v54, %v137_v29  ;;  %v166_v4 = vmax.f32 %v164_v58, %v165_v50  ;;  %v181_v17 = vmax.f32 %v179_v5, %v180_v1  ;;  %v114_v21 = vld [vmem:[%s894_s0 + $0x350] sm:$0xff]  ;;  %v194_v22 = vsel %vm125_vm0, %v12_v6, -inf  ;;  %v89_v27 = vld [vmem:[%s894_s0 + $0x288] sm:$0xff]  ;;  %v64_v29 = vld [vmem:[%s894_s0 + $0x1c0] sm:$0xff] }
   0xe   :  { %v153_v9 = vmax.f32 %v151_v61, %v152_v48  ;;  %v195_v23 = vsel %vm125_vm0, %v25_v7, -inf  ;;  %v197_v24 = vsel %vm125_vm0, %v38_v8, -inf  ;;  %v13_v31 = vld [vmem:[%s894_s0 + $0x28] sm:$0xff]  ;;  %v173_v33 = vsel %vm125_vm0, %v101_v14, -inf  ;;  %v26_v36 = vld [vmem:[%s894_s0 + $0x90] sm:$0xff]  ;;  %v39_v43 = vld [vmem:[%s894_s0 + $0xf8] sm:$0xff] }
   0xf   :  { %v140_v13 = vmax.f32 %v138_v2, %v139_v30  ;;  %v168_v15 = vmax.f32 %v166_v4, %v167_v62  ;;  %v183_v28 = vmax.f32 %v181_v17, %v182_v12  ;;  %v196_v30 = vmax.f32 %v194_v22, %v195_v23  ;;  %v102_v39 = vld [vmem:[%s894_s0 + $0x2f0] sm:$0xff]  ;;  %v77_v41 = vld [vmem:[%s894_s0 + $0x228] sm:$0xff]  ;;  %v52_v47 = vld [vmem:[%s894_s0 + $0x160] sm:$0xff] }
  0x10   :  { %v155_v20 = vmax.f32 %v153_v9, %v154_v49  ;;  %v186_v34 = vsel %vm125_vm0, %v76_v16, -inf  ;;  %v199_v35 = vsel %vm125_vm0, %v51_v19, -inf  ;;  %v175_v38 = vsel %vm125_vm0, %v114_v21, -inf  ;;  %v115_v50 = vld [vmem:[%s894_s0 + $0x358] sm:$0xff]  ;;  %v90_v52 = vld [vmem:[%s894_s0 + $0x290] sm:$0xff]  ;;  %v65_v54 = vld [vmem:[%s894_s0 + $0x1c8] sm:$0xff] }
  0x11   :  { %v142_v25 = vmax.f32 %v140_v13, %v141_v42  ;;  %v170_v26 = vmax.f32 %v168_v15, %v169_v10  ;;  %v185_v40 = vmax.f32 %v183_v28, %v184_v18  ;;  %v198_v42 = vmax.f32 %v196_v30, %v197_v24  ;;  %v14_v60 = vld [vmem:[%s894_s0 + $0x30] sm:$0xff]  ;;  %v27_v61 = vld [vmem:[%s894_s0 + $0x98] sm:$0xff]  ;;  %v53_v9 = vld [vmem:[%s894_s0 + $0x168] sm:$0xff] }
  0x12   :  { %v157_v32 = vmax.f32 %v155_v20, %v156_v55  ;;  %v188_v45 = vsel %vm125_vm0, %v89_v27, -inf  ;;  %v201_v46 = vsel %vm125_vm0, %v64_v29, -inf  ;;  %v211_v48 = vsel %vm125_vm0, %v13_v31, -inf  ;;  %v103_v0 = vld [vmem:[%s894_s0 + $0x2f8] sm:$0xff]  ;;  %v78_v6 = vld [vmem:[%s894_s0 + $0x230] sm:$0xff]  ;;  %v28_v22 = vld [vmem:[%s894_s0 + $0xa0] sm:$0xff] }
  0x13   :  { %347 = vst.msk [vmem:[%s895_s1] sm:$0xff] %vm125_vm0, %v142_v25  ;;  %v172_v37 = vmax.f32 %v170_v26, %v171_v11  ;;  %v187_v51 = vmax.f32 %v185_v40, %v186_v34  ;;  %v200_v53 = vmax.f32 %v198_v42, %v199_v35  ;;  %v212_v55 = vsel %vm125_vm0, %v26_v36, -inf  ;;  %v116_v11 = vld [vmem:[%s894_s0 + $0x360] sm:$0xff]  ;;  %v91_v13 = vld [vmem:[%s894_s0 + $0x298] sm:$0xff]  ;;  %v66_v18 = vld [vmem:[%s894_s0 + $0x1d0] sm:$0xff] }
  0x14   :  { %v159_v44 = vmax.f32 %v157_v32, %v158_v3  ;;  %v190_v56 = vsel %vm125_vm0, %v102_v39, -inf  ;;  %v203_v57 = vsel %vm125_vm0, %v77_v41, -inf  ;;  %v213_v58 = vmax.f32 %v211_v48, %v212_v55  ;;  %v40_v3 = vld [vmem:[%s894_s0 + $0x100] sm:$0xff]  ;;  %v15_v21 = vld [vmem:[%s894_s0 + $0x38] sm:$0xff]  ;;  %v41_v27 = vld [vmem:[%s894_s0 + $0x108] sm:$0xff] }
  0x15   :  { %v174_v49 = vmax.f32 %v172_v37, %v173_v33  ;;  %v214_v59 = vsel %vm125_vm0, %v39_v43, -inf  ;;  %v189_v63 = vmax.f32 %v187_v51, %v188_v45  ;;  %v202_v1 = vmax.f32 %v200_v53, %v201_v46  ;;  %v104_v29 = vld [vmem:[%s894_s0 + $0x300] sm:$0xff]  ;;  %v79_v32 = vld [vmem:[%s894_s0 + $0x238] sm:$0xff]  ;;  %v54_v34 = vld [vmem:[%s894_s0 + $0x170] sm:$0xff] }
  0x16   :  { %348 = vst.msk [vmem:[%s895_s1 + $0x8] sm:$0xff] %vm125_vm0, %v159_v44  ;;  %v216_v2 = vsel %vm125_vm0, %v52_v47, -inf  ;;  %v192_v4 = vsel %vm125_vm0, %v115_v50, -inf  ;;  %v205_v5 = vsel %vm125_vm0, %v90_v52, -inf  ;;  %v215_v7 = vmax.f32 %v213_v58, %v214_v59  ;;  %v117_v36 = vld [vmem:[%s894_s0 + $0x368] sm:$0xff]  ;;  %v92_v37 = vld [vmem:[%s894_s0 + $0x2a0] sm:$0xff] }
  0x17   :  { %v176_v62 = vmax.f32 %v174_v49, %v175_v38  ;;  %v218_v8 = vsel %vm125_vm0, %v65_v54, -inf  ;;  %v191_v10 = vmax.f32 %v189_v63, %v190_v56  ;;  %v204_v12 = vmax.f32 %v202_v1, %v203_v57  ;;  %v67_v43 = vld [vmem:[%s894_s0 + $0x1d8] sm:$0xff]  ;;  %v16_v46 = vld [vmem:[%s894_s0 + $0x40] sm:$0xff]  ;;  %v29_v47 = vld [vmem:[%s894_s0 + $0xa8] sm:$0xff] }
  0x18   :  { %v228_v14 = vsel %vm125_vm0, %v14_v60, -inf  ;;  %v229_v15 = vsel %vm125_vm0, %v27_v61, -inf  ;;  %v207_v16 = vsel %vm125_vm0, %v103_v0, -inf  ;;  %v217_v17 = vmax.f32 %v215_v7, %v216_v2  ;;  %v105_v50 = vld [vmem:[%s894_s0 + $0x308] sm:$0xff]  ;;  %v80_v56 = vld [vmem:[%s894_s0 + $0x240] sm:$0xff]  ;;  %v42_v58 = vld [vmem:[%s894_s0 + $0x110] sm:$0xff] }
  0x19   :  { %349 = vst.msk [vmem:[%s895_s1 + $0x10] sm:$0xff] %vm125_vm0, %v176_v62  ;;  %v230_v19 = vmax.f32 %v228_v14, %v229_v15  ;;  %v231_v20 = vsel %vm125_vm0, %v40_v3, -inf  ;;  %v193_v23 = vmax.f32 %v191_v10, %v192_v4  ;;  %v206_v24 = vmax.f32 %v204_v12, %v205_v5  ;;  %v55_v59 = vld [vmem:[%s894_s0 + $0x178] sm:$0xff]  ;;  %v118_v60 = vld [vmem:[%s894_s0 + $0x370] sm:$0xff]  ;;  %v93_v3 = vld [vmem:[%s894_s0 + $0x2a8] sm:$0xff] }
  0x1a   :  { %v220_v25 = vsel %vm125_vm0, %v78_v6, -inf  ;;  %v233_v26 = vsel %vm125_vm0, %v53_v9, -inf  ;;  %v209_v28 = vsel %vm125_vm0, %v116_v11, -inf  ;;  %v219_v30 = vmax.f32 %v217_v17, %v218_v8  ;;  %v68_v5 = vld [vmem:[%s894_s0 + $0x1e0] sm:$0xff]  ;;  %v17_v7 = vld [vmem:[%s894_s0 + $0x48] sm:$0xff]  ;;  %v30_v12 = vld [vmem:[%s894_s0 + $0xb0] sm:$0xff] }
  0x1b   :  { %v222_v31 = vsel %vm125_vm0, %v91_v13, -inf  ;;  %v232_v33 = vmax.f32 %v230_v19, %v231_v20  ;;  %350 = vst.msk [vmem:[%s895_s1 + $0x18] sm:$0xff] %vm125_vm0, %v193_v23  ;;  %v208_v35 = vmax.f32 %v206_v24, %v207_v16  ;;  %v235_v38 = vsel %vm125_vm0, %v66_v18, -inf  ;;  %v106_v15 = vld [vmem:[%s894_s0 + $0x310] sm:$0xff]  ;;  %v81_v17 = vld [vmem:[%s894_s0 + $0x248] sm:$0xff]  ;;  %v43_v19 = vld [vmem:[%s894_s0 + $0x118] sm:$0xff] }
  0x1c   :  { %v245_v39 = vsel %vm125_vm0, %v15_v21, -inf  ;;  %v246_v40 = vsel %vm125_vm0, %v28_v22, -inf  ;;  %v221_v41 = vmax.f32 %v219_v30, %v220_v25  ;;  %v248_v45 = vsel %vm125_vm0, %v41_v27, -inf  ;;  %v56_v23 = vld [vmem:[%s894_s0 + $0x180] sm:$0xff]  ;;  %v69_v30 = vld [vmem:[%s894_s0 + $0x1e8] sm:$0xff] }
  0x1d   :  { %v234_v42 = vmax.f32 %v232_v33, %v233_v26  ;;  %v247_v44 = vmax.f32 %v245_v39, %v246_v40  ;;  %v210_v48 = vmax.f32 %v208_v35, %v209_v28  ;;  %v224_v49 = vsel %vm125_vm0, %v104_v29, -inf  ;;  %v119_v26 = vld [vmem:[%s894_s0 + $0x378] sm:$0xff]  ;;  %v94_v28 = vld [vmem:[%s894_s0 + $0x2b0] sm:$0xff] }
  0x1e   :  { %v237_v51 = vsel %vm125_vm0, %v79_v32, -inf  ;;  %v250_v52 = vsel %vm125_vm0, %v54_v34, -inf  ;;  %v223_v53 = vmax.f32 %v221_v41, %v222_v31  ;;  %v226_v54 = vsel %vm125_vm0, %v117_v36, -inf  ;;  %v18_v36 = vld [vmem:[%s894_s0 + $0x50] sm:$0xff]  ;;  %v107_v40 = vld [vmem:[%s894_s0 + $0x318] sm:$0xff] }
  0x1f   :  { %v236_v55 = vmax.f32 %v234_v42, %v235_v38  ;;  %v249_v57 = vmax.f32 %v247_v44, %v248_v45  ;;  %351 = vst.msk [vmem:[%s895_s1 + $0x20] sm:$0xff] %vm125_vm0, %v210_v48  ;;  %v239_v61 = vsel %vm125_vm0, %v92_v37, -inf  ;;  %v252_v62 = vsel %vm125_vm0, %v67_v43, -inf  ;;  %v31_v37 = vld [vmem:[%s894_s0 + $0xb8] sm:$0xff]  ;;  %v44_v43 = vld [vmem:[%s894_s0 + $0x120] sm:$0xff] }
  0x20   :  { %v262_v63 = vsel %vm125_vm0, %v16_v46, -inf  ;;  %v263_v0 = vsel %vm125_vm0, %v29_v47, -inf  ;;  %v225_v1 = vmax.f32 %v223_v53, %v224_v49  ;;  %v241_v8 = vsel %vm125_vm0, %v105_v50, -inf  ;;  %v82_v46 = vld [vmem:[%s894_s0 + $0x250] sm:$0xff]  ;;  %v57_v49 = vld [vmem:[%s894_s0 + $0x188] sm:$0xff]  ;;  %v95_v53 = vld [vmem:[%s894_s0 + $0x2b8] sm:$0xff] }
  0x21   :  { %v238_v2 = vmax.f32 %v236_v55, %v237_v51  ;;  %v251_v4 = vmax.f32 %v249_v57, %v250_v52  ;;  %v264_v6 = vmax.f32 %v262_v63, %v263_v0  ;;  %v254_v9 = vsel %vm125_vm0, %v80_v56, -inf  ;;  %v120_v51 = vld [vmem:[%s894_s0 + $0x380] sm:$0xff] }
  0x22   :  { %v265_v10 = vsel %vm125_vm0, %v42_v58, -inf  ;;  %v267_v11 = vsel %vm125_vm0, %v55_v59, -inf  ;;  %v227_v13 = vmax.f32 %v225_v1, %v226_v54  ;;  %v243_v20 = vsel %vm125_vm0, %v118_v60, -inf  ;;  %v70_v58 = vld [vmem:[%s894_s0 + $0x1f0] sm:$0xff] }
  0x23   :  { %v240_v14 = vmax.f32 %v238_v2, %v239_v61  ;;  %v253_v16 = vmax.f32 %v251_v4, %v252_v62  ;;  %v266_v18 = vmax.f32 %v264_v6, %v265_v10  ;;  %v256_v21 = vsel %vm125_vm0, %v93_v3, -inf  ;;  %v19_v61 = vld [vmem:[%s894_s0 + $0x58] sm:$0xff]  ;;  %v32_v62 = vld [vmem:[%s894_s0 + $0xc0] sm:$0xff]  ;;  %v45_v3 = vld [vmem:[%s894_s0 + $0x128] sm:$0xff] }
  0x24   :  { %v269_v22 = vsel %vm125_vm0, %v68_v5, -inf  ;;  %v279_v24 = vsel %vm125_vm0, %v17_v7, -inf  ;;  %352 = vst.msk [vmem:[%s895_s1 + $0x28] sm:$0xff] %vm125_vm0, %v227_v13  ;;  %v280_v31 = vsel %vm125_vm0, %v30_v12, -inf  ;;  %v258_v32 = vsel %vm125_vm0, %v106_v15, -inf  ;;  %v108_v5 = vld [vmem:[%s894_s0 + $0x320] sm:$0xff] }
  0x25   :  { %v242_v25 = vmax.f32 %v240_v14, %v241_v8  ;;  %v255_v27 = vmax.f32 %v253_v16, %v254_v9  ;;  %v268_v29 = vmax.f32 %v266_v18, %v267_v11  ;;  %v271_v33 = vsel %vm125_vm0, %v81_v17, -inf  ;;  %v83_v8 = vld [vmem:[%s894_s0 + $0x258] sm:$0xff]  ;;  %v58_v10 = vld [vmem:[%s894_s0 + $0x190] sm:$0xff]  ;;  %v121_v12 = vld [vmem:[%s894_s0 + $0x388] sm:$0xff] }
  0x26   :  { %v281_v34 = vmax.f32 %v279_v24, %v280_v31  ;;  %v282_v35 = vsel %vm125_vm0, %v43_v19, -inf  ;;  %v284_v42 = vsel %vm125_vm0, %v56_v23, -inf  ;;  %v260_v44 = vsel %vm125_vm0, %v119_v26, -inf  ;;  %v96_v13 = vld [vmem:[%s894_s0 + $0x2c0] sm:$0xff]  ;;  %v71_v19 = vld [vmem:[%s894_s0 + $0x1f8] sm:$0xff]  ;;  %v33_v23 = vld [vmem:[%s894_s0 + $0xc8] sm:$0xff] }
  0x27   :  { %v244_v38 = vmax.f32 %v242_v25, %v243_v20  ;;  %v257_v39 = vmax.f32 %v255_v27, %v256_v21  ;;  %v270_v41 = vmax.f32 %v268_v29, %v269_v22  ;;  %v273_v45 = vsel %vm125_vm0, %v94_v28, -inf  ;;  %v20_v22 = vld [vmem:[%s894_s0 + $0x60] sm:$0xff]  ;;  %v109_v26 = vld [vmem:[%s894_s0 + $0x328] sm:$0xff] }
  0x28   :  { %v283_v47 = vmax.f32 %v281_v34, %v282_v35  ;;  %v286_v48 = vsel %vm125_vm0, %v69_v30, -inf  ;;  %v296_v54 = vsel %vm125_vm0, %v18_v36, -inf  ;;  %v297_v55 = vsel %vm125_vm0, %v31_v37, -inf  ;;  %v46_v34 = vld [vmem:[%s894_s0 + $0x130] sm:$0xff]  ;;  %v59_v35 = vld [vmem:[%s894_s0 + $0x198] sm:$0xff] }
  0x29   :  { %353 = vst.msk [vmem:[%s895_s1 + $0x30] sm:$0xff] %vm125_vm0, %v244_v38  ;;  %v259_v50 = vmax.f32 %v257_v39, %v258_v32  ;;  %v272_v52 = vmax.f32 %v270_v41, %v271_v33  ;;  %v275_v56 = vsel %vm125_vm0, %v107_v40, -inf  ;;  %v298_v59 = vmax.f32 %v296_v54, %v297_v55  ;;  %v84_v32 = vld [vmem:[%s894_s0 + $0x260] sm:$0xff]  ;;  %v122_v41 = vld [vmem:[%s894_s0 + $0x390] sm:$0xff]  ;;  %v85_v55 = vld [vmem:[%s894_s0 + $0x268] sm:$0xff] }
  0x2a   :  { %v285_v57 = vmax.f32 %v283_v47, %v284_v42  ;;  %v299_v60 = vsel %vm125_vm0, %v44_v43, -inf  ;;  %v288_v1 = vsel %vm125_vm0, %v82_v46, -inf  ;;  %v301_v2 = vsel %vm125_vm0, %v57_v49, -inf  ;;  %v97_v43 = vld [vmem:[%s894_s0 + $0x2c8] sm:$0xff] }
  0x2b   :  { %v261_v63 = vmax.f32 %v259_v50, %v260_v44  ;;  %v274_v0 = vmax.f32 %v272_v52, %v273_v45  ;;  %v277_v4 = vsel %vm125_vm0, %v120_v51, -inf  ;;  %v290_v7 = vsel %vm125_vm0, %v95_v53, -inf  ;;  %v72_v45 = vld [vmem:[%s894_s0 + $0x200] sm:$0xff]  ;;  %v110_v53 = vld [vmem:[%s894_s0 + $0x330] sm:$0xff] }
  0x2c   :  { %v287_v6 = vmax.f32 %v285_v57, %v286_v48  ;;  %v300_v9 = vmax.f32 %v298_v59, %v299_v60  ;;  %v303_v14 = vsel %vm125_vm0, %v70_v58, -inf  ;;  %v313_v15 = vsel %vm125_vm0, %v19_v61, -inf  ;;  %v123_v61 = vld [vmem:[%s894_s0 + $0x398] sm:$0xff] }
  0x2d   :  { %354 = vst.msk [vmem:[%s895_s1 + $0x38] sm:$0xff] %vm125_vm0, %v261_v63  ;;  %v276_v11 = vmax.f32 %v274_v0, %v275_v56  ;;  %v314_v16 = vsel %vm125_vm0, %v32_v62, -inf  ;;  %v316_v21 = vsel %vm125_vm0, %v45_v3, -inf  ;;  %v292_v25 = vsel %vm125_vm0, %v108_v5, -inf  ;;  %v98_v63 = vld [vmem:[%s894_s0 + $0x2d0] sm:$0xff]  ;;  %v111_v5 = vld [vmem:[%s894_s0 + $0x338] sm:$0xff] }
  0x2e   :  { %v289_v17 = vmax.f32 %v287_v6, %v288_v1  ;;  %v302_v18 = vmax.f32 %v300_v9, %v301_v2  ;;  %v315_v20 = vmax.f32 %v313_v15, %v314_v16  ;;  %v305_v27 = vsel %vm125_vm0, %v83_v8, -inf }
  0x2f   :  { %v278_v24 = vmax.f32 %v276_v11, %v277_v4  ;;  %v318_v28 = vsel %vm125_vm0, %v58_v10, -inf  ;;  %v294_v30 = vsel %vm125_vm0, %v121_v12, -inf  ;;  %v307_v36 = vsel %vm125_vm0, %v96_v13, -inf  ;;  %v124_v10 = vld [vmem:[%s894_s0 + $0x3a0] sm:$0xff] }
  0x30   :  { %v291_v29 = vmax.f32 %v289_v17, %v290_v7  ;;  %v304_v31 = vmax.f32 %v302_v18, %v303_v14  ;;  %v317_v33 = vmax.f32 %v315_v20, %v316_v21  ;;  %v320_v37 = vsel %vm125_vm0, %v71_v19, -inf }
  0x31   :  { %355 = vst.msk [vmem:[%s895_s1 + $0x40] sm:$0xff] %vm125_vm0, %v278_v24  ;;  %v330_v38 = vsel %vm125_vm0, %v20_v22, -inf  ;;  %v331_v39 = vsel %vm125_vm0, %v33_v23, -inf  ;;  %v309_v47 = vsel %vm125_vm0, %v109_v26, -inf  ;;  %v322_v48 = vsel %vm125_vm0, %v84_v32, -inf }
  0x32   :  { %v293_v40 = vmax.f32 %v291_v29, %v292_v25  ;;  %v306_v42 = vmax.f32 %v304_v31, %v305_v27  ;;  %v319_v44 = vmax.f32 %v317_v33, %v318_v28  ;;  %v332_v46 = vmax.f32 %v330_v38, %v331_v39 }
  0x33   :  { %v333_v49 = vsel %vm125_vm0, %v46_v34, -inf  ;;  %v335_v50 = vsel %vm125_vm0, %v59_v35, -inf  ;;  %v311_v57 = vsel %vm125_vm0, %v122_v41, -inf  ;;  %v324_v58 = vsel %vm125_vm0, %v97_v43, -inf }
  0x34   :  { %v295_v51 = vmax.f32 %v293_v40, %v294_v30  ;;  %v308_v52 = vmax.f32 %v306_v42, %v307_v36  ;;  %v321_v54 = vmax.f32 %v319_v44, %v320_v37  ;;  %v334_v56 = vmax.f32 %v332_v46, %v333_v49 }
  0x35   :  { %v337_v59 = vsel %vm125_vm0, %v72_v45, -inf  ;;  %v326_v1 = vsel %vm125_vm0, %v110_v53, -inf  ;;  %v339_v2 = vsel %vm125_vm0, %v85_v55, -inf  ;;  %v328_v7 = vsel %vm125_vm0, %v123_v61, -inf }
  0x36   :  { %356 = vst.msk [vmem:[%s895_s1 + $0x48] sm:$0xff] %vm125_vm0, %v295_v51  ;;  %v310_v60 = vmax.f32 %v308_v52, %v309_v47  ;;  %v323_v62 = vmax.f32 %v321_v54, %v322_v48  ;;  %v336_v0 = vmax.f32 %v334_v56, %v335_v50  ;;  %v341_v8 = vsel %vm125_vm0, %v98_v63, -inf }
  0x37   :  { %v343_v12 = vsel %vm125_vm0, %v111_v5, -inf  ;;  %v345_v15 = vsel %vm125_vm0, %v124_v10, -inf }
  0x38   :  { %v312_v3 = vmax.f32 %v310_v60, %v311_v57  ;;  %v325_v4 = vmax.f32 %v323_v62, %v324_v58  ;;  %v338_v6 = vmax.f32 %v336_v0, %v337_v59 }
  0x3a   :  { %357 = vst.msk [vmem:[%s895_s1 + $0x50] sm:$0xff] %vm125_vm0, %v312_v3  ;;  %v327_v9 = vmax.f32 %v325_v4, %v326_v1  ;;  %v340_v11 = vmax.f32 %v338_v6, %v339_v2 }
  0x3c   :  { %v329_v13 = vmax.f32 %v327_v9, %v328_v7  ;;  %v342_v14 = vmax.f32 %v340_v11, %v341_v8 }
  0x3e   :  { %358 = vst.msk [vmem:[%s895_s1 + $0x58] sm:$0xff] %vm125_vm0, %v329_v13  ;;  %v344_v16 = vmax.f32 %v342_v14, %v343_v12 }
  0x40   :  { %v346_v17 = vmax.f32 %v344_v16, %v345_v15 }
  0x42   :  { %359 = vst.msk [vmem:[%s895_s1 + $0x60] sm:$0xff] %vm125_vm0, %v346_v17 }

// kernel: net_conv_forward.14
= control target key start
LH: loop header
LB: loop body
LE: loop exit
PB: predicated region body
PF: predicated region fallthrough
CT: control target
= control target key end

     0   :  { %s2866_s12 = smov 0   ;;  %s2868_s13 = smov 0   ;;  %s3692_s0 = inlined_call_operand.vmem [shape: bf16[112,2048], index: 0, kind: input, shape index: {}]   ;;  %s3693_s1 = inlined_call_operand.vmem [shape: bf16[2048,256], index: 1, kind: input, shape index: {}]   ;;  %s3694_s2 = inlined_call_operand.vmem [shape: f32[1,256], index: 2, kind: input, shape index: {}]   ;;  %s3695_s3 = inlined_call_operand.vmem [shape: f32[112,256], index: 3, kind: output, shape index: {}]  }
   0x1   :  { %s2870_s14 = smov 0   ;;  %s2872_s15 = smov 0  }
   0x2   :  { %s2874_s16 = smov 0  }
   0x3 LB: > { %s25_s17 = sadd.s32 1, %s2839_s15  ;;  %p48_p1 = scmp.ne.s32.totalorder %s2831_s13, %s2827_s12  ;;  %s2843_s16 = sphi %s2874_s16, %s13_s16   ;;  %s2839_s15 = sphi %s2872_s15, %s3699_s15   ;;  %s2835_s14 = sphi %s2870_s14, %s3698_s14   ;;  %s2831_s13 = sphi %s2868_s13, %s3697_s13   ;;  %s2827_s12 = sphi %s2866_s12, %s3696_s12  }
   0x4   : > { %p26_p0 = scmp.ge.s32.totalorder %s25_s17, 2  ;;  %p49_p2 = scmp.eq.s32.totalorder %s2843_s16, 0 }
   0x5   : > { %s41_s19 = sadd.s32 1, %s2831_s13  ;;  %p2287_p5 = scmp.ge.s32.totalorder %s2843_s16, 2 }
   0x6   : > { %s3701_s17 = smov (%p26_p0, %s25_s17), 0  ;;  %p50_p3 = por %p49_p2, %p48_p1 }
   0x7   : > { %s37_s18 = ssub.s32 %s2839_s15, %s3701_s17  ;;  %164 = sbr.rel (%p2287_p5) target bundleno = 47 (0x2f), region = 20 }
   0x8   : > { %p39_p4 = scmp.eq.s32.totalorder %s37_s18, 0 }
   0xa   : > { %s2901_s20 = scalar_select %p39_p4, %s2831_s13, %s41_s19  }
   0xe   : > { %167 = sbr.rel (!%p50_p3) target bundleno = 47 (0x2f), region = 24  ;;  %s169_s21 = sand.u32 (%p50_p3), 1, %s2831_s13  }
   0xf   : > { %s2484_s22 = sshll.u32 (%p50_p3), %s2839_s15, 5  ;;  %s2570_s23 = smul.u32 (%p50_p3), 448, %s169_s21 }
  0x10   : > { %s2909_s26 = scalar_lea.vmem (%p50_p3), %s3692_s0, %s2484_s22 }
  0x11   : > { %v190_v0 = vld [vmem:[%s2909_s26] sm:$0xff] (%p50_p3)  ;;  %v192_v1 = vld [vmem:[%s2909_s26 + $0x8] sm:$0xff] (%p50_p3)  ;;  %v194_v2 = vld [vmem:[%s2909_s26 + $0x10] sm:$0xff] (%p50_p3)  ;;  %s2917_s27 = scalar_lea.vmem (%p50_p3), [#allocation2], %s2570_s23 }
  0x12   : > { %v196_v3 = vld [vmem:[%s2909_s26 + $0x18] sm:$0xff] (%p50_p3)  ;;  %v198_v4 = vld [vmem:[%s2909_s26 + $0x40] sm:$0xff] (%p50_p3)  ;;  %v200_v5 = vld [vmem:[%s2909_s26 + $0x48] sm:$0xff] (%p50_p3)  ;;  %191 = vst [vmem:[%s2917_s27] sm:$0xff] (%p50_p3), %v190_v0 }
  0x13   : > { %193 = vst [vmem:[%s2917_s27 + $0x8] sm:$0xff] (%p50_p3), %v192_v1  ;;  %195 = vst [vmem:[%s2917_s27 + $0x10] sm:$0xff] (%p50_p3), %v194_v2  ;;  %v202_v6 = vld [vmem:[%s2909_s26 + $0x50] sm:$0xff] (%p50_p3)  ;;  %v204_v7 = vld [vmem:[%s2909_s26 + $0x58] sm:$0xff] (%p50_p3) }
  0x14   : > { %197 = vst [vmem:[%s2917_s27 + $0x18] sm:$0xff] (%p50_p3), %v196_v3  ;;  %199 = vst [vmem:[%s2917_s27 + $0x20] sm:$0xff] (%p50_p3), %v198_v4  ;;  %v206_v8 = vld [vmem:[%s2909_s26 + $0x80] sm:$0xff] (%p50_p3)  ;;  %v208_v9 = vld [vmem:[%s2909_s26 + $0x88] sm:$0xff] (%p50_p3) }
  0x15   : > { %201 = vst [vmem:[%s2917_s27 + $0x28] sm:$0xff] %v200_v5  ;;  %203 = vst [vmem:[%s2917_s27 + $0x30] sm:$0xff] %v202_v6  ;;  %v210_v10 = vld [vmem:[%s2909_s26 + $0x90] sm:$0xff]  ;;  %v212_v11 = vld [vmem:[%s2909_s26 + $0x98] sm:$0xff] }
  0x16   : > { %205 = vst [vmem:[%s2917_s27 + $0x38] sm:$0xff] %v204_v7  ;;  %207 = vst [vmem:[%s2917_s27 + $0x40] sm:$0xff] %v206_v8  ;;  %v214_v12 = vld [vmem:[%s2909_s26 + $0xc0] sm:$0xff]  ;;  %v216_v13 = vld [vmem:[%s2909_s26 + $0xc8] sm:$0xff] }
  0x17   : > { %209 = vst [vmem:[%s2917_s27 + $0x48] sm:$0xff] %v208_v9  ;;  %211 = vst [vmem:[%s2917_s27 + $0x50] sm:$0xff] %v210_v10  ;;  %v218_v14 = vld [vmem:[%s2909_s26 + $0xd0] sm:$0xff]  ;;  %v220_v15 = vld [vmem:[%s2909_s26 + $0xd8] sm:$0xff] }
  0x18   : > { %213 = vst [vmem:[%s2917_s27 + $0x58] sm:$0xff] %v212_v11  ;;  %215 = vst [vmem:[%s2917_s27 + $0x60] sm:$0xff] %v214_v12  ;;  %v222_v16 = vld [vmem:[%s2909_s26 + $0x100] sm:$0xff]  ;;  %v224_v17 = vld [vmem:[%s2909_s26 + $0x108] sm:$0xff] }
  0x19   : > { %217 = vst [vmem:[%s2917_s27 + $0x68] sm:$0xff] %v216_v13  ;;  %219 = vst [vmem:[%s2917_s27 + $0x70] sm:$0xff] %v218_v14  ;;  %v226_v18 = vld [vmem:[%s2909_s26 + $0x110] sm:$0xff]  ;;  %v228_v19 = vld [vmem:[%s2909_s26 + $0x118] sm:$0xff] }
  0x1a   : > { %221 = vst [vmem:[%s2917_s27 + $0x78] sm:$0xff] %v220_v15  ;;  %223 = vst [vmem:[%s2917_s27 + $0x80] sm:$0xff] %v222_v16  ;;  %v230_v20 = vld [vmem:[%s2909_s26 + $0x140] sm:$0xff]  ;;  %v232_v21 = vld [vmem:[%s2909_s26 + $0x148] sm:$0xff] }
  0x1b   : > { %225 = vst [vmem:[%s2917_s27 + $0x88] sm:$0xff] %v224_v17  ;;  %227 = vst [vmem:[%s2917_s27 + $0x90] sm:$0xff] %v226_v18  ;;  %v234_v22 = vld [vmem:[%s2909_s26 + $0x150] sm:$0xff]  ;;  %v236_v23 = vld [vmem:[%s2909_s26 + $0x158] sm:$0xff] }
  0x1c   : > { %229 = vst [vmem:[%s2917_s27 + $0x98] sm:$0xff] %v228_v19  ;;  %231 = vst [vmem:[%s2917_s27 + $0xa0] sm:$0xff] %v230_v20  ;;  %v238_v24 = vld [vmem:[%s2909_s26 + $0x180] sm:$0xff]  ;;  %v240_v25 = vld [vmem:[%s2909_s26 + $0x188] sm:$0xff] }
  0x1d   : > { %233 = vst [vmem:[%s2917_s27 + $0xa8] sm:$0xff] %v232_v21  ;;  %235 = vst [vmem:[%s2917_s27 + $0xb0] sm:$0xff] %v234_v22  ;;  %v242_v26 = vld [vmem:[%s2909_s26 + $0x190] sm:$0xff]  ;;  %v244_v27 = vld [vmem:[%s2909_s26 + $0x198] sm:$0xff] }
  0x1e   : > { %237 = vst [vmem:[%s2917_s27 + $0xb8] sm:$0xff] %v236_v23  ;;  %239 = vst [vmem:[%s2917_s27 + $0xc0] sm:$0xff] %v238_v24  ;;  %v246_v28 = vld [vmem:[%s2909_s26 + $0x1c0] sm:$0xff]  ;;  %v248_v29 = vld [vmem:[%s2909_s26 + $0x1c8] sm:$0xff] }
  0x1f   : > { %241 = vst [vmem:[%s2917_s27 + $0xc8] sm:$0xff] %v240_v25  ;;  %243 = vst [vmem:[%s2917_s27 + $0xd0] sm:$0xff] %v242_v26  ;;  %v250_v30 = vld [vmem:[%s2909_s26 + $0x1d0] sm:$0xff]  ;;  %v252_v31 = vld [vmem:[%s2909_s26 + $0x1d8] sm:$0xff] }
  0x20   : > { %245 = vst [vmem:[%s2917_s27 + $0xd8] sm:$0xff] %v244_v27  ;;  %247 = vst [vmem:[%s2917_s27 + $0xe0] sm:$0xff] %v246_v28  ;;  %v254_v32 = vld [vmem:[%s2909_s26 + $0x200] sm:$0xff]  ;;  %v256_v33 = vld [vmem:[%s2909_s26 + $0x208] sm:$0xff] }
  0x21   : > { %249 = vst [vmem:[%s2917_s27 + $0xe8] sm:$0xff] %v248_v29  ;;  %251 = vst [vmem:[%s2917_s27 + $0xf0] sm:$0xff] %v250_v30  ;;  %v258_v34 = vld [vmem:[%s2909_s26 + $0x210] sm:$0xff]  ;;  %v260_v35 = vld [vmem:[%s2909_s26 + $0x218] sm:$0xff] }
  0x22   : > { %253 = vst [vmem:[%s2917_s27 + $0xf8] sm:$0xff] %v252_v31  ;;  %255 = vst [vmem:[%s2917_s27 + $0x100] sm:$0xff] %v254_v32  ;;  %v262_v36 = vld [vmem:[%s2909_s26 + $0x240] sm:$0xff]  ;;  %v264_v37 = vld [vmem:[%s2909_s26 + $0x248] sm:$0xff] }
  0x23   : > { %257 = vst [vmem:[%s2917_s27 + $0x108] sm:$0xff] %v256_v33  ;;  %259 = vst [vmem:[%s2917_s27 + $0x110] sm:$0xff] %v258_v34  ;;  %v266_v38 = vld [vmem:[%s2909_s26 + $0x250] sm:$0xff]  ;;  %v268_v39 = vld [vmem:[%s2909_s26 + $0x258] sm:$0xff] }
  0x24   : > { %261 = vst [vmem:[%s2917_s27 + $0x118] sm:$0xff] %v260_v35  ;;  %263 = vst [vmem:[%s2917_s27 + $0x120] sm:$0xff] %v262_v36  ;;  %v270_v40 = vld [vmem:[%s2909_s26 + $0x280] sm:$0xff]  ;;  %v272_v41 = vld [vmem:[%s2909_s26 + $0x288] sm:$0xff] }
  0x25   : > { %265 = vst [vmem:[%s2917_s27 + $0x128] sm:$0xff] %v264_v37  ;;  %267 = vst [vmem:[%s2917_s27 + $0x130] sm:$0xff] %v266_v38  ;;  %v274_v42 = vld [vmem:[%s2909_s26 + $0x290] sm:$0xff]  ;;  %v276_v43 = vld [vmem:[%s2909_s26 + $0x298] sm:$0xff] }
  0x26   : > { %269 = vst [vmem:[%s2917_s27 + $0x138] sm:$0xff] %v268_v39  ;;  %271 = vst [vmem:[%s2917_s27 + $0x140] sm:$0xff] %v270_v40  ;;  %v278_v44 = vld [vmem:[%s2909_s26 + $0x2c0] sm:$0xff]  ;;  %v280_v45 = vld [vmem:[%s2909_s26 + $0x2c8] sm:$0xff] }
  0x27   : > { %273 = vst [vmem:[%s2917_s27 + $0x148] sm:$0xff] %v272_v41  ;;  %275 = vst [vmem:[%s2917_s27 + $0x150] sm:$0xff] %v274_v42  ;;  %v282_v46 = vld [vmem:[%s2909_s26 + $0x2d0] sm:$0xff]  ;;  %v284_v47 = vld [vmem:[%s2909_s26 + $0x2d8] sm:$0xff] }
  0x28   : > { %277 = vst [vmem:[%s2917_s27 + $0x158] sm:$0xff] %v276_v43  ;;  %279 = vst [vmem:[%s2917_s27 + $0x160] sm:$0xff] %v278_v44  ;;  %v286_v48 = vld [vmem:[%s2909_s26 + $0x300] sm:$0xff]  ;;  %v288_v49 = vld [vmem:[%s2909_s26 + $0x308] sm:$0xff] }
  0x29   : > { %281 = vst [vmem:[%s2917_s27 + $0x168] sm:$0xff] %v280_v45  ;;  %283 = vst [vmem:[%s2917_s27 + $0x170] sm:$0xff] %v282_v46  ;;  %v290_v50 = vld [vmem:[%s2909_s26 + $0x310] sm:$0xff]  ;;  %v292_v51 = vld [vmem:[%s2909_s26 + $0x318] sm:$0xff] }
  0x2a   : > { %285 = vst [vmem:[%s2917_s27 + $0x178] sm:$0xff] %v284_v47  ;;  %287 = vst [vmem:[%s2917_s27 + $0x180] sm:$0xff] %v286_v48  ;;  %v294_v52 = vld [vmem:[%s2909_s26 + $0x340] sm:$0xff]  ;;  %v296_v53 = vld [vmem:[%s2909_s26 + $0x348] sm:$0xff] }
  0x2b   : > { %289 = vst [vmem:[%s2917_s27 + $0x188] sm:$0xff] %v288_v49  ;;  %291 = vst [vmem:[%s2917_s27 + $0x190] sm:$0xff] %v290_v50  ;;  %v298_v54 = vld [vmem:[%s2909_s26 + $0x350] sm:$0xff]  ;;  %v300_v55 = vld [vmem:[%s2909_s26 + $0x358] sm:$0xff] }
  0x2c   : > { %293 = vst [vmem:[%s2917_s27 + $0x198] sm:$0xff] %v292_v51  ;;  %295 = vst [vmem:[%s2917_s27 + $0x1a0] sm:$0xff] %v294_v52 }
  0x2d   : > { %297 = vst [vmem:[%s2917_s27 + $0x1a8] sm:$0xff] %v296_v53  ;;  %299 = vst [vmem:[%s2917_s27 + $0x1b0] sm:$0xff] %v298_v54 }
  0x2e   : > { %301 = vst [vmem:[%s2917_s27 + $0x1b8] sm:$0xff] %v300_v55 }
  0x2f PF: > { %p2290_p6 = scmp.ge.s32.totalorder %s2843_s16, 1  ;;  %p321_p7 = scmp.lt.s32.totalorder %s2843_s16, 3 }
  0x31   : > { %p322_p8 = pnand %p2290_p6, %p321_p7 }
  0x32   : > { %s328_s28 = sand.u32 (!%p322_p8), 1, %s2827_s12   ;;  %s2291_s29 = sshll.u32 (!%p322_p8), %s2835_s14, 7 }
  0x33   : > { %325 = sbr.rel (%p322_p8) target bundleno = 484 (0x1e4), region = 51  ;;  %p374_p9 = scmp.lt.s32.totalorder (!%p322_p8), %s2291_s29, 255 }
  0x34   : > { %s2571_s30 = smul.u32 (!%p322_p8), 448, %s328_s28  ;;  %p2294_p10 = scmp.ne.s32.totalorder (!%p322_p8), %s2835_s14, 0 }
  0x36   : > { %s3034_s8 = scalar_lea.vmem (!%p322_p8), [#allocation2], %s2571_s30 }
  0x3a   : > { %s3703_s29 = smov (!%p374_p9, %s2291_s29), 255  ;;  %404 = sbr.rel (%p2294_p10) target bundleno = 74 (0x4a), region = 59 }
  0x3b   : > { %s2485_s4 = sshll.u32 %s3703_s29, 3  ;;  %v2845_v56 = vmov (!%p2294_p10), 0.0  }
  0x3c   : > { %s3032_s7 = scalar_lea.vmem %s3693_s1, %s2485_s4  ;;  %405 = vst [vmem:[%s3695_s3] sm:$0xff] (!%p2294_p10), %v2845_v56  ;;  %406 = vst [vmem:[%s3695_s3 + $0x8] sm:$0xff] (!%p2294_p10), %v2845_v56 }
  0x3d   : > { %407 = vst [vmem:[%s3695_s3 + $0x10] sm:$0xff] (!%p2294_p10), %v2845_v56  ;;  %408 = vst [vmem:[%s3695_s3 + $0x18] sm:$0xff] (!%p2294_p10), %v2845_v56 }
  0x3e   : > { %409 = vst [vmem:[%s3695_s3 + $0x20] sm:$0xff] (!%p2294_p10), %v2845_v56  ;;  %410 = vst [vmem:[%s3695_s3 + $0x28] sm:$0xff] (!%p2294_p10), %v2845_v56 }
  0x3f   : > { %411 = vst [vmem:[%s3695_s3 + $0x30] sm:$0xff] (!%p2294_p10), %v2845_v56  ;;  %412 = vst [vmem:[%s3695_s3 + $0x38] sm:$0xff] (!%p2294_p10), %v2845_v56 }
  0x40   : > { %413 = vst [vmem:[%s3695_s3 + $0x40] sm:$0xff] (!%p2294_p10), %v2845_v56  ;;  %414 = vst [vmem:[%s3695_s3 + $0x48] sm:$0xff] (!%p2294_p10), %v2845_v56 }
  0x41   : > { %415 = vst [vmem:[%s3695_s3 + $0x50] sm:$0xff] %v2845_v56  ;;  %416 = vst [vmem:[%s3695_s3 + $0x58] sm:$0xff] %v2845_v56 }
  0x42   : > { %417 = vst [vmem:[%s3695_s3 + $0x60] sm:$0xff] %v2845_v56  ;;  %418 = vst [vmem:[%s3695_s3 + $0x68] sm:$0xff] %v2845_v56 }
  0x43   : > { %419 = vst [vmem:[%s3695_s3 + $0x70] sm:$0xff] %v2845_v56  ;;  %420 = vst [vmem:[%s3695_s3 + $0x78] sm:$0xff] %v2845_v56 }
  0x44   : > { %421 = vst [vmem:[%s3695_s3 + $0x80] sm:$0xff] %v2845_v56  ;;  %422 = vst [vmem:[%s3695_s3 + $0x88] sm:$0xff] %v2845_v56 }
  0x45   : > { %423 = vst [vmem:[%s3695_s3 + $0x90] sm:$0xff] %v2845_v56  ;;  %424 = vst [vmem:[%s3695_s3 + $0x98] sm:$0xff] %v2845_v56 }
  0x46   : > { %425 = vst [vmem:[%s3695_s3 + $0xa0] sm:$0xff] %v2845_v56  ;;  %426 = vst [vmem:[%s3695_s3 + $0xa8] sm:$0xff] %v2845_v56 }
  0x47   : > { %427 = vst [vmem:[%s3695_s3 + $0xb0] sm:$0xff] %v2845_v56  ;;  %428 = vst [vmem:[%s3695_s3 + $0xb8] sm:$0xff] %v2845_v56 }
  0x48   : > { %429 = vst [vmem:[%s3695_s3 + $0xc0] sm:$0xff] %v2845_v56  ;;  %430 = vst [vmem:[%s3695_s3 + $0xc8] sm:$0xff] %v2845_v56 }
  0x49   : > { %431 = vst [vmem:[%s3695_s3 + $0xd0] sm:$0xff] %v2845_v56  ;;  %432 = vst [vmem:[%s3695_s3 + $0xd8] sm:$0xff] %v2845_v56 }
  0x4a PF: > { %v2613_v57 = vld [vmem:[%s3032_s7 + $0x4] ss:$8 sps:$4 sm:$0xff]   ;;  %v2617_v59 = vld [vmem:[%s3032_s7] ss:$8 sps:$4 sm:$0xff]   ;;  %v2619_v61 = vld [vmem:[%s3032_s7 + $0x14] ss:$8 sps:$4 sm:$0xff]  }
  0x4b   : > { %v2615_v58 = vld [vmem:[%s3032_s7 + $0x204] ss:$8 sps:$4 sm:$0xff]   ;;  %1565 = vmatprep.subr.bf16.mxu1 %v2613_v57  ;;  %v2618_v60 = vld [vmem:[%s3032_s7 + $0x200] ss:$8 sps:$4 sm:$0xff]   ;;  %v2621_v62 = vld [vmem:[%s3032_s7 + $0x214] ss:$8 sps:$4 sm:$0xff]  }
  0x4c   : > { %1771 = vmatprep.subr.bf16.mxu0 %v2615_v58  ;;  %1566 = vmatpush1.bf16.msra.mxu1 %v2617_v59  ;;  %v2623_v63 = vld [vmem:[%s3032_s7 + $0x10] ss:$8 sps:$4 sm:$0xff]   ;;  %v2625_v1 = vld [vmem:[%s3032_s7 + $0x24] ss:$8 sps:$4 sm:$0xff]   ;;  %v2629_v3 = vld [vmem:[%s3032_s7 + $0x20] ss:$8 sps:$4 sm:$0xff]  }
  0x4d   : > { %1772 = vmatpush1.bf16.msra.mxu0 %v2618_v60  ;;  %1567 = vmatprep.subr.bf16.mxu1 %v2619_v61  ;;  %v2624_v0 = vld [vmem:[%s3032_s7 + $0x210] ss:$8 sps:$4 sm:$0xff]   ;;  %v2627_v2 = vld [vmem:[%s3032_s7 + $0x224] ss:$8 sps:$4 sm:$0xff]   ;;  %v2630_v4 = vld [vmem:[%s3032_s7 + $0x220] ss:$8 sps:$4 sm:$0xff]  }
  0x4e   : > { %1773 = vmatprep.subr.bf16.mxu0 %v2621_v62  ;;  %v2631_v5 = vld [vmem:[%s3032_s7 + $0x34] ss:$8 sps:$4 sm:$0xff]   ;;  %v2635_v7 = vld [vmem:[%s3032_s7 + $0x30] ss:$8 sps:$4 sm:$0xff]   ;;  %v2637_v9 = vld [vmem:[%s3032_s7 + $0x44] ss:$8 sps:$4 sm:$0xff]  }
  0x4f   : > { %v2633_v6 = vld [vmem:[%s3032_s7 + $0x234] ss:$8 sps:$4 sm:$0xff]   ;;  %v2636_v8 = vld [vmem:[%s3032_s7 + $0x230] ss:$8 sps:$4 sm:$0xff]   ;;  %v2639_v10 = vld [vmem:[%s3032_s7 + $0x244] ss:$8 sps:$4 sm:$0xff]  }
  0x50   : > { %1568 = vmatpush1.bf16.msra.mxu1 %v2623_v63  ;;  %v2641_v11 = vld [vmem:[%s3032_s7 + $0x40] ss:$8 sps:$4 sm:$0xff]   ;;  %v2643_v13 = vld [vmem:[%s3032_s7 + $0x54] ss:$8 sps:$4 sm:$0xff]   ;;  %v2647_v15 = vld [vmem:[%s3032_s7 + $0x50] ss:$8 sps:$4 sm:$0xff]  }
  0x51   : > { %1774 = vmatpush1.bf16.msra.mxu0 %v2624_v0  ;;  %1569 = vmatprep.subr.bf16.mxu1 %v2625_v1  ;;  %v2642_v12 = vld [vmem:[%s3032_s7 + $0x240] ss:$8 sps:$4 sm:$0xff]   ;;  %v2645_v14 = vld [vmem:[%s3032_s7 + $0x254] ss:$8 sps:$4 sm:$0xff]   ;;  %v2648_v16 = vld [vmem:[%s3032_s7 + $0x250] ss:$8 sps:$4 sm:$0xff]  }
  0x52   : > { %1775 = vmatprep.subr.bf16.mxu0 %v2627_v2  ;;  %v2649_v17 = vld [vmem:[%s3032_s7 + $0x64] ss:$8 sps:$4 sm:$0xff]   ;;  %v2653_v19 = vld [vmem:[%s3032_s7 + $0x60] ss:$8 sps:$4 sm:$0xff]   ;;  %v2655_v21 = vld [vmem:[%s3032_s7 + $0x74] ss:$8 sps:$4 sm:$0xff]  }
  0x53   : > { %v2651_v18 = vld [vmem:[%s3032_s7 + $0x264] ss:$8 sps:$4 sm:$0xff]   ;;  %v2654_v20 = vld [vmem:[%s3032_s7 + $0x260] ss:$8 sps:$4 sm:$0xff]   ;;  %v2657_v22 = vld [vmem:[%s3032_s7 + $0x274] ss:$8 sps:$4 sm:$0xff]  }
  0x54   : > { %1570 = vmatpush1.bf16.msra.mxu1 %v2629_v3  ;;  %v2659_v23 = vld [vmem:[%s3032_s7 + $0x70] ss:$8 sps:$4 sm:$0xff]   ;;  %v2661_v25 = vld [vmem:[%s3032_s7 + $0x84] ss:$8 sps:$4 sm:$0xff]   ;;  %v2665_v27 = vld [vmem:[%s3032_s7 + $0x80] ss:$8 sps:$4 sm:$0xff]  }
  0x55   : > { %1776 = vmatpush1.bf16.msra.mxu0 %v2630_v4  ;;  %1571 = vmatprep.subr.bf16.mxu1 %v2631_v5  ;;  %v2660_v24 = vld [vmem:[%s3032_s7 + $0x270] ss:$8 sps:$4 sm:$0xff]   ;;  %v2663_v26 = vld [vmem:[%s3032_s7 + $0x284] ss:$8 sps:$4 sm:$0xff]   ;;  %v2666_v28 = vld [vmem:[%s3032_s7 + $0x280] ss:$8 sps:$4 sm:$0xff]  }
  0x56   : > { %1777 = vmatprep.subr.bf16.mxu0 %v2633_v6  ;;  %v2667_v29 = vld [vmem:[%s3032_s7 + $0x94] ss:$8 sps:$4 sm:$0xff]   ;;  %v2671_v31 = vld [vmem:[%s3032_s7 + $0x90] ss:$8 sps:$4 sm:$0xff]   ;;  %v2673_v33 = vld [vmem:[%s3032_s7 + $0xa4] ss:$8 sps:$4 sm:$0xff]  }
  0x57   : > { %v2669_v30 = vld [vmem:[%s3032_s7 + $0x294] ss:$8 sps:$4 sm:$0xff]   ;;  %v2672_v32 = vld [vmem:[%s3032_s7 + $0x290] ss:$8 sps:$4 sm:$0xff]   ;;  %v2675_v34 = vld [vmem:[%s3032_s7 + $0x2a4] ss:$8 sps:$4 sm:$0xff]  }
  0x58   : > { %1572 = vmatpush1.bf16.msra.mxu1 %v2635_v7  ;;  %v2677_v35 = vld [vmem:[%s3032_s7 + $0xa0] ss:$8 sps:$4 sm:$0xff]   ;;  %v2679_v37 = vld [vmem:[%s3032_s7 + $0xb4] ss:$8 sps:$4 sm:$0xff]   ;;  %v2683_v39 = vld [vmem:[%s3032_s7 + $0xb0] ss:$8 sps:$4 sm:$0xff]  }
  0x59   : > { %1778 = vmatpush1.bf16.msra.mxu0 %v2636_v8  ;;  %1573 = vmatprep.subr.bf16.mxu1 %v2637_v9  ;;  %v2678_v36 = vld [vmem:[%s3032_s7 + $0x2a0] ss:$8 sps:$4 sm:$0xff]   ;;  %v2681_v38 = vld [vmem:[%s3032_s7 + $0x2b4] ss:$8 sps:$4 sm:$0xff]   ;;  %v2684_v40 = vld [vmem:[%s3032_s7 + $0x2b0] ss:$8 sps:$4 sm:$0xff]  }
  0x5a   : > { %1779 = vmatprep.subr.bf16.mxu0 %v2639_v10  ;;  %v461_v41 = vld [vmem:[%s3034_s8] sm:$0xff]  ;;  %v463_v46 = vld [vmem:[%s3034_s8 + $0x10] sm:$0xff]  ;;  %p2479_p11 = scmp.ne.s32.totalorder %s2835_s14, 1 }
  0x5b   : > { %v465_v42 = vld [vmem:[%s3034_s8 + $0x20] sm:$0xff]  ;;  %v467_v47 = vld [vmem:[%s3034_s8 + $0x30] sm:$0xff] }
  0x5c   : > { %1574 = vmatpush1.bf16.msra.mxu1 %v2641_v11  ;;  %v2685_v43 = vld [vmem:[%s3032_s7 + $0xc4] ss:$8 sps:$4 sm:$0xff]   ;;  %v2296_v45 = vcombine.high %v461_v41, %v465_v42  ;;  %v2300_v48 = vcombine.high %v463_v46, %v467_v47  ;;  %v2689_v49 = vld [vmem:[%s3032_s7 + $0xc0] ss:$8 sps:$4 sm:$0xff]   ;;  %v2691_v51 = vld [vmem:[%s3032_s7 + $0xd4] ss:$8 sps:$4 sm:$0xff]   ;;  %v2295_v5 = vcombine.low %v461_v41, %v465_v42  ;;  %v2299_v6 = vcombine.low %v463_v46, %v467_v47 }
  0x5d   : > { %1780 = vmatpush1.bf16.msra.mxu0 %v2642_v12  ;;  %1575 = vmatprep.subr.bf16.mxu1 %v2643_v13  ;;  %v2687_v44 = vld [vmem:[%s3032_s7 + $0x2c4] ss:$8 sps:$4 sm:$0xff]   ;;  %v2690_v50 = vld [vmem:[%s3032_s7 + $0x2c0] ss:$8 sps:$4 sm:$0xff]   ;;  %v2693_v52 = vld [vmem:[%s3032_s7 + $0x2d4] ss:$8 sps:$4 sm:$0xff]  }
  0x5e   : > { %1781 = vmatprep.subr.bf16.mxu0 %v2645_v14  ;;  %1597 = vmatprep.mubr.bf16.mxu1 %v2296_v45  ;;  %v2695_v53 = vld [vmem:[%s3032_s7 + $0xd0] ss:$8 sps:$4 sm:$0xff]   ;;  %v2697_v55 = vld [vmem:[%s3032_s7 + $0xe4] ss:$8 sps:$4 sm:$0xff]   ;;  %v2701_v57 = vld [vmem:[%s3032_s7 + $0xe0] ss:$8 sps:$4 sm:$0xff]  }
  0x5f   : > { %1803 = vmatprep.mubr.bf16.mxu0 %v2300_v48  ;;  %v2696_v54 = vld [vmem:[%s3032_s7 + $0x2d0] ss:$8 sps:$4 sm:$0xff]   ;;  %v2699_v56 = vld [vmem:[%s3032_s7 + $0x2e4] ss:$8 sps:$4 sm:$0xff]   ;;  %v2702_v58 = vld [vmem:[%s3032_s7 + $0x2e0] ss:$8 sps:$4 sm:$0xff]  }
  0x60   : > { %1576 = vmatpush1.bf16.msra.mxu1 %v2647_v15  ;;  %v2703_v59 = vld [vmem:[%s3032_s7 + $0xf4] ss:$8 sps:$4 sm:$0xff]   ;;  %v2707_v61 = vld [vmem:[%s3032_s7 + $0xf0] ss:$8 sps:$4 sm:$0xff]   ;;  %v2711_v63 = vld [vmem:[%s3032_s7 + $0x104] ss:$8 sps:$4 sm:$0xff]  }
  0x61   : > { %1782 = vmatpush1.bf16.msra.mxu0 %v2648_v16  ;;  %1577 = vmatprep.subr.bf16.mxu1 %v2649_v17  ;;  %v2705_v60 = vld [vmem:[%s3032_s7 + $0x2f4] ss:$8 sps:$4 sm:$0xff]   ;;  %v2708_v62 = vld [vmem:[%s3032_s7 + $0x2f0] ss:$8 sps:$4 sm:$0xff]   ;;  %v2714_v0 = vld [vmem:[%s3032_s7 + $0x304] ss:$8 sps:$4 sm:$0xff]  }
  0x62   : > { %1783 = vmatprep.subr.bf16.mxu0 %v2651_v18  ;;  %v2709_v1 = vld [vmem:[%s3032_s7 + $0x100] ss:$8 sps:$4 sm:$0xff]   ;;  %v471_v7 = vld [vmem:[%s3034_s8 + $0x50] sm:$0xff]  ;;  %v2723_v15 = vld [vmem:[%s3032_s7 + $0x124] ss:$8 sps:$4 sm:$0xff]  }
  0x63   : > { %v2712_v2 = vld [vmem:[%s3032_s7 + $0x300] ss:$8 sps:$4 sm:$0xff]   ;;  %v475_v8 = vld [vmem:[%s3034_s8 + $0x70] sm:$0xff]  ;;  %v2726_v16 = vld [vmem:[%s3032_s7 + $0x324] ss:$8 sps:$4 sm:$0xff]  }
  0x64   : > { %1578 = vmatpush1.bf16.msra.mxu1 %v2653_v19  ;;  %v469_v3 = vld [vmem:[%s3034_s8 + $0x40] sm:$0xff]  ;;  %v2717_v9 = vld [vmem:[%s3032_s7 + $0x114] ss:$8 sps:$4 sm:$0xff]   ;;  %v2308_v12 = vcombine.high %v471_v7, %v475_v8  ;;  %v2715_v13 = vld [vmem:[%s3032_s7 + $0x110] ss:$8 sps:$4 sm:$0xff]  }
  0x65   : > { %1784 = vmatpush1.bf16.msra.mxu0 %v2654_v20  ;;  %1579 = vmatprep.subr.bf16.mxu1 %v2655_v21  ;;  %v473_v4 = vld [vmem:[%s3034_s8 + $0x60] sm:$0xff]  ;;  %v2720_v10 = vld [vmem:[%s3032_s7 + $0x314] ss:$8 sps:$4 sm:$0xff]   ;;  %v2718_v14 = vld [vmem:[%s3032_s7 + $0x310] ss:$8 sps:$4 sm:$0xff]  }
  0x66   : > { %1785 = vmatprep.subr.bf16.mxu0 %v2657_v22  ;;  %v2304_v11 = vcombine.high %v469_v3, %v473_v4  ;;  %v2721_v17 = vld [vmem:[%s3032_s7 + $0x120] ss:$8 sps:$4 sm:$0xff]   ;;  %v2303_v21 = vcombine.low %v469_v3, %v473_v4  ;;  %v2307_v22 = vcombine.low %v471_v7, %v475_v8  ;;  %v2741_v41 = vld [vmem:[%s3032_s7 + $0x154] ss:$8 sps:$4 sm:$0xff]   ;;  %v2739_v45 = vld [vmem:[%s3032_s7 + $0x150] ss:$8 sps:$4 sm:$0xff]  }
  0x67   : > { %v2724_v18 = vld [vmem:[%s3032_s7 + $0x320] ss:$8 sps:$4 sm:$0xff]   ;;  %v2744_v42 = vld [vmem:[%s3032_s7 + $0x354] ss:$8 sps:$4 sm:$0xff]   ;;  %v2742_v46 = vld [vmem:[%s3032_s7 + $0x350] ss:$8 sps:$4 sm:$0xff]  }
  0x68   : > { %1580 = vmatpush1.bf16.msra.mxu1 %v2659_v23  ;;  %v477_v19 = vld [vmem:[%s3034_s8 + $0x80] sm:$0xff]  ;;  %v479_v23 = vld [vmem:[%s3034_s8 + $0x90] sm:$0xff] }
  0x69   : > { %1786 = vmatpush1.bf16.msra.mxu0 %v2660_v24  ;;  %1581 = vmatprep.subr.bf16.mxu1 %v2661_v25  ;;  %v481_v20 = vld [vmem:[%s3034_s8 + $0xa0] sm:$0xff]  ;;  %v483_v24 = vld [vmem:[%s3034_s8 + $0xb0] sm:$0xff] }
  0x6a   : > { %1787 = vmatprep.subr.bf16.mxu0 %v2663_v26  ;;  %v2729_v25 = vld [vmem:[%s3032_s7 + $0x134] ss:$8 sps:$4 sm:$0xff]   ;;  %v2747_v47 = vld [vmem:[%s3032_s7 + $0x164] ss:$8 sps:$4 sm:$0xff]   ;;  %v2757_v7 = vld [vmem:[%s3032_s7 + $0x180] ss:$8 sps:$4 sm:$0xff]  }
  0x6b   : > { %v2732_v26 = vld [vmem:[%s3032_s7 + $0x334] ss:$8 sps:$4 sm:$0xff]   ;;  %v2750_v48 = vld [vmem:[%s3032_s7 + $0x364] ss:$8 sps:$4 sm:$0xff]   ;;  %v2760_v8 = vld [vmem:[%s3032_s7 + $0x380] ss:$8 sps:$4 sm:$0xff]  }
  0x6c   : > { %1582 = vmatpush1.bf16.msra.mxu1 %v2665_v27  ;;  %v2312_v27 = vcombine.high %v477_v19, %v481_v20  ;;  %v505_v4 = vld [vmem:[%s3034_s8 + $0x160] sm:$0xff] }
  0x6d   : > { %1788 = vmatpush1.bf16.msra.mxu0 %v2666_v28  ;;  %1583 = vmatprep.subr.bf16.mxu1 %v2667_v29  ;;  %v2316_v28 = vcombine.high %v479_v23, %v483_v24  ;;  %v2727_v29 = vld [vmem:[%s3032_s7 + $0x130] ss:$8 sps:$4 sm:$0xff]  }
  0x6e   : > { %1789 = vmatprep.subr.bf16.mxu0 %v2669_v30  ;;  %v2730_v30 = vld [vmem:[%s3032_s7 + $0x330] ss:$8 sps:$4 sm:$0xff]  }
  0x70   : > { %1584 = vmatpush1.bf16.msra.mxu1 %v2671_v31  ;;  %v2735_v31 = vld [vmem:[%s3032_s7 + $0x144] ss:$8 sps:$4 sm:$0xff]  }
  0x71   : > { %1790 = vmatpush1.bf16.msra.mxu0 %v2672_v32  ;;  %1585 = vmatprep.subr.bf16.mxu1 %v2673_v33  ;;  %v2738_v32 = vld [vmem:[%s3032_s7 + $0x344] ss:$8 sps:$4 sm:$0xff]   ;;  %v2733_v33 = vld [vmem:[%s3032_s7 + $0x140] ss:$8 sps:$4 sm:$0xff]  }
  0x72   : > { %1791 = vmatprep.subr.bf16.mxu0 %v2675_v34  ;;  %v485_v34 = vld [vmem:[%s3034_s8 + $0xc0] sm:$0xff] }
  0x74   : > { %1586 = vmatpush1.bf16.msra.mxu1 %v2677_v35  ;;  %v489_v35 = vld [vmem:[%s3034_s8 + $0xe0] sm:$0xff] }
  0x75   : > { %1792 = vmatpush1.bf16.msra.mxu0 %v2678_v36  ;;  %1587 = vmatprep.subr.bf16.mxu1 %v2679_v37  ;;  %v2311_v36 = vcombine.low %v477_v19, %v481_v20  ;;  %v2315_v37 = vcombine.low %v479_v23, %v483_v24  ;;  %v513_v20 = vld [vmem:[%s3034_s8 + $0x1a0] sm:$0xff] }
  0x76   : > { %1793 = vmatprep.subr.bf16.mxu0 %v2681_v38  ;;  %v487_v38 = vld [vmem:[%s3034_s8 + $0xd0] sm:$0xff]  ;;  %v2769_v23 = vld [vmem:[%s3032_s7 + $0x1a0] ss:$8 sps:$4 sm:$0xff]  }
  0x77   : > { %v2772_v24 = vld [vmem:[%s3032_s7 + $0x3a0] ss:$8 sps:$4 sm:$0xff]  }
  0x78   : > { %1588 = vmatpush1.bf16.msra.mxu1 %v2683_v39  ;;  %v491_v39 = vld [vmem:[%s3034_s8 + $0xf0] sm:$0xff] }
  0x79   : > { %1794 = vmatpush1.bf16.msra.mxu0 %v2684_v40  ;;  %1589 = vmatprep.subr.bf16.mxu1 %v2685_v43  ;;  %v2736_v40 = vld [vmem:[%s3032_s7 + $0x340] ss:$8 sps:$4 sm:$0xff]   ;;  %v2320_v43 = vcombine.high %v485_v34, %v489_v35 }
  0x7a   : > { %1795 = vmatprep.subr.bf16.mxu0 %v2687_v44  ;;  %v2324_v44 = vcombine.high %v487_v38, %v491_v39 }
  0x7c   : > { %1590 = vmatpush1.bf16.msra.mxu1 %v2689_v49  ;;  %v493_v49 = vld [vmem:[%s3034_s8 + $0x100] sm:$0xff] }
  0x7d   : > { %1796 = vmatpush1.bf16.msra.mxu0 %v2690_v50  ;;  %1591 = vmatprep.subr.bf16.mxu1 %v2691_v51  ;;  %v497_v50 = vld [vmem:[%s3034_s8 + $0x120] sm:$0xff]  ;;  %v2319_v51 = vcombine.low %v485_v34, %v489_v35 }
  0x7e   : > { %1797 = vmatprep.subr.bf16.mxu0 %v2693_v52  ;;  %v2323_v52 = vcombine.low %v487_v38, %v491_v39  ;;  %v468_v38 = vld [vmem:[%s3034_s8 + $0x38] sm:$0xff]  ;;  %v2781_v39 = vld [vmem:[%s3032_s7 + $0x1c0] ss:$8 sps:$4 sm:$0xff]  }
  0x80   : > { %1592 = vmatpush1.bf16.msra.mxu1 %v2695_v53  ;;  %v495_v53 = vld [vmem:[%s3034_s8 + $0x110] sm:$0xff] }
  0x81   : > { %1798 = vmatpush1.bf16.msra.mxu0 %v2696_v54  ;;  %1593 = vmatprep.subr.bf16.mxu1 %v2697_v55  ;;  %v499_v54 = vld [vmem:[%s3034_s8 + $0x130] sm:$0xff]  ;;  %v2745_v55 = vld [vmem:[%s3032_s7 + $0x160] ss:$8 sps:$4 sm:$0xff]  }
  0x82   : > { %1799 = vmatprep.subr.bf16.mxu0 %v2699_v56  ;;  %v2748_v56 = vld [vmem:[%s3032_s7 + $0x360] ss:$8 sps:$4 sm:$0xff]   ;;  %v2331_v3 = vcombine.low %v495_v53, %v499_v54 }
  0x84   : > { %1594 = vmatpush1.bf16.msra.mxu1 %v2701_v57  ;;  %v2753_v57 = vld [vmem:[%s3032_s7 + $0x174] ss:$8 sps:$4 sm:$0xff]  }
  0x85   : > { %1800 = vmatpush1.bf16.msra.mxu0 %v2702_v58  ;;  %1595 = vmatprep.subr.bf16.mxu1 %v2703_v59  ;;  %v2756_v58 = vld [vmem:[%s3032_s7 + $0x374] ss:$8 sps:$4 sm:$0xff]   ;;  %v2328_v59 = vcombine.high %v493_v49, %v497_v50 }
  0x86   : > { %1801 = vmatprep.subr.bf16.mxu0 %v2705_v60  ;;  %v2332_v60 = vcombine.high %v495_v53, %v499_v54  ;;  %v2799_v53 = vld [vmem:[%s3032_s7 + $0x1f0] ss:$8 sps:$4 sm:$0xff]  }
  0x87   : > { %v2802_v54 = vld [vmem:[%s3032_s7 + $0x3f0] ss:$8 sps:$4 sm:$0xff]  }
  0x88   : > { %1596 = vmatpush1.bf16.msra.mxu1 %v2707_v61  ;;  %v2751_v61 = vld [vmem:[%s3032_s7 + $0x170] ss:$8 sps:$4 sm:$0xff]  }
  0x89   : > { %1802 = vmatpush1.bf16.msra.mxu0 %v2708_v62  ;;  %1668 = vmatprep.subr.bf16.mxu1 %v2711_v63  ;;  %v2754_v62 = vld [vmem:[%s3032_s7 + $0x370] ss:$8 sps:$4 sm:$0xff]   ;;  %v2759_v63 = vld [vmem:[%s3032_s7 + $0x184] ss:$8 sps:$4 sm:$0xff]  }
  0x8a   : > { %1874 = vmatprep.subr.bf16.mxu0 %v2714_v0  ;;  %v2762_v0 = vld [vmem:[%s3032_s7 + $0x384] ss:$8 sps:$4 sm:$0xff]  }
  0x8b   : > { %1598 = vmatmul.mubr.bf16.vlgmr.msra.gmra.mrb[0].mxu1 %v2295_v5  ;;  %v503_v5 = vld [vmem:[%s3034_s8 + $0x150] sm:$0xff] }
  0x8c   : > { %1804 = vmatmul.mubr.bf16.vlgmr.msra.gmra.mrb[0].mxu0 %v2299_v6  ;;  %1669 = vmatpush1.bf16.msra.mxu1 %v2709_v1  ;;  %v501_v1 = vld [vmem:[%s3034_s8 + $0x140] sm:$0xff]  ;;  %v507_v6 = vld [vmem:[%s3034_s8 + $0x170] sm:$0xff] }
  0x8d   : > { %1875 = vmatpush1.bf16.msra.mxu0 %v2712_v2  ;;  %1670 = vmatprep.subr.bf16.mxu1 %v2717_v9  ;;  %v2327_v2 = vcombine.low %v493_v49, %v497_v50  ;;  %v2765_v9 = vld [vmem:[%s3032_s7 + $0x194] ss:$8 sps:$4 sm:$0xff]   ;;  %v2339_v19 = vcombine.low %v503_v5, %v507_v6  ;;  %v2793_v49 = vld [vmem:[%s3032_s7 + $0x1e0] ss:$8 sps:$4 sm:$0xff]  }
  0x8e   : > { %1876 = vmatprep.subr.bf16.mxu0 %v2720_v10  ;;  %1607 = vmatprep.mubr.bf16.mxu1 %v2304_v11  ;;  %v2768_v10 = vld [vmem:[%s3032_s7 + $0x394] ss:$8 sps:$4 sm:$0xff]   ;;  %v2336_v11 = vcombine.high %v501_v1, %v505_v4  ;;  %v2796_v50 = vld [vmem:[%s3032_s7 + $0x3e0] ss:$8 sps:$4 sm:$0xff]  }
  0x8f   : > { %1813 = vmatprep.mubr.bf16.mxu0 %v2308_v12  ;;  %v2340_v12 = vcombine.high %v503_v5, %v507_v6 }
  0x90   : > { %1671 = vmatpush1.bf16.msra.mxu1 %v2715_v13  ;;  %v2763_v13 = vld [vmem:[%s3032_s7 + $0x190] ss:$8 sps:$4 sm:$0xff]  }
  0x91   : > { %1877 = vmatpush1.bf16.msra.mxu0 %v2718_v14  ;;  %1672 = vmatprep.subr.bf16.mxu1 %v2723_v15  ;;  %v2766_v14 = vld [vmem:[%s3032_s7 + $0x390] ss:$8 sps:$4 sm:$0xff]   ;;  %v2771_v15 = vld [vmem:[%s3032_s7 + $0x1a4] ss:$8 sps:$4 sm:$0xff]  }
  0x92   : > { %1878 = vmatprep.subr.bf16.mxu0 %v2726_v16  ;;  %v2774_v16 = vld [vmem:[%s3032_s7 + $0x3a4] ss:$8 sps:$4 sm:$0xff]  }
  0x93   : > { %1608 = vmatmul.mubr.bf16.gmra.mrb[4].mxu1 %v2303_v21  ;;  %v511_v21 = vld [vmem:[%s3034_s8 + $0x190] sm:$0xff] }
  0x94   : > { %1814 = vmatmul.mubr.bf16.gmra.mrb[4].mxu0 %v2307_v22  ;;  %1673 = vmatpush1.bf16.msra.mxu1 %v2721_v17  ;;  %v509_v17 = vld [vmem:[%s3034_s8 + $0x180] sm:$0xff]  ;;  %v515_v22 = vld [vmem:[%s3034_s8 + $0x1b0] sm:$0xff] }
  0x95   : > { %1879 = vmatpush1.bf16.msra.mxu0 %v2724_v18  ;;  %1674 = vmatprep.subr.bf16.mxu1 %v2729_v25  ;;  %v2335_v18 = vcombine.low %v501_v1, %v505_v4  ;;  %v2777_v25 = vld [vmem:[%s3032_s7 + $0x1b4] ss:$8 sps:$4 sm:$0xff]   ;;  %v2343_v34 = vcombine.low %v509_v17, %v513_v20  ;;  %v2347_v35 = vcombine.low %v511_v21, %v515_v22 }
  0x96   : > { %1880 = vmatprep.subr.bf16.mxu0 %v2732_v26  ;;  %1617 = vmatprep.mubr.bf16.mxu1 %v2312_v27  ;;  %v2780_v26 = vld [vmem:[%s3032_s7 + $0x3b4] ss:$8 sps:$4 sm:$0xff]   ;;  %v2344_v27 = vcombine.high %v509_v17, %v513_v20 }
  0x97   : > { %1823 = vmatprep.mubr.bf16.mxu0 %v2316_v28  ;;  %v2348_v28 = vcombine.high %v511_v21, %v515_v22  ;;  %v480_v1 = vld [vmem:[%s3034_s8 + $0x98] sm:$0xff] }
  0x98   : > { %1675 = vmatpush1.bf16.msra.mxu1 %v2727_v29  ;;  %v2775_v29 = vld [vmem:[%s3032_s7 + $0x1b0] ss:$8 sps:$4 sm:$0xff]  }
  0x99   : > { %1881 = vmatpush1.bf16.msra.mxu0 %v2730_v30  ;;  %1676 = vmatprep.subr.bf16.mxu1 %v2735_v31  ;;  %v2778_v30 = vld [vmem:[%s3032_s7 + $0x3b0] ss:$8 sps:$4 sm:$0xff]   ;;  %v2783_v31 = vld [vmem:[%s3032_s7 + $0x1c4] ss:$8 sps:$4 sm:$0xff]  }
  0x9a   : > { %1882 = vmatprep.subr.bf16.mxu0 %v2738_v32  ;;  %v2786_v32 = vld [vmem:[%s3032_s7 + $0x3c4] ss:$8 sps:$4 sm:$0xff]   ;;  %v496_v17 = vld [vmem:[%s3034_s8 + $0x118] sm:$0xff] }
  0x9b   : > { %1618 = vmatmul.mubr.bf16.gmra.mrb[8].mxu1 %v2311_v36  ;;  %v466_v36 = vld [vmem:[%s3034_s8 + $0x28] sm:$0xff] }
  0x9c   : > { %1824 = vmatmul.mubr.bf16.gmra.mrb[8].mxu0 %v2315_v37  ;;  %1677 = vmatpush1.bf16.msra.mxu1 %v2733_v33  ;;  %v462_v33 = vld [vmem:[%s3034_s8 + $0x8] sm:$0xff]  ;;  %v464_v37 = vld [vmem:[%s3034_s8 + $0x18] sm:$0xff] }
  0x9d   : > { %1883 = vmatpush1.bf16.msra.mxu0 %v2736_v40  ;;  %1678 = vmatprep.subr.bf16.mxu1 %v2741_v41  ;;  %v2784_v40 = vld [vmem:[%s3032_s7 + $0x3c0] ss:$8 sps:$4 sm:$0xff]   ;;  %v2789_v41 = vld [vmem:[%s3032_s7 + $0x1d4] ss:$8 sps:$4 sm:$0xff]  }
  0x9e   : > { %1884 = vmatprep.subr.bf16.mxu0 %v2744_v42  ;;  %1627 = vmatprep.mubr.bf16.mxu1 %v2320_v43  ;;  %v2792_v42 = vld [vmem:[%s3032_s7 + $0x3d4] ss:$8 sps:$4 sm:$0xff]   ;;  %v2298_v43 = vcombine.high %v462_v33, %v466_v36 }
  0x9f   : > { %1833 = vmatprep.mubr.bf16.mxu0 %v2324_v44  ;;  %v2302_v44 = vcombine.high %v464_v37, %v468_v38 }
  0xa0   : > { %1679 = vmatpush1.bf16.msra.mxu1 %v2739_v45  ;;  %v2787_v45 = vld [vmem:[%s3032_s7 + $0x1d0] ss:$8 sps:$4 sm:$0xff]  }
  0xa1   : > { %1885 = vmatpush1.bf16.msra.mxu0 %v2742_v46  ;;  %1680 = vmatprep.subr.bf16.mxu1 %v2747_v47  ;;  %v2790_v46 = vld [vmem:[%s3032_s7 + $0x3d0] ss:$8 sps:$4 sm:$0xff]   ;;  %v2795_v47 = vld [vmem:[%s3032_s7 + $0x1e4] ss:$8 sps:$4 sm:$0xff]  }
  0xa2   : > { %1886 = vmatprep.subr.bf16.mxu0 %v2750_v48  ;;  %v2798_v48 = vld [vmem:[%s3032_s7 + $0x3e4] ss:$8 sps:$4 sm:$0xff]  }
  0xa3   : > { %1628 = vmatmul.mubr.bf16.gmra.mrb[12].mxu1 %v2319_v51  ;;  %v2801_v51 = vld [vmem:[%s3032_s7 + $0x1f4] ss:$8 sps:$4 sm:$0xff]  }
  0xa4   : > { %1834 = vmatmul.mubr.bf16.gmra.mrb[12].mxu0 %v2323_v52  ;;  %1681 = vmatpush1.bf16.msra.mxu1 %v2745_v55  ;;  %v2804_v52 = vld [vmem:[%s3032_s7 + $0x3f4] ss:$8 sps:$4 sm:$0xff]   ;;  %v470_v55 = vld [vmem:[%s3034_s8 + $0x48] sm:$0xff] }
  0xa5   : > { %1887 = vmatpush1.bf16.msra.mxu0 %v2748_v56  ;;  %1682 = vmatprep.subr.bf16.mxu1 %v2753_v57  ;;  %v474_v56 = vld [vmem:[%s3034_s8 + $0x68] sm:$0xff]  ;;  %v472_v57 = vld [vmem:[%s3034_s8 + $0x58] sm:$0xff] }
  0xa6   : > { %1888 = vmatprep.subr.bf16.mxu0 %v2756_v58  ;;  %1637 = vmatprep.mubr.bf16.mxu1 %v2328_v59  ;;  %v476_v58 = vld [vmem:[%s3034_s8 + $0x78] sm:$0xff]  ;;  %v2297_v59 = vcombine.low %v462_v33, %v466_v36 }
  0xa7   : > { %1843 = vmatprep.mubr.bf16.mxu0 %v2332_v60  ;;  %v2301_v60 = vcombine.low %v464_v37, %v468_v38  ;;  %v2309_v4 = vcombine.low %v472_v57, %v476_v58  ;;  %v512_v33 = vld [vmem:[%s3034_s8 + $0x198] sm:$0xff] }
  0xa8   : > { %1683 = vmatpush1.bf16.msra.mxu1 %v2751_v61  ;;  %v2306_v61 = vcombine.high %v470_v55, %v474_v56 }
  0xa9   : > { %1889 = vmatpush1.bf16.msra.mxu0 %v2754_v62  ;;  %1684 = vmatprep.subr.bf16.mxu1 %v2759_v63  ;;  %v2310_v62 = vcombine.high %v472_v57, %v476_v58  ;;  %v478_v63 = vld [vmem:[%s3034_s8 + $0x88] sm:$0xff] }
  0xaa   : > { %1890 = vmatprep.subr.bf16.mxu0 %v2762_v0  ;;  %v482_v0 = vld [vmem:[%s3034_s8 + $0xa8] sm:$0xff] }
  0xab   : > { %1638 = vmatmul.mubr.bf16.gmra.mrb[16].mxu1 %v2327_v2  ;;  %v484_v2 = vld [vmem:[%s3034_s8 + $0xb8] sm:$0xff]  ;;  %v2314_v5 = vcombine.high %v478_v63, %v482_v0 }
  0xac   : > { %1844 = vmatmul.mubr.bf16.gmra.mrb[16].mxu0 %v2331_v3  ;;  %1685 = vmatpush1.bf16.msra.mxu1 %v2757_v7  ;;  %v2305_v3 = vcombine.low %v470_v55, %v474_v56  ;;  %v2318_v6 = vcombine.high %v480_v1, %v484_v2  ;;  %v486_v7 = vld [vmem:[%s3034_s8 + $0xc8] sm:$0xff]  ;;  %v436_v55 = vld [vmem:[%s3695_s3 + $0x18] sm:$0xff] }
  0xad   : > { %1891 = vmatpush1.bf16.msra.mxu0 %v2760_v8  ;;  %1686 = vmatprep.subr.bf16.mxu1 %v2765_v9  ;;  %v490_v8 = vld [vmem:[%s3034_s8 + $0xe8] sm:$0xff]  ;;  %v488_v9 = vld [vmem:[%s3034_s8 + $0xd8] sm:$0xff] }
  0xae   : > { %1892 = vmatprep.subr.bf16.mxu0 %v2768_v10  ;;  %1647 = vmatprep.mubr.bf16.mxu1 %v2336_v11  ;;  %v492_v10 = vld [vmem:[%s3034_s8 + $0xf8] sm:$0xff]  ;;  %v2313_v11 = vcombine.low %v478_v63, %v482_v0 }
  0xaf   : > { %1853 = vmatprep.mubr.bf16.mxu0 %v2340_v12  ;;  %v2317_v12 = vcombine.low %v480_v1, %v484_v2  ;;  %v2325_v20 = vcombine.low %v488_v9, %v492_v10  ;;  %v438_v2 = vld [vmem:[%s3695_s3 + $0x28] sm:$0xff] }
  0xb0   : > { %1687 = vmatpush1.bf16.msra.mxu1 %v2763_v13  ;;  %v2322_v13 = vcombine.high %v486_v7, %v490_v8 }
  0xb1   : > { %1893 = vmatpush1.bf16.msra.mxu0 %v2766_v14  ;;  %1688 = vmatprep.subr.bf16.mxu1 %v2771_v15  ;;  %v2326_v14 = vcombine.high %v488_v9, %v492_v10  ;;  %v494_v15 = vld [vmem:[%s3034_s8 + $0x108] sm:$0xff] }
  0xb2   : > { %1894 = vmatprep.subr.bf16.mxu0 %v2774_v16  ;;  %v498_v16 = vld [vmem:[%s3034_s8 + $0x128] sm:$0xff] }
  0xb3   : > { %1648 = vmatmul.mubr.bf16.gmra.mrb[20].mxu1 %v2335_v18  ;;  %v500_v18 = vld [vmem:[%s3034_s8 + $0x138] sm:$0xff]  ;;  %v2330_v21 = vcombine.high %v494_v15, %v498_v16 }
  0xb4   : > { %1854 = vmatmul.mubr.bf16.gmra.mrb[20].mxu0 %v2339_v19  ;;  %1689 = vmatpush1.bf16.msra.mxu1 %v2769_v23  ;;  %v2321_v19 = vcombine.low %v486_v7, %v490_v8  ;;  %v2334_v22 = vcombine.high %v496_v17, %v500_v18  ;;  %v502_v23 = vld [vmem:[%s3034_s8 + $0x148] sm:$0xff] }
  0xb5   : > { %1895 = vmatpush1.bf16.msra.mxu0 %v2772_v24  ;;  %1690 = vmatprep.subr.bf16.mxu1 %v2777_v25  ;;  %v506_v24 = vld [vmem:[%s3034_s8 + $0x168] sm:$0xff]  ;;  %v504_v25 = vld [vmem:[%s3034_s8 + $0x158] sm:$0xff] }
  0xb6   : > { %1896 = vmatprep.subr.bf16.mxu0 %v2780_v26  ;;  %1657 = vmatprep.mubr.bf16.mxu1 %v2344_v27  ;;  %v508_v26 = vld [vmem:[%s3034_s8 + $0x178] sm:$0xff]  ;;  %v2329_v27 = vcombine.low %v494_v15, %v498_v16 }
  0xb7   : > { %1863 = vmatprep.mubr.bf16.mxu0 %v2348_v28  ;;  %v2333_v28 = vcombine.low %v496_v17, %v500_v18  ;;  %v2341_v36 = vcombine.low %v504_v25, %v508_v26  ;;  %v441_v18 = vld [vmem:[%s3695_s3 + $0x40] sm:$0xff] }
  0xb8   : > { %1691 = vmatpush1.bf16.msra.mxu1 %v2775_v29  ;;  %v2338_v29 = vcombine.high %v502_v23, %v506_v24 }
  0xb9   : > { %1897 = vmatpush1.bf16.msra.mxu0 %v2778_v30  ;;  %1692 = vmatprep.subr.bf16.mxu1 %v2783_v31  ;;  %v2342_v30 = vcombine.high %v504_v25, %v508_v26  ;;  %v510_v31 = vld [vmem:[%s3034_s8 + $0x188] sm:$0xff]  ;;  %v443_v26 = vld [vmem:[%s3695_s3 + $0x50] sm:$0xff] }
  0xba   : > { %1898 = vmatprep.subr.bf16.mxu0 %v2786_v32  ;;  %v514_v32 = vld [vmem:[%s3034_s8 + $0x1a8] sm:$0xff] }
  0xbb   : > { %1658 = vmatmul.mubr.bf16.gmra.mrb[24].mxu1 %v2343_v34  ;;  %v516_v34 = vld [vmem:[%s3034_s8 + $0x1b8] sm:$0xff]  ;;  %v2346_v37 = vcombine.high %v510_v31, %v514_v32 }
  0xbc   : > { %1864 = vmatmul.mubr.bf16.gmra.mrb[24].mxu0 %v2347_v35  ;;  %1693 = vmatpush1.bf16.msra.mxu1 %v2781_v39  ;;  %v2337_v35 = vcombine.low %v502_v23, %v506_v24  ;;  %v2350_v38 = vcombine.high %v512_v33, %v516_v34  ;;  %v2345_v39 = vcombine.low %v510_v31, %v514_v32  ;;  %v444_v31 = vld [vmem:[%s3695_s3 + $0x58] sm:$0xff] }
  0xbd   : > { %1899 = vmatpush1.bf16.msra.mxu0 %v2784_v40  ;;  %1694 = vmatprep.subr.bf16.mxu1 %v2789_v41  ;;  %v2349_v40 = vcombine.low %v512_v33, %v516_v34 }
  0xbe   : > { %1900 = vmatprep.subr.bf16.mxu0 %v2792_v42  ;;  %1700 = vmatprep.mubr.bf16.mxu1 %v2298_v43  ;;  %v433_v42 = vld [vmem:[%s3695_s3] sm:$0xff] }
  0xbf   : > { %1906 = vmatprep.mubr.bf16.mxu0 %v2302_v44 }
  0xc0   : > { %1695 = vmatpush1.bf16.msra.mxu1 %v2787_v45 }
  0xc1   : > { %1901 = vmatpush1.bf16.msra.mxu0 %v2790_v46  ;;  %1696 = vmatprep.subr.bf16.mxu1 %v2795_v47  ;;  %v434_v46 = vld [vmem:[%s3695_s3 + $0x8] sm:$0xff] }
  0xc2   : > { %1902 = vmatprep.subr.bf16.mxu0 %v2798_v48 }
  0xc4   : > { %1697 = vmatpush1.bf16.msra.mxu1 %v2793_v49 }
  0xc5   : > { %1903 = vmatpush1.bf16.msra.mxu0 %v2796_v50  ;;  %1698 = vmatprep.subr.bf16.mxu1 %v2801_v51  ;;  %v435_v50 = vld [vmem:[%s3695_s3 + $0x10] sm:$0xff] }
  0xc6   : > { %1904 = vmatprep.subr.bf16.mxu0 %v2804_v52 }
  0xc8   : > { %1699 = vmatpush1.bf16.msra.mxu1 %v2799_v53 }
  0xc9   : > { %1905 = vmatpush1.bf16.msra.mxu0 %v2802_v54 }
  0xcb   : > { %1701 = vmatmul.mubr.bf16.vlgmr.msra.gmra.mrb[0].mxu1 %v2297_v59 }
  0xcc   : > { %1907 = vmatmul.mubr.bf16.vlgmr.msra.gmra.mrb[0].mxu0 %v2301_v60  ;;  %1710 = vmatprep.mubr.bf16.mxu1 %v2306_v61 }
  0xcd   : > { %1916 = vmatprep.mubr.bf16.mxu0 %v2310_v62  ;;  %v437_v62 = vld [vmem:[%s3695_s3 + $0x20] sm:$0xff] }
  0xd3   : > { %1711 = vmatmul.mubr.bf16.gmra.mrb[4].mxu1 %v2305_v3 }
  0xd4   : > { %1917 = vmatmul.mubr.bf16.gmra.mrb[4].mxu0 %v2309_v4  ;;  %1720 = vmatprep.mubr.bf16.mxu1 %v2314_v5 }
  0xd5   : > { %1926 = vmatprep.mubr.bf16.mxu0 %v2318_v6  ;;  %v439_v6 = vld [vmem:[%s3695_s3 + $0x30] sm:$0xff] }
  0xdb   : > { %1721 = vmatmul.mubr.bf16.gmra.mrb[8].mxu1 %v2313_v11  ;;  %v440_v11 = vld [vmem:[%s3695_s3 + $0x38] sm:$0xff] }
  0xdc   : > { %1927 = vmatmul.mubr.bf16.gmra.mrb[8].mxu0 %v2317_v12  ;;  %1730 = vmatprep.mubr.bf16.mxu1 %v2322_v13 }
  0xdd   : > { %1936 = vmatprep.mubr.bf16.mxu0 %v2326_v14 }
  0xe3   : > { %1731 = vmatmul.mubr.bf16.gmra.mrb[12].mxu1 %v2321_v19 }
  0xe4   : > { %1937 = vmatmul.mubr.bf16.gmra.mrb[12].mxu0 %v2325_v20  ;;  %1740 = vmatprep.mubr.bf16.mxu1 %v2330_v21 }
  0xe5   : > { %1946 = vmatprep.mubr.bf16.mxu0 %v2334_v22  ;;  %v442_v22 = vld [vmem:[%s3695_s3 + $0x48] sm:$0xff] }
  0xeb   : > { %1741 = vmatmul.mubr.bf16.gmra.mrb[16].mxu1 %v2329_v27 }
  0xec   : > { %1947 = vmatmul.mubr.bf16.gmra.mrb[16].mxu0 %v2333_v28  ;;  %1750 = vmatprep.mubr.bf16.mxu1 %v2338_v29 }
  0xed   : > { %1956 = vmatprep.mubr.bf16.mxu0 %v2342_v30 }
  0xf3   : > { %1751 = vmatmul.mubr.bf16.gmra.mrb[20].mxu1 %v2337_v35 }
  0xf4   : > { %1957 = vmatmul.mubr.bf16.gmra.mrb[20].mxu0 %v2341_v36  ;;  %1760 = vmatprep.mubr.bf16.mxu1 %v2346_v37 }
  0xf5   : > { %1966 = vmatprep.mubr.bf16.mxu0 %v2350_v38  ;;  %v445_v38 = vld [vmem:[%s3695_s3 + $0x60] sm:$0xff] }
  0xfb   : > { %1761 = vmatmul.mubr.bf16.gmra.mrb[24].mxu1 %v2345_v39 }
  0xfc   : > { %1967 = vmatmul.mubr.bf16.gmra.mrb[24].mxu0 %v2349_v40 }
 0x19e   : > { %v1702_v41 = vpop.f32.mrb[0].mxu1 }
 0x19f   : > { %v1908_v43 = vpop.f32.mrb[0].mxu0  ;;  %v1704_v45 = vpop.f32.mrb[1].mxu1 }
 0x1a0   : > { %v2486_v44 = vadd.f32 %v1908_v43, %v1702_v41  ;;  %v1910_v47 = vpop.f32.mrb[1].mxu0  ;;  %v1706_v49 = vpop.f32.mrb[2].mxu1 }
 0x1a1   : > { %v2487_v48 = vadd.f32 %v1910_v47, %v1704_v45  ;;  %v1912_v51 = vpop.f32.mrb[2].mxu0  ;;  %v1708_v54 = vpop.f32.mrb[3].mxu1 }
 0x1a2   : > { %v1977_v52 = vadd.f32 %v2486_v44, %v433_v42  ;;  %v2488_v53 = vadd.f32 %v1912_v51, %v1706_v49  ;;  %v1914_v56 = vpop.f32.mrb[3].mxu0  ;;  %v446_v42 = vld [vmem:[%s3695_s3 + $0x68] sm:$0xff]  ;;  %v448_v51 = vld [vmem:[%s3695_s3 + $0x78] sm:$0xff] }
 0x1a3   : > { %v1978_v57 = vadd.f32 %v2487_v48, %v434_v46  ;;  %v2489_v58 = vadd.f32 %v1914_v56, %v1708_v54  ;;  %v447_v46 = vld [vmem:[%s3695_s3 + $0x70] sm:$0xff] }
 0x1a4   : > { %2005 = vst [vmem:[%s3695_s3] sm:$0xff] %v1977_v52  ;;  %v1979_v59 = vadd.f32 %v2488_v53, %v435_v50 }
 0x1a5   : > { %2006 = vst [vmem:[%s3695_s3 + $0x8] sm:$0xff] %v1978_v57  ;;  %v1980_v60 = vadd.f32 %v2489_v58, %v436_v55  ;;  %v449_v58 = vld [vmem:[%s3695_s3 + $0x80] sm:$0xff] }
 0x1a6   : > { %2007 = vst [vmem:[%s3695_s3 + $0x10] sm:$0xff] %v1979_v59  ;;  %v1712_v61 = vpop.f32.mrb[4].mxu1 }
 0x1a7   : > { %2008 = vst [vmem:[%s3695_s3 + $0x18] sm:$0xff] %v1980_v60  ;;  %v1918_v63 = vpop.f32.mrb[4].mxu0  ;;  %v1714_v1 = vpop.f32.mrb[5].mxu1 }
 0x1a8   : > { %v2490_v0 = vadd.f32 %v1918_v63, %v1712_v61  ;;  %v1920_v3 = vpop.f32.mrb[5].mxu0  ;;  %v1716_v5 = vpop.f32.mrb[6].mxu1 }
 0x1a9   : > { %v2491_v4 = vadd.f32 %v1920_v3, %v1714_v1  ;;  %v1922_v7 = vpop.f32.mrb[6].mxu0  ;;  %v1718_v10 = vpop.f32.mrb[7].mxu1 }
 0x1aa   : > { %v1981_v8 = vadd.f32 %v2490_v0, %v437_v62  ;;  %v2492_v9 = vadd.f32 %v1922_v7, %v1716_v5  ;;  %v1924_v12 = vpop.f32.mrb[7].mxu0  ;;  %v450_v62 = vld [vmem:[%s3695_s3 + $0x88] sm:$0xff]  ;;  %v452_v7 = vld [vmem:[%s3695_s3 + $0x98] sm:$0xff] }
 0x1ab   : > { %v1982_v13 = vadd.f32 %v2491_v4, %v438_v2  ;;  %v2493_v14 = vadd.f32 %v1924_v12, %v1718_v10  ;;  %v451_v2 = vld [vmem:[%s3695_s3 + $0x90] sm:$0xff] }
 0x1ac   : > { %2009 = vst [vmem:[%s3695_s3 + $0x20] sm:$0xff] %v1981_v8  ;;  %v1983_v15 = vadd.f32 %v2492_v9, %v439_v6 }
 0x1ad   : > { %2010 = vst [vmem:[%s3695_s3 + $0x28] sm:$0xff] %v1982_v13  ;;  %v1984_v16 = vadd.f32 %v2493_v14, %v440_v11  ;;  %v453_v14 = vld [vmem:[%s3695_s3 + $0xa0] sm:$0xff] }
 0x1ae   : > { %2011 = vst [vmem:[%s3695_s3 + $0x30] sm:$0xff] %v1983_v15  ;;  %v1722_v17 = vpop.f32.mrb[8].mxu1 }
 0x1af   : > { %2012 = vst [vmem:[%s3695_s3 + $0x38] sm:$0xff] %v1984_v16  ;;  %v1928_v19 = vpop.f32.mrb[8].mxu0  ;;  %v1724_v21 = vpop.f32.mrb[9].mxu1 }
 0x1b0   : > { %v2494_v20 = vadd.f32 %v1928_v19, %v1722_v17  ;;  %v1930_v23 = vpop.f32.mrb[9].mxu0  ;;  %v1726_v25 = vpop.f32.mrb[10].mxu1 }
 0x1b1   : > { %v2495_v24 = vadd.f32 %v1930_v23, %v1724_v21  ;;  %v1932_v27 = vpop.f32.mrb[10].mxu0  ;;  %v1728_v30 = vpop.f32.mrb[11].mxu1 }
 0x1b2   : > { %v1985_v28 = vadd.f32 %v2494_v20, %v441_v18  ;;  %v2496_v29 = vadd.f32 %v1932_v27, %v1726_v25  ;;  %v1934_v32 = vpop.f32.mrb[11].mxu0  ;;  %v454_v18 = vld [vmem:[%s3695_s3 + $0xa8] sm:$0xff]  ;;  %v456_v27 = vld [vmem:[%s3695_s3 + $0xb8] sm:$0xff] }
 0x1b3   : > { %v1986_v33 = vadd.f32 %v2495_v24, %v442_v22  ;;  %v2497_v34 = vadd.f32 %v1934_v32, %v1728_v30  ;;  %v455_v22 = vld [vmem:[%s3695_s3 + $0xb0] sm:$0xff] }
 0x1b4   : > { %2013 = vst [vmem:[%s3695_s3 + $0x40] sm:$0xff] %v1985_v28  ;;  %v1987_v35 = vadd.f32 %v2496_v29, %v443_v26 }
 0x1b5   : > { %2014 = vst [vmem:[%s3695_s3 + $0x48] sm:$0xff] %v1986_v33  ;;  %v1988_v36 = vadd.f32 %v2497_v34, %v444_v31  ;;  %v457_v34 = vld [vmem:[%s3695_s3 + $0xc0] sm:$0xff] }
 0x1b6   : > { %2015 = vst [vmem:[%s3695_s3 + $0x50] sm:$0xff] %v1987_v35  ;;  %v1732_v37 = vpop.f32.mrb[12].mxu1 }
 0x1b7   : > { %2016 = vst [vmem:[%s3695_s3 + $0x58] sm:$0xff] %v1988_v36  ;;  %v1938_v39 = vpop.f32.mrb[12].mxu0  ;;  %v1734_v41 = vpop.f32.mrb[13].mxu1 }
 0x1b8   : > { %v2498_v40 = vadd.f32 %v1938_v39, %v1732_v37  ;;  %v1940_v43 = vpop.f32.mrb[13].mxu0  ;;  %v1736_v45 = vpop.f32.mrb[14].mxu1 }
 0x1b9   : > { %v2499_v44 = vadd.f32 %v1940_v43, %v1734_v41  ;;  %v1942_v47 = vpop.f32.mrb[14].mxu0  ;;  %v1738_v50 = vpop.f32.mrb[15].mxu1 }
 0x1ba   : > { %v1989_v48 = vadd.f32 %v2498_v40, %v445_v38  ;;  %v2500_v49 = vadd.f32 %v1942_v47, %v1736_v45  ;;  %v1944_v52 = vpop.f32.mrb[15].mxu0  ;;  %v458_v38 = vld [vmem:[%s3695_s3 + $0xc8] sm:$0xff]  ;;  %v460_v47 = vld [vmem:[%s3695_s3 + $0xd8] sm:$0xff] }
 0x1bb   : > { %v1990_v53 = vadd.f32 %v2499_v44, %v446_v42  ;;  %v2501_v54 = vadd.f32 %v1944_v52, %v1738_v50  ;;  %v459_v42 = vld [vmem:[%s3695_s3 + $0xd0] sm:$0xff] }
 0x1bc   : > { %2017 = vst [vmem:[%s3695_s3 + $0x60] sm:$0xff] %v1989_v48  ;;  %v1991_v55 = vadd.f32 %v2500_v49, %v447_v46 }
 0x1bd   : > { %2018 = vst [vmem:[%s3695_s3 + $0x68] sm:$0xff] %v1990_v53  ;;  %v1992_v56 = vadd.f32 %v2501_v54, %v448_v51  ;;  %v2067_v53 = vlaneseq (!%p2479_p11) }
 0x1be   : > { %2019 = vst [vmem:[%s3695_s3 + $0x70] sm:$0xff] %v1991_v55  ;;  %v1742_v57 = vpop.f32.mrb[16].mxu1  ;;  %v2065_v55 = vld [vmem:[%s3694_s2] sm:$0x3] (!%p2479_p11) }
 0x1bf   : > { %2020 = vst [vmem:[%s3695_s3 + $0x78] sm:$0xff] %v1992_v56  ;;  %v1948_v59 = vpop.f32.mrb[16].mxu0  ;;  %v1744_v61 = vpop.f32.mrb[17].mxu1  ;;  %v2068_v54 = vshrl.u32 (!%p2479_p11), %v2067_v53, 7  ;;  %v2037_v56 = vld [vmem:[%s3695_s3] sm:$0xff] (!%p2479_p11) }
 0x1c0   : > { %v2502_v60 = vadd.f32 %v1948_v59, %v1742_v57  ;;  %v1950_v63 = vpop.f32.mrb[17].mxu0  ;;  %v1746_v1 = vpop.f32.mrb[18].mxu1 }
 0x1c1   : > { %v2503_v0 = vadd.f32 %v1950_v63, %v1744_v61  ;;  %v1952_v3 = vpop.f32.mrb[18].mxu0  ;;  %v1748_v6 = vpop.f32.mrb[19].mxu1  ;;  %v2069_v57 = vsub.s32 (!%p2479_p11), 0, %v2068_v54  ;;  %v2073_v59 = vsub.s32 (!%p2479_p11), 1, %v2068_v54  ;;  %v2040_v61 = vld [vmem:[%s3695_s3 + $0x18] sm:$0xff] (!%p2479_p11) }
 0x1c2   : > { %v1993_v4 = vadd.f32 %v2502_v60, %v449_v58  ;;  %v2504_v5 = vadd.f32 %v1952_v3, %v1746_v1  ;;  %v1954_v8 = vpop.f32.mrb[19].mxu0  ;;  %v2038_v58 = vld [vmem:[%s3695_s3 + $0x8] sm:$0xff] (!%p2479_p11)  ;;  %v2039_v60 = vld [vmem:[%s3695_s3 + $0x10] sm:$0xff] (!%p2479_p11)  ;;  %v2044_v3 = vld [vmem:[%s3695_s3 + $0x38] sm:$0xff] (!%p2479_p11) }
 0x1c3   : > { %v1994_v9 = vadd.f32 %v2503_v0, %v450_v62  ;;  %v2505_v10 = vadd.f32 %v1954_v8, %v1748_v6  ;;  %v2041_v62 = vld [vmem:[%s3695_s3 + $0x20] sm:$0xff] (!%p2479_p11)  ;;  %v3492_v63 = vrot.slane (!%p2479_p11), %v2065_v55, %v2069_v57  ;;  %v3494_v0 = vrot.slane (!%p2479_p11), %v2065_v55, %v2073_v59  ;;  %v2042_v1 = vld [vmem:[%s3695_s3 + $0x28] sm:$0xff] (!%p2479_p11) }
 0x1c4   : > { %2021 = vst [vmem:[%s3695_s3 + $0x80] sm:$0xff] %v1993_v4  ;;  %v1995_v11 = vadd.f32 %v2504_v5, %v451_v2  ;;  %v2043_v2 = vld [vmem:[%s3695_s3 + $0x30] sm:$0xff] (!%p2479_p11)  ;;  %v2045_v8 = vld [vmem:[%s3695_s3 + $0x40] sm:$0xff] (!%p2479_p11) }
 0x1c5   : > { %2022 = vst [vmem:[%s3695_s3 + $0x88] sm:$0xff] %v1994_v9  ;;  %v1996_v12 = vadd.f32 %v2505_v10, %v452_v7  ;;  %v2077_v4 = vadd.f32 (!%p2479_p11), %v3492_v63, %v2037_v56  ;;  %v2078_v5 = vadd.f32 (!%p2479_p11), %v3494_v0, %v2038_v58  ;;  %v2079_v6 = vadd.f32 (!%p2479_p11), %v3492_v63, %v2039_v60  ;;  %v2046_v9 = vld [vmem:[%s3695_s3 + $0x48] sm:$0xff] (!%p2479_p11)  ;;  %v2047_v10 = vld [vmem:[%s3695_s3 + $0x50] sm:$0xff] (!%p2479_p11) }
 0x1c6   : > { %2023 = vst [vmem:[%s3695_s3 + $0x90] sm:$0xff] %v1995_v11  ;;  %v1752_v13 = vpop.f32.mrb[20].mxu1  ;;  %v2080_v7 = vadd.f32 (!%p2479_p11), %v3494_v0, %v2040_v61  ;;  %v2081_v11 = vadd.f32 (!%p2479_p11), %v3492_v63, %v2041_v62 }
 0x1c7   : > { %2024 = vst [vmem:[%s3695_s3 + $0x98] sm:$0xff] %v1996_v12  ;;  %v1958_v15 = vpop.f32.mrb[20].mxu0  ;;  %v1754_v17 = vpop.f32.mrb[21].mxu1  ;;  %v2082_v12 = vadd.f32 (!%p2479_p11), %v3494_v0, %v2042_v1 }
 0x1c8   : > { %v2506_v16 = vadd.f32 %v1958_v15, %v1752_v13  ;;  %v1960_v19 = vpop.f32.mrb[21].mxu0  ;;  %v1756_v21 = vpop.f32.mrb[22].mxu1  ;;  %v2083_v13 = vadd.f32 (!%p2479_p11), %v3492_v63, %v2043_v2  ;;  %v2048_v15 = vld [vmem:[%s3695_s3 + $0x58] sm:$0xff] (!%p2479_p11) }
 0x1c9   : > { %v2507_v20 = vadd.f32 %v1960_v19, %v1754_v17  ;;  %v1962_v23 = vpop.f32.mrb[22].mxu0  ;;  %v1758_v26 = vpop.f32.mrb[23].mxu1  ;;  %v2050_v17 = vld [vmem:[%s3695_s3 + $0x68] sm:$0xff] (!%p2479_p11)  ;;  %v2106_v19 = vmax.f32 (!%p2479_p11), %v2078_v5, 0.0 }
 0x1ca   : > { %v1997_v24 = vadd.f32 %v2506_v16, %v453_v14  ;;  %v2508_v25 = vadd.f32 %v1962_v23, %v1756_v21  ;;  %v1964_v28 = vpop.f32.mrb[23].mxu0  ;;  %v2084_v14 = vadd.f32 (!%p2479_p11), %v3494_v0, %v2044_v3  ;;  %v2049_v16 = vld [vmem:[%s3695_s3 + $0x60] sm:$0xff] (!%p2479_p11)  ;;  %v2108_v21 = vmax.f32 (!%p2479_p11), %v2080_v7, 0.0  ;;  %v2052_v23 = vld [vmem:[%s3695_s3 + $0x78] sm:$0xff] (!%p2479_p11) }
 0x1cb   : > { %v1998_v29 = vadd.f32 %v2507_v20, %v454_v18  ;;  %v2509_v30 = vadd.f32 %v1964_v28, %v1758_v26  ;;  %v2105_v18 = vmax.f32 (!%p2479_p11), %v2077_v4, 0.0  ;;  %v2107_v20 = vmax.f32 (!%p2479_p11), %v2079_v6, 0.0  ;;  %2134 = vst [vmem:[%s3695_s3 + $0x8] sm:$0xff] (!%p2479_p11), %v2106_v19 }
 0x1cc   : > { %2025 = vst [vmem:[%s3695_s3 + $0xa0] sm:$0xff] %v1997_v24  ;;  %v1999_v31 = vadd.f32 %v2508_v25, %v455_v22  ;;  %v2051_v22 = vld [vmem:[%s3695_s3 + $0x70] sm:$0xff] (!%p2479_p11)  ;;  %v2109_v24 = vmax.f32 (!%p2479_p11), %v2081_v11, 0.0  ;;  %v2110_v25 = vmax.f32 (!%p2479_p11), %v2082_v12, 0.0  ;;  %v2111_v26 = vmax.f32 (!%p2479_p11), %v2083_v13, 0.0  ;;  %2136 = vst [vmem:[%s3695_s3 + $0x18] sm:$0xff] (!%p2479_p11), %v2108_v21 }
 0x1cd   : > { %2026 = vst [vmem:[%s3695_s3 + $0xa8] sm:$0xff] %v1998_v29  ;;  %v2000_v32 = vadd.f32 %v2509_v30, %v456_v27  ;;  %v2112_v27 = vmax.f32 (!%p2479_p11), %v2084_v14, 0.0  ;;  %2133 = vst [vmem:[%s3695_s3] sm:$0xff] (!%p2479_p11), %v2105_v18  ;;  %v2085_v28 = vadd.f32 (!%p2479_p11), %v3492_v63, %v2045_v8  ;;  %v2086_v29 = vadd.f32 (!%p2479_p11), %v3494_v0, %v2046_v9 }
 0x1ce   : > { %2027 = vst [vmem:[%s3695_s3 + $0xb0] sm:$0xff] %v1999_v31  ;;  %v1762_v33 = vpop.f32.mrb[24].mxu1  ;;  %2135 = vst [vmem:[%s3695_s3 + $0x10] sm:$0xff] (!%p2479_p11), %v2107_v20  ;;  %v2087_v30 = vadd.f32 (!%p2479_p11), %v3492_v63, %v2047_v10  ;;  %v2088_v31 = vadd.f32 (!%p2479_p11), %v3494_v0, %v2048_v15 }
 0x1cf   : > { %2028 = vst [vmem:[%s3695_s3 + $0xb8] sm:$0xff] %v2000_v32  ;;  %v1968_v35 = vpop.f32.mrb[24].mxu0  ;;  %v1764_v37 = vpop.f32.mrb[25].mxu1  ;;  %v2053_v32 = vld [vmem:[%s3695_s3 + $0x80] sm:$0xff] (!%p2479_p11)  ;;  %2137 = vst [vmem:[%s3695_s3 + $0x20] sm:$0xff] (!%p2479_p11), %v2109_v24 }
 0x1d0   : > { %v2510_v36 = vadd.f32 %v1968_v35, %v1762_v33  ;;  %v1970_v39 = vpop.f32.mrb[25].mxu0  ;;  %v1766_v41 = vpop.f32.mrb[26].mxu1  ;;  %v2054_v33 = vld [vmem:[%s3695_s3 + $0x88] sm:$0xff] (!%p2479_p11)  ;;  %2138 = vst [vmem:[%s3695_s3 + $0x28] sm:$0xff] (!%p2479_p11), %v2110_v25  ;;  %2139 = vst [vmem:[%s3695_s3 + $0x30] sm:$0xff] (!%p2479_p11), %v2111_v26  ;;  %v2089_v35 = vadd.f32 (!%p2479_p11), %v3492_v63, %v2049_v16 }
 0x1d1   : > { %v2511_v40 = vadd.f32 %v1970_v39, %v1764_v37  ;;  %v1972_v43 = vpop.f32.mrb[26].mxu0  ;;  %v1768_v46 = vpop.f32.mrb[27].mxu1  ;;  %2036 = sbr.rel (%p2479_p11) target bundleno = 484 (0x1e4), region = 63  ;;  %2140 = vst [vmem:[%s3695_s3 + $0x38] sm:$0xff] (!%p2479_p11), %v2112_v27  ;;  %v2091_v37 = vadd.f32 (!%p2479_p11), %v3492_v63, %v2051_v22  ;;  %v2056_v39 = vld [vmem:[%s3695_s3 + $0x98] sm:$0xff] (!%p2479_p11)  ;;  %v2094_v53 = vadd.f32 (!%p2479_p11), %v3494_v0, %v2054_v33 }
 0x1d2   : > { %v2001_v44 = vadd.f32 %v2510_v36, %v457_v34  ;;  %v2512_v45 = vadd.f32 %v1972_v43, %v1766_v41  ;;  %v1974_v48 = vpop.f32.mrb[27].mxu0  ;;  %v2055_v34 = vld [vmem:[%s3695_s3 + $0x90] sm:$0xff] (!%p2479_p11)  ;;  %v2090_v36 = vadd.f32 (!%p2479_p11), %v3494_v0, %v2050_v17  ;;  %v2114_v43 = vmax.f32 (!%p2479_p11), %v2086_v29, 0.0 }
 0x1d3   : > { %v2002_v49 = vadd.f32 %v2511_v40, %v458_v38  ;;  %v2513_v50 = vadd.f32 %v1974_v48, %v1768_v46  ;;  %v2092_v38 = vadd.f32 (!%p2479_p11), %v3494_v0, %v2052_v23  ;;  %v2057_v40 = vld [vmem:[%s3695_s3 + $0xa0] sm:$0xff] (!%p2479_p11)  ;;  %v2117_v48 = vmax.f32 (!%p2479_p11), %v2089_v35, 0.0 }
 0x1d4   : > { %2029 = vst [vmem:[%s3695_s3 + $0xc0] sm:$0xff] %v2001_v44  ;;  %v2003_v51 = vadd.f32 %v2512_v45, %v459_v42  ;;  %v2058_v41 = vld [vmem:[%s3695_s3 + $0xa8] sm:$0xff] (!%p2479_p11)  ;;  %v2113_v42 = vmax.f32 (!%p2479_p11), %v2085_v28, 0.0  ;;  %v2115_v44 = vmax.f32 (!%p2479_p11), %v2087_v30, 0.0  ;;  %v2116_v45 = vmax.f32 (!%p2479_p11), %v2088_v31, 0.0  ;;  %2142 = vst [vmem:[%s3695_s3 + $0x48] sm:$0xff] (!%p2479_p11), %v2114_v43 }
 0x1d5   : > { %2030 = vst [vmem:[%s3695_s3 + $0xc8] sm:$0xff] %v2002_v49  ;;  %v2004_v52 = vadd.f32 %v2513_v50, %v460_v47  ;;  %v2059_v46 = vld [vmem:[%s3695_s3 + $0xb0] sm:$0xff] (!%p2479_p11)  ;;  %v2118_v49 = vmax.f32 (!%p2479_p11), %v2090_v36, 0.0  ;;  %v2119_v50 = vmax.f32 (!%p2479_p11), %v2091_v37, 0.0  ;;  %v2095_v54 = vadd.f32 (!%p2479_p11), %v3492_v63, %v2055_v34  ;;  %2145 = vst [vmem:[%s3695_s3 + $0x60] sm:$0xff] (!%p2479_p11), %v2117_v48 }
 0x1d6   : > { %2031 = vst [vmem:[%s3695_s3 + $0xd0] sm:$0xff] %v2003_v51  ;;  %v2060_v47 = vld [vmem:[%s3695_s3 + $0xb8] sm:$0xff] (!%p2479_p11)  ;;  %v2120_v51 = vmax.f32 (!%p2479_p11), %v2092_v38, 0.0  ;;  %2141 = vst [vmem:[%s3695_s3 + $0x40] sm:$0xff] (!%p2479_p11), %v2113_v42  ;;  %v2096_v55 = vadd.f32 (!%p2479_p11), %v3494_v0, %v2056_v39  ;;  %v2097_v57 = vadd.f32 (!%p2479_p11), %v3492_v63, %v2057_v40  ;;  %v2098_v58 = vadd.f32 (!%p2479_p11), %v3494_v0, %v2058_v41 }
 0x1d7   : > { %2032 = vst [vmem:[%s3695_s3 + $0xd8] sm:$0xff] %v2004_v52  ;;  %2143 = vst [vmem:[%s3695_s3 + $0x50] sm:$0xff] (!%p2479_p11), %v2115_v44  ;;  %v2093_v52 = vadd.f32 (!%p2479_p11), %v3492_v63, %v2053_v32  ;;  %v2099_v59 = vadd.f32 (!%p2479_p11), %v3492_v63, %v2059_v46  ;;  %v2100_v60 = vadd.f32 (!%p2479_p11), %v3494_v0, %v2060_v47  ;;  %v2122_v3 = vmax.f32 (!%p2479_p11), %v2094_v53, 0.0 }
 0x1d8   : > { %2144 = vst [vmem:[%s3695_s3 + $0x58] sm:$0xff] %v2116_v45  ;;  %2146 = vst [vmem:[%s3695_s3 + $0x68] sm:$0xff] %v2118_v49  ;;  %v2123_v4 = vmax.f32 %v2095_v54, 0.0  ;;  %v2124_v5 = vmax.f32 %v2096_v55, 0.0  ;;  %v2125_v6 = vmax.f32 %v2097_v57, 0.0  ;;  %v2126_v7 = vmax.f32 %v2098_v58, 0.0 }
 0x1d9   : > { %2147 = vst [vmem:[%s3695_s3 + $0x70] sm:$0xff] %v2119_v50  ;;  %2148 = vst [vmem:[%s3695_s3 + $0x78] sm:$0xff] %v2120_v51  ;;  %v2121_v2 = vmax.f32 %v2093_v52, 0.0  ;;  %v2127_v8 = vmax.f32 %v2099_v59, 0.0  ;;  %v2128_v9 = vmax.f32 %v2100_v60, 0.0 }
 0x1da   : > { %2150 = vst [vmem:[%s3695_s3 + $0x88] sm:$0xff] %v2122_v3  ;;  %2151 = vst [vmem:[%s3695_s3 + $0x90] sm:$0xff] %v2123_v4 }
 0x1db   : > { %v2061_v56 = vld [vmem:[%s3695_s3 + $0xc0] sm:$0xff]  ;;  %2149 = vst [vmem:[%s3695_s3 + $0x80] sm:$0xff] %v2121_v2  ;;  %2152 = vst [vmem:[%s3695_s3 + $0x98] sm:$0xff] %v2124_v5 }
 0x1dc   : > { %v2062_v61 = vld [vmem:[%s3695_s3 + $0xc8] sm:$0xff]  ;;  %v2101_v10 = vadd.f32 %v3492_v63, %v2061_v56  ;;  %2153 = vst [vmem:[%s3695_s3 + $0xa0] sm:$0xff] %v2125_v6  ;;  %2154 = vst [vmem:[%s3695_s3 + $0xa8] sm:$0xff] %v2126_v7 }
 0x1dd   : > { %v2063_v62 = vld [vmem:[%s3695_s3 + $0xd0] sm:$0xff]  ;;  %v2102_v11 = vadd.f32 %v3494_v0, %v2062_v61  ;;  %2155 = vst [vmem:[%s3695_s3 + $0xb0] sm:$0xff] %v2127_v8  ;;  %2156 = vst [vmem:[%s3695_s3 + $0xb8] sm:$0xff] %v2128_v9 }
 0x1de   : > { %v2064_v1 = vld [vmem:[%s3695_s3 + $0xd8] sm:$0xff]  ;;  %v2103_v12 = vadd.f32 %v3492_v63, %v2063_v62  ;;  %v2129_v14 = vmax.f32 %v2101_v10, 0.0 }
 0x1df   : > { %v2104_v13 = vadd.f32 %v3494_v0, %v2064_v1  ;;  %v2130_v63 = vmax.f32 %v2102_v11, 0.0 }
 0x1e0   : > { %v2131_v15 = vmax.f32 %v2103_v12, 0.0  ;;  %2157 = vst [vmem:[%s3695_s3 + $0xc0] sm:$0xff] %v2129_v14 }
 0x1e1   : > { %v2132_v0 = vmax.f32 %v2104_v13, 0.0  ;;  %2158 = vst [vmem:[%s3695_s3 + $0xc8] sm:$0xff] %v2130_v63 }
 0x1e2   : > { %2159 = vst [vmem:[%s3695_s3 + $0xd0] sm:$0xff] %v2131_v15 }
 0x1e3   : > { %2160 = vst [vmem:[%s3695_s3 + $0xd8] sm:$0xff] %v2132_v0 }
 0x1e4 PF: > { %s13_s16 = sadd.s32 1, %s2843_s16   ;;  %s3696_s12 = smov %s2831_s13 }
 0x1e5   : > { %p10_p12 = scmp.ge.s32.totalorder %s13_s16, 4   ;;  %s3697_s13 = smov %s2901_s20 }
 0x1e6   : > { %s3698_s14 = smov %s2839_s15  ;;  %s3699_s15 = smov %s3701_s17 }
 0x1e7   :  { %12 = sbr.rel (!%p10_p12) target bundleno = 3 (0x3), region = 104 }

// kernel: net_conv_forward.15
= control target key start
LH: loop header
LB: loop body
LE: loop exit
PB: predicated region body
PF: predicated region fallthrough
CT: control target
= control target key end

     0   :  { %vm70_vm0 = vcmask 523264   ;;  %s368_s0 = inlined_call_operand.vmem [shape: f32[9,24,192], index: 0, kind: input, shape index: {}]   ;;  %s369_s1 = inlined_call_operand.vmem [shape: f32[24,192], index: 1, kind: output, shape index: {}]  }
   0x1   :  { %v8_v0 = vld [vmem:[%s368_s0] sm:$0xff]  ;;  %v14_v1 = vld [vmem:[%s368_s0 + $0x30] sm:$0xff]  ;;  %v9_v6 = vld [vmem:[%s368_s0 + $0x8] sm:$0xff] }
   0x2   :  { %v20_v2 = vld [vmem:[%s368_s0 + $0x60] sm:$0xff]  ;;  %v62_v3 = vmax.f32 %v8_v0, %v14_v1  ;;  %v26_v4 = vld [vmem:[%s368_s0 + $0x90] sm:$0xff]  ;;  %v15_v7 = vld [vmem:[%s368_s0 + $0x38] sm:$0xff]  ;;  %v71_v11 = vsel %vm70_vm0, %v9_v6, -inf }
   0x3   :  { %v21_v8 = vld [vmem:[%s368_s0 + $0x68] sm:$0xff]  ;;  %v32_v9 = vld [vmem:[%s368_s0 + $0xc0] sm:$0xff]  ;;  %v27_v10 = vld [vmem:[%s368_s0 + $0x98] sm:$0xff]  ;;  %v72_v12 = vsel %vm70_vm0, %v15_v7, -inf }
   0x4   :  { %v63_v5 = vmax.f32 %v62_v3, %v20_v2  ;;  %v74_v13 = vsel %vm70_vm0, %v21_v8, -inf  ;;  %v33_v15 = vld [vmem:[%s368_s0 + $0xc8] sm:$0xff]  ;;  %v73_v16 = vmax.f32 %v71_v11, %v72_v12  ;;  %v38_v17 = vld [vmem:[%s368_s0 + $0xf0] sm:$0xff]  ;;  %v76_v18 = vsel %vm70_vm0, %v27_v10, -inf  ;;  %v16_v20 = vld [vmem:[%s368_s0 + $0x40] sm:$0xff] }
   0x5   :  { %v10_v19 = vld [vmem:[%s368_s0 + $0x10] sm:$0xff]  ;;  %v39_v22 = vld [vmem:[%s368_s0 + $0xf8] sm:$0xff]  ;;  %v44_v26 = vld [vmem:[%s368_s0 + $0x120] sm:$0xff]  ;;  %v78_v28 = vsel %vm70_vm0, %v33_v15, -inf }
   0x6   :  { %v64_v14 = vmax.f32 %v63_v5, %v26_v4  ;;  %v75_v23 = vmax.f32 %v73_v16, %v74_v13  ;;  %v22_v24 = vld [vmem:[%s368_s0 + $0x70] sm:$0xff]  ;;  %v88_v25 = vmax.f32 %v10_v19, %v16_v20  ;;  %v28_v29 = vld [vmem:[%s368_s0 + $0xa0] sm:$0xff]  ;;  %v45_v31 = vld [vmem:[%s368_s0 + $0x128] sm:$0xff]  ;;  %v80_v36 = vsel %vm70_vm0, %v39_v22, -inf }
   0x7   :  { %v50_v27 = vld [vmem:[%s368_s0 + $0x150] sm:$0xff]  ;;  %v11_v34 = vld [vmem:[%s368_s0 + $0x18] sm:$0xff]  ;;  %v17_v35 = vld [vmem:[%s368_s0 + $0x48] sm:$0xff]  ;;  %v82_v50 = vsel %vm70_vm0, %v45_v31, -inf }
   0x8   :  { %v65_v21 = vmax.f32 %v64_v14, %v32_v9  ;;  %v77_v32 = vmax.f32 %v75_v23, %v76_v18  ;;  %v89_v33 = vmax.f32 %v88_v25, %v22_v24  ;;  %v34_v37 = vld [vmem:[%s368_s0 + $0xd0] sm:$0xff]  ;;  %v23_v38 = vld [vmem:[%s368_s0 + $0x78] sm:$0xff]  ;;  %v29_v39 = vld [vmem:[%s368_s0 + $0xa8] sm:$0xff]  ;;  %v96_v40 = vsel %vm70_vm0, %v11_v34, -inf }
   0x9   :  { %v97_v41 = vsel %vm70_vm0, %v17_v35, -inf  ;;  %v56_v42 = vld [vmem:[%s368_s0 + $0x180] sm:$0xff]  ;;  %v51_v44 = vld [vmem:[%s368_s0 + $0x158] sm:$0xff]  ;;  %v57_v49 = vld [vmem:[%s368_s0 + $0x188] sm:$0xff]  ;;  %v99_v52 = vsel %vm70_vm0, %v23_v38, -inf  ;;  %v101_v53 = vsel %vm70_vm0, %v29_v39, -inf }
   0xa   :  { %v66_v30 = vmax.f32 %v65_v21, %v38_v17  ;;  %v79_v45 = vmax.f32 %v77_v32, %v78_v28  ;;  %v90_v46 = vmax.f32 %v89_v33, %v28_v29  ;;  %v35_v47 = vld [vmem:[%s368_s0 + $0xd8] sm:$0xff]  ;;  %v98_v48 = vmax.f32 %v96_v40, %v97_v41  ;;  %v40_v51 = vld [vmem:[%s368_s0 + $0x100] sm:$0xff]  ;;  %v41_v58 = vld [vmem:[%s368_s0 + $0x108] sm:$0xff] }
   0xb   :  { %v12_v54 = vld [vmem:[%s368_s0 + $0x20] sm:$0xff]  ;;  %v18_v60 = vld [vmem:[%s368_s0 + $0x50] sm:$0xff]  ;;  %v84_v62 = vsel %vm70_vm0, %v51_v44, -inf  ;;  %v103_v1 = vsel %vm70_vm0, %v35_v47, -inf  ;;  %v47_v6 = vld [vmem:[%s368_s0 + $0x138] sm:$0xff]  ;;  %v86_v10 = vsel %vm70_vm0, %v57_v49, -inf }
   0xc   :  { %v67_v43 = vmax.f32 %v66_v30, %v44_v26  ;;  %v81_v56 = vmax.f32 %v79_v45, %v80_v36  ;;  %v91_v57 = vmax.f32 %v90_v46, %v34_v37  ;;  %v100_v59 = vmax.f32 %v98_v48, %v99_v52  ;;  %v24_v61 = vld [vmem:[%s368_s0 + $0x80] sm:$0xff]  ;;  %v46_v63 = vld [vmem:[%s368_s0 + $0x130] sm:$0xff]  ;;  %v13_v9 = vld [vmem:[%s368_s0 + $0x28] sm:$0xff] }
   0xd   :  { %v52_v0 = vld [vmem:[%s368_s0 + $0x160] sm:$0xff]  ;;  %v113_v2 = vmax.f32 %v12_v54, %v18_v60  ;;  %v30_v8 = vld [vmem:[%s368_s0 + $0xb0] sm:$0xff]  ;;  %v105_v11 = vsel %vm70_vm0, %v41_v58, -inf  ;;  %v19_v13 = vld [vmem:[%s368_s0 + $0x58] sm:$0xff]  ;;  %v121_v16 = vsel %vm70_vm0, %v13_v9, -inf  ;;  %v107_v24 = vsel %vm70_vm0, %v47_v6, -inf }
   0xe   :  { %v68_v55 = vmax.f32 %v67_v43, %v50_v27  ;;  %v83_v4 = vmax.f32 %v81_v56, %v82_v50  ;;  %v92_v5 = vmax.f32 %v91_v57, %v40_v51  ;;  %v102_v7 = vmax.f32 %v100_v59, %v101_v53  ;;  %v25_v14 = vld [vmem:[%s368_s0 + $0x88] sm:$0xff]  ;;  %v31_v15 = vld [vmem:[%s368_s0 + $0xb8] sm:$0xff]  ;;  %v36_v21 = vld [vmem:[%s368_s0 + $0xe0] sm:$0xff] }
   0xf   :  { %v114_v12 = vmax.f32 %v113_v2, %v24_v61  ;;  %v53_v19 = vld [vmem:[%s368_s0 + $0x168] sm:$0xff]  ;;  %v122_v22 = vsel %vm70_vm0, %v19_v13, -inf  ;;  %v58_v23 = vld [vmem:[%s368_s0 + $0x190] sm:$0xff]  ;;  %v124_v28 = vsel %vm70_vm0, %v25_v14, -inf  ;;  %v59_v31 = vld [vmem:[%s368_s0 + $0x198] sm:$0xff]  ;;  %v126_v34 = vsel %vm70_vm0, %v31_v15, -inf }
  0x10   :  { %v69_v3 = vmax.f32 %v68_v55, %v56_v42  ;;  %v85_v17 = vmax.f32 %v83_v4, %v84_v62  ;;  %v93_v18 = vmax.f32 %v92_v5, %v46_v63  ;;  %v104_v20 = vmax.f32 %v102_v7, %v103_v1  ;;  %v37_v26 = vld [vmem:[%s368_s0 + $0xe8] sm:$0xff]  ;;  %v42_v33 = vld [vmem:[%s368_s0 + $0x110] sm:$0xff]  ;;  %v43_v37 = vld [vmem:[%s368_s0 + $0x118] sm:$0xff] }
  0x11   :  { %v115_v25 = vmax.f32 %v114_v12, %v30_v8  ;;  %v123_v27 = vmax.f32 %v121_v16, %v122_v22  ;;  %v109_v35 = vsel %vm70_vm0, %v53_v19, -inf  ;;  %v48_v41 = vld [vmem:[%s368_s0 + $0x140] sm:$0xff]  ;;  %v128_v42 = vsel %vm70_vm0, %v37_v26, -inf  ;;  %v49_v45 = vld [vmem:[%s368_s0 + $0x148] sm:$0xff]  ;;  %v54_v48 = vld [vmem:[%s368_s0 + $0x170] sm:$0xff] }
  0x12   :  { %138 = vst [vmem:[%s369_s1] sm:$0xff] %v69_v3  ;;  %v87_v29 = vmax.f32 %v85_v17, %v86_v10  ;;  %v94_v30 = vmax.f32 %v93_v18, %v52_v0  ;;  %v106_v32 = vmax.f32 %v104_v20, %v105_v11  ;;  %v111_v43 = vsel %vm70_vm0, %v59_v31, -inf  ;;  %v55_v51 = vld [vmem:[%s368_s0 + $0x178] sm:$0xff]  ;;  %v60_v54 = vld [vmem:[%s368_s0 + $0x1a0] sm:$0xff]  ;;  %v61_v57 = vld [vmem:[%s368_s0 + $0x1a8] sm:$0xff] }
  0x13   :  { %v116_v36 = vmax.f32 %v115_v25, %v36_v21  ;;  %v125_v38 = vmax.f32 %v123_v27, %v124_v28  ;;  %v130_v49 = vsel %vm70_vm0, %v43_v37, -inf  ;;  %v132_v55 = vsel %vm70_vm0, %v49_v45, -inf }
  0x14   :  { %139 = vst.msk [vmem:[%s369_s1 + $0x8] sm:$0xff] %vm70_vm0, %v87_v29  ;;  %v95_v39 = vmax.f32 %v94_v30, %v58_v23  ;;  %v108_v40 = vmax.f32 %v106_v32, %v107_v24  ;;  %v134_v59 = vsel %vm70_vm0, %v55_v51, -inf  ;;  %v136_v62 = vsel %vm70_vm0, %v61_v57, -inf }
  0x15   :  { %v117_v44 = vmax.f32 %v116_v36, %v42_v33  ;;  %v127_v46 = vmax.f32 %v125_v38, %v126_v34 }
  0x16   :  { %140 = vst [vmem:[%s369_s1 + $0x10] sm:$0xff] %v95_v39  ;;  %v110_v47 = vmax.f32 %v108_v40, %v109_v35 }
  0x17   :  { %v118_v50 = vmax.f32 %v117_v44, %v48_v41  ;;  %v129_v52 = vmax.f32 %v127_v46, %v128_v42 }
  0x18   :  { %v112_v53 = vmax.f32 %v110_v47, %v111_v43 }
  0x19   :  { %v119_v56 = vmax.f32 %v118_v50, %v54_v48  ;;  %v131_v58 = vmax.f32 %v129_v52, %v130_v49 }
  0x1a   :  { %141 = vst.msk [vmem:[%s369_s1 + $0x18] sm:$0xff] %vm70_vm0, %v112_v53 }
  0x1b   :  { %v120_v60 = vmax.f32 %v119_v56, %v60_v54  ;;  %v133_v61 = vmax.f32 %v131_v58, %v132_v55 }
  0x1d   :  { %142 = vst [vmem:[%s369_s1 + $0x20] sm:$0xff] %v120_v60  ;;  %v135_v63 = vmax.f32 %v133_v61, %v134_v59 }
  0x1f   :  { %v137_v0 = vmax.f32 %v135_v63, %v136_v62 }
  0x21   :  { %143 = vst.msk [vmem:[%s369_s1 + $0x28] sm:$0xff] %vm70_vm0, %v137_v0 }

// kernel: net_conv_forward.16
= control target key start
LH: loop header
LB: loop body
LE: loop exit
PB: predicated region body
PF: predicated region fallthrough
CT: control target
= control target key end

     0   :  { %s3071_s12 = smov 0   ;;  %s3073_s13 = smov 0   ;;  %s3632_s0 = inlined_call_operand.vmem [shape: bf16[32,2048], index: 0, kind: input, shape index: {}]   ;;  %s3633_s1 = inlined_call_operand.vmem [shape: bf16[2048,384], index: 1, kind: input, shape index: {}]   ;;  %s3634_s2 = inlined_call_operand.vmem [shape: f32[1,384], index: 2, kind: input, shape index: {}]   ;;  %s3635_s3 = inlined_call_operand.vmem [shape: f32[32,384], index: 3, kind: output, shape index: {}]  }
   0x1   :  { %s3075_s14 = smov 0   ;;  %s3077_s15 = smov 0  }
   0x2   :  { %s3079_s16 = smov 0  }
   0x3 LB: > { %s25_s17 = sadd.s32 1, %s3044_s15  ;;  %p48_p1 = scmp.ne.s32.totalorder %s3036_s13, %s3032_s12  ;;  %s3048_s16 = sphi %s3079_s16, %s13_s16   ;;  %s3044_s15 = sphi %s3077_s15, %s3639_s15   ;;  %s3040_s14 = sphi %s3075_s14, %s3638_s14   ;;  %s3036_s13 = sphi %s3073_s13, %s3637_s13   ;;  %s3032_s12 = sphi %s3071_s12, %s3636_s12  }
   0x4   : > { %p26_p0 = scmp.ge.s32.totalorder %s25_s17, 2  ;;  %p49_p2 = scmp.eq.s32.totalorder %s3048_s16, 0 }
   0x5   : > { %s41_s19 = sadd.s32 1, %s3036_s13  ;;  %p2353_p5 = scmp.ge.s32.totalorder %s3048_s16, 2 }
   0x6   : > { %s3641_s17 = smov (%p26_p0, %s25_s17), 0  ;;  %p50_p3 = por %p49_p2, %p48_p1 }
   0x7   : > { %s37_s18 = ssub.s32 %s3044_s15, %s3641_s17  ;;  %164 = sbr.rel (%p2353_p5) target bundleno = 26 (0x1a), region = 20 }
   0x8   : > { %p39_p4 = scmp.eq.s32.totalorder %s37_s18, 0 }
   0xa   : > { %s3106_s20 = scalar_select %p39_p4, %s3036_s13, %s41_s19  }
   0xe   : > { %167 = sbr.rel (!%p50_p3) target bundleno = 26 (0x1a), region = 24  ;;  %s169_s21 = sand.u32 (%p50_p3), 1, %s3036_s13  }
   0xf   : > { %s2575_s22 = sshll.u32 (%p50_p3), %s3044_s15, 5  ;;  %s2354_s23 = sshll.u32 (%p50_p3), %s169_s21, 7 }
  0x10   : > { %s3114_s26 = scalar_lea.vmem (%p50_p3), %s3632_s0, %s2575_s22  ;;  %s171_s27 = scalar_lea.vmem (%p50_p3), [#allocation2], %s2354_s23 }
  0x11   : > { %v190_v0 = vld [vmem:[%s3114_s26] sm:$0xff] (%p50_p3)  ;;  %v192_v1 = vld [vmem:[%s3114_s26 + $0x8] sm:$0xff] (%p50_p3)  ;;  %v194_v2 = vld [vmem:[%s3114_s26 + $0x10] sm:$0xff] (%p50_p3) }
  0x12   : > { %191 = vst [vmem:[%s171_s27] sm:$0xff] (%p50_p3), %v190_v0  ;;  %193 = vst [vmem:[%s171_s27 + $0x8] sm:$0xff] (%p50_p3), %v192_v1  ;;  %v196_v3 = vld [vmem:[%s3114_s26 + $0x18] sm:$0xff] (%p50_p3)  ;;  %v198_v4 = vld [vmem:[%s3114_s26 + $0x40] sm:$0xff] (%p50_p3) }
  0x13   : > { %195 = vst [vmem:[%s171_s27 + $0x10] sm:$0xff] (%p50_p3), %v194_v2  ;;  %v200_v5 = vld [vmem:[%s3114_s26 + $0x48] sm:$0xff] (%p50_p3)  ;;  %197 = vst [vmem:[%s171_s27 + $0x18] sm:$0xff] (%p50_p3), %v196_v3  ;;  %v202_v6 = vld [vmem:[%s3114_s26 + $0x50] sm:$0xff] (%p50_p3) }
  0x14   : > { %199 = vst [vmem:[%s171_s27 + $0x20] sm:$0xff] (%p50_p3), %v198_v4  ;;  %201 = vst [vmem:[%s171_s27 + $0x28] sm:$0xff] (%p50_p3), %v200_v5  ;;  %v204_v7 = vld [vmem:[%s3114_s26 + $0x58] sm:$0xff] (%p50_p3)  ;;  %v206_v8 = vld [vmem:[%s3114_s26 + $0x80] sm:$0xff] (%p50_p3) }
  0x15   : > { %203 = vst [vmem:[%s171_s27 + $0x30] sm:$0xff] %v202_v6  ;;  %205 = vst [vmem:[%s171_s27 + $0x38] sm:$0xff] %v204_v7  ;;  %v208_v9 = vld [vmem:[%s3114_s26 + $0x88] sm:$0xff]  ;;  %v210_v10 = vld [vmem:[%s3114_s26 + $0x90] sm:$0xff] }
  0x16   : > { %207 = vst [vmem:[%s171_s27 + $0x40] sm:$0xff] %v206_v8  ;;  %v212_v11 = vld [vmem:[%s3114_s26 + $0x98] sm:$0xff]  ;;  %209 = vst [vmem:[%s171_s27 + $0x48] sm:$0xff] %v208_v9  ;;  %v214_v12 = vld [vmem:[%s3114_s26 + $0xc0] sm:$0xff] }
  0x17   : > { %211 = vst [vmem:[%s171_s27 + $0x50] sm:$0xff] %v210_v10  ;;  %213 = vst [vmem:[%s171_s27 + $0x58] sm:$0xff] %v212_v11  ;;  %v216_v13 = vld [vmem:[%s3114_s26 + $0xc8] sm:$0xff]  ;;  %v218_v14 = vld [vmem:[%s3114_s26 + $0xd0] sm:$0xff] }
  0x18   : > { %215 = vst [vmem:[%s171_s27 + $0x60] sm:$0xff] %v214_v12  ;;  %217 = vst [vmem:[%s171_s27 + $0x68] sm:$0xff] %v216_v13  ;;  %v220_v15 = vld [vmem:[%s3114_s26 + $0xd8] sm:$0xff] }
  0x19   : > { %219 = vst [vmem:[%s171_s27 + $0x70] sm:$0xff] %v218_v14  ;;  %221 = vst [vmem:[%s171_s27 + $0x78] sm:$0xff] %v220_v15 }
  0x1a PF: > { %p2357_p6 = scmp.ge.s32.totalorder %s3048_s16, 1  ;;  %p241_p7 = scmp.lt.s32.totalorder %s3048_s16, 3 }
  0x1c   : > { %p242_p8 = pnand %p2357_p6, %p241_p7 }
  0x1d   : > { %s248_s28 = sand.u32 (!%p242_p8), 1, %s3032_s12   ;;  %s2359_s29 = sshll.u32 (!%p242_p8), %s3040_s14, 7 }
  0x1e   : > { %245 = sbr.rel (%p242_p8) target bundleno = 480 (0x1e0), region = 51  ;;  %s2358_s30 = sshll.u32 (!%p242_p8), %s248_s28, 7 }
  0x1f   : > { %p294_p9 = scmp.lt.s32.totalorder (!%p242_p8), %s2359_s29, 255  ;;  %s3141_s8 = scalar_lea.vmem (!%p242_p8), [#allocation2], %s2358_s30 }
  0x20   : > { %p2361_p10 = scmp.ne.s32.totalorder (!%p242_p8), %s3040_s14, 0 }
  0x25   : > { %s3643_s29 = smov (!%p294_p9, %s2359_s29), 255  ;;  %325 = sbr.rel (%p2361_p10) target bundleno = 45 (0x2d), region = 59 }
  0x26   : > { %s2712_s4 = smul.u32 12, %s3643_s29  ;;  %v3050_v16 = vmov (!%p2361_p10), 0.0  }
  0x27   : > { %326 = vst [vmem:[%s3635_s3] sm:$0xff] (!%p2361_p10), %v3050_v16  ;;  %327 = vst [vmem:[%s3635_s3 + $0x8] sm:$0xff] (!%p2361_p10), %v3050_v16 }
  0x28   : > { %s3139_s7 = scalar_lea.vmem %s3633_s1, %s2712_s4  ;;  %328 = vst [vmem:[%s3635_s3 + $0x10] sm:$0xff] (!%p2361_p10), %v3050_v16  ;;  %329 = vst [vmem:[%s3635_s3 + $0x18] sm:$0xff] (!%p2361_p10), %v3050_v16 }
  0x29   : > { %330 = vst [vmem:[%s3635_s3 + $0x20] sm:$0xff] (!%p2361_p10), %v3050_v16  ;;  %331 = vst [vmem:[%s3635_s3 + $0x28] sm:$0xff] (!%p2361_p10), %v3050_v16 }
  0x2a   : > { %332 = vst [vmem:[%s3635_s3 + $0x30] sm:$0xff] (!%p2361_p10), %v3050_v16  ;;  %333 = vst [vmem:[%s3635_s3 + $0x38] sm:$0xff] (!%p2361_p10), %v3050_v16 }
  0x2b   : > { %334 = vst [vmem:[%s3635_s3 + $0x40] sm:$0xff] (!%p2361_p10), %v3050_v16  ;;  %335 = vst [vmem:[%s3635_s3 + $0x48] sm:$0xff] (!%p2361_p10), %v3050_v16 }
  0x2c   : > { %336 = vst [vmem:[%s3635_s3 + $0x50] sm:$0xff] %v3050_v16  ;;  %337 = vst [vmem:[%s3635_s3 + $0x58] sm:$0xff] %v3050_v16 }
  0x2d PF: > { %v2754_v17 = vld [vmem:[%s3139_s7 + $0x4] ss:$12 sps:$4 sm:$0xff]   ;;  %v2758_v19 = vld [vmem:[%s3139_s7] ss:$12 sps:$4 sm:$0xff]   ;;  %v2760_v21 = vld [vmem:[%s3139_s7 + $0x1c] ss:$12 sps:$4 sm:$0xff]  }
  0x2e   : > { %v2756_v18 = vld [vmem:[%s3139_s7 + $0x184] ss:$12 sps:$4 sm:$0xff]   ;;  %1726 = vmatprep.subr.bf16.mxu1 %v2754_v17  ;;  %v2759_v20 = vld [vmem:[%s3139_s7 + $0x180] ss:$12 sps:$4 sm:$0xff]   ;;  %v2762_v22 = vld [vmem:[%s3139_s7 + $0x19c] ss:$12 sps:$4 sm:$0xff]  }
  0x2f   : > { %1779 = vmatprep.subr.bf16.mxu0 %v2756_v18  ;;  %1727 = vmatpush1.bf16.msra.mxu1 %v2758_v19  ;;  %v2764_v23 = vld [vmem:[%s3139_s7 + $0x18] ss:$12 sps:$4 sm:$0xff]   ;;  %v2766_v25 = vld [vmem:[%s3139_s7 + $0x34] ss:$12 sps:$4 sm:$0xff]   ;;  %v2770_v27 = vld [vmem:[%s3139_s7 + $0x30] ss:$12 sps:$4 sm:$0xff]  }
  0x30   : > { %1780 = vmatpush1.bf16.msra.mxu0 %v2759_v20  ;;  %1728 = vmatprep.subr.bf16.mxu1 %v2760_v21  ;;  %v2765_v24 = vld [vmem:[%s3139_s7 + $0x198] ss:$12 sps:$4 sm:$0xff]   ;;  %v2768_v26 = vld [vmem:[%s3139_s7 + $0x1b4] ss:$12 sps:$4 sm:$0xff]   ;;  %v2771_v28 = vld [vmem:[%s3139_s7 + $0x1b0] ss:$12 sps:$4 sm:$0xff]  }
  0x31   : > { %1781 = vmatprep.subr.bf16.mxu0 %v2762_v22  ;;  %v2772_v29 = vld [vmem:[%s3139_s7 + $0x4c] ss:$12 sps:$4 sm:$0xff]   ;;  %v2776_v31 = vld [vmem:[%s3139_s7 + $0x48] ss:$12 sps:$4 sm:$0xff]   ;;  %v2778_v33 = vld [vmem:[%s3139_s7 + $0x64] ss:$12 sps:$4 sm:$0xff]  }
  0x32   : > { %v2774_v30 = vld [vmem:[%s3139_s7 + $0x1cc] ss:$12 sps:$4 sm:$0xff]   ;;  %v2777_v32 = vld [vmem:[%s3139_s7 + $0x1c8] ss:$12 sps:$4 sm:$0xff]   ;;  %v2780_v34 = vld [vmem:[%s3139_s7 + $0x1e4] ss:$12 sps:$4 sm:$0xff]  }
  0x33   : > { %1729 = vmatpush1.bf16.msra.mxu1 %v2764_v23  ;;  %v2782_v35 = vld [vmem:[%s3139_s7 + $0x60] ss:$12 sps:$4 sm:$0xff]   ;;  %v2784_v37 = vld [vmem:[%s3139_s7 + $0x7c] ss:$12 sps:$4 sm:$0xff]   ;;  %v2788_v39 = vld [vmem:[%s3139_s7 + $0x78] ss:$12 sps:$4 sm:$0xff]  }
  0x34   : > { %1782 = vmatpush1.bf16.msra.mxu0 %v2765_v24  ;;  %1730 = vmatprep.subr.bf16.mxu1 %v2766_v25  ;;  %v2783_v36 = vld [vmem:[%s3139_s7 + $0x1e0] ss:$12 sps:$4 sm:$0xff]   ;;  %v2786_v38 = vld [vmem:[%s3139_s7 + $0x1fc] ss:$12 sps:$4 sm:$0xff]   ;;  %v2789_v40 = vld [vmem:[%s3139_s7 + $0x1f8] ss:$12 sps:$4 sm:$0xff]  }
  0x35   : > { %1783 = vmatprep.subr.bf16.mxu0 %v2768_v26  ;;  %v2790_v41 = vld [vmem:[%s3139_s7 + $0x94] ss:$12 sps:$4 sm:$0xff]   ;;  %v2794_v43 = vld [vmem:[%s3139_s7 + $0x90] ss:$12 sps:$4 sm:$0xff]   ;;  %v2796_v45 = vld [vmem:[%s3139_s7 + $0xac] ss:$12 sps:$4 sm:$0xff]  }
  0x36   : > { %v2792_v42 = vld [vmem:[%s3139_s7 + $0x214] ss:$12 sps:$4 sm:$0xff]   ;;  %v2795_v44 = vld [vmem:[%s3139_s7 + $0x210] ss:$12 sps:$4 sm:$0xff]   ;;  %v2798_v46 = vld [vmem:[%s3139_s7 + $0x22c] ss:$12 sps:$4 sm:$0xff]  }
  0x37   : > { %1731 = vmatpush1.bf16.msra.mxu1 %v2770_v27  ;;  %v2800_v47 = vld [vmem:[%s3139_s7 + $0xa8] ss:$12 sps:$4 sm:$0xff]   ;;  %v2802_v49 = vld [vmem:[%s3139_s7 + $0xc4] ss:$12 sps:$4 sm:$0xff]   ;;  %v2806_v51 = vld [vmem:[%s3139_s7 + $0xc0] ss:$12 sps:$4 sm:$0xff]  }
  0x38   : > { %1784 = vmatpush1.bf16.msra.mxu0 %v2771_v28  ;;  %1732 = vmatprep.subr.bf16.mxu1 %v2772_v29  ;;  %v2801_v48 = vld [vmem:[%s3139_s7 + $0x228] ss:$12 sps:$4 sm:$0xff]   ;;  %v2804_v50 = vld [vmem:[%s3139_s7 + $0x244] ss:$12 sps:$4 sm:$0xff]   ;;  %v2807_v52 = vld [vmem:[%s3139_s7 + $0x240] ss:$12 sps:$4 sm:$0xff]  }
  0x39   : > { %1785 = vmatprep.subr.bf16.mxu0 %v2774_v30  ;;  %v2808_v53 = vld [vmem:[%s3139_s7 + $0xdc] ss:$12 sps:$4 sm:$0xff]   ;;  %v2812_v55 = vld [vmem:[%s3139_s7 + $0xd8] ss:$12 sps:$4 sm:$0xff]   ;;  %v2814_v57 = vld [vmem:[%s3139_s7 + $0xf4] ss:$12 sps:$4 sm:$0xff]  }
  0x3a   : > { %v2810_v54 = vld [vmem:[%s3139_s7 + $0x25c] ss:$12 sps:$4 sm:$0xff]   ;;  %v2813_v56 = vld [vmem:[%s3139_s7 + $0x258] ss:$12 sps:$4 sm:$0xff]   ;;  %v2816_v58 = vld [vmem:[%s3139_s7 + $0x274] ss:$12 sps:$4 sm:$0xff]  }
  0x3b   : > { %1733 = vmatpush1.bf16.msra.mxu1 %v2776_v31  ;;  %v2818_v59 = vld [vmem:[%s3139_s7 + $0xf0] ss:$12 sps:$4 sm:$0xff]   ;;  %v2820_v61 = vld [vmem:[%s3139_s7 + $0x10c] ss:$12 sps:$4 sm:$0xff]   ;;  %v2824_v63 = vld [vmem:[%s3139_s7 + $0x108] ss:$12 sps:$4 sm:$0xff]  }
  0x3c   : > { %1786 = vmatpush1.bf16.msra.mxu0 %v2777_v32  ;;  %1734 = vmatprep.subr.bf16.mxu1 %v2778_v33  ;;  %v2819_v60 = vld [vmem:[%s3139_s7 + $0x270] ss:$12 sps:$4 sm:$0xff]   ;;  %v2822_v62 = vld [vmem:[%s3139_s7 + $0x28c] ss:$12 sps:$4 sm:$0xff]   ;;  %v2825_v0 = vld [vmem:[%s3139_s7 + $0x288] ss:$12 sps:$4 sm:$0xff]  }
  0x3d   : > { %1787 = vmatprep.subr.bf16.mxu0 %v2780_v34  ;;  %v350_v1 = vld [vmem:[%s3141_s8] sm:$0xff]  ;;  %v351_v3 = vld [vmem:[%s3141_s8 + $0x8] sm:$0xff]  ;;  %v2842_v17 = vld [vmem:[%s3139_s7 + $0x150] ss:$12 sps:$4 sm:$0xff]   ;;  %p2570_p11 = scmp.ne.s32.totalorder %s3040_s14, 1 }
  0x3e   : > { %v354_v2 = vld [vmem:[%s3141_s8 + $0x20] sm:$0xff]  ;;  %v355_v4 = vld [vmem:[%s3141_s8 + $0x28] sm:$0xff]  ;;  %v2843_v18 = vld [vmem:[%s3139_s7 + $0x2d0] ss:$12 sps:$4 sm:$0xff]  }
  0x3f   : > { %1735 = vmatpush1.bf16.msra.mxu1 %v2782_v35  ;;  %v2826_v5 = vld [vmem:[%s3139_s7 + $0x124] ss:$12 sps:$4 sm:$0xff]   ;;  %v3233_v6 = vcombine.high %v350_v1, %v354_v2  ;;  %v3236_v8 = vcombine.high %v351_v3, %v355_v4  ;;  %v2830_v9 = vld [vmem:[%s3139_s7 + $0x120] ss:$12 sps:$4 sm:$0xff]   ;;  %v2832_v11 = vld [vmem:[%s3139_s7 + $0x13c] ss:$12 sps:$4 sm:$0xff]   ;;  %v3257_v26 = vcombine.low %v350_v1, %v354_v2  ;;  %v3259_v27 = vcombine.low %v351_v3, %v355_v4 }
  0x40   : > { %1788 = vmatpush1.bf16.msra.mxu0 %v2783_v36  ;;  %1736 = vmatprep.subr.bf16.mxu1 %v2784_v37  ;;  %v2828_v7 = vld [vmem:[%s3139_s7 + $0x2a4] ss:$12 sps:$4 sm:$0xff]   ;;  %v2831_v10 = vld [vmem:[%s3139_s7 + $0x2a0] ss:$12 sps:$4 sm:$0xff]   ;;  %v2834_v12 = vld [vmem:[%s3139_s7 + $0x2bc] ss:$12 sps:$4 sm:$0xff]  }
  0x41   : > { %1789 = vmatprep.subr.bf16.mxu0 %v2786_v38  ;;  %1758 = vmatprep.mubr.bf16.mxu1 %v3233_v6  ;;  %v2836_v13 = vld [vmem:[%s3139_s7 + $0x138] ss:$12 sps:$4 sm:$0xff]   ;;  %v2838_v15 = vld [vmem:[%s3139_s7 + $0x154] ss:$12 sps:$4 sm:$0xff]   ;;  %v2857_v31 = vld [vmem:[%s3139_s7 + $0x31c] ss:$12 sps:$4 sm:$0xff]  }
  0x42   : > { %1811 = vmatprep.mubr.bf16.mxu0 %v3236_v8  ;;  %v2837_v14 = vld [vmem:[%s3139_s7 + $0x2b8] ss:$12 sps:$4 sm:$0xff]   ;;  %v2840_v16 = vld [vmem:[%s3139_s7 + $0x2d4] ss:$12 sps:$4 sm:$0xff]   ;;  %v2860_v38 = vld [vmem:[%s3139_s7 + $0x330] ss:$12 sps:$4 sm:$0xff]  }
  0x43   : > { %1737 = vmatpush1.bf16.msra.mxu1 %v2788_v39  ;;  %v2844_v19 = vld [vmem:[%s3139_s7 + $0x16c] ss:$12 sps:$4 sm:$0xff]   ;;  %v2848_v21 = vld [vmem:[%s3139_s7 + $0x168] ss:$12 sps:$4 sm:$0xff]   ;;  %v2852_v23 = vld [vmem:[%s3139_s7 + $0x304] ss:$12 sps:$4 sm:$0xff]  }
  0x44   : > { %1790 = vmatpush1.bf16.msra.mxu0 %v2789_v40  ;;  %1738 = vmatprep.subr.bf16.mxu1 %v2790_v41  ;;  %v2846_v20 = vld [vmem:[%s3139_s7 + $0x2ec] ss:$12 sps:$4 sm:$0xff]   ;;  %v2849_v22 = vld [vmem:[%s3139_s7 + $0x2e8] ss:$12 sps:$4 sm:$0xff]   ;;  %v358_v28 = vld [vmem:[%s3141_s8 + $0x40] sm:$0xff] }
  0x45   : > { %1791 = vmatprep.subr.bf16.mxu0 %v2792_v42  ;;  %v2853_v24 = vld [vmem:[%s3139_s7 + $0xc8] ss:$12 sps:$4 sm:$0xff]   ;;  %v2850_v25 = vld [vmem:[%s3139_s7 + $0x300] ss:$12 sps:$4 sm:$0xff]   ;;  %v2855_v33 = vld [vmem:[%s3139_s7 + $0x318] ss:$12 sps:$4 sm:$0xff]  }
  0x46   : > { %v362_v29 = vld [vmem:[%s3141_s8 + $0x60] sm:$0xff]  ;;  %v2854_v30 = vld [vmem:[%s3139_s7 + $0x8] ss:$12 sps:$4 sm:$0xff]   ;;  %v2867_v41 = vld [vmem:[%s3139_s7 + $0x34c] ss:$12 sps:$4 sm:$0xff]  }
  0x47   : > { %1739 = vmatpush1.bf16.msra.mxu1 %v2794_v43  ;;  %v2858_v32 = vld [vmem:[%s3139_s7 + $0xe0] ss:$12 sps:$4 sm:$0xff]   ;;  %v3267_v34 = vcombine.high %v358_v28, %v362_v29  ;;  %v2863_v37 = vld [vmem:[%s3139_s7 + $0xf8] ss:$12 sps:$4 sm:$0xff]   ;;  %v3276_v39 = vcombine.low %v358_v28, %v362_v29  ;;  %v2868_v42 = vld [vmem:[%s3139_s7 + $0x110] ss:$12 sps:$4 sm:$0xff]  }
  0x48   : > { %1792 = vmatpush1.bf16.msra.mxu0 %v2795_v44  ;;  %1740 = vmatprep.subr.bf16.mxu1 %v2796_v45  ;;  %v2859_v35 = vld [vmem:[%s3139_s7 + $0x20] ss:$12 sps:$4 sm:$0xff]   ;;  %v2864_v40 = vld [vmem:[%s3139_s7 + $0x38] ss:$12 sps:$4 sm:$0xff]   ;;  %v2865_v43 = vld [vmem:[%s3139_s7 + $0x348] ss:$12 sps:$4 sm:$0xff]  }
  0x49   : > { %1793 = vmatprep.subr.bf16.mxu0 %v2798_v46  ;;  %v2862_v36 = vld [vmem:[%s3139_s7 + $0x334] ss:$12 sps:$4 sm:$0xff]   ;;  %v2869_v44 = vld [vmem:[%s3139_s7 + $0x50] ss:$12 sps:$4 sm:$0xff]   ;;  %v2915_v28 = vld [vmem:[%s3139_s7 + $0x438] ss:$12 sps:$4 sm:$0xff]  }
  0x4a   : > { %v2872_v45 = vld [vmem:[%s3139_s7 + $0x364] ss:$12 sps:$4 sm:$0xff]   ;;  %v2873_v46 = vld [vmem:[%s3139_s7 + $0x128] ss:$12 sps:$4 sm:$0xff]   ;;  %v2890_v3 = vld [vmem:[%s3139_s7 + $0x3c0] ss:$12 sps:$4 sm:$0xff]  }
  0x4b   : > { %1741 = vmatpush1.bf16.msra.mxu1 %v2800_v47  ;;  %v2870_v47 = vld [vmem:[%s3139_s7 + $0x360] ss:$12 sps:$4 sm:$0xff]   ;;  %v2893_v2 = vld [vmem:[%s3139_s7 + $0x248] ss:$12 sps:$4 sm:$0xff]  }
  0x4c   : > { %1794 = vmatpush1.bf16.msra.mxu0 %v2801_v48  ;;  %1742 = vmatprep.subr.bf16.mxu1 %v2802_v49  ;;  %v2874_v48 = vld [vmem:[%s3139_s7 + $0x68] ss:$12 sps:$4 sm:$0xff]   ;;  %v2919_v29 = vld [vmem:[%s3139_s7 + $0x200] ss:$12 sps:$4 sm:$0xff]  }
  0x4d   : > { %1795 = vmatprep.subr.bf16.mxu0 %v2804_v50  ;;  %v2877_v49 = vld [vmem:[%s3139_s7 + $0x37c] ss:$12 sps:$4 sm:$0xff]   ;;  %v2878_v50 = vld [vmem:[%s3139_s7 + $0x140] ss:$12 sps:$4 sm:$0xff]  }
  0x4e   : > { %v2894_v4 = vld [vmem:[%s3139_s7 + $0x188] ss:$12 sps:$4 sm:$0xff]  }
  0x4f   : > { %1743 = vmatpush1.bf16.msra.mxu1 %v2806_v51  ;;  %v2875_v51 = vld [vmem:[%s3139_s7 + $0x378] ss:$12 sps:$4 sm:$0xff]  }
  0x50   : > { %1796 = vmatpush1.bf16.msra.mxu0 %v2807_v52  ;;  %1744 = vmatprep.subr.bf16.mxu1 %v2808_v53  ;;  %v2879_v52 = vld [vmem:[%s3139_s7 + $0x80] ss:$12 sps:$4 sm:$0xff]  }
  0x51   : > { %1797 = vmatprep.subr.bf16.mxu0 %v2810_v54  ;;  %v2882_v53 = vld [vmem:[%s3139_s7 + $0x394] ss:$12 sps:$4 sm:$0xff]   ;;  %v2883_v54 = vld [vmem:[%s3139_s7 + $0x158] ss:$12 sps:$4 sm:$0xff]  }
  0x53   : > { %1745 = vmatpush1.bf16.msra.mxu1 %v2812_v55  ;;  %v2880_v55 = vld [vmem:[%s3139_s7 + $0x390] ss:$12 sps:$4 sm:$0xff]  }
  0x54   : > { %1798 = vmatpush1.bf16.msra.mxu0 %v2813_v56  ;;  %1746 = vmatprep.subr.bf16.mxu1 %v2814_v57  ;;  %v2884_v56 = vld [vmem:[%s3139_s7 + $0x98] ss:$12 sps:$4 sm:$0xff]  }
  0x55   : > { %1799 = vmatprep.subr.bf16.mxu0 %v2816_v58  ;;  %v2887_v57 = vld [vmem:[%s3139_s7 + $0x3ac] ss:$12 sps:$4 sm:$0xff]   ;;  %v2888_v58 = vld [vmem:[%s3139_s7 + $0x170] ss:$12 sps:$4 sm:$0xff]  }
  0x57   : > { %1747 = vmatpush1.bf16.msra.mxu1 %v2818_v59  ;;  %v2885_v59 = vld [vmem:[%s3139_s7 + $0x3a8] ss:$12 sps:$4 sm:$0xff]  }
  0x58   : > { %1800 = vmatpush1.bf16.msra.mxu0 %v2819_v60  ;;  %1748 = vmatprep.subr.bf16.mxu1 %v2820_v61  ;;  %v2889_v60 = vld [vmem:[%s3139_s7 + $0xb0] ss:$12 sps:$4 sm:$0xff]   ;;  %v359_v61 = vld [vmem:[%s3141_s8 + $0x48] sm:$0xff] }
  0x59   : > { %1801 = vmatprep.subr.bf16.mxu0 %v2822_v62  ;;  %v363_v62 = vld [vmem:[%s3141_s8 + $0x68] sm:$0xff] }
  0x5a   : > { %v3306_v1 = vcombine.low %v359_v61, %v363_v62 }
  0x5b   : > { %1749 = vmatpush1.bf16.msra.mxu1 %v2824_v63  ;;  %v2892_v63 = vld [vmem:[%s3139_s7 + $0x3c4] ss:$12 sps:$4 sm:$0xff]  }
  0x5c   : > { %1802 = vmatpush1.bf16.msra.mxu0 %v2825_v0  ;;  %1750 = vmatprep.subr.bf16.mxu1 %v2826_v5  ;;  %v3304_v0 = vcombine.high %v359_v61, %v363_v62  ;;  %v2897_v5 = vld [vmem:[%s3139_s7 + $0x3dc] ss:$12 sps:$4 sm:$0xff]   ;;  %v2958_v62 = vld [vmem:[%s3139_s7 + $0x440] ss:$12 sps:$4 sm:$0xff]  }
  0x5d   : > { %1803 = vmatprep.subr.bf16.mxu0 %v2828_v7  ;;  %v2895_v7 = vld [vmem:[%s3139_s7 + $0x3d8] ss:$12 sps:$4 sm:$0xff]   ;;  %v2957_v61 = vld [vmem:[%s3139_s7 + $0x4fc] ss:$12 sps:$4 sm:$0xff]  }
  0x5f   : > { %1751 = vmatpush1.bf16.msra.mxu1 %v2830_v9  ;;  %v3317_v9 = vld [vmem:[%s3141_s8 + $0x10] sm:$0xff] }
  0x60   : > { %1804 = vmatpush1.bf16.msra.mxu0 %v2831_v10  ;;  %1752 = vmatprep.subr.bf16.mxu1 %v2832_v11  ;;  %v356_v10 = vld [vmem:[%s3141_s8 + $0x30] sm:$0xff]  ;;  %v2899_v11 = vld [vmem:[%s3139_s7 + $0x1a0] ss:$12 sps:$4 sm:$0xff]  }
  0x61   : > { %1805 = vmatprep.subr.bf16.mxu0 %v2834_v12  ;;  %v2902_v12 = vld [vmem:[%s3139_s7 + $0x3f4] ss:$12 sps:$4 sm:$0xff]  }
  0x63   : > { %1753 = vmatpush1.bf16.msra.mxu1 %v2836_v13  ;;  %v3324_v13 = vcombine.high %v3317_v9, %v356_v10 }
  0x64   : > { %1806 = vmatpush1.bf16.msra.mxu0 %v2837_v14  ;;  %1754 = vmatprep.subr.bf16.mxu1 %v2838_v15  ;;  %v2903_v14 = vld [vmem:[%s3139_s7 + $0x278] ss:$12 sps:$4 sm:$0xff]   ;;  %v2900_v15 = vld [vmem:[%s3139_s7 + $0x3f0] ss:$12 sps:$4 sm:$0xff]  }
  0x65   : > { %1807 = vmatprep.subr.bf16.mxu0 %v2840_v16  ;;  %v2904_v16 = vld [vmem:[%s3139_s7 + $0x1b8] ss:$12 sps:$4 sm:$0xff]  }
  0x67   : > { %1755 = vmatpush1.bf16.msra.mxu1 %v2842_v17  ;;  %v2907_v17 = vld [vmem:[%s3139_s7 + $0x40c] ss:$12 sps:$4 sm:$0xff]  }
  0x68   : > { %1808 = vmatpush1.bf16.msra.mxu0 %v2843_v18  ;;  %1756 = vmatprep.subr.bf16.mxu1 %v2844_v19  ;;  %v2908_v18 = vld [vmem:[%s3139_s7 + $0x290] ss:$12 sps:$4 sm:$0xff]   ;;  %v2905_v19 = vld [vmem:[%s3139_s7 + $0x408] ss:$12 sps:$4 sm:$0xff]  }
  0x69   : > { %1809 = vmatprep.subr.bf16.mxu0 %v2846_v20  ;;  %v2909_v20 = vld [vmem:[%s3139_s7 + $0x1d0] ss:$12 sps:$4 sm:$0xff]  }
  0x6b   : > { %1757 = vmatpush1.bf16.msra.mxu1 %v2848_v21  ;;  %v2912_v21 = vld [vmem:[%s3139_s7 + $0x424] ss:$12 sps:$4 sm:$0xff]  }
  0x6c   : > { %1810 = vmatpush1.bf16.msra.mxu0 %v2849_v22  ;;  %2576 = vmatprep.subr.bf16.mxu1 %v2853_v24  ;;  %v2913_v22 = vld [vmem:[%s3139_s7 + $0x2a8] ss:$12 sps:$4 sm:$0xff]  }
  0x6d   : > { %1832 = vmatprep.subr.bf16.mxu0 %v2852_v23  ;;  %v2910_v23 = vld [vmem:[%s3139_s7 + $0x420] ss:$12 sps:$4 sm:$0xff]   ;;  %v2914_v24 = vld [vmem:[%s3139_s7 + $0x1e8] ss:$12 sps:$4 sm:$0xff]  }
  0x6e   : > { %1759 = vmatmul.mubr.bf16.vlgmr.msra.gmra.mrb[0].mxu1 %v3257_v26 }
  0x6f   : > { %1812 = vmatmul.mubr.bf16.vlgmr.msra.gmra.mrb[0].mxu0 %v3259_v27  ;;  %2577 = vmatpush3.bf16.msra.mxu1 %v2854_v30  ;;  %v2923_v30 = vld [vmem:[%s3139_s7 + $0x2d8] ss:$12 sps:$4 sm:$0xff]  }
  0x70   : > { %1833 = vmatpush1.bf16.msra.mxu0 %v2850_v25  ;;  %2578 = vmatprep.subr.bf16.mxu1 %v2858_v32  ;;  %v2917_v25 = vld [vmem:[%s3139_s7 + $0x43c] ss:$12 sps:$4 sm:$0xff]   ;;  %v2924_v32 = vld [vmem:[%s3139_s7 + $0x218] ss:$12 sps:$4 sm:$0xff]  }
  0x71   : > { %1834 = vmatprep.subr.bf16.mxu0 %v2857_v31  ;;  %1768 = vmatprep.mubr.bf16.mxu1 %v3267_v34  ;;  %v2920_v31 = vld [vmem:[%s3139_s7 + $0x450] ss:$12 sps:$4 sm:$0xff]  }
  0x72   : > { %1821 = vmatprep.mubr.bf16.mxu0 %v3304_v0 }
  0x73   : > { %2579 = vmatpush3.bf16.msra.mxu1 %v2859_v35  ;;  %v2925_v35 = vld [vmem:[%s3139_s7 + $0x468] ss:$12 sps:$4 sm:$0xff]  }
  0x74   : > { %1835 = vmatpush1.bf16.msra.mxu0 %v2855_v33  ;;  %2580 = vmatprep.subr.bf16.mxu1 %v2863_v37  ;;  %v2927_v33 = vld [vmem:[%s3139_s7 + $0x46c] ss:$12 sps:$4 sm:$0xff]   ;;  %v2932_v37 = vld [vmem:[%s3139_s7 + $0x484] ss:$12 sps:$4 sm:$0xff]  }
  0x75   : > { %1836 = vmatprep.subr.bf16.mxu0 %v2862_v36  ;;  %v2929_v36 = vld [vmem:[%s3139_s7 + $0x230] ss:$12 sps:$4 sm:$0xff]  }
  0x76   : > { %1769 = vmatmul.mubr.bf16.gmra.mrb[4].mxu1 %v3276_v39 }
  0x77   : > { %2581 = vmatpush3.bf16.msra.mxu1 %v2864_v40  ;;  %1970 = vmatprep.mubr.bf16.mxu1 %v3233_v6  ;;  %v2898_v6 = vld [vmem:[%s3139_s7 + $0x260] ss:$12 sps:$4 sm:$0xff]   ;;  %v3357_v40 = vcombine.low %v3317_v9, %v356_v10  ;;  %v3403_v9 = vld [vmem:[%s3141_s8 + $0x38] sm:$0xff] }
  0x78   : > { %1837 = vmatpush1.bf16.msra.mxu0 %v2860_v38  ;;  %2582 = vmatprep.subr.bf16.mxu1 %v2868_v42  ;;  %v2933_v38 = vld [vmem:[%s3139_s7 + $0x3c8] ss:$12 sps:$4 sm:$0xff]  }
  0x79   : > { %1838 = vmatprep.subr.bf16.mxu0 %v2867_v41  ;;  %1822 = vmatmul.mubr.bf16.gmra.mrb[4].mxu0 %v3306_v1  ;;  %v2934_v41 = vld [vmem:[%s3139_s7 + $0x308] ss:$12 sps:$4 sm:$0xff]  }
  0x7a   : > { %1864 = vmatprep.mubr.bf16.mxu0 %v3324_v13  ;;  %v2937_v42 = vld [vmem:[%s3139_s7 + $0x49c] ss:$12 sps:$4 sm:$0xff]  }
  0x7b   : > { %2583 = vmatpush3.bf16.msra.mxu1 %v2869_v44  ;;  %v2935_v44 = vld [vmem:[%s3139_s7 + $0x498] ss:$12 sps:$4 sm:$0xff]  }
  0x7c   : > { %1839 = vmatpush1.bf16.msra.mxu0 %v2865_v43  ;;  %2584 = vmatprep.subr.bf16.mxu1 %v2873_v46  ;;  %v2938_v43 = vld [vmem:[%s3139_s7 + $0x3e0] ss:$12 sps:$4 sm:$0xff]  }
  0x7d   : > { %1840 = vmatprep.subr.bf16.mxu0 %v2872_v45  ;;  %v2939_v45 = vld [vmem:[%s3139_s7 + $0x320] ss:$12 sps:$4 sm:$0xff]  }
  0x7e   : > { %v2942_v46 = vld [vmem:[%s3139_s7 + $0x4b4] ss:$12 sps:$4 sm:$0xff]  }
  0x7f   : > { %2585 = vmatpush3.bf16.msra.mxu1 %v2874_v48  ;;  %v360_v48 = vld [vmem:[%s3141_s8 + $0x50] sm:$0xff] }
  0x80   : > { %1841 = vmatpush1.bf16.msra.mxu0 %v2870_v47  ;;  %2586 = vmatprep.subr.bf16.mxu1 %v2878_v50  ;;  %v2943_v47 = vld [vmem:[%s3139_s7 + $0x3f8] ss:$12 sps:$4 sm:$0xff]   ;;  %v2940_v50 = vld [vmem:[%s3139_s7 + $0x4b0] ss:$12 sps:$4 sm:$0xff]  }
  0x81   : > { %1842 = vmatprep.subr.bf16.mxu0 %v2877_v49  ;;  %v364_v49 = vld [vmem:[%s3141_s8 + $0x70] sm:$0xff] }
  0x83   : > { %2587 = vmatpush3.bf16.msra.mxu1 %v2879_v52  ;;  %v2947_v52 = vld [vmem:[%s3139_s7 + $0x4cc] ss:$12 sps:$4 sm:$0xff]  }
  0x84   : > { %1843 = vmatpush1.bf16.msra.mxu0 %v2875_v51  ;;  %2588 = vmatprep.subr.bf16.mxu1 %v2883_v54  ;;  %v3373_v51 = vcombine.high %v360_v48, %v364_v49  ;;  %v3377_v54 = vcombine.low %v360_v48, %v364_v49 }
  0x85   : > { %1844 = vmatprep.subr.bf16.mxu0 %v2882_v53  ;;  %v2948_v53 = vld [vmem:[%s3139_s7 + $0x410] ss:$12 sps:$4 sm:$0xff]  }
  0x87   : > { %2589 = vmatpush3.bf16.msra.mxu1 %v2884_v56  ;;  %v2949_v56 = vld [vmem:[%s3139_s7 + $0x350] ss:$12 sps:$4 sm:$0xff]  }
  0x88   : > { %1845 = vmatpush1.bf16.msra.mxu0 %v2880_v55  ;;  %2590 = vmatprep.subr.bf16.mxu1 %v2888_v58  ;;  %v2945_v55 = vld [vmem:[%s3139_s7 + $0x4c8] ss:$12 sps:$4 sm:$0xff]  }
  0x89   : > { %1846 = vmatprep.subr.bf16.mxu0 %v2887_v57  ;;  %v2952_v57 = vld [vmem:[%s3139_s7 + $0x4e4] ss:$12 sps:$4 sm:$0xff]   ;;  %v2953_v58 = vld [vmem:[%s3139_s7 + $0x428] ss:$12 sps:$4 sm:$0xff]  }
  0x8b   : > { %2591 = vmatpush3.bf16.msra.mxu1 %v2889_v60  ;;  %v2954_v60 = vld [vmem:[%s3139_s7 + $0x368] ss:$12 sps:$4 sm:$0xff]  }
  0x8c   : > { %1847 = vmatpush1.bf16.msra.mxu0 %v2885_v59  ;;  %2604 = vmatprep.subr.bf16.mxu1 %v2893_v2  ;;  %v2950_v59 = vld [vmem:[%s3139_s7 + $0x4e0] ss:$12 sps:$4 sm:$0xff]   ;;  %v2963_v2 = vld [vmem:[%s3139_s7 + $0x458] ss:$12 sps:$4 sm:$0xff]  }
  0x8d   : > { %1848 = vmatprep.subr.bf16.mxu0 %v2892_v63  ;;  %v2955_v63 = vld [vmem:[%s3139_s7 + $0x4f8] ss:$12 sps:$4 sm:$0xff]  }
  0x8e   : > { %1971 = vmatmul.mubr.bf16.vlgmr.msra.gmra.mrb[8].mxu1 %v3257_v26  ;;  %v2918_v26 = vld [vmem:[%s3139_s7 + $0x2c0] ss:$12 sps:$4 sm:$0xff]  }
  0x8f   : > { %2605 = vmatpush3.bf16.msra.mxu1 %v2894_v4  ;;  %1978 = vmatprep.mubr.bf16.mxu1 %v3267_v34  ;;  %v2928_v34 = vld [vmem:[%s3139_s7 + $0x2f0] ss:$12 sps:$4 sm:$0xff]   ;;  %v2964_v4 = vld [vmem:[%s3139_s7 + $0x398] ss:$12 sps:$4 sm:$0xff]  }
  0x90   : > { %1849 = vmatpush1.bf16.msra.mxu0 %v2890_v3  ;;  %2606 = vmatprep.subr.bf16.mxu1 %v2898_v6  ;;  %v2960_v3 = vld [vmem:[%s3139_s7 + $0x510] ss:$12 sps:$4 sm:$0xff]  }
  0x91   : > { %1850 = vmatprep.subr.bf16.mxu0 %v2897_v5  ;;  %v2967_v5 = vld [vmem:[%s3139_s7 + $0x52c] ss:$12 sps:$4 sm:$0xff]   ;;  %v2968_v6 = vld [vmem:[%s3139_s7 + $0x470] ss:$12 sps:$4 sm:$0xff]  }
  0x93   : > { %2607 = vmatpush3.bf16.msra.mxu1 %v2899_v11  ;;  %v2965_v11 = vld [vmem:[%s3139_s7 + $0x528] ss:$12 sps:$4 sm:$0xff]  }
  0x94   : > { %1851 = vmatpush1.bf16.msra.mxu0 %v2895_v7  ;;  %2608 = vmatprep.subr.bf16.mxu1 %v2903_v14  ;;  %v3400_v7 = vld [vmem:[%s3141_s8 + $0x18] sm:$0xff]  ;;  %v2973_v14 = vld [vmem:[%s3139_s7 + $0x548] ss:$12 sps:$4 sm:$0xff]  }
  0x95   : > { %1852 = vmatprep.subr.bf16.mxu0 %v2902_v12  ;;  %v2369_v10 = vcombine.high %v3400_v7, %v3403_v9  ;;  %v2969_v12 = vld [vmem:[%s3139_s7 + $0x3b0] ss:$12 sps:$4 sm:$0xff]  }
  0x96   : > { %1979 = vmatmul.mubr.bf16.gmra.mrb[12].mxu1 %v3276_v39  ;;  %v2930_v39 = vld [vmem:[%s3139_s7 + $0x480] ss:$12 sps:$4 sm:$0xff]  }
  0x97   : > { %2609 = vmatpush3.bf16.msra.mxu1 %v2904_v16  ;;  %2019 = vmatprep.mubr.bf16.mxu1 %v3236_v8  ;;  %v2922_v8 = vld [vmem:[%s3139_s7 + $0x454] ss:$12 sps:$4 sm:$0xff]  }
  0x98   : > { %1853 = vmatpush1.bf16.msra.mxu0 %v2900_v15  ;;  %2610 = vmatprep.subr.bf16.mxu1 %v2908_v18  ;;  %v2970_v15 = vld [vmem:[%s3139_s7 + $0x540] ss:$12 sps:$4 sm:$0xff]   ;;  %v2974_v16 = vld [vmem:[%s3139_s7 + $0x488] ss:$12 sps:$4 sm:$0xff]  }
  0x99   : > { %1854 = vmatprep.subr.bf16.mxu0 %v2907_v17  ;;  %v2977_v17 = vld [vmem:[%s3139_s7 + $0x55c] ss:$12 sps:$4 sm:$0xff]   ;;  %v2978_v18 = vld [vmem:[%s3139_s7 + $0x560] ss:$12 sps:$4 sm:$0xff]  }
  0x9b   : > { %2611 = vmatpush3.bf16.msra.mxu1 %v2909_v20  ;;  %v2979_v20 = vld [vmem:[%s3139_s7 + $0x4a0] ss:$12 sps:$4 sm:$0xff]  }
  0x9c   : > { %1855 = vmatpush1.bf16.msra.mxu0 %v2905_v19  ;;  %2612 = vmatprep.subr.bf16.mxu1 %v2913_v22  ;;  %v2975_v19 = vld [vmem:[%s3139_s7 + $0x558] ss:$12 sps:$4 sm:$0xff]  }
  0x9d   : > { %1856 = vmatprep.subr.bf16.mxu0 %v2912_v21  ;;  %v2982_v21 = vld [vmem:[%s3139_s7 + $0x574] ss:$12 sps:$4 sm:$0xff]   ;;  %v2983_v22 = vld [vmem:[%s3139_s7 + $0x578] ss:$12 sps:$4 sm:$0xff]  }
  0x9f   : > { %2613 = vmatpush3.bf16.msra.mxu1 %v2914_v24  ;;  %v2984_v24 = vld [vmem:[%s3139_s7 + $0x4b8] ss:$12 sps:$4 sm:$0xff]  }
  0xa0   : > { %1857 = vmatpush1.bf16.msra.mxu0 %v2910_v23  ;;  %2614 = vmatprep.subr.bf16.mxu1 %v2918_v26  ;;  %v2980_v23 = vld [vmem:[%s3139_s7 + $0x570] ss:$12 sps:$4 sm:$0xff]  }
  0xa1   : > { %1858 = vmatprep.subr.bf16.mxu0 %v2917_v25  ;;  %v2987_v25 = vld [vmem:[%s3139_s7 + $0x58c] ss:$12 sps:$4 sm:$0xff]   ;;  %v2988_v26 = vld [vmem:[%s3139_s7 + $0x590] ss:$12 sps:$4 sm:$0xff]  }
  0xa3   : > { %2615 = vmatpush3.bf16.msra.mxu1 %v2919_v29  ;;  %v2989_v29 = vld [vmem:[%s3139_s7 + $0x4d0] ss:$12 sps:$4 sm:$0xff]  }
  0xa4   : > { %1859 = vmatpush1.bf16.msra.mxu0 %v2915_v28  ;;  %2616 = vmatprep.subr.bf16.mxu1 %v2923_v30  ;;  %v2985_v28 = vld [vmem:[%s3139_s7 + $0x588] ss:$12 sps:$4 sm:$0xff]  }
  0xa5   : > { %1860 = vmatprep.subr.bf16.mxu0 %v2922_v8  ;;  %v2992_v8 = vld [vmem:[%s3139_s7 + $0x5a4] ss:$12 sps:$4 sm:$0xff]   ;;  %v2993_v30 = vld [vmem:[%s3139_s7 + $0x5a8] ss:$12 sps:$4 sm:$0xff]  }
  0xa7   : > { %2617 = vmatpush3.bf16.msra.mxu1 %v2924_v32  ;;  %v2994_v32 = vld [vmem:[%s3139_s7 + $0x4e8] ss:$12 sps:$4 sm:$0xff]  }
  0xa8   : > { %1861 = vmatpush1.bf16.msra.mxu0 %v2920_v31  ;;  %2618 = vmatprep.subr.bf16.mxu1 %v2928_v34  ;;  %v2990_v31 = vld [vmem:[%s3139_s7 + $0x5a0] ss:$12 sps:$4 sm:$0xff]  }
  0xa9   : > { %1862 = vmatprep.subr.bf16.mxu0 %v2927_v33  ;;  %v2997_v33 = vld [vmem:[%s3139_s7 + $0x5bc] ss:$12 sps:$4 sm:$0xff]   ;;  %v2998_v34 = vld [vmem:[%s3139_s7 + $0x5c0] ss:$12 sps:$4 sm:$0xff]  }
  0xab   : > { %2619 = vmatpush3.bf16.msra.mxu1 %v2929_v36  ;;  %v2999_v36 = vld [vmem:[%s3139_s7 + $0x500] ss:$12 sps:$4 sm:$0xff]  }
  0xac   : > { %1863 = vmatpush1.bf16.msra.mxu0 %v2925_v35  ;;  %2632 = vmatprep.subr.bf16.mxu1 %v2933_v38  ;;  %v2995_v35 = vld [vmem:[%s3139_s7 + $0x5b8] ss:$12 sps:$4 sm:$0xff]  }
  0xad   : > { %1885 = vmatprep.subr.bf16.mxu0 %v2932_v37  ;;  %v3002_v37 = vld [vmem:[%s3139_s7 + $0x5d4] ss:$12 sps:$4 sm:$0xff]   ;;  %v3003_v38 = vld [vmem:[%s3139_s7 + $0x5d8] ss:$12 sps:$4 sm:$0xff]  }
  0xae   : > { %2020 = vmatmul.mubr.bf16.vlgmr.msra.gmra.mrb[16].mxu1 %v3259_v27  ;;  %v2944_v27 = vld [vmem:[%s3139_s7 + $0x338] ss:$12 sps:$4 sm:$0xff]  }
  0xaf   : > { %1865 = vmatmul.mubr.bf16.vlgmr.msra.gmra.mrb[0].mxu0 %v3357_v40  ;;  %2633 = vmatpush3.bf16.msra.mxu1 %v2934_v41  ;;  %v3007_v41 = vld [vmem:[%s3139_s7 + $0x5ec] ss:$12 sps:$4 sm:$0xff]  }
  0xb0   : > { %1886 = vmatpush1.bf16.msra.mxu0 %v2930_v39  ;;  %2634 = vmatprep.subr.bf16.mxu1 %v2938_v43  ;;  %v3000_v39 = vld [vmem:[%s3139_s7 + $0x5d0] ss:$12 sps:$4 sm:$0xff]   ;;  %v3005_v43 = vld [vmem:[%s3139_s7 + $0x5e8] ss:$12 sps:$4 sm:$0xff]  }
  0xb1   : > { %1887 = vmatprep.subr.bf16.mxu0 %v2937_v42  ;;  %2027 = vmatprep.mubr.bf16.mxu1 %v3304_v0  ;;  %v2959_v0 = vld [vmem:[%s3139_s7 + $0x380] ss:$12 sps:$4 sm:$0xff]   ;;  %v3008_v42 = vld [vmem:[%s3139_s7 + $0x5f0] ss:$12 sps:$4 sm:$0xff]  }
  0xb2   : > { %1874 = vmatprep.mubr.bf16.mxu0 %v3373_v51 }
  0xb3   : > { %2635 = vmatpush3.bf16.msra.mxu1 %v2939_v45  ;;  %v361_v45 = vld [vmem:[%s3141_s8 + $0x58] sm:$0xff] }
  0xb4   : > { %1888 = vmatpush1.bf16.msra.mxu0 %v2935_v44  ;;  %2636 = vmatprep.subr.bf16.mxu1 %v2943_v47  ;;  %v3009_v44 = vld [vmem:[%s3139_s7 + $0x530] ss:$12 sps:$4 sm:$0xff]   ;;  %v2368_v47 = vcombine.low %v3400_v7, %v3403_v9 }
  0xb5   : > { %1889 = vmatprep.subr.bf16.mxu0 %v2942_v46  ;;  %v365_v46 = vld [vmem:[%s3141_s8 + $0x78] sm:$0xff] }
  0xb6   : > { %2028 = vmatmul.mubr.bf16.gmra.mrb[20].mxu1 %v3306_v1  ;;  %v2962_v1 = vld [vmem:[%s3139_s7 + $0x514] ss:$12 sps:$4 sm:$0xff]   ;;  %v2377_v48 = vcombine.high %v361_v45, %v365_v46  ;;  %v2376_v49 = vcombine.low %v361_v45, %v365_v46 }
  0xb7   : > { %1875 = vmatmul.mubr.bf16.gmra.mrb[4].mxu0 %v3377_v54  ;;  %2637 = vmatpush3.bf16.msra.mxu1 %v2944_v27 }
  0xb8   : > { %1890 = vmatpush1.bf16.msra.mxu0 %v2940_v50  ;;  %2638 = vmatprep.subr.bf16.mxu1 %v2948_v53 }
  0xb9   : > { %1891 = vmatprep.subr.bf16.mxu0 %v2947_v52  ;;  %2068 = vmatprep.mubr.bf16.mxu1 %v3324_v13  ;;  %v2972_v13 = vld [vmem:[%s3139_s7 + $0x544] ss:$12 sps:$4 sm:$0xff]  }
  0xba   : > { %1917 = vmatprep.mubr.bf16.mxu0 %v2369_v10 }
  0xbb   : > { %2639 = vmatpush3.bf16.msra.mxu1 %v2949_v56 }
  0xbc   : > { %1892 = vmatpush1.bf16.msra.mxu0 %v2945_v55  ;;  %2640 = vmatprep.subr.bf16.mxu1 %v2953_v58 }
  0xbd   : > { %1893 = vmatprep.subr.bf16.mxu0 %v2952_v57 }
  0xbf   : > { %2641 = vmatpush3.bf16.msra.mxu1 %v2954_v60 }
  0xc0   : > { %1894 = vmatpush1.bf16.msra.mxu0 %v2950_v59  ;;  %2642 = vmatprep.subr.bf16.mxu1 %v2958_v62 }
  0xc1   : > { %1895 = vmatprep.subr.bf16.mxu0 %v2957_v61 }
  0xc3   : > { %2643 = vmatpush3.bf16.msra.mxu1 %v2959_v0 }
  0xc4   : > { %1896 = vmatpush1.bf16.msra.mxu0 %v2955_v63  ;;  %2644 = vmatprep.subr.bf16.mxu1 %v2963_v2 }
  0xc5   : > { %1897 = vmatprep.subr.bf16.mxu0 %v2962_v1 }
  0xc7   : > { %2645 = vmatpush3.bf16.msra.mxu1 %v2964_v4 }
  0xc8   : > { %1898 = vmatpush1.bf16.msra.mxu0 %v2960_v3  ;;  %2646 = vmatprep.subr.bf16.mxu1 %v2968_v6 }
  0xc9   : > { %1899 = vmatprep.subr.bf16.mxu0 %v2967_v5 }
  0xcb   : > { %2647 = vmatpush3.bf16.msra.mxu1 %v2969_v12 }
  0xcc   : > { %1900 = vmatpush1.bf16.msra.mxu0 %v2965_v11  ;;  %2660 = vmatprep.subr.bf16.mxu1 %v2973_v14 }
  0xcd   : > { %1901 = vmatprep.subr.bf16.mxu0 %v2972_v13 }
  0xce   : > { %2069 = vmatmul.mubr.bf16.vlgmr.msra.gmra.mrb[24].mxu1 %v3357_v40  ;;  %v3004_v40 = vld [vmem:[%s3139_s7 + $0x518] ss:$12 sps:$4 sm:$0xff]  }
  0xcf   : > { %2661 = vmatpush3.bf16.msra.mxu1 %v2974_v16  ;;  %2076 = vmatprep.mubr.bf16.mxu1 %v3373_v51 }
  0xd0   : > { %1902 = vmatpush1.bf16.msra.mxu0 %v2970_v15  ;;  %2662 = vmatprep.subr.bf16.mxu1 %v2978_v18 }
  0xd1   : > { %1903 = vmatprep.subr.bf16.mxu0 %v2977_v17 }
  0xd3   : > { %2663 = vmatpush3.bf16.msra.mxu1 %v2979_v20 }
  0xd4   : > { %1904 = vmatpush1.bf16.msra.mxu0 %v2975_v19  ;;  %2664 = vmatprep.subr.bf16.mxu1 %v2983_v22 }
  0xd5   : > { %1905 = vmatprep.subr.bf16.mxu0 %v2982_v21 }
  0xd6   : > { %2077 = vmatmul.mubr.bf16.gmra.mrb[28].mxu1 %v3377_v54 }
  0xd7   : > { %2665 = vmatpush3.bf16.msra.mxu1 %v2984_v24  ;;  %2117 = vmatprep.mubr.bf16.mxu1 %v2369_v10 }
  0xd8   : > { %1906 = vmatpush1.bf16.msra.mxu0 %v2980_v23  ;;  %2666 = vmatprep.subr.bf16.mxu1 %v2988_v26 }
  0xd9   : > { %1907 = vmatprep.subr.bf16.mxu0 %v2987_v25 }
  0xdb   : > { %2667 = vmatpush3.bf16.msra.mxu1 %v2989_v29 }
  0xdc   : > { %1908 = vmatpush1.bf16.msra.mxu0 %v2985_v28  ;;  %2668 = vmatprep.subr.bf16.mxu1 %v2993_v30 }
  0xdd   : > { %1909 = vmatprep.subr.bf16.mxu0 %v2992_v8 }
  0xdf   : > { %2669 = vmatpush3.bf16.msra.mxu1 %v2994_v32 }
  0xe0   : > { %1910 = vmatpush1.bf16.msra.mxu0 %v2990_v31  ;;  %2670 = vmatprep.subr.bf16.mxu1 %v2998_v34 }
  0xe1   : > { %1911 = vmatprep.subr.bf16.mxu0 %v2997_v33 }
  0xe3   : > { %2671 = vmatpush3.bf16.msra.mxu1 %v2999_v36 }
  0xe4   : > { %1912 = vmatpush1.bf16.msra.mxu0 %v2995_v35  ;;  %2672 = vmatprep.subr.bf16.mxu1 %v3003_v38  ;;  %v338_v38 = vld [vmem:[%s3635_s3] sm:$0xff] }
  0xe5   : > { %1913 = vmatprep.subr.bf16.mxu0 %v3002_v37 }
  0xe7   : > { %2673 = vmatpush3.bf16.msra.mxu1 %v3004_v40 }
  0xe8   : > { %1914 = vmatpush1.bf16.msra.mxu0 %v3000_v39  ;;  %2674 = vmatprep.subr.bf16.mxu1 %v3008_v42  ;;  %v339_v42 = vld [vmem:[%s3635_s3 + $0x8] sm:$0xff] }
  0xe9   : > { %1915 = vmatprep.subr.bf16.mxu0 %v3007_v41 }
  0xeb   : > { %2675 = vmatpush3.bf16.msra.mxu1 %v3009_v44 }
  0xec   : > { %1916 = vmatpush1.bf16.msra.mxu0 %v3005_v43 }
  0xee   : > { %2118 = vmatmul.mubr.bf16.vlgmr.msra.gmra.mrb[32].mxu1 %v2368_v47 }
  0xef   : > { %1918 = vmatmul.mubr.bf16.vlgmr.msra.gmra.mrb[0].mxu0 %v2368_v47  ;;  %2125 = vmatprep.mubr.bf16.mxu1 %v2377_v48  ;;  %v341_v47 = vld [vmem:[%s3635_s3 + $0x18] sm:$0xff] }
  0xf0   : > { %1927 = vmatprep.mubr.bf16.mxu0 %v2377_v48 }
  0xf6   : > { %2126 = vmatmul.mubr.bf16.gmra.mrb[36].mxu1 %v2376_v49 }
  0xf7   : > { %1928 = vmatmul.mubr.bf16.gmra.mrb[4].mxu0 %v2376_v49 }
 0x141   : > { %v1760_v50 = vpop.f32.mrb[0].mxu1 }
 0x142   : > { %v1762_v27 = vpop.f32.mrb[1].mxu1 }
 0x143   : > { %v3448_v51 = vpop.f32.mrb[2].mxu1 }
 0x144   : > { %v3450_v52 = vpop.f32.mrb[3].mxu1 }
 0x149   : > { %v3452_v53 = vpop.f32.mrb[4].mxu1 }
 0x14a   : > { %v3454_v54 = vpop.f32.mrb[5].mxu1 }
 0x14b   : > { %v3456_v55 = vpop.f32.mrb[6].mxu1 }
 0x14c   : > { %v3458_v56 = vpop.f32.mrb[7].mxu1 }
 0x161   : > { %v2592_v57 = vpop.f32.mrb[8].mxu1 }
 0x162   : > { %v2593_v58 = vpop.f32.mrb[9].mxu1 }
 0x163   : > { %v2594_v59 = vadd.f32 %v2593_v58, %v2592_v57  ;;  %v2595_v60 = vpop.f32.mrb[10].mxu1  ;;  %v340_v58 = vld [vmem:[%s3635_s3 + $0x10] sm:$0xff] }
 0x164   : > { %v2596_v61 = vpop.f32.mrb[11].mxu1 }
 0x165   : > { %v2597_v62 = vadd.f32 %v2596_v61, %v2595_v60 }
 0x169   : > { %v2598_v63 = vpop.f32.mrb[12].mxu1 }
 0x16a   : > { %v2599_v0 = vpop.f32.mrb[13].mxu1 }
 0x16b   : > { %v2600_v1 = vadd.f32 %v2599_v0, %v2598_v63  ;;  %v2601_v2 = vpop.f32.mrb[14].mxu1 }
 0x16c   : > { %v2602_v3 = vpop.f32.mrb[15].mxu1 }
 0x16d   : > { %v2603_v4 = vadd.f32 %v2602_v3, %v2601_v2 }
 0x181   : > { %v2620_v5 = vpop.f32.mrb[16].mxu1 }
 0x182   : > { %v2621_v6 = vpop.f32.mrb[17].mxu1 }
 0x183   : > { %v2622_v7 = vadd.f32 %v2621_v6, %v2620_v5  ;;  %v2623_v9 = vpop.f32.mrb[18].mxu1  ;;  %v344_v5 = vld [vmem:[%s3635_s3 + $0x30] sm:$0xff] }
 0x184   : > { %v2624_v10 = vpop.f32.mrb[19].mxu1 }
 0x185   : > { %v2022_v11 = vadd.f32 %v2622_v7, %v2594_v59  ;;  %v2625_v12 = vadd.f32 %v2624_v10, %v2623_v9  ;;  %v342_v59 = vld [vmem:[%s3635_s3 + $0x20] sm:$0xff]  ;;  %v345_v10 = vld [vmem:[%s3635_s3 + $0x38] sm:$0xff] }
 0x187   : > { %v2025_v13 = vadd.f32 %v2625_v12, %v2597_v62 }
 0x189   : > { %v2626_v14 = vpop.f32.mrb[20].mxu1 }
 0x18a   : > { %v2627_v15 = vpop.f32.mrb[21].mxu1 }
 0x18b   : > { %v2628_v16 = vadd.f32 %v2627_v15, %v2626_v14  ;;  %v2629_v17 = vpop.f32.mrb[22].mxu1  ;;  %v347_v15 = vld [vmem:[%s3635_s3 + $0x48] sm:$0xff] }
 0x18c   : > { %v2630_v18 = vpop.f32.mrb[23].mxu1 }
 0x18d   : > { %v2030_v19 = vadd.f32 %v2628_v16, %v2600_v1  ;;  %v2631_v20 = vadd.f32 %v2630_v18, %v2629_v17  ;;  %v346_v18 = vld [vmem:[%s3635_s3 + $0x40] sm:$0xff] }
 0x18f   : > { %v2033_v21 = vadd.f32 %v2631_v20, %v2603_v4  ;;  %v348_v20 = vld [vmem:[%s3635_s3 + $0x50] sm:$0xff] }
 0x1a1   : > { %v2648_v22 = vpop.f32.mrb[24].mxu1 }
 0x1a2   : > { %v2649_v23 = vpop.f32.mrb[25].mxu1 }
 0x1a3   : > { %v2650_v24 = vadd.f32 %v2649_v23, %v2648_v22  ;;  %v2651_v25 = vpop.f32.mrb[26].mxu1 }
 0x1a4   : > { %v2652_v26 = vpop.f32.mrb[27].mxu1 }
 0x1a5   : > { %v2071_v28 = vadd.f32 %v2650_v24, %v2022_v11  ;;  %v2653_v29 = vadd.f32 %v2652_v26, %v2651_v25 }
 0x1a7   : > { %v2074_v8 = vadd.f32 %v2653_v29, %v2025_v13 }
 0x1a9   : > { %v2654_v30 = vpop.f32.mrb[28].mxu1 }
 0x1aa   : > { %v2655_v31 = vpop.f32.mrb[29].mxu1 }
 0x1ab   : > { %v2656_v32 = vadd.f32 %v2655_v31, %v2654_v30  ;;  %v2657_v33 = vpop.f32.mrb[30].mxu1  ;;  %v2176_v30 = vlaneseq (!%p2570_p11) }
 0x1ac   : > { %v2658_v34 = vpop.f32.mrb[31].mxu1 }
 0x1ad   : > { %v2079_v35 = vadd.f32 %v2656_v32, %v2030_v19  ;;  %v2659_v36 = vadd.f32 %v2658_v34, %v2657_v33  ;;  %v2177_v31 = vshrl.u32 (!%p2570_p11), %v2176_v30, 7  ;;  %v2174_v32 = vld [vmem:[%s3634_s2] sm:$0x7] (!%p2570_p11) }
 0x1af   : > { %v3460_v37 = vadd.f32 %v2659_v36, %v2033_v21  ;;  %v2178_v34 = vsub.s32 (!%p2570_p11), 0, %v2177_v31  ;;  %v2182_v36 = vsub.s32 (!%p2570_p11), 1, %v2177_v31 }
 0x1c1   : > { %v2676_v40 = vpop.f32.mrb[32].mxu1 }
 0x1c2   : > { %v1919_v39 = vpop.f32.mrb[0].mxu0  ;;  %v2677_v44 = vpop.f32.mrb[33].mxu1 }
 0x1c3   : > { %v2688_v41 = vadd.f32 %v1919_v39, %v1760_v50  ;;  %v1921_v43 = vpop.f32.mrb[1].mxu0  ;;  %v2678_v46 = vadd.f32 %v2677_v44, %v2676_v40  ;;  %v2679_v49 = vpop.f32.mrb[34].mxu1 }
 0x1c4   : > { %v2689_v45 = vadd.f32 %v1921_v43, %v1762_v27  ;;  %v1923_v48 = vpop.f32.mrb[2].mxu0  ;;  %v2680_v27 = vpop.f32.mrb[35].mxu1 }
 0x1c5   : > { %v2134_v57 = vadd.f32 %v2688_v41, %v338_v38  ;;  %v2690_v50 = vadd.f32 %v1923_v48, %v3448_v51  ;;  %v1925_v60 = vpop.f32.mrb[3].mxu0  ;;  %v2120_v62 = vadd.f32 %v2678_v46, %v2071_v28  ;;  %v2681_v0 = vadd.f32 %v2680_v27, %v2679_v49  ;;  %v343_v51 = vld [vmem:[%s3635_s3 + $0x28] sm:$0xff] }
 0x1c6   : > { %v2135_v61 = vadd.f32 %v2689_v45, %v339_v42  ;;  %v2691_v63 = vadd.f32 %v1925_v60, %v3450_v52  ;;  %v2179_v41 = vrot.slane (!%p2570_p11), %v2174_v32, %v2178_v34  ;;  %v2183_v42 = vrot.slane (!%p2570_p11), %v2174_v32, %v2182_v36 }
 0x1c7   : > { %2146 = vst [vmem:[%s3635_s3] sm:$0xff] %v2134_v57  ;;  %v2137_v1 = vadd.f32 %v2690_v50, %v341_v47  ;;  %v2136_v2 = vadd.f32 %v2120_v62, %v340_v58  ;;  %v2123_v4 = vadd.f32 %v2681_v0, %v2074_v8 }
 0x1c8   : > { %2147 = vst [vmem:[%s3635_s3 + $0x8] sm:$0xff] %v2135_v61  ;;  %v2138_v3 = vadd.f32 %v2691_v63, %v342_v59 }
 0x1c9   : > { %2149 = vst [vmem:[%s3635_s3 + $0x18] sm:$0xff] %v2137_v1  ;;  %2148 = vst [vmem:[%s3635_s3 + $0x10] sm:$0xff] %v2136_v2  ;;  %v2139_v52 = vadd.f32 %v2123_v4, %v343_v51  ;;  %v2682_v7 = vpop.f32.mrb[36].mxu1 }
 0x1ca   : > { %2150 = vst [vmem:[%s3635_s3 + $0x20] sm:$0xff] %v2138_v3  ;;  %v1929_v6 = vpop.f32.mrb[4].mxu0  ;;  %v2683_v12 = vpop.f32.mrb[37].mxu1 }
 0x1cb   : > { %v2692_v9 = vadd.f32 %v1929_v6, %v3452_v53  ;;  %v1931_v11 = vpop.f32.mrb[5].mxu0  ;;  %2151 = vst [vmem:[%s3635_s3 + $0x28] sm:$0xff] %v2139_v52  ;;  %v2684_v14 = vadd.f32 %v2683_v12, %v2682_v7  ;;  %v2685_v17 = vpop.f32.mrb[38].mxu1 }
 0x1cc   : > { %v2693_v13 = vadd.f32 %v1931_v11, %v3454_v54  ;;  %v1933_v16 = vpop.f32.mrb[6].mxu0  ;;  %v2686_v54 = vpop.f32.mrb[39].mxu1 }
 0x1cd   : > { %v2140_v53 = vadd.f32 %v2692_v9, %v344_v5  ;;  %v2694_v19 = vadd.f32 %v1933_v16, %v3456_v55  ;;  %v1935_v21 = vpop.f32.mrb[7].mxu0  ;;  %v2128_v23 = vadd.f32 %v2684_v14, %v2079_v35  ;;  %v2687_v25 = vadd.f32 %v2686_v54, %v2685_v17  ;;  %v349_v55 = vld [vmem:[%s3635_s3 + $0x58] sm:$0xff]  ;;  %2161 = sbr.rel (%p2570_p11) target bundleno = 480 (0x1e0), region = 63 }
 0x1ce   : > { %v2141_v22 = vadd.f32 %v2693_v13, %v345_v10  ;;  %v2695_v24 = vadd.f32 %v1935_v21, %v3458_v56  ;;  %v2162_v33 = vld [vmem:[%s3635_s3] sm:$0xff] (!%p2570_p11) }
 0x1cf   : > { %2152 = vst [vmem:[%s3635_s3 + $0x30] sm:$0xff] %v2140_v53  ;;  %v2143_v26 = vadd.f32 %v2694_v19, %v347_v15  ;;  %v2142_v28 = vadd.f32 %v2128_v23, %v346_v18  ;;  %v2131_v8 = vadd.f32 %v2687_v25, %v3460_v37  ;;  %v2163_v35 = vld [vmem:[%s3635_s3 + $0x8] sm:$0xff] (!%p2570_p11)  ;;  %v2186_v37 = vsub.s32 (!%p2570_p11), 2, %v2177_v31 }
 0x1d0   : > { %2153 = vst [vmem:[%s3635_s3 + $0x38] sm:$0xff] %v2141_v22  ;;  %v2144_v29 = vadd.f32 %v2695_v24, %v348_v20  ;;  %v2164_v38 = vld [vmem:[%s3635_s3 + $0x10] sm:$0xff] (!%p2570_p11)  ;;  %v2165_v39 = vld [vmem:[%s3635_s3 + $0x18] sm:$0xff] (!%p2570_p11)  ;;  %v2191_v47 = vadd.f32 (!%p2570_p11), %v2179_v41, %v2162_v33  ;;  %v2192_v48 = vadd.f32 (!%p2570_p11), %v2183_v42, %v2163_v35 }
 0x1d1   : > { %2155 = vst [vmem:[%s3635_s3 + $0x48] sm:$0xff] %v2143_v26  ;;  %2154 = vst [vmem:[%s3635_s3 + $0x40] sm:$0xff] %v2142_v28  ;;  %v2145_v56 = vadd.f32 %v2131_v8, %v349_v55  ;;  %v2166_v40 = vld [vmem:[%s3635_s3 + $0x20] sm:$0xff] (!%p2570_p11)  ;;  %v2187_v43 = vrot.slane (!%p2570_p11), %v2174_v32, %v2186_v37  ;;  %v2194_v57 = vadd.f32 (!%p2570_p11), %v2179_v41, %v2165_v39 }
 0x1d2   : > { %2156 = vst [vmem:[%s3635_s3 + $0x50] sm:$0xff] %v2144_v29  ;;  %v2167_v44 = vld [vmem:[%s3635_s3 + $0x28] sm:$0xff] (!%p2570_p11)  ;;  %v2195_v50 = vadd.f32 (!%p2570_p11), %v2183_v42, %v2166_v40  ;;  %v2203_v0 = vmax.f32 (!%p2570_p11), %v2191_v47, 0.0  ;;  %v2204_v1 = vmax.f32 (!%p2570_p11), %v2192_v48, 0.0 }
 0x1d3   : > { %2157 = vst [vmem:[%s3635_s3 + $0x58] sm:$0xff] %v2145_v56  ;;  %v2193_v49 = vadd.f32 (!%p2570_p11), %v2187_v43, %v2164_v38  ;;  %v2196_v59 = vadd.f32 (!%p2570_p11), %v2187_v43, %v2167_v44  ;;  %v2206_v2 = vmax.f32 (!%p2570_p11), %v2194_v57, 0.0 }
 0x1d4   : > { %v2207_v3 = vmax.f32 %v2195_v50, 0.0  ;;  %2215 = vst [vmem:[%s3635_s3] sm:$0xff] %v2203_v0  ;;  %2216 = vst [vmem:[%s3635_s3 + $0x8] sm:$0xff] %v2204_v1 }
 0x1d5   : > { %v2205_v51 = vmax.f32 %v2193_v49, 0.0  ;;  %v2208_v4 = vmax.f32 %v2196_v59, 0.0  ;;  %2218 = vst [vmem:[%s3635_s3 + $0x18] sm:$0xff] %v2206_v2 }
 0x1d6   : > { %v2168_v45 = vld [vmem:[%s3635_s3 + $0x30] sm:$0xff]  ;;  %2219 = vst [vmem:[%s3635_s3 + $0x20] sm:$0xff] %v2207_v3 }
 0x1d7   : > { %v2169_v46 = vld [vmem:[%s3635_s3 + $0x38] sm:$0xff]  ;;  %v2197_v60 = vadd.f32 %v2179_v41, %v2168_v45  ;;  %2217 = vst [vmem:[%s3635_s3 + $0x10] sm:$0xff] %v2205_v51  ;;  %2220 = vst [vmem:[%s3635_s3 + $0x28] sm:$0xff] %v2208_v4 }
 0x1d8   : > { %v2170_v58 = vld [vmem:[%s3635_s3 + $0x40] sm:$0xff]  ;;  %v2198_v27 = vadd.f32 %v2183_v42, %v2169_v46  ;;  %v2171_v61 = vld [vmem:[%s3635_s3 + $0x48] sm:$0xff] }
 0x1d9   : > { %v2172_v62 = vld [vmem:[%s3635_s3 + $0x50] sm:$0xff]  ;;  %v2209_v52 = vmax.f32 %v2197_v60, 0.0  ;;  %v2199_v6 = vadd.f32 %v2187_v43, %v2170_v58  ;;  %v2200_v7 = vadd.f32 %v2179_v41, %v2171_v61 }
 0x1da   : > { %v2173_v63 = vld [vmem:[%s3635_s3 + $0x58] sm:$0xff]  ;;  %v2210_v5 = vmax.f32 %v2198_v27, 0.0  ;;  %v2201_v9 = vadd.f32 %v2183_v42, %v2172_v62 }
 0x1db   : > { %v2202_v10 = vadd.f32 %v2187_v43, %v2173_v63  ;;  %2221 = vst [vmem:[%s3635_s3 + $0x30] sm:$0xff] %v2209_v52  ;;  %v2211_v11 = vmax.f32 %v2199_v6, 0.0  ;;  %v2212_v12 = vmax.f32 %v2200_v7, 0.0 }
 0x1dc   : > { %2222 = vst [vmem:[%s3635_s3 + $0x38] sm:$0xff] %v2210_v5  ;;  %v2213_v13 = vmax.f32 %v2201_v9, 0.0 }
 0x1dd   : > { %v2214_v14 = vmax.f32 %v2202_v10, 0.0  ;;  %2223 = vst [vmem:[%s3635_s3 + $0x40] sm:$0xff] %v2211_v11  ;;  %2224 = vst [vmem:[%s3635_s3 + $0x48] sm:$0xff] %v2212_v12 }
 0x1de   : > { %2225 = vst [vmem:[%s3635_s3 + $0x50] sm:$0xff] %v2213_v13 }
 0x1df   : > { %2226 = vst [vmem:[%s3635_s3 + $0x58] sm:$0xff] %v2214_v14 }
 0x1e0 PF: > { %s13_s16 = sadd.s32 1, %s3048_s16   ;;  %s3636_s12 = smov %s3036_s13 }
 0x1e1   : > { %p10_p12 = scmp.ge.s32.totalorder %s13_s16, 4   ;;  %s3637_s13 = smov %s3106_s20 }
 0x1e2   : > { %s3638_s14 = smov %s3044_s15  ;;  %s3639_s15 = smov %s3641_s17 }
 0x1e3   :  { %12 = sbr.rel (!%p10_p12) target bundleno = 3 (0x3), region = 104 }

// kernel: net_conv_forward.17
= control target key start
LH: loop header
LB: loop body
LE: loop exit
PB: predicated region body
PF: predicated region fallthrough
CT: control target
= control target key end

     0   :  { %s2086_s12 = smov 0   ;;  %s2088_s13 = smov 0   ;;  %s2458_s0 = inlined_call_operand.vmem [shape: bf16[32,4096], index: 0, kind: input, shape index: {}]   ;;  %s2459_s1 = inlined_call_operand.vmem [shape: bf16[4096,256], index: 1, kind: input, shape index: {}]   ;;  %s2460_s2 = inlined_call_operand.vmem [shape: f32[1,256], index: 2, kind: input, shape index: {}]   ;;  %s2461_s3 = inlined_call_operand.vmem [shape: f32[32,256], index: 3, kind: output, shape index: {}]  }
   0x1   :  { %s2090_s14 = smov 0   ;;  %s2092_s15 = smov 0  }
   0x2   :  { %s2094_s16 = smov 0  }
   0x3 LB: > { %s25_s17 = sadd.s32 1, %s2059_s15  ;;  %p48_p1 = scmp.ne.s32.totalorder %s2051_s13, %s2047_s12  ;;  %s2063_s16 = sphi %s2094_s16, %s13_s16   ;;  %s2059_s15 = sphi %s2092_s15, %s2465_s15   ;;  %s2055_s14 = sphi %s2090_s14, %s2464_s14   ;;  %s2051_s13 = sphi %s2088_s13, %s2463_s13   ;;  %s2047_s12 = sphi %s2086_s12, %s2462_s12  }
   0x4   : > { %p26_p0 = scmp.ge.s32.totalorder %s25_s17, 4  ;;  %p49_p2 = scmp.eq.s32.totalorder %s2063_s16, 0 }
   0x5   : > { %s41_s19 = sadd.s32 1, %s2051_s13  ;;  %p1607_p5 = scmp.ge.s32.totalorder %s2063_s16, 4 }
   0x6   : > { %s2467_s17 = smov (%p26_p0, %s25_s17), 0  ;;  %p50_p3 = por %p49_p2, %p48_p1 }
   0x7   : > { %s37_s18 = ssub.s32 %s2059_s15, %s2467_s17  ;;  %164 = sbr.rel (%p1607_p5) target bundleno = 26 (0x1a), region = 20 }
   0x8   : > { %p39_p4 = scmp.eq.s32.totalorder %s37_s18, 0 }
   0xa   : > { %s2121_s20 = scalar_select %p39_p4, %s2051_s13, %s41_s19  }
   0xe   : > { %167 = sbr.rel (!%p50_p3) target bundleno = 26 (0x1a), region = 24  ;;  %s169_s21 = sand.u32 (%p50_p3), 1, %s2051_s13  }
   0xf   : > { %s1766_s22 = sshll.u32 (%p50_p3), %s2059_s15, 5  ;;  %s1608_s23 = sshll.u32 (%p50_p3), %s169_s21, 7 }
  0x10   : > { %s2129_s26 = scalar_lea.vmem (%p50_p3), %s2458_s0, %s1766_s22  ;;  %s171_s27 = scalar_lea.vmem (%p50_p3), [#allocation2], %s1608_s23 }
  0x11   : > { %v190_v0 = vld [vmem:[%s2129_s26] sm:$0xff] (%p50_p3)  ;;  %v192_v1 = vld [vmem:[%s2129_s26 + $0x8] sm:$0xff] (%p50_p3)  ;;  %v194_v2 = vld [vmem:[%s2129_s26 + $0x10] sm:$0xff] (%p50_p3) }
  0x12   : > { %191 = vst [vmem:[%s171_s27] sm:$0xff] (%p50_p3), %v190_v0  ;;  %193 = vst [vmem:[%s171_s27 + $0x8] sm:$0xff] (%p50_p3), %v192_v1  ;;  %v196_v3 = vld [vmem:[%s2129_s26 + $0x18] sm:$0xff] (%p50_p3)  ;;  %v198_v4 = vld [vmem:[%s2129_s26 + $0x80] sm:$0xff] (%p50_p3) }
  0x13   : > { %195 = vst [vmem:[%s171_s27 + $0x10] sm:$0xff] (%p50_p3), %v194_v2  ;;  %v200_v5 = vld [vmem:[%s2129_s26 + $0x88] sm:$0xff] (%p50_p3)  ;;  %197 = vst [vmem:[%s171_s27 + $0x18] sm:$0xff] (%p50_p3), %v196_v3  ;;  %v202_v6 = vld [vmem:[%s2129_s26 + $0x90] sm:$0xff] (%p50_p3) }
  0x14   : > { %199 = vst [vmem:[%s171_s27 + $0x20] sm:$0xff] (%p50_p3), %v198_v4  ;;  %201 = vst [vmem:[%s171_s27 + $0x28] sm:$0xff] (%p50_p3), %v200_v5  ;;  %v204_v7 = vld [vmem:[%s2129_s26 + $0x98] sm:$0xff] (%p50_p3)  ;;  %v206_v8 = vld [vmem:[%s2129_s26 + $0x100] sm:$0xff] (%p50_p3) }
  0x15   : > { %203 = vst [vmem:[%s171_s27 + $0x30] sm:$0xff] %v202_v6  ;;  %205 = vst [vmem:[%s171_s27 + $0x38] sm:$0xff] %v204_v7  ;;  %v208_v9 = vld [vmem:[%s2129_s26 + $0x108] sm:$0xff]  ;;  %v210_v10 = vld [vmem:[%s2129_s26 + $0x110] sm:$0xff] }
  0x16   : > { %207 = vst [vmem:[%s171_s27 + $0x40] sm:$0xff] %v206_v8  ;;  %v212_v11 = vld [vmem:[%s2129_s26 + $0x118] sm:$0xff]  ;;  %209 = vst [vmem:[%s171_s27 + $0x48] sm:$0xff] %v208_v9  ;;  %v214_v12 = vld [vmem:[%s2129_s26 + $0x180] sm:$0xff] }
  0x17   : > { %211 = vst [vmem:[%s171_s27 + $0x50] sm:$0xff] %v210_v10  ;;  %213 = vst [vmem:[%s171_s27 + $0x58] sm:$0xff] %v212_v11  ;;  %v216_v13 = vld [vmem:[%s2129_s26 + $0x188] sm:$0xff]  ;;  %v218_v14 = vld [vmem:[%s2129_s26 + $0x190] sm:$0xff] }
  0x18   : > { %215 = vst [vmem:[%s171_s27 + $0x60] sm:$0xff] %v214_v12  ;;  %217 = vst [vmem:[%s171_s27 + $0x68] sm:$0xff] %v216_v13  ;;  %v220_v15 = vld [vmem:[%s2129_s26 + $0x198] sm:$0xff] }
  0x19   : > { %219 = vst [vmem:[%s171_s27 + $0x70] sm:$0xff] %v218_v14  ;;  %221 = vst [vmem:[%s171_s27 + $0x78] sm:$0xff] %v220_v15 }
  0x1a PF: > { %p1611_p6 = scmp.ge.s32.totalorder %s2063_s16, 1  ;;  %p241_p7 = scmp.lt.s32.totalorder %s2063_s16, 5 }
  0x1c   : > { %p242_p8 = pnand %p1611_p6, %p241_p7 }
  0x1d   : > { %s248_s28 = sand.u32 (!%p242_p8), 1, %s2047_s12   ;;  %s1613_s29 = sshll.u32 (!%p242_p8), %s2055_s14, 7 }
  0x1e   : > { %245 = sbr.rel (%p242_p8) target bundleno = 414 (0x19e), region = 51  ;;  %s1612_s30 = sshll.u32 (!%p242_p8), %s248_s28, 7 }
  0x1f   : > { %p294_p9 = scmp.lt.s32.totalorder (!%p242_p8), %s1613_s29, 511  ;;  %s2156_s8 = scalar_lea.vmem (!%p242_p8), [#allocation2], %s1612_s30 }
  0x20   : > { %p1616_p10 = scmp.ne.s32.totalorder (!%p242_p8), %s2055_s14, 0 }
  0x25   : > { %s2469_s29 = smov (!%p294_p9, %s1613_s29), 511  ;;  %324 = sbr.rel (%p1616_p10) target bundleno = 44 (0x2c), region = 59 }
  0x26   : > { %s1767_s4 = sshll.u32 %s2469_s29, 3  ;;  %v2065_v16 = vmov (!%p1616_p10), 0.0  }
  0x27   : > { %s2154_s7 = scalar_lea.vmem %s2459_s1, %s1767_s4  ;;  %325 = vst [vmem:[%s2461_s3] sm:$0xff] (!%p1616_p10), %v2065_v16  ;;  %326 = vst [vmem:[%s2461_s3 + $0x8] sm:$0xff] (!%p1616_p10), %v2065_v16 }
  0x28   : > { %327 = vst [vmem:[%s2461_s3 + $0x10] sm:$0xff] (!%p1616_p10), %v2065_v16  ;;  %328 = vst [vmem:[%s2461_s3 + $0x18] sm:$0xff] (!%p1616_p10), %v2065_v16 }
  0x29   : > { %329 = vst [vmem:[%s2461_s3 + $0x20] sm:$0xff] (!%p1616_p10), %v2065_v16  ;;  %330 = vst [vmem:[%s2461_s3 + $0x28] sm:$0xff] (!%p1616_p10), %v2065_v16 }
  0x2a   : > { %331 = vst [vmem:[%s2461_s3 + $0x30] sm:$0xff] (!%p1616_p10), %v2065_v16  ;;  %332 = vst [vmem:[%s2461_s3 + $0x38] sm:$0xff] (!%p1616_p10), %v2065_v16 }
  0x2c PF: > { %v1833_v17 = vld [vmem:[%s2154_s7 + $0x4] ss:$8 sps:$4 sm:$0xff]   ;;  %v1837_v19 = vld [vmem:[%s2154_s7] ss:$8 sps:$4 sm:$0xff]   ;;  %v1839_v21 = vld [vmem:[%s2154_s7 + $0x14] ss:$8 sps:$4 sm:$0xff]  }
  0x2d   : > { %v1835_v18 = vld [vmem:[%s2154_s7 + $0x204] ss:$8 sps:$4 sm:$0xff]   ;;  %1205 = vmatprep.subr.bf16.mxu1 %v1833_v17  ;;  %v1838_v20 = vld [vmem:[%s2154_s7 + $0x200] ss:$8 sps:$4 sm:$0xff]   ;;  %v1841_v22 = vld [vmem:[%s2154_s7 + $0x214] ss:$8 sps:$4 sm:$0xff]  }
  0x2e   : > { %1311 = vmatprep.subr.bf16.mxu0 %v1835_v18  ;;  %1206 = vmatpush1.bf16.msra.mxu1 %v1837_v19  ;;  %v1843_v23 = vld [vmem:[%s2154_s7 + $0x10] ss:$8 sps:$4 sm:$0xff]   ;;  %v1845_v25 = vld [vmem:[%s2154_s7 + $0x24] ss:$8 sps:$4 sm:$0xff]   ;;  %v1849_v27 = vld [vmem:[%s2154_s7 + $0x20] ss:$8 sps:$4 sm:$0xff]  }
  0x2f   : > { %1312 = vmatpush1.bf16.msra.mxu0 %v1838_v20  ;;  %1207 = vmatprep.subr.bf16.mxu1 %v1839_v21  ;;  %v1844_v24 = vld [vmem:[%s2154_s7 + $0x210] ss:$8 sps:$4 sm:$0xff]   ;;  %v1847_v26 = vld [vmem:[%s2154_s7 + $0x224] ss:$8 sps:$4 sm:$0xff]   ;;  %v1850_v28 = vld [vmem:[%s2154_s7 + $0x220] ss:$8 sps:$4 sm:$0xff]  }
  0x30   : > { %1313 = vmatprep.subr.bf16.mxu0 %v1841_v22  ;;  %v1851_v29 = vld [vmem:[%s2154_s7 + $0x34] ss:$8 sps:$4 sm:$0xff]   ;;  %v1855_v31 = vld [vmem:[%s2154_s7 + $0x30] ss:$8 sps:$4 sm:$0xff]   ;;  %v1857_v33 = vld [vmem:[%s2154_s7 + $0x44] ss:$8 sps:$4 sm:$0xff]  }
  0x31   : > { %v1853_v30 = vld [vmem:[%s2154_s7 + $0x234] ss:$8 sps:$4 sm:$0xff]   ;;  %v1856_v32 = vld [vmem:[%s2154_s7 + $0x230] ss:$8 sps:$4 sm:$0xff]   ;;  %v1859_v34 = vld [vmem:[%s2154_s7 + $0x244] ss:$8 sps:$4 sm:$0xff]  }
  0x32   : > { %1208 = vmatpush1.bf16.msra.mxu1 %v1843_v23  ;;  %v1861_v35 = vld [vmem:[%s2154_s7 + $0x40] ss:$8 sps:$4 sm:$0xff]   ;;  %v1863_v37 = vld [vmem:[%s2154_s7 + $0x54] ss:$8 sps:$4 sm:$0xff]   ;;  %v1867_v39 = vld [vmem:[%s2154_s7 + $0x50] ss:$8 sps:$4 sm:$0xff]  }
  0x33   : > { %1314 = vmatpush1.bf16.msra.mxu0 %v1844_v24  ;;  %1209 = vmatprep.subr.bf16.mxu1 %v1845_v25  ;;  %v1862_v36 = vld [vmem:[%s2154_s7 + $0x240] ss:$8 sps:$4 sm:$0xff]   ;;  %v1865_v38 = vld [vmem:[%s2154_s7 + $0x254] ss:$8 sps:$4 sm:$0xff]   ;;  %v1868_v40 = vld [vmem:[%s2154_s7 + $0x250] ss:$8 sps:$4 sm:$0xff]  }
  0x34   : > { %1315 = vmatprep.subr.bf16.mxu0 %v1847_v26  ;;  %v1869_v41 = vld [vmem:[%s2154_s7 + $0x64] ss:$8 sps:$4 sm:$0xff]   ;;  %v1873_v43 = vld [vmem:[%s2154_s7 + $0x60] ss:$8 sps:$4 sm:$0xff]   ;;  %v1875_v45 = vld [vmem:[%s2154_s7 + $0x74] ss:$8 sps:$4 sm:$0xff]  }
  0x35   : > { %v1871_v42 = vld [vmem:[%s2154_s7 + $0x264] ss:$8 sps:$4 sm:$0xff]   ;;  %v1874_v44 = vld [vmem:[%s2154_s7 + $0x260] ss:$8 sps:$4 sm:$0xff]   ;;  %v1877_v46 = vld [vmem:[%s2154_s7 + $0x274] ss:$8 sps:$4 sm:$0xff]  }
  0x36   : > { %1210 = vmatpush1.bf16.msra.mxu1 %v1849_v27  ;;  %v1879_v47 = vld [vmem:[%s2154_s7 + $0x70] ss:$8 sps:$4 sm:$0xff]   ;;  %v1881_v49 = vld [vmem:[%s2154_s7 + $0x84] ss:$8 sps:$4 sm:$0xff]   ;;  %v1885_v51 = vld [vmem:[%s2154_s7 + $0x80] ss:$8 sps:$4 sm:$0xff]  }
  0x37   : > { %1316 = vmatpush1.bf16.msra.mxu0 %v1850_v28  ;;  %1211 = vmatprep.subr.bf16.mxu1 %v1851_v29  ;;  %v1880_v48 = vld [vmem:[%s2154_s7 + $0x270] ss:$8 sps:$4 sm:$0xff]   ;;  %v1883_v50 = vld [vmem:[%s2154_s7 + $0x284] ss:$8 sps:$4 sm:$0xff]   ;;  %v1886_v52 = vld [vmem:[%s2154_s7 + $0x280] ss:$8 sps:$4 sm:$0xff]  }
  0x38   : > { %1317 = vmatprep.subr.bf16.mxu0 %v1853_v30  ;;  %v1887_v53 = vld [vmem:[%s2154_s7 + $0x94] ss:$8 sps:$4 sm:$0xff]   ;;  %v1891_v55 = vld [vmem:[%s2154_s7 + $0x90] ss:$8 sps:$4 sm:$0xff]   ;;  %v1893_v57 = vld [vmem:[%s2154_s7 + $0xa4] ss:$8 sps:$4 sm:$0xff]  }
  0x39   : > { %v1889_v54 = vld [vmem:[%s2154_s7 + $0x294] ss:$8 sps:$4 sm:$0xff]   ;;  %v1892_v56 = vld [vmem:[%s2154_s7 + $0x290] ss:$8 sps:$4 sm:$0xff]   ;;  %v1895_v58 = vld [vmem:[%s2154_s7 + $0x2a4] ss:$8 sps:$4 sm:$0xff]  }
  0x3a   : > { %1212 = vmatpush1.bf16.msra.mxu1 %v1855_v31  ;;  %v1897_v59 = vld [vmem:[%s2154_s7 + $0xa0] ss:$8 sps:$4 sm:$0xff]   ;;  %v1899_v61 = vld [vmem:[%s2154_s7 + $0xb4] ss:$8 sps:$4 sm:$0xff]   ;;  %v1903_v63 = vld [vmem:[%s2154_s7 + $0xb0] ss:$8 sps:$4 sm:$0xff]  }
  0x3b   : > { %1318 = vmatpush1.bf16.msra.mxu0 %v1856_v32  ;;  %1213 = vmatprep.subr.bf16.mxu1 %v1857_v33  ;;  %v1898_v60 = vld [vmem:[%s2154_s7 + $0x2a0] ss:$8 sps:$4 sm:$0xff]   ;;  %v1901_v62 = vld [vmem:[%s2154_s7 + $0x2b4] ss:$8 sps:$4 sm:$0xff]   ;;  %v1904_v0 = vld [vmem:[%s2154_s7 + $0x2b0] ss:$8 sps:$4 sm:$0xff]  }
  0x3c   : > { %1319 = vmatprep.subr.bf16.mxu0 %v1859_v34  ;;  %v341_v1 = vld [vmem:[%s2156_s8] sm:$0xff]  ;;  %v343_v6 = vld [vmem:[%s2156_s8 + $0x10] sm:$0xff]  ;;  %p1761_p11 = scmp.ne.s32.totalorder %s2055_s14, 3 }
  0x3d   : > { %v345_v2 = vld [vmem:[%s2156_s8 + $0x20] sm:$0xff]  ;;  %v347_v7 = vld [vmem:[%s2156_s8 + $0x30] sm:$0xff] }
  0x3e   : > { %1214 = vmatpush1.bf16.msra.mxu1 %v1861_v35  ;;  %v1905_v3 = vld [vmem:[%s2154_s7 + $0xc4] ss:$8 sps:$4 sm:$0xff]   ;;  %v1618_v5 = vcombine.high %v341_v1, %v345_v2  ;;  %v1622_v8 = vcombine.high %v343_v6, %v347_v7  ;;  %v1909_v9 = vld [vmem:[%s2154_s7 + $0xc0] ss:$8 sps:$4 sm:$0xff]   ;;  %v1911_v11 = vld [vmem:[%s2154_s7 + $0xd4] ss:$8 sps:$4 sm:$0xff]   ;;  %v1617_v25 = vcombine.low %v341_v1, %v345_v2  ;;  %v1621_v27 = vcombine.low %v343_v6, %v347_v7 }
  0x3f   : > { %1320 = vmatpush1.bf16.msra.mxu0 %v1862_v36  ;;  %1215 = vmatprep.subr.bf16.mxu1 %v1863_v37  ;;  %v1907_v4 = vld [vmem:[%s2154_s7 + $0x2c4] ss:$8 sps:$4 sm:$0xff]   ;;  %v1910_v10 = vld [vmem:[%s2154_s7 + $0x2c0] ss:$8 sps:$4 sm:$0xff]   ;;  %v1913_v12 = vld [vmem:[%s2154_s7 + $0x2d4] ss:$8 sps:$4 sm:$0xff]  }
  0x40   : > { %1321 = vmatprep.subr.bf16.mxu0 %v1865_v38  ;;  %1237 = vmatprep.mubr.bf16.mxu1 %v1618_v5  ;;  %v1915_v13 = vld [vmem:[%s2154_s7 + $0xd0] ss:$8 sps:$4 sm:$0xff]   ;;  %v1917_v15 = vld [vmem:[%s2154_s7 + $0xe4] ss:$8 sps:$4 sm:$0xff]   ;;  %v1921_v17 = vld [vmem:[%s2154_s7 + $0xe0] ss:$8 sps:$4 sm:$0xff]  }
  0x41   : > { %1343 = vmatprep.mubr.bf16.mxu0 %v1622_v8  ;;  %v1916_v14 = vld [vmem:[%s2154_s7 + $0x2d0] ss:$8 sps:$4 sm:$0xff]   ;;  %v1919_v16 = vld [vmem:[%s2154_s7 + $0x2e4] ss:$8 sps:$4 sm:$0xff]   ;;  %v1922_v18 = vld [vmem:[%s2154_s7 + $0x2e0] ss:$8 sps:$4 sm:$0xff]  }
  0x42   : > { %1216 = vmatpush1.bf16.msra.mxu1 %v1867_v39  ;;  %v1923_v19 = vld [vmem:[%s2154_s7 + $0xf4] ss:$8 sps:$4 sm:$0xff]   ;;  %v1927_v21 = vld [vmem:[%s2154_s7 + $0xf0] ss:$8 sps:$4 sm:$0xff]   ;;  %v1931_v23 = vld [vmem:[%s2154_s7 + $0x104] ss:$8 sps:$4 sm:$0xff]  }
  0x43   : > { %1322 = vmatpush1.bf16.msra.mxu0 %v1868_v40  ;;  %1217 = vmatprep.subr.bf16.mxu1 %v1869_v41  ;;  %v1925_v20 = vld [vmem:[%s2154_s7 + $0x2f4] ss:$8 sps:$4 sm:$0xff]   ;;  %v1928_v22 = vld [vmem:[%s2154_s7 + $0x2f0] ss:$8 sps:$4 sm:$0xff]   ;;  %v1934_v24 = vld [vmem:[%s2154_s7 + $0x304] ss:$8 sps:$4 sm:$0xff]  }
  0x44   : > { %1323 = vmatprep.subr.bf16.mxu0 %v1871_v42  ;;  %v1929_v26 = vld [vmem:[%s2154_s7 + $0x100] ss:$8 sps:$4 sm:$0xff]   ;;  %v1937_v29 = vld [vmem:[%s2154_s7 + $0x114] ss:$8 sps:$4 sm:$0xff]   ;;  %v1935_v31 = vld [vmem:[%s2154_s7 + $0x110] ss:$8 sps:$4 sm:$0xff]  }
  0x45   : > { %v1932_v28 = vld [vmem:[%s2154_s7 + $0x300] ss:$8 sps:$4 sm:$0xff]   ;;  %v1940_v30 = vld [vmem:[%s2154_s7 + $0x314] ss:$8 sps:$4 sm:$0xff]   ;;  %v1938_v32 = vld [vmem:[%s2154_s7 + $0x310] ss:$8 sps:$4 sm:$0xff]  }
  0x46   : > { %1218 = vmatpush1.bf16.msra.mxu1 %v1873_v43  ;;  %v1943_v33 = vld [vmem:[%s2154_s7 + $0x124] ss:$8 sps:$4 sm:$0xff]   ;;  %v1941_v35 = vld [vmem:[%s2154_s7 + $0x120] ss:$8 sps:$4 sm:$0xff]   ;;  %v1949_v37 = vld [vmem:[%s2154_s7 + $0x134] ss:$8 sps:$4 sm:$0xff]  }
  0x47   : > { %1324 = vmatpush1.bf16.msra.mxu0 %v1874_v44  ;;  %1219 = vmatprep.subr.bf16.mxu1 %v1875_v45  ;;  %v1946_v34 = vld [vmem:[%s2154_s7 + $0x324] ss:$8 sps:$4 sm:$0xff]   ;;  %v1944_v36 = vld [vmem:[%s2154_s7 + $0x320] ss:$8 sps:$4 sm:$0xff]   ;;  %v1952_v38 = vld [vmem:[%s2154_s7 + $0x334] ss:$8 sps:$4 sm:$0xff]  }
  0x48   : > { %1325 = vmatprep.subr.bf16.mxu0 %v1877_v46  ;;  %v1947_v39 = vld [vmem:[%s2154_s7 + $0x130] ss:$8 sps:$4 sm:$0xff]   ;;  %v1955_v41 = vld [vmem:[%s2154_s7 + $0x144] ss:$8 sps:$4 sm:$0xff]   ;;  %v1953_v43 = vld [vmem:[%s2154_s7 + $0x140] ss:$8 sps:$4 sm:$0xff]  }
  0x49   : > { %v1950_v40 = vld [vmem:[%s2154_s7 + $0x330] ss:$8 sps:$4 sm:$0xff]   ;;  %v1958_v42 = vld [vmem:[%s2154_s7 + $0x344] ss:$8 sps:$4 sm:$0xff]   ;;  %v1956_v44 = vld [vmem:[%s2154_s7 + $0x340] ss:$8 sps:$4 sm:$0xff]  }
  0x4a   : > { %1220 = vmatpush1.bf16.msra.mxu1 %v1879_v47  ;;  %v1961_v45 = vld [vmem:[%s2154_s7 + $0x154] ss:$8 sps:$4 sm:$0xff]   ;;  %v349_v47 = vld [vmem:[%s2156_s8 + $0x40] sm:$0xff]  ;;  %v1971_v5 = vld [vmem:[%s2154_s7 + $0x170] ss:$8 sps:$4 sm:$0xff]  }
  0x4b   : > { %1326 = vmatpush1.bf16.msra.mxu0 %v1880_v48  ;;  %1221 = vmatprep.subr.bf16.mxu1 %v1881_v49  ;;  %v1964_v46 = vld [vmem:[%s2154_s7 + $0x354] ss:$8 sps:$4 sm:$0xff]   ;;  %v353_v48 = vld [vmem:[%s2156_s8 + $0x60] sm:$0xff]  ;;  %v1974_v6 = vld [vmem:[%s2154_s7 + $0x370] ss:$8 sps:$4 sm:$0xff]  }
  0x4c   : > { %1327 = vmatprep.subr.bf16.mxu0 %v1883_v50  ;;  %v1626_v49 = vcombine.high %v349_v47, %v353_v48  ;;  %v351_v50 = vld [vmem:[%s2156_s8 + $0x50] sm:$0xff]  ;;  %v1979_v7 = vld [vmem:[%s2154_s7 + $0x184] ss:$8 sps:$4 sm:$0xff]  }
  0x4d   : > { %v1976_v1 = vld [vmem:[%s2154_s7 + $0x374] ss:$8 sps:$4 sm:$0xff]   ;;  %v1982_v8 = vld [vmem:[%s2154_s7 + $0x384] ss:$8 sps:$4 sm:$0xff]  }
  0x4e   : > { %1222 = vmatpush1.bf16.msra.mxu1 %v1885_v51  ;;  %v355_v51 = vld [vmem:[%s2156_s8 + $0x70] sm:$0xff] }
  0x4f   : > { %1328 = vmatpush1.bf16.msra.mxu0 %v1886_v52  ;;  %1223 = vmatprep.subr.bf16.mxu1 %v1887_v53  ;;  %v1959_v52 = vld [vmem:[%s2154_s7 + $0x150] ss:$8 sps:$4 sm:$0xff]  }
  0x50   : > { %1329 = vmatprep.subr.bf16.mxu0 %v1889_v54  ;;  %v1962_v53 = vld [vmem:[%s2154_s7 + $0x350] ss:$8 sps:$4 sm:$0xff]   ;;  %v1630_v54 = vcombine.high %v351_v50, %v355_v51 }
  0x52   : > { %1224 = vmatpush1.bf16.msra.mxu1 %v1891_v55  ;;  %v1625_v55 = vcombine.low %v349_v47, %v353_v48 }
  0x53   : > { %1330 = vmatpush1.bf16.msra.mxu0 %v1892_v56  ;;  %1225 = vmatprep.subr.bf16.mxu1 %v1893_v57  ;;  %v1629_v56 = vcombine.low %v351_v50, %v355_v51  ;;  %v1967_v57 = vld [vmem:[%s2154_s7 + $0x164] ss:$8 sps:$4 sm:$0xff]  }
  0x54   : > { %1331 = vmatprep.subr.bf16.mxu0 %v1895_v58  ;;  %v1970_v58 = vld [vmem:[%s2154_s7 + $0x364] ss:$8 sps:$4 sm:$0xff]  }
  0x55   : > { %v333_v50 = vld [vmem:[%s2461_s3] sm:$0xff] }
  0x56   : > { %1226 = vmatpush1.bf16.msra.mxu1 %v1897_v59  ;;  %v1965_v59 = vld [vmem:[%s2154_s7 + $0x160] ss:$8 sps:$4 sm:$0xff]  }
  0x57   : > { %1332 = vmatpush1.bf16.msra.mxu0 %v1898_v60  ;;  %1227 = vmatprep.subr.bf16.mxu1 %v1899_v61  ;;  %v1968_v60 = vld [vmem:[%s2154_s7 + $0x360] ss:$8 sps:$4 sm:$0xff]  }
  0x58   : > { %1333 = vmatprep.subr.bf16.mxu0 %v1901_v62  ;;  %v2284_v61 = vld [vmem:[%s2156_s8 + $0x8] sm:$0xff] }
  0x59   : > { %v2287_v62 = vld [vmem:[%s2156_s8 + $0x28] sm:$0xff] }
  0x5a   : > { %1228 = vmatpush1.bf16.msra.mxu1 %v1903_v63  ;;  %v2290_v63 = vld [vmem:[%s2156_s8 + $0x18] sm:$0xff]  ;;  %v1620_v2 = vcombine.high %v2284_v61, %v2287_v62 }
  0x5b   : > { %1334 = vmatpush1.bf16.msra.mxu0 %v1904_v0  ;;  %1229 = vmatprep.subr.bf16.mxu1 %v1905_v3  ;;  %v1973_v0 = vld [vmem:[%s2154_s7 + $0x174] ss:$8 sps:$4 sm:$0xff]  }
  0x5c   : > { %1335 = vmatprep.subr.bf16.mxu0 %v1907_v4  ;;  %v2297_v3 = vld [vmem:[%s2156_s8 + $0x38] sm:$0xff] }
  0x5d   : > { %v1624_v4 = vcombine.high %v2290_v63, %v2297_v3 }
  0x5e   : > { %1230 = vmatpush1.bf16.msra.mxu1 %v1909_v9  ;;  %v1977_v9 = vld [vmem:[%s2154_s7 + $0x180] ss:$8 sps:$4 sm:$0xff]  }
  0x5f   : > { %1336 = vmatpush1.bf16.msra.mxu0 %v1910_v10  ;;  %1231 = vmatprep.subr.bf16.mxu1 %v1911_v11  ;;  %v1980_v10 = vld [vmem:[%s2154_s7 + $0x380] ss:$8 sps:$4 sm:$0xff]   ;;  %v1985_v11 = vld [vmem:[%s2154_s7 + $0x194] ss:$8 sps:$4 sm:$0xff]  }
  0x60   : > { %1337 = vmatprep.subr.bf16.mxu0 %v1913_v12  ;;  %v1988_v12 = vld [vmem:[%s2154_s7 + $0x394] ss:$8 sps:$4 sm:$0xff]  }
  0x62   : > { %1232 = vmatpush1.bf16.msra.mxu1 %v1915_v13  ;;  %v1983_v13 = vld [vmem:[%s2154_s7 + $0x190] ss:$8 sps:$4 sm:$0xff]  }
  0x63   : > { %1338 = vmatpush1.bf16.msra.mxu0 %v1916_v14  ;;  %1233 = vmatprep.subr.bf16.mxu1 %v1917_v15  ;;  %v1986_v14 = vld [vmem:[%s2154_s7 + $0x390] ss:$8 sps:$4 sm:$0xff]   ;;  %v1991_v15 = vld [vmem:[%s2154_s7 + $0x1a4] ss:$8 sps:$4 sm:$0xff]  }
  0x64   : > { %1339 = vmatprep.subr.bf16.mxu0 %v1919_v16  ;;  %v1994_v16 = vld [vmem:[%s2154_s7 + $0x3a4] ss:$8 sps:$4 sm:$0xff]  }
  0x66   : > { %1234 = vmatpush1.bf16.msra.mxu1 %v1921_v17  ;;  %v1989_v17 = vld [vmem:[%s2154_s7 + $0x1a0] ss:$8 sps:$4 sm:$0xff]  }
  0x67   : > { %1340 = vmatpush1.bf16.msra.mxu0 %v1922_v18  ;;  %1235 = vmatprep.subr.bf16.mxu1 %v1923_v19  ;;  %v1992_v18 = vld [vmem:[%s2154_s7 + $0x3a0] ss:$8 sps:$4 sm:$0xff]   ;;  %v1997_v19 = vld [vmem:[%s2154_s7 + $0x1b4] ss:$8 sps:$4 sm:$0xff]  }
  0x68   : > { %1341 = vmatprep.subr.bf16.mxu0 %v1925_v20  ;;  %v2000_v20 = vld [vmem:[%s2154_s7 + $0x3b4] ss:$8 sps:$4 sm:$0xff]  }
  0x6a   : > { %1236 = vmatpush1.bf16.msra.mxu1 %v1927_v21  ;;  %v1995_v21 = vld [vmem:[%s2154_s7 + $0x1b0] ss:$8 sps:$4 sm:$0xff]  }
  0x6b   : > { %1342 = vmatpush1.bf16.msra.mxu0 %v1928_v22  ;;  %1258 = vmatprep.subr.bf16.mxu1 %v1931_v23  ;;  %v1998_v22 = vld [vmem:[%s2154_s7 + $0x3b0] ss:$8 sps:$4 sm:$0xff]   ;;  %v2003_v23 = vld [vmem:[%s2154_s7 + $0x1c4] ss:$8 sps:$4 sm:$0xff]  }
  0x6c   : > { %1364 = vmatprep.subr.bf16.mxu0 %v1934_v24  ;;  %v2006_v24 = vld [vmem:[%s2154_s7 + $0x3c4] ss:$8 sps:$4 sm:$0xff]  }
  0x6d   : > { %1238 = vmatmul.mubr.bf16.vlgmr.msra.gmra.mrb[0].mxu1 %v1617_v25  ;;  %v2001_v25 = vld [vmem:[%s2154_s7 + $0x1c0] ss:$8 sps:$4 sm:$0xff]  }
  0x6e   : > { %1344 = vmatmul.mubr.bf16.vlgmr.msra.gmra.mrb[0].mxu0 %v1621_v27  ;;  %1259 = vmatpush1.bf16.msra.mxu1 %v1929_v26  ;;  %v2004_v26 = vld [vmem:[%s2154_s7 + $0x3c0] ss:$8 sps:$4 sm:$0xff]   ;;  %v2009_v27 = vld [vmem:[%s2154_s7 + $0x1d4] ss:$8 sps:$4 sm:$0xff]  }
  0x6f   : > { %1365 = vmatpush1.bf16.msra.mxu0 %v1932_v28  ;;  %1260 = vmatprep.subr.bf16.mxu1 %v1937_v29  ;;  %v2012_v28 = vld [vmem:[%s2154_s7 + $0x3d4] ss:$8 sps:$4 sm:$0xff]   ;;  %v2007_v29 = vld [vmem:[%s2154_s7 + $0x1d0] ss:$8 sps:$4 sm:$0xff]  }
  0x70   : > { %1366 = vmatprep.subr.bf16.mxu0 %v1940_v30  ;;  %1247 = vmatprep.mubr.bf16.mxu1 %v1626_v49  ;;  %v2010_v30 = vld [vmem:[%s2154_s7 + $0x3d0] ss:$8 sps:$4 sm:$0xff]  }
  0x71   : > { %1353 = vmatprep.mubr.bf16.mxu0 %v1630_v54  ;;  %v334_v54 = vld [vmem:[%s2461_s3 + $0x8] sm:$0xff] }
  0x72   : > { %1261 = vmatpush1.bf16.msra.mxu1 %v1935_v31  ;;  %v2015_v31 = vld [vmem:[%s2154_s7 + $0x1e4] ss:$8 sps:$4 sm:$0xff]  }
  0x73   : > { %1367 = vmatpush1.bf16.msra.mxu0 %v1938_v32  ;;  %1262 = vmatprep.subr.bf16.mxu1 %v1943_v33  ;;  %v2018_v32 = vld [vmem:[%s2154_s7 + $0x3e4] ss:$8 sps:$4 sm:$0xff]   ;;  %v2013_v33 = vld [vmem:[%s2154_s7 + $0x1e0] ss:$8 sps:$4 sm:$0xff]  }
  0x74   : > { %1368 = vmatprep.subr.bf16.mxu0 %v1946_v34  ;;  %v2016_v34 = vld [vmem:[%s2154_s7 + $0x3e0] ss:$8 sps:$4 sm:$0xff]  }
  0x75   : > { %1248 = vmatmul.mubr.bf16.gmra.mrb[4].mxu1 %v1625_v55 }
  0x76   : > { %1263 = vmatpush1.bf16.msra.mxu1 %v1941_v35  ;;  %1354 = vmatmul.mubr.bf16.gmra.mrb[4].mxu0 %v1629_v56  ;;  %v2021_v35 = vld [vmem:[%s2154_s7 + $0x1f4] ss:$8 sps:$4 sm:$0xff]  }
  0x77   : > { %1369 = vmatpush1.bf16.msra.mxu0 %v1944_v36  ;;  %1264 = vmatprep.subr.bf16.mxu1 %v1949_v37  ;;  %v2024_v36 = vld [vmem:[%s2154_s7 + $0x3f4] ss:$8 sps:$4 sm:$0xff]   ;;  %v2019_v37 = vld [vmem:[%s2154_s7 + $0x1f0] ss:$8 sps:$4 sm:$0xff]  }
  0x78   : > { %1370 = vmatprep.subr.bf16.mxu0 %v1952_v38  ;;  %1290 = vmatprep.mubr.bf16.mxu1 %v1620_v2  ;;  %v2022_v38 = vld [vmem:[%s2154_s7 + $0x3f0] ss:$8 sps:$4 sm:$0xff]  }
  0x79   : > { %1396 = vmatprep.mubr.bf16.mxu0 %v1624_v4 }
  0x7a   : > { %1265 = vmatpush1.bf16.msra.mxu1 %v1947_v39  ;;  %v350_v39 = vld [vmem:[%s2156_s8 + $0x48] sm:$0xff] }
  0x7b   : > { %1371 = vmatpush1.bf16.msra.mxu0 %v1950_v40  ;;  %1266 = vmatprep.subr.bf16.mxu1 %v1955_v41  ;;  %v354_v40 = vld [vmem:[%s2156_s8 + $0x68] sm:$0xff]  ;;  %v352_v41 = vld [vmem:[%s2156_s8 + $0x58] sm:$0xff] }
  0x7c   : > { %1372 = vmatprep.subr.bf16.mxu0 %v1958_v42  ;;  %v356_v42 = vld [vmem:[%s2156_s8 + $0x78] sm:$0xff]  ;;  %v1627_v47 = vcombine.low %v350_v39, %v354_v40 }
  0x7d   : > { %v1631_v48 = vcombine.low %v352_v41, %v356_v42 }
  0x7e   : > { %1267 = vmatpush1.bf16.msra.mxu1 %v1953_v43  ;;  %v1619_v43 = vcombine.low %v2284_v61, %v2287_v62 }
  0x7f   : > { %1373 = vmatpush1.bf16.msra.mxu0 %v1956_v44  ;;  %1268 = vmatprep.subr.bf16.mxu1 %v1961_v45  ;;  %v1623_v44 = vcombine.low %v2290_v63, %v2297_v3  ;;  %v1628_v45 = vcombine.high %v350_v39, %v354_v40  ;;  %v336_v63 = vld [vmem:[%s2461_s3 + $0x18] sm:$0xff] }
  0x80   : > { %1374 = vmatprep.subr.bf16.mxu0 %v1964_v46  ;;  %v1632_v46 = vcombine.high %v352_v41, %v356_v42 }
  0x82   : > { %1269 = vmatpush1.bf16.msra.mxu1 %v1959_v52 }
  0x83   : > { %1375 = vmatpush1.bf16.msra.mxu0 %v1962_v53  ;;  %1270 = vmatprep.subr.bf16.mxu1 %v1967_v57 }
  0x84   : > { %1376 = vmatprep.subr.bf16.mxu0 %v1970_v58  ;;  %v335_v58 = vld [vmem:[%s2461_s3 + $0x10] sm:$0xff] }
  0x86   : > { %1271 = vmatpush1.bf16.msra.mxu1 %v1965_v59 }
  0x87   : > { %1377 = vmatpush1.bf16.msra.mxu0 %v1968_v60  ;;  %1272 = vmatprep.subr.bf16.mxu1 %v1973_v0 }
  0x88   : > { %1378 = vmatprep.subr.bf16.mxu0 %v1976_v1 }
  0x8a   : > { %1273 = vmatpush1.bf16.msra.mxu1 %v1971_v5 }
  0x8b   : > { %1379 = vmatpush1.bf16.msra.mxu0 %v1974_v6  ;;  %1274 = vmatprep.subr.bf16.mxu1 %v1979_v7  ;;  %v337_v6 = vld [vmem:[%s2461_s3 + $0x20] sm:$0xff] }
  0x8c   : > { %1380 = vmatprep.subr.bf16.mxu0 %v1982_v8 }
  0x8e   : > { %1275 = vmatpush1.bf16.msra.mxu1 %v1977_v9 }
  0x8f   : > { %1381 = vmatpush1.bf16.msra.mxu0 %v1980_v10  ;;  %1276 = vmatprep.subr.bf16.mxu1 %v1985_v11  ;;  %v338_v10 = vld [vmem:[%s2461_s3 + $0x28] sm:$0xff] }
  0x90   : > { %1382 = vmatprep.subr.bf16.mxu0 %v1988_v12 }
  0x92   : > { %1277 = vmatpush1.bf16.msra.mxu1 %v1983_v13 }
  0x93   : > { %1383 = vmatpush1.bf16.msra.mxu0 %v1986_v14  ;;  %1278 = vmatprep.subr.bf16.mxu1 %v1991_v15  ;;  %v339_v14 = vld [vmem:[%s2461_s3 + $0x30] sm:$0xff] }
  0x94   : > { %1384 = vmatprep.subr.bf16.mxu0 %v1994_v16 }
  0x96   : > { %1279 = vmatpush1.bf16.msra.mxu1 %v1989_v17 }
  0x97   : > { %1385 = vmatpush1.bf16.msra.mxu0 %v1992_v18  ;;  %1280 = vmatprep.subr.bf16.mxu1 %v1997_v19  ;;  %v340_v19 = vld [vmem:[%s2461_s3 + $0x38] sm:$0xff] }
  0x98   : > { %1386 = vmatprep.subr.bf16.mxu0 %v2000_v20 }
  0x9a   : > { %1281 = vmatpush1.bf16.msra.mxu1 %v1995_v21 }
  0x9b   : > { %1387 = vmatpush1.bf16.msra.mxu0 %v1998_v22  ;;  %1282 = vmatprep.subr.bf16.mxu1 %v2003_v23 }
  0x9c   : > { %1388 = vmatprep.subr.bf16.mxu0 %v2006_v24 }
  0x9e   : > { %1283 = vmatpush1.bf16.msra.mxu1 %v2001_v25  ;;  %v1447_v25 = vlaneseq (!%p1761_p11) }
  0x9f   : > { %1389 = vmatpush1.bf16.msra.mxu0 %v2004_v26  ;;  %1284 = vmatprep.subr.bf16.mxu1 %v2009_v27  ;;  %v1445_v27 = vld [vmem:[%s2460_s2] sm:$0x3] (!%p1761_p11) }
  0xa0   : > { %1390 = vmatprep.subr.bf16.mxu0 %v2012_v28  ;;  %v1448_v26 = vshrl.u32 (!%p1761_p11), %v1447_v25, 7 }
  0xa2   : > { %1285 = vmatpush1.bf16.msra.mxu1 %v2007_v29  ;;  %v1449_v29 = vsub.s32 (!%p1761_p11), 0, %v1448_v26 }
  0xa3   : > { %1391 = vmatpush1.bf16.msra.mxu0 %v2010_v30  ;;  %1286 = vmatprep.subr.bf16.mxu1 %v2015_v31  ;;  %v1453_v31 = vsub.s32 (!%p1761_p11), 1, %v1448_v26 }
  0xa4   : > { %1392 = vmatprep.subr.bf16.mxu0 %v2018_v32 }
  0xa6   : > { %1287 = vmatpush1.bf16.msra.mxu1 %v2013_v33 }
  0xa7   : > { %1393 = vmatpush1.bf16.msra.mxu0 %v2016_v34  ;;  %1288 = vmatprep.subr.bf16.mxu1 %v2021_v35  ;;  %v1450_v35 = vrot.slane (!%p1761_p11), %v1445_v27, %v1449_v29 }
  0xa8   : > { %1394 = vmatprep.subr.bf16.mxu0 %v2024_v36  ;;  %v1454_v36 = vrot.slane (!%p1761_p11), %v1445_v27, %v1453_v31 }
  0xaa   : > { %1289 = vmatpush1.bf16.msra.mxu1 %v2019_v37 }
  0xab   : > { %1395 = vmatpush1.bf16.msra.mxu0 %v2022_v38 }
  0xad   : > { %1291 = vmatmul.mubr.bf16.vlgmr.msra.gmra.mrb[0].mxu1 %v1619_v43 }
  0xae   : > { %1397 = vmatmul.mubr.bf16.vlgmr.msra.gmra.mrb[0].mxu0 %v1623_v44  ;;  %1300 = vmatprep.mubr.bf16.mxu1 %v1628_v45 }
  0xaf   : > { %1406 = vmatprep.mubr.bf16.mxu0 %v1632_v46 }
  0xb5   : > { %1301 = vmatmul.mubr.bf16.gmra.mrb[4].mxu1 %v1627_v47 }
  0xb6   : > { %1407 = vmatmul.mubr.bf16.gmra.mrb[4].mxu0 %v1631_v48 }
 0x180   : > { %v1292_v49 = vpop.f32.mrb[0].mxu1 }
 0x181   : > { %v1398_v51 = vpop.f32.mrb[0].mxu0  ;;  %v1294_v53 = vpop.f32.mrb[1].mxu1 }
 0x182   : > { %v1768_v52 = vadd.f32 %v1398_v51, %v1292_v49  ;;  %v1400_v55 = vpop.f32.mrb[1].mxu0  ;;  %v1296_v57 = vpop.f32.mrb[2].mxu1 }
 0x183   : > { %v1769_v56 = vadd.f32 %v1400_v55, %v1294_v53  ;;  %v1402_v59 = vpop.f32.mrb[2].mxu0  ;;  %v1298_v62 = vpop.f32.mrb[3].mxu1 }
 0x184   : > { %v1417_v60 = vadd.f32 %v1768_v52, %v333_v50  ;;  %v1770_v61 = vadd.f32 %v1402_v59, %v1296_v57  ;;  %v1404_v0 = vpop.f32.mrb[3].mxu0 }
 0x185   : > { %v1418_v1 = vadd.f32 %v1769_v56, %v334_v54  ;;  %v1771_v2 = vadd.f32 %v1404_v0, %v1298_v62 }
 0x186   : > { %1425 = vst [vmem:[%s2461_s3] sm:$0xff] %v1417_v60  ;;  %v1419_v3 = vadd.f32 %v1770_v61, %v335_v58 }
 0x187   : > { %1426 = vst [vmem:[%s2461_s3 + $0x8] sm:$0xff] %v1418_v1  ;;  %v1420_v4 = vadd.f32 %v1771_v2, %v336_v63 }
 0x188   : > { %1427 = vst [vmem:[%s2461_s3 + $0x10] sm:$0xff] %v1419_v3  ;;  %v1302_v5 = vpop.f32.mrb[4].mxu1 }
 0x189   : > { %1428 = vst [vmem:[%s2461_s3 + $0x18] sm:$0xff] %v1420_v4  ;;  %v1408_v7 = vpop.f32.mrb[4].mxu0  ;;  %v1304_v9 = vpop.f32.mrb[5].mxu1 }
 0x18a   : > { %v1772_v8 = vadd.f32 %v1408_v7, %v1302_v5  ;;  %v1410_v11 = vpop.f32.mrb[5].mxu0  ;;  %v1306_v13 = vpop.f32.mrb[6].mxu1 }
 0x18b   : > { %v1773_v12 = vadd.f32 %v1410_v11, %v1304_v9  ;;  %v1412_v15 = vpop.f32.mrb[6].mxu0  ;;  %v1308_v18 = vpop.f32.mrb[7].mxu1  ;;  %1436 = sbr.rel (%p1761_p11) target bundleno = 414 (0x19e), region = 63 }
 0x18c   : > { %v1421_v16 = vadd.f32 %v1772_v8, %v337_v6  ;;  %v1774_v17 = vadd.f32 %v1412_v15, %v1306_v13  ;;  %v1414_v20 = vpop.f32.mrb[7].mxu0 }
 0x18d   : > { %v1422_v21 = vadd.f32 %v1773_v12, %v338_v10  ;;  %v1775_v22 = vadd.f32 %v1414_v20, %v1308_v18  ;;  %v1437_v28 = vld [vmem:[%s2461_s3] sm:$0xff] (!%p1761_p11) }
 0x18e   : > { %1429 = vst [vmem:[%s2461_s3 + $0x20] sm:$0xff] %v1421_v16  ;;  %v1423_v23 = vadd.f32 %v1774_v17, %v339_v14  ;;  %v1438_v30 = vld [vmem:[%s2461_s3 + $0x8] sm:$0xff] (!%p1761_p11)  ;;  %v1457_v40 = vadd.f32 (!%p1761_p11), %v1450_v35, %v1437_v28 }
 0x18f   : > { %1430 = vst [vmem:[%s2461_s3 + $0x28] sm:$0xff] %v1422_v21  ;;  %v1424_v24 = vadd.f32 %v1775_v22, %v340_v19  ;;  %v1439_v32 = vld [vmem:[%s2461_s3 + $0x10] sm:$0xff] (!%p1761_p11)  ;;  %v1458_v41 = vadd.f32 (!%p1761_p11), %v1454_v36, %v1438_v30 }
 0x190   : > { %1431 = vst [vmem:[%s2461_s3 + $0x30] sm:$0xff] %v1423_v23  ;;  %v1440_v33 = vld [vmem:[%s2461_s3 + $0x18] sm:$0xff] (!%p1761_p11)  ;;  %v1459_v42 = vadd.f32 (!%p1761_p11), %v1450_v35, %v1439_v32  ;;  %v1465_v48 = vmax.f32 (!%p1761_p11), %v1457_v40, 0.0 }
 0x191   : > { %1432 = vst [vmem:[%s2461_s3 + $0x38] sm:$0xff] %v1424_v24  ;;  %v1460_v43 = vadd.f32 (!%p1761_p11), %v1454_v36, %v1440_v33  ;;  %v1466_v49 = vmax.f32 (!%p1761_p11), %v1458_v41, 0.0 }
 0x192   : > { %v1467_v50 = vmax.f32 %v1459_v42, 0.0  ;;  %1473 = vst [vmem:[%s2461_s3] sm:$0xff] %v1465_v48 }
 0x193   : > { %v1468_v51 = vmax.f32 %v1460_v43, 0.0  ;;  %1474 = vst [vmem:[%s2461_s3 + $0x8] sm:$0xff] %v1466_v49 }
 0x194   : > { %1475 = vst [vmem:[%s2461_s3 + $0x10] sm:$0xff] %v1467_v50 }
 0x195   : > { %v1441_v34 = vld [vmem:[%s2461_s3 + $0x20] sm:$0xff]  ;;  %1476 = vst [vmem:[%s2461_s3 + $0x18] sm:$0xff] %v1468_v51 }
 0x196   : > { %v1442_v37 = vld [vmem:[%s2461_s3 + $0x28] sm:$0xff]  ;;  %v1461_v44 = vadd.f32 %v1450_v35, %v1441_v34 }
 0x197   : > { %v1443_v38 = vld [vmem:[%s2461_s3 + $0x30] sm:$0xff]  ;;  %v1462_v45 = vadd.f32 %v1454_v36, %v1442_v37 }
 0x198   : > { %v1444_v39 = vld [vmem:[%s2461_s3 + $0x38] sm:$0xff]  ;;  %v1463_v46 = vadd.f32 %v1450_v35, %v1443_v38  ;;  %v1469_v52 = vmax.f32 %v1461_v44, 0.0 }
 0x199   : > { %v1464_v47 = vadd.f32 %v1454_v36, %v1444_v39  ;;  %v1470_v53 = vmax.f32 %v1462_v45, 0.0 }
 0x19a   : > { %v1471_v54 = vmax.f32 %v1463_v46, 0.0  ;;  %1477 = vst [vmem:[%s2461_s3 + $0x20] sm:$0xff] %v1469_v52 }
 0x19b   : > { %v1472_v55 = vmax.f32 %v1464_v47, 0.0  ;;  %1478 = vst [vmem:[%s2461_s3 + $0x28] sm:$0xff] %v1470_v53 }
 0x19c   : > { %1479 = vst [vmem:[%s2461_s3 + $0x30] sm:$0xff] %v1471_v54 }
 0x19d   : > { %1480 = vst [vmem:[%s2461_s3 + $0x38] sm:$0xff] %v1472_v55 }
 0x19e PF: > { %s13_s16 = sadd.s32 1, %s2063_s16   ;;  %s2462_s12 = smov %s2051_s13 }
 0x19f   : > { %p10_p12 = scmp.ge.s32.totalorder %s13_s16, 6   ;;  %s2463_s13 = smov %s2121_s20 }
 0x1a0   : > { %s2464_s14 = smov %s2059_s15  ;;  %s2465_s15 = smov %s2467_s17 }
 0x1a1   :  { %12 = sbr.rel (!%p10_p12) target bundleno = 3 (0x3), region = 104 }

// kernel: net_conv_forward.18
= control target key start
LH: loop header
LB: loop body
LE: loop exit
PB: predicated region body
PF: predicated region fallthrough
CT: control target
= control target key end

     0   :  { %s2086_s12 = smov 0   ;;  %s2088_s13 = smov 0   ;;  %s2458_s0 = inlined_call_operand.vmem [shape: bf16[32,3072], index: 0, kind: input, shape index: {}]   ;;  %s2459_s1 = inlined_call_operand.vmem [shape: bf16[3072,256], index: 1, kind: input, shape index: {}]   ;;  %s2460_s2 = inlined_call_operand.vmem [shape: f32[1,256], index: 2, kind: input, shape index: {}]   ;;  %s2461_s3 = inlined_call_operand.vmem [shape: f32[32,256], index: 3, kind: output, shape index: {}]  }
   0x1   :  { %s2090_s14 = smov 0   ;;  %s2092_s15 = smov 0  }
   0x2   :  { %s2094_s16 = smov 0  }
   0x3 LB: > { %s25_s17 = sadd.s32 1, %s2059_s15  ;;  %p48_p1 = scmp.ne.s32.totalorder %s2051_s13, %s2047_s12  ;;  %s2063_s16 = sphi %s2094_s16, %s13_s16   ;;  %s2059_s15 = sphi %s2092_s15, %s2465_s15   ;;  %s2055_s14 = sphi %s2090_s14, %s2464_s14   ;;  %s2051_s13 = sphi %s2088_s13, %s2463_s13   ;;  %s2047_s12 = sphi %s2086_s12, %s2462_s12  }
   0x4   : > { %p26_p0 = scmp.ge.s32.totalorder %s25_s17, 3  ;;  %p49_p2 = scmp.eq.s32.totalorder %s2063_s16, 0 }
   0x5   : > { %s41_s19 = sadd.s32 1, %s2051_s13  ;;  %p1607_p5 = scmp.ge.s32.totalorder %s2063_s16, 3 }
   0x6   : > { %s2467_s17 = smov (%p26_p0, %s25_s17), 0  ;;  %p50_p3 = por %p49_p2, %p48_p1 }
   0x7   : > { %s37_s18 = ssub.s32 %s2059_s15, %s2467_s17  ;;  %164 = sbr.rel (%p1607_p5) target bundleno = 26 (0x1a), region = 20 }
   0x8   : > { %p39_p4 = scmp.eq.s32.totalorder %s37_s18, 0 }
   0xa   : > { %s2121_s20 = scalar_select %p39_p4, %s2051_s13, %s41_s19  }
   0xe   : > { %167 = sbr.rel (!%p50_p3) target bundleno = 26 (0x1a), region = 24  ;;  %s169_s21 = sand.u32 (%p50_p3), 1, %s2051_s13  }
   0xf   : > { %s1766_s22 = sshll.u32 (%p50_p3), %s2059_s15, 5  ;;  %s1608_s23 = sshll.u32 (%p50_p3), %s169_s21, 7 }
  0x10   : > { %s2129_s26 = scalar_lea.vmem (%p50_p3), %s2458_s0, %s1766_s22  ;;  %s171_s27 = scalar_lea.vmem (%p50_p3), [#allocation2], %s1608_s23 }
  0x11   : > { %v190_v0 = vld [vmem:[%s2129_s26] sm:$0xff] (%p50_p3)  ;;  %v192_v1 = vld [vmem:[%s2129_s26 + $0x8] sm:$0xff] (%p50_p3)  ;;  %v194_v2 = vld [vmem:[%s2129_s26 + $0x10] sm:$0xff] (%p50_p3) }
  0x12   : > { %191 = vst [vmem:[%s171_s27] sm:$0xff] (%p50_p3), %v190_v0  ;;  %193 = vst [vmem:[%s171_s27 + $0x8] sm:$0xff] (%p50_p3), %v192_v1  ;;  %v196_v3 = vld [vmem:[%s2129_s26 + $0x18] sm:$0xff] (%p50_p3)  ;;  %v198_v4 = vld [vmem:[%s2129_s26 + $0x60] sm:$0xff] (%p50_p3) }
  0x13   : > { %195 = vst [vmem:[%s171_s27 + $0x10] sm:$0xff] (%p50_p3), %v194_v2  ;;  %v200_v5 = vld [vmem:[%s2129_s26 + $0x68] sm:$0xff] (%p50_p3)  ;;  %197 = vst [vmem:[%s171_s27 + $0x18] sm:$0xff] (%p50_p3), %v196_v3  ;;  %v202_v6 = vld [vmem:[%s2129_s26 + $0x70] sm:$0xff] (%p50_p3) }
  0x14   : > { %199 = vst [vmem:[%s171_s27 + $0x20] sm:$0xff] (%p50_p3), %v198_v4  ;;  %201 = vst [vmem:[%s171_s27 + $0x28] sm:$0xff] (%p50_p3), %v200_v5  ;;  %v204_v7 = vld [vmem:[%s2129_s26 + $0x78] sm:$0xff] (%p50_p3)  ;;  %v206_v8 = vld [vmem:[%s2129_s26 + $0xc0] sm:$0xff] (%p50_p3) }
  0x15   : > { %203 = vst [vmem:[%s171_s27 + $0x30] sm:$0xff] %v202_v6  ;;  %205 = vst [vmem:[%s171_s27 + $0x38] sm:$0xff] %v204_v7  ;;  %v208_v9 = vld [vmem:[%s2129_s26 + $0xc8] sm:$0xff]  ;;  %v210_v10 = vld [vmem:[%s2129_s26 + $0xd0] sm:$0xff] }
  0x16   : > { %207 = vst [vmem:[%s171_s27 + $0x40] sm:$0xff] %v206_v8  ;;  %v212_v11 = vld [vmem:[%s2129_s26 + $0xd8] sm:$0xff]  ;;  %209 = vst [vmem:[%s171_s27 + $0x48] sm:$0xff] %v208_v9  ;;  %v214_v12 = vld [vmem:[%s2129_s26 + $0x120] sm:$0xff] }
  0x17   : > { %211 = vst [vmem:[%s171_s27 + $0x50] sm:$0xff] %v210_v10  ;;  %213 = vst [vmem:[%s171_s27 + $0x58] sm:$0xff] %v212_v11  ;;  %v216_v13 = vld [vmem:[%s2129_s26 + $0x128] sm:$0xff]  ;;  %v218_v14 = vld [vmem:[%s2129_s26 + $0x130] sm:$0xff] }
  0x18   : > { %215 = vst [vmem:[%s171_s27 + $0x60] sm:$0xff] %v214_v12  ;;  %217 = vst [vmem:[%s171_s27 + $0x68] sm:$0xff] %v216_v13  ;;  %v220_v15 = vld [vmem:[%s2129_s26 + $0x138] sm:$0xff] }
  0x19   : > { %219 = vst [vmem:[%s171_s27 + $0x70] sm:$0xff] %v218_v14  ;;  %221 = vst [vmem:[%s171_s27 + $0x78] sm:$0xff] %v220_v15 }
  0x1a PF: > { %p1611_p6 = scmp.ge.s32.totalorder %s2063_s16, 1  ;;  %p241_p7 = scmp.lt.s32.totalorder %s2063_s16, 4 }
  0x1c   : > { %p242_p8 = pnand %p1611_p6, %p241_p7 }
  0x1d   : > { %s248_s28 = sand.u32 (!%p242_p8), 1, %s2047_s12   ;;  %s1613_s29 = sshll.u32 (!%p242_p8), %s2055_s14, 7 }
  0x1e   : > { %245 = sbr.rel (%p242_p8) target bundleno = 414 (0x19e), region = 51  ;;  %s1612_s30 = sshll.u32 (!%p242_p8), %s248_s28, 7 }
  0x1f   : > { %p294_p9 = scmp.lt.s32.totalorder (!%p242_p8), %s1613_s29, 383  ;;  %s2156_s8 = scalar_lea.vmem (!%p242_p8), [#allocation2], %s1612_s30 }
  0x20   : > { %p1616_p10 = scmp.ne.s32.totalorder (!%p242_p8), %s2055_s14, 0 }
  0x25   : > { %s2469_s29 = smov (!%p294_p9, %s1613_s29), 383  ;;  %324 = sbr.rel (%p1616_p10) target bundleno = 44 (0x2c), region = 59 }
  0x26   : > { %s1767_s4 = sshll.u32 %s2469_s29, 3  ;;  %v2065_v16 = vmov (!%p1616_p10), 0.0  }
  0x27   : > { %s2154_s7 = scalar_lea.vmem %s2459_s1, %s1767_s4  ;;  %325 = vst [vmem:[%s2461_s3] sm:$0xff] (!%p1616_p10), %v2065_v16  ;;  %326 = vst [vmem:[%s2461_s3 + $0x8] sm:$0xff] (!%p1616_p10), %v2065_v16 }
  0x28   : > { %327 = vst [vmem:[%s2461_s3 + $0x10] sm:$0xff] (!%p1616_p10), %v2065_v16  ;;  %328 = vst [vmem:[%s2461_s3 + $0x18] sm:$0xff] (!%p1616_p10), %v2065_v16 }
  0x29   : > { %329 = vst [vmem:[%s2461_s3 + $0x20] sm:$0xff] (!%p1616_p10), %v2065_v16  ;;  %330 = vst [vmem:[%s2461_s3 + $0x28] sm:$0xff] (!%p1616_p10), %v2065_v16 }
  0x2a   : > { %331 = vst [vmem:[%s2461_s3 + $0x30] sm:$0xff] (!%p1616_p10), %v2065_v16  ;;  %332 = vst [vmem:[%s2461_s3 + $0x38] sm:$0xff] (!%p1616_p10), %v2065_v16 }
  0x2c PF: > { %v1833_v17 = vld [vmem:[%s2154_s7 + $0x4] ss:$8 sps:$4 sm:$0xff]   ;;  %v1837_v19 = vld [vmem:[%s2154_s7] ss:$8 sps:$4 sm:$0xff]   ;;  %v1839_v21 = vld [vmem:[%s2154_s7 + $0x14] ss:$8 sps:$4 sm:$0xff]  }
  0x2d   : > { %v1835_v18 = vld [vmem:[%s2154_s7 + $0x204] ss:$8 sps:$4 sm:$0xff]   ;;  %1205 = vmatprep.subr.bf16.mxu1 %v1833_v17  ;;  %v1838_v20 = vld [vmem:[%s2154_s7 + $0x200] ss:$8 sps:$4 sm:$0xff]   ;;  %v1841_v22 = vld [vmem:[%s2154_s7 + $0x214] ss:$8 sps:$4 sm:$0xff]  }
  0x2e   : > { %1311 = vmatprep.subr.bf16.mxu0 %v1835_v18  ;;  %1206 = vmatpush1.bf16.msra.mxu1 %v1837_v19  ;;  %v1843_v23 = vld [vmem:[%s2154_s7 + $0x10] ss:$8 sps:$4 sm:$0xff]   ;;  %v1845_v25 = vld [vmem:[%s2154_s7 + $0x24] ss:$8 sps:$4 sm:$0xff]   ;;  %v1849_v27 = vld [vmem:[%s2154_s7 + $0x20] ss:$8 sps:$4 sm:$0xff]  }
  0x2f   : > { %1312 = vmatpush1.bf16.msra.mxu0 %v1838_v20  ;;  %1207 = vmatprep.subr.bf16.mxu1 %v1839_v21  ;;  %v1844_v24 = vld [vmem:[%s2154_s7 + $0x210] ss:$8 sps:$4 sm:$0xff]   ;;  %v1847_v26 = vld [vmem:[%s2154_s7 + $0x224] ss:$8 sps:$4 sm:$0xff]   ;;  %v1850_v28 = vld [vmem:[%s2154_s7 + $0x220] ss:$8 sps:$4 sm:$0xff]  }
  0x30   : > { %1313 = vmatprep.subr.bf16.mxu0 %v1841_v22  ;;  %v1851_v29 = vld [vmem:[%s2154_s7 + $0x34] ss:$8 sps:$4 sm:$0xff]   ;;  %v1855_v31 = vld [vmem:[%s2154_s7 + $0x30] ss:$8 sps:$4 sm:$0xff]   ;;  %v1857_v33 = vld [vmem:[%s2154_s7 + $0x44] ss:$8 sps:$4 sm:$0xff]  }
  0x31   : > { %v1853_v30 = vld [vmem:[%s2154_s7 + $0x234] ss:$8 sps:$4 sm:$0xff]   ;;  %v1856_v32 = vld [vmem:[%s2154_s7 + $0x230] ss:$8 sps:$4 sm:$0xff]   ;;  %v1859_v34 = vld [vmem:[%s2154_s7 + $0x244] ss:$8 sps:$4 sm:$0xff]  }
  0x32   : > { %1208 = vmatpush1.bf16.msra.mxu1 %v1843_v23  ;;  %v1861_v35 = vld [vmem:[%s2154_s7 + $0x40] ss:$8 sps:$4 sm:$0xff]   ;;  %v1863_v37 = vld [vmem:[%s2154_s7 + $0x54] ss:$8 sps:$4 sm:$0xff]   ;;  %v1867_v39 = vld [vmem:[%s2154_s7 + $0x50] ss:$8 sps:$4 sm:$0xff]  }
  0x33   : > { %1314 = vmatpush1.bf16.msra.mxu0 %v1844_v24  ;;  %1209 = vmatprep.subr.bf16.mxu1 %v1845_v25  ;;  %v1862_v36 = vld [vmem:[%s2154_s7 + $0x240] ss:$8 sps:$4 sm:$0xff]   ;;  %v1865_v38 = vld [vmem:[%s2154_s7 + $0x254] ss:$8 sps:$4 sm:$0xff]   ;;  %v1868_v40 = vld [vmem:[%s2154_s7 + $0x250] ss:$8 sps:$4 sm:$0xff]  }
  0x34   : > { %1315 = vmatprep.subr.bf16.mxu0 %v1847_v26  ;;  %v1869_v41 = vld [vmem:[%s2154_s7 + $0x64] ss:$8 sps:$4 sm:$0xff]   ;;  %v1873_v43 = vld [vmem:[%s2154_s7 + $0x60] ss:$8 sps:$4 sm:$0xff]   ;;  %v1875_v45 = vld [vmem:[%s2154_s7 + $0x74] ss:$8 sps:$4 sm:$0xff]  }
  0x35   : > { %v1871_v42 = vld [vmem:[%s2154_s7 + $0x264] ss:$8 sps:$4 sm:$0xff]   ;;  %v1874_v44 = vld [vmem:[%s2154_s7 + $0x260] ss:$8 sps:$4 sm:$0xff]   ;;  %v1877_v46 = vld [vmem:[%s2154_s7 + $0x274] ss:$8 sps:$4 sm:$0xff]  }
  0x36   : > { %1210 = vmatpush1.bf16.msra.mxu1 %v1849_v27  ;;  %v1879_v47 = vld [vmem:[%s2154_s7 + $0x70] ss:$8 sps:$4 sm:$0xff]   ;;  %v1881_v49 = vld [vmem:[%s2154_s7 + $0x84] ss:$8 sps:$4 sm:$0xff]   ;;  %v1885_v51 = vld [vmem:[%s2154_s7 + $0x80] ss:$8 sps:$4 sm:$0xff]  }
  0x37   : > { %1316 = vmatpush1.bf16.msra.mxu0 %v1850_v28  ;;  %1211 = vmatprep.subr.bf16.mxu1 %v1851_v29  ;;  %v1880_v48 = vld [vmem:[%s2154_s7 + $0x270] ss:$8 sps:$4 sm:$0xff]   ;;  %v1883_v50 = vld [vmem:[%s2154_s7 + $0x284] ss:$8 sps:$4 sm:$0xff]   ;;  %v1886_v52 = vld [vmem:[%s2154_s7 + $0x280] ss:$8 sps:$4 sm:$0xff]  }
  0x38   : > { %1317 = vmatprep.subr.bf16.mxu0 %v1853_v30  ;;  %v1887_v53 = vld [vmem:[%s2154_s7 + $0x94] ss:$8 sps:$4 sm:$0xff]   ;;  %v1891_v55 = vld [vmem:[%s2154_s7 + $0x90] ss:$8 sps:$4 sm:$0xff]   ;;  %v1893_v57 = vld [vmem:[%s2154_s7 + $0xa4] ss:$8 sps:$4 sm:$0xff]  }
  0x39   : > { %v1889_v54 = vld [vmem:[%s2154_s7 + $0x294] ss:$8 sps:$4 sm:$0xff]   ;;  %v1892_v56 = vld [vmem:[%s2154_s7 + $0x290] ss:$8 sps:$4 sm:$0xff]   ;;  %v1895_v58 = vld [vmem:[%s2154_s7 + $0x2a4] ss:$8 sps:$4 sm:$0xff]  }
  0x3a   : > { %1212 = vmatpush1.bf16.msra.mxu1 %v1855_v31  ;;  %v1897_v59 = vld [vmem:[%s2154_s7 + $0xa0] ss:$8 sps:$4 sm:$0xff]   ;;  %v1899_v61 = vld [vmem:[%s2154_s7 + $0xb4] ss:$8 sps:$4 sm:$0xff]   ;;  %v1903_v63 = vld [vmem:[%s2154_s7 + $0xb0] ss:$8 sps:$4 sm:$0xff]  }
  0x3b   : > { %1318 = vmatpush1.bf16.msra.mxu0 %v1856_v32  ;;  %1213 = vmatprep.subr.bf16.mxu1 %v1857_v33  ;;  %v1898_v60 = vld [vmem:[%s2154_s7 + $0x2a0] ss:$8 sps:$4 sm:$0xff]   ;;  %v1901_v62 = vld [vmem:[%s2154_s7 + $0x2b4] ss:$8 sps:$4 sm:$0xff]   ;;  %v1904_v0 = vld [vmem:[%s2154_s7 + $0x2b0] ss:$8 sps:$4 sm:$0xff]  }
  0x3c   : > { %1319 = vmatprep.subr.bf16.mxu0 %v1859_v34  ;;  %v341_v1 = vld [vmem:[%s2156_s8] sm:$0xff]  ;;  %v343_v6 = vld [vmem:[%s2156_s8 + $0x10] sm:$0xff]  ;;  %p1761_p11 = scmp.ne.s32.totalorder %s2055_s14, 2 }
  0x3d   : > { %v345_v2 = vld [vmem:[%s2156_s8 + $0x20] sm:$0xff]  ;;  %v347_v7 = vld [vmem:[%s2156_s8 + $0x30] sm:$0xff] }
  0x3e   : > { %1214 = vmatpush1.bf16.msra.mxu1 %v1861_v35  ;;  %v1905_v3 = vld [vmem:[%s2154_s7 + $0xc4] ss:$8 sps:$4 sm:$0xff]   ;;  %v1618_v5 = vcombine.high %v341_v1, %v345_v2  ;;  %v1622_v8 = vcombine.high %v343_v6, %v347_v7  ;;  %v1909_v9 = vld [vmem:[%s2154_s7 + $0xc0] ss:$8 sps:$4 sm:$0xff]   ;;  %v1911_v11 = vld [vmem:[%s2154_s7 + $0xd4] ss:$8 sps:$4 sm:$0xff]   ;;  %v1617_v25 = vcombine.low %v341_v1, %v345_v2  ;;  %v1621_v27 = vcombine.low %v343_v6, %v347_v7 }
  0x3f   : > { %1320 = vmatpush1.bf16.msra.mxu0 %v1862_v36  ;;  %1215 = vmatprep.subr.bf16.mxu1 %v1863_v37  ;;  %v1907_v4 = vld [vmem:[%s2154_s7 + $0x2c4] ss:$8 sps:$4 sm:$0xff]   ;;  %v1910_v10 = vld [vmem:[%s2154_s7 + $0x2c0] ss:$8 sps:$4 sm:$0xff]   ;;  %v1913_v12 = vld [vmem:[%s2154_s7 + $0x2d4] ss:$8 sps:$4 sm:$0xff]  }
  0x40   : > { %1321 = vmatprep.subr.bf16.mxu0 %v1865_v38  ;;  %1237 = vmatprep.mubr.bf16.mxu1 %v1618_v5  ;;  %v1915_v13 = vld [vmem:[%s2154_s7 + $0xd0] ss:$8 sps:$4 sm:$0xff]   ;;  %v1917_v15 = vld [vmem:[%s2154_s7 + $0xe4] ss:$8 sps:$4 sm:$0xff]   ;;  %v1921_v17 = vld [vmem:[%s2154_s7 + $0xe0] ss:$8 sps:$4 sm:$0xff]  }
  0x41   : > { %1343 = vmatprep.mubr.bf16.mxu0 %v1622_v8  ;;  %v1916_v14 = vld [vmem:[%s2154_s7 + $0x2d0] ss:$8 sps:$4 sm:$0xff]   ;;  %v1919_v16 = vld [vmem:[%s2154_s7 + $0x2e4] ss:$8 sps:$4 sm:$0xff]   ;;  %v1922_v18 = vld [vmem:[%s2154_s7 + $0x2e0] ss:$8 sps:$4 sm:$0xff]  }
  0x42   : > { %1216 = vmatpush1.bf16.msra.mxu1 %v1867_v39  ;;  %v1923_v19 = vld [vmem:[%s2154_s7 + $0xf4] ss:$8 sps:$4 sm:$0xff]   ;;  %v1927_v21 = vld [vmem:[%s2154_s7 + $0xf0] ss:$8 sps:$4 sm:$0xff]   ;;  %v1931_v23 = vld [vmem:[%s2154_s7 + $0x104] ss:$8 sps:$4 sm:$0xff]  }
  0x43   : > { %1322 = vmatpush1.bf16.msra.mxu0 %v1868_v40  ;;  %1217 = vmatprep.subr.bf16.mxu1 %v1869_v41  ;;  %v1925_v20 = vld [vmem:[%s2154_s7 + $0x2f4] ss:$8 sps:$4 sm:$0xff]   ;;  %v1928_v22 = vld [vmem:[%s2154_s7 + $0x2f0] ss:$8 sps:$4 sm:$0xff]   ;;  %v1934_v24 = vld [vmem:[%s2154_s7 + $0x304] ss:$8 sps:$4 sm:$0xff]  }
  0x44   : > { %1323 = vmatprep.subr.bf16.mxu0 %v1871_v42  ;;  %v1929_v26 = vld [vmem:[%s2154_s7 + $0x100] ss:$8 sps:$4 sm:$0xff]   ;;  %v1937_v29 = vld [vmem:[%s2154_s7 + $0x114] ss:$8 sps:$4 sm:$0xff]   ;;  %v1935_v31 = vld [vmem:[%s2154_s7 + $0x110] ss:$8 sps:$4 sm:$0xff]  }
  0x45   : > { %v1932_v28 = vld [vmem:[%s2154_s7 + $0x300] ss:$8 sps:$4 sm:$0xff]   ;;  %v1940_v30 = vld [vmem:[%s2154_s7 + $0x314] ss:$8 sps:$4 sm:$0xff]   ;;  %v1938_v32 = vld [vmem:[%s2154_s7 + $0x310] ss:$8 sps:$4 sm:$0xff]  }
  0x46   : > { %1218 = vmatpush1.bf16.msra.mxu1 %v1873_v43  ;;  %v1943_v33 = vld [vmem:[%s2154_s7 + $0x124] ss:$8 sps:$4 sm:$0xff]   ;;  %v1941_v35 = vld [vmem:[%s2154_s7 + $0x120] ss:$8 sps:$4 sm:$0xff]   ;;  %v1949_v37 = vld [vmem:[%s2154_s7 + $0x134] ss:$8 sps:$4 sm:$0xff]  }
  0x47   : > { %1324 = vmatpush1.bf16.msra.mxu0 %v1874_v44  ;;  %1219 = vmatprep.subr.bf16.mxu1 %v1875_v45  ;;  %v1946_v34 = vld [vmem:[%s2154_s7 + $0x324] ss:$8 sps:$4 sm:$0xff]   ;;  %v1944_v36 = vld [vmem:[%s2154_s7 + $0x320] ss:$8 sps:$4 sm:$0xff]   ;;  %v1952_v38 = vld [vmem:[%s2154_s7 + $0x334] ss:$8 sps:$4 sm:$0xff]  }
  0x48   : > { %1325 = vmatprep.subr.bf16.mxu0 %v1877_v46  ;;  %v1947_v39 = vld [vmem:[%s2154_s7 + $0x130] ss:$8 sps:$4 sm:$0xff]   ;;  %v1955_v41 = vld [vmem:[%s2154_s7 + $0x144] ss:$8 sps:$4 sm:$0xff]   ;;  %v1953_v43 = vld [vmem:[%s2154_s7 + $0x140] ss:$8 sps:$4 sm:$0xff]  }
  0x49   : > { %v1950_v40 = vld [vmem:[%s2154_s7 + $0x330] ss:$8 sps:$4 sm:$0xff]   ;;  %v1958_v42 = vld [vmem:[%s2154_s7 + $0x344] ss:$8 sps:$4 sm:$0xff]   ;;  %v1956_v44 = vld [vmem:[%s2154_s7 + $0x340] ss:$8 sps:$4 sm:$0xff]  }
  0x4a   : > { %1220 = vmatpush1.bf16.msra.mxu1 %v1879_v47  ;;  %v1961_v45 = vld [vmem:[%s2154_s7 + $0x154] ss:$8 sps:$4 sm:$0xff]   ;;  %v349_v47 = vld [vmem:[%s2156_s8 + $0x40] sm:$0xff]  ;;  %v1971_v5 = vld [vmem:[%s2154_s7 + $0x170] ss:$8 sps:$4 sm:$0xff]  }
  0x4b   : > { %1326 = vmatpush1.bf16.msra.mxu0 %v1880_v48  ;;  %1221 = vmatprep.subr.bf16.mxu1 %v1881_v49  ;;  %v1964_v46 = vld [vmem:[%s2154_s7 + $0x354] ss:$8 sps:$4 sm:$0xff]   ;;  %v353_v48 = vld [vmem:[%s2156_s8 + $0x60] sm:$0xff]  ;;  %v1974_v6 = vld [vmem:[%s2154_s7 + $0x370] ss:$8 sps:$4 sm:$0xff]  }
  0x4c   : > { %1327 = vmatprep.subr.bf16.mxu0 %v1883_v50  ;;  %v1626_v49 = vcombine.high %v349_v47, %v353_v48  ;;  %v351_v50 = vld [vmem:[%s2156_s8 + $0x50] sm:$0xff]  ;;  %v1979_v7 = vld [vmem:[%s2154_s7 + $0x184] ss:$8 sps:$4 sm:$0xff]  }
  0x4d   : > { %v1976_v1 = vld [vmem:[%s2154_s7 + $0x374] ss:$8 sps:$4 sm:$0xff]   ;;  %v1982_v8 = vld [vmem:[%s2154_s7 + $0x384] ss:$8 sps:$4 sm:$0xff]  }
  0x4e   : > { %1222 = vmatpush1.bf16.msra.mxu1 %v1885_v51  ;;  %v355_v51 = vld [vmem:[%s2156_s8 + $0x70] sm:$0xff] }
  0x4f   : > { %1328 = vmatpush1.bf16.msra.mxu0 %v1886_v52  ;;  %1223 = vmatprep.subr.bf16.mxu1 %v1887_v53  ;;  %v1959_v52 = vld [vmem:[%s2154_s7 + $0x150] ss:$8 sps:$4 sm:$0xff]  }
  0x50   : > { %1329 = vmatprep.subr.bf16.mxu0 %v1889_v54  ;;  %v1962_v53 = vld [vmem:[%s2154_s7 + $0x350] ss:$8 sps:$4 sm:$0xff]   ;;  %v1630_v54 = vcombine.high %v351_v50, %v355_v51 }
  0x52   : > { %1224 = vmatpush1.bf16.msra.mxu1 %v1891_v55  ;;  %v1625_v55 = vcombine.low %v349_v47, %v353_v48 }
  0x53   : > { %1330 = vmatpush1.bf16.msra.mxu0 %v1892_v56  ;;  %1225 = vmatprep.subr.bf16.mxu1 %v1893_v57  ;;  %v1629_v56 = vcombine.low %v351_v50, %v355_v51  ;;  %v1967_v57 = vld [vmem:[%s2154_s7 + $0x164] ss:$8 sps:$4 sm:$0xff]  }
  0x54   : > { %1331 = vmatprep.subr.bf16.mxu0 %v1895_v58  ;;  %v1970_v58 = vld [vmem:[%s2154_s7 + $0x364] ss:$8 sps:$4 sm:$0xff]  }
  0x55   : > { %v333_v50 = vld [vmem:[%s2461_s3] sm:$0xff] }
  0x56   : > { %1226 = vmatpush1.bf16.msra.mxu1 %v1897_v59  ;;  %v1965_v59 = vld [vmem:[%s2154_s7 + $0x160] ss:$8 sps:$4 sm:$0xff]  }
  0x57   : > { %1332 = vmatpush1.bf16.msra.mxu0 %v1898_v60  ;;  %1227 = vmatprep.subr.bf16.mxu1 %v1899_v61  ;;  %v1968_v60 = vld [vmem:[%s2154_s7 + $0x360] ss:$8 sps:$4 sm:$0xff]  }
  0x58   : > { %1333 = vmatprep.subr.bf16.mxu0 %v1901_v62  ;;  %v2284_v61 = vld [vmem:[%s2156_s8 + $0x8] sm:$0xff] }
  0x59   : > { %v2287_v62 = vld [vmem:[%s2156_s8 + $0x28] sm:$0xff] }
  0x5a   : > { %1228 = vmatpush1.bf16.msra.mxu1 %v1903_v63  ;;  %v2290_v63 = vld [vmem:[%s2156_s8 + $0x18] sm:$0xff]  ;;  %v1620_v2 = vcombine.high %v2284_v61, %v2287_v62 }
  0x5b   : > { %1334 = vmatpush1.bf16.msra.mxu0 %v1904_v0  ;;  %1229 = vmatprep.subr.bf16.mxu1 %v1905_v3  ;;  %v1973_v0 = vld [vmem:[%s2154_s7 + $0x174] ss:$8 sps:$4 sm:$0xff]  }
  0x5c   : > { %1335 = vmatprep.subr.bf16.mxu0 %v1907_v4  ;;  %v2297_v3 = vld [vmem:[%s2156_s8 + $0x38] sm:$0xff] }
  0x5d   : > { %v1624_v4 = vcombine.high %v2290_v63, %v2297_v3 }
  0x5e   : > { %1230 = vmatpush1.bf16.msra.mxu1 %v1909_v9  ;;  %v1977_v9 = vld [vmem:[%s2154_s7 + $0x180] ss:$8 sps:$4 sm:$0xff]  }
  0x5f   : > { %1336 = vmatpush1.bf16.msra.mxu0 %v1910_v10  ;;  %1231 = vmatprep.subr.bf16.mxu1 %v1911_v11  ;;  %v1980_v10 = vld [vmem:[%s2154_s7 + $0x380] ss:$8 sps:$4 sm:$0xff]   ;;  %v1985_v11 = vld [vmem:[%s2154_s7 + $0x194] ss:$8 sps:$4 sm:$0xff]  }
  0x60   : > { %1337 = vmatprep.subr.bf16.mxu0 %v1913_v12  ;;  %v1988_v12 = vld [vmem:[%s2154_s7 + $0x394] ss:$8 sps:$4 sm:$0xff]  }
  0x62   : > { %1232 = vmatpush1.bf16.msra.mxu1 %v1915_v13  ;;  %v1983_v13 = vld [vmem:[%s2154_s7 + $0x190] ss:$8 sps:$4 sm:$0xff]  }
  0x63   : > { %1338 = vmatpush1.bf16.msra.mxu0 %v1916_v14  ;;  %1233 = vmatprep.subr.bf16.mxu1 %v1917_v15  ;;  %v1986_v14 = vld [vmem:[%s2154_s7 + $0x390] ss:$8 sps:$4 sm:$0xff]   ;;  %v1991_v15 = vld [vmem:[%s2154_s7 + $0x1a4] ss:$8 sps:$4 sm:$0xff]  }
  0x64   : > { %1339 = vmatprep.subr.bf16.mxu0 %v1919_v16  ;;  %v1994_v16 = vld [vmem:[%s2154_s7 + $0x3a4] ss:$8 sps:$4 sm:$0xff]  }
  0x66   : > { %1234 = vmatpush1.bf16.msra.mxu1 %v1921_v17  ;;  %v1989_v17 = vld [vmem:[%s2154_s7 + $0x1a0] ss:$8 sps:$4 sm:$0xff]  }
  0x67   : > { %1340 = vmatpush1.bf16.msra.mxu0 %v1922_v18  ;;  %1235 = vmatprep.subr.bf16.mxu1 %v1923_v19  ;;  %v1992_v18 = vld [vmem:[%s2154_s7 + $0x3a0] ss:$8 sps:$4 sm:$0xff]   ;;  %v1997_v19 = vld [vmem:[%s2154_s7 + $0x1b4] ss:$8 sps:$4 sm:$0xff]  }
  0x68   : > { %1341 = vmatprep.subr.bf16.mxu0 %v1925_v20  ;;  %v2000_v20 = vld [vmem:[%s2154_s7 + $0x3b4] ss:$8 sps:$4 sm:$0xff]  }
  0x6a   : > { %1236 = vmatpush1.bf16.msra.mxu1 %v1927_v21  ;;  %v1995_v21 = vld [vmem:[%s2154_s7 + $0x1b0] ss:$8 sps:$4 sm:$0xff]  }
  0x6b   : > { %1342 = vmatpush1.bf16.msra.mxu0 %v1928_v22  ;;  %1258 = vmatprep.subr.bf16.mxu1 %v1931_v23  ;;  %v1998_v22 = vld [vmem:[%s2154_s7 + $0x3b0] ss:$8 sps:$4 sm:$0xff]   ;;  %v2003_v23 = vld [vmem:[%s2154_s7 + $0x1c4] ss:$8 sps:$4 sm:$0xff]  }
  0x6c   : > { %1364 = vmatprep.subr.bf16.mxu0 %v1934_v24  ;;  %v2006_v24 = vld [vmem:[%s2154_s7 + $0x3c4] ss:$8 sps:$4 sm:$0xff]  }
  0x6d   : > { %1238 = vmatmul.mubr.bf16.vlgmr.msra.gmra.mrb[0].mxu1 %v1617_v25  ;;  %v2001_v25 = vld [vmem:[%s2154_s7 + $0x1c0] ss:$8 sps:$4 sm:$0xff]  }
  0x6e   : > { %1344 = vmatmul.mubr.bf16.vlgmr.msra.gmra.mrb[0].mxu0 %v1621_v27  ;;  %1259 = vmatpush1.bf16.msra.mxu1 %v1929_v26  ;;  %v2004_v26 = vld [vmem:[%s2154_s7 + $0x3c0] ss:$8 sps:$4 sm:$0xff]   ;;  %v2009_v27 = vld [vmem:[%s2154_s7 + $0x1d4] ss:$8 sps:$4 sm:$0xff]  }
  0x6f   : > { %1365 = vmatpush1.bf16.msra.mxu0 %v1932_v28  ;;  %1260 = vmatprep.subr.bf16.mxu1 %v1937_v29  ;;  %v2012_v28 = vld [vmem:[%s2154_s7 + $0x3d4] ss:$8 sps:$4 sm:$0xff]   ;;  %v2007_v29 = vld [vmem:[%s2154_s7 + $0x1d0] ss:$8 sps:$4 sm:$0xff]  }
  0x70   : > { %1366 = vmatprep.subr.bf16.mxu0 %v1940_v30  ;;  %1247 = vmatprep.mubr.bf16.mxu1 %v1626_v49  ;;  %v2010_v30 = vld [vmem:[%s2154_s7 + $0x3d0] ss:$8 sps:$4 sm:$0xff]  }
  0x71   : > { %1353 = vmatprep.mubr.bf16.mxu0 %v1630_v54  ;;  %v334_v54 = vld [vmem:[%s2461_s3 + $0x8] sm:$0xff] }
  0x72   : > { %1261 = vmatpush1.bf16.msra.mxu1 %v1935_v31  ;;  %v2015_v31 = vld [vmem:[%s2154_s7 + $0x1e4] ss:$8 sps:$4 sm:$0xff]  }
  0x73   : > { %1367 = vmatpush1.bf16.msra.mxu0 %v1938_v32  ;;  %1262 = vmatprep.subr.bf16.mxu1 %v1943_v33  ;;  %v2018_v32 = vld [vmem:[%s2154_s7 + $0x3e4] ss:$8 sps:$4 sm:$0xff]   ;;  %v2013_v33 = vld [vmem:[%s2154_s7 + $0x1e0] ss:$8 sps:$4 sm:$0xff]  }
  0x74   : > { %1368 = vmatprep.subr.bf16.mxu0 %v1946_v34  ;;  %v2016_v34 = vld [vmem:[%s2154_s7 + $0x3e0] ss:$8 sps:$4 sm:$0xff]  }
  0x75   : > { %1248 = vmatmul.mubr.bf16.gmra.mrb[4].mxu1 %v1625_v55 }
  0x76   : > { %1263 = vmatpush1.bf16.msra.mxu1 %v1941_v35  ;;  %1354 = vmatmul.mubr.bf16.gmra.mrb[4].mxu0 %v1629_v56  ;;  %v2021_v35 = vld [vmem:[%s2154_s7 + $0x1f4] ss:$8 sps:$4 sm:$0xff]  }
  0x77   : > { %1369 = vmatpush1.bf16.msra.mxu0 %v1944_v36  ;;  %1264 = vmatprep.subr.bf16.mxu1 %v1949_v37  ;;  %v2024_v36 = vld [vmem:[%s2154_s7 + $0x3f4] ss:$8 sps:$4 sm:$0xff]   ;;  %v2019_v37 = vld [vmem:[%s2154_s7 + $0x1f0] ss:$8 sps:$4 sm:$0xff]  }
  0x78   : > { %1370 = vmatprep.subr.bf16.mxu0 %v1952_v38  ;;  %1290 = vmatprep.mubr.bf16.mxu1 %v1620_v2  ;;  %v2022_v38 = vld [vmem:[%s2154_s7 + $0x3f0] ss:$8 sps:$4 sm:$0xff]  }
  0x79   : > { %1396 = vmatprep.mubr.bf16.mxu0 %v1624_v4 }
  0x7a   : > { %1265 = vmatpush1.bf16.msra.mxu1 %v1947_v39  ;;  %v350_v39 = vld [vmem:[%s2156_s8 + $0x48] sm:$0xff] }
  0x7b   : > { %1371 = vmatpush1.bf16.msra.mxu0 %v1950_v40  ;;  %1266 = vmatprep.subr.bf16.mxu1 %v1955_v41  ;;  %v354_v40 = vld [vmem:[%s2156_s8 + $0x68] sm:$0xff]  ;;  %v352_v41 = vld [vmem:[%s2156_s8 + $0x58] sm:$0xff] }
  0x7c   : > { %1372 = vmatprep.subr.bf16.mxu0 %v1958_v42  ;;  %v356_v42 = vld [vmem:[%s2156_s8 + $0x78] sm:$0xff]  ;;  %v1627_v47 = vcombine.low %v350_v39, %v354_v40 }
  0x7d   : > { %v1631_v48 = vcombine.low %v352_v41, %v356_v42 }
  0x7e   : > { %1267 = vmatpush1.bf16.msra.mxu1 %v1953_v43  ;;  %v1619_v43 = vcombine.low %v2284_v61, %v2287_v62 }
  0x7f   : > { %1373 = vmatpush1.bf16.msra.mxu0 %v1956_v44  ;;  %1268 = vmatprep.subr.bf16.mxu1 %v1961_v45  ;;  %v1623_v44 = vcombine.low %v2290_v63, %v2297_v3  ;;  %v1628_v45 = vcombine.high %v350_v39, %v354_v40  ;;  %v336_v63 = vld [vmem:[%s2461_s3 + $0x18] sm:$0xff] }
  0x80   : > { %1374 = vmatprep.subr.bf16.mxu0 %v1964_v46  ;;  %v1632_v46 = vcombine.high %v352_v41, %v356_v42 }
  0x82   : > { %1269 = vmatpush1.bf16.msra.mxu1 %v1959_v52 }
  0x83   : > { %1375 = vmatpush1.bf16.msra.mxu0 %v1962_v53  ;;  %1270 = vmatprep.subr.bf16.mxu1 %v1967_v57 }
  0x84   : > { %1376 = vmatprep.subr.bf16.mxu0 %v1970_v58  ;;  %v335_v58 = vld [vmem:[%s2461_s3 + $0x10] sm:$0xff] }
  0x86   : > { %1271 = vmatpush1.bf16.msra.mxu1 %v1965_v59 }
  0x87   : > { %1377 = vmatpush1.bf16.msra.mxu0 %v1968_v60  ;;  %1272 = vmatprep.subr.bf16.mxu1 %v1973_v0 }
  0x88   : > { %1378 = vmatprep.subr.bf16.mxu0 %v1976_v1 }
  0x8a   : > { %1273 = vmatpush1.bf16.msra.mxu1 %v1971_v5 }
  0x8b   : > { %1379 = vmatpush1.bf16.msra.mxu0 %v1974_v6  ;;  %1274 = vmatprep.subr.bf16.mxu1 %v1979_v7  ;;  %v337_v6 = vld [vmem:[%s2461_s3 + $0x20] sm:$0xff] }
  0x8c   : > { %1380 = vmatprep.subr.bf16.mxu0 %v1982_v8 }
  0x8e   : > { %1275 = vmatpush1.bf16.msra.mxu1 %v1977_v9 }
  0x8f   : > { %1381 = vmatpush1.bf16.msra.mxu0 %v1980_v10  ;;  %1276 = vmatprep.subr.bf16.mxu1 %v1985_v11  ;;  %v338_v10 = vld [vmem:[%s2461_s3 + $0x28] sm:$0xff] }
  0x90   : > { %1382 = vmatprep.subr.bf16.mxu0 %v1988_v12 }
  0x92   : > { %1277 = vmatpush1.bf16.msra.mxu1 %v1983_v13 }
  0x93   : > { %1383 = vmatpush1.bf16.msra.mxu0 %v1986_v14  ;;  %1278 = vmatprep.subr.bf16.mxu1 %v1991_v15  ;;  %v339_v14 = vld [vmem:[%s2461_s3 + $0x30] sm:$0xff] }
  0x94   : > { %1384 = vmatprep.subr.bf16.mxu0 %v1994_v16 }
  0x96   : > { %1279 = vmatpush1.bf16.msra.mxu1 %v1989_v17 }
  0x97   : > { %1385 = vmatpush1.bf16.msra.mxu0 %v1992_v18  ;;  %1280 = vmatprep.subr.bf16.mxu1 %v1997_v19  ;;  %v340_v19 = vld [vmem:[%s2461_s3 + $0x38] sm:$0xff] }
  0x98   : > { %1386 = vmatprep.subr.bf16.mxu0 %v2000_v20 }
  0x9a   : > { %1281 = vmatpush1.bf16.msra.mxu1 %v1995_v21 }
  0x9b   : > { %1387 = vmatpush1.bf16.msra.mxu0 %v1998_v22  ;;  %1282 = vmatprep.subr.bf16.mxu1 %v2003_v23 }
  0x9c   : > { %1388 = vmatprep.subr.bf16.mxu0 %v2006_v24 }
  0x9e   : > { %1283 = vmatpush1.bf16.msra.mxu1 %v2001_v25  ;;  %v1447_v25 = vlaneseq (!%p1761_p11) }
  0x9f   : > { %1389 = vmatpush1.bf16.msra.mxu0 %v2004_v26  ;;  %1284 = vmatprep.subr.bf16.mxu1 %v2009_v27  ;;  %v1445_v27 = vld [vmem:[%s2460_s2] sm:$0x3] (!%p1761_p11) }
  0xa0   : > { %1390 = vmatprep.subr.bf16.mxu0 %v2012_v28  ;;  %v1448_v26 = vshrl.u32 (!%p1761_p11), %v1447_v25, 7 }
  0xa2   : > { %1285 = vmatpush1.bf16.msra.mxu1 %v2007_v29  ;;  %v1449_v29 = vsub.s32 (!%p1761_p11), 0, %v1448_v26 }
  0xa3   : > { %1391 = vmatpush1.bf16.msra.mxu0 %v2010_v30  ;;  %1286 = vmatprep.subr.bf16.mxu1 %v2015_v31  ;;  %v1453_v31 = vsub.s32 (!%p1761_p11), 1, %v1448_v26 }
  0xa4   : > { %1392 = vmatprep.subr.bf16.mxu0 %v2018_v32 }
  0xa6   : > { %1287 = vmatpush1.bf16.msra.mxu1 %v2013_v33 }
  0xa7   : > { %1393 = vmatpush1.bf16.msra.mxu0 %v2016_v34  ;;  %1288 = vmatprep.subr.bf16.mxu1 %v2021_v35  ;;  %v1450_v35 = vrot.slane (!%p1761_p11), %v1445_v27, %v1449_v29 }
  0xa8   : > { %1394 = vmatprep.subr.bf16.mxu0 %v2024_v36  ;;  %v1454_v36 = vrot.slane (!%p1761_p11), %v1445_v27, %v1453_v31 }
  0xaa   : > { %1289 = vmatpush1.bf16.msra.mxu1 %v2019_v37 }
  0xab   : > { %1395 = vmatpush1.bf16.msra.mxu0 %v2022_v38 }
  0xad   : > { %1291 = vmatmul.mubr.bf16.vlgmr.msra.gmra.mrb[0].mxu1 %v1619_v43 }
  0xae   : > { %1397 = vmatmul.mubr.bf16.vlgmr.msra.gmra.mrb[0].mxu0 %v1623_v44  ;;  %1300 = vmatprep.mubr.bf16.mxu1 %v1628_v45 }
  0xaf   : > { %1406 = vmatprep.mubr.bf16.mxu0 %v1632_v46 }
  0xb5   : > { %1301 = vmatmul.mubr.bf16.gmra.mrb[4].mxu1 %v1627_v47 }
  0xb6   : > { %1407 = vmatmul.mubr.bf16.gmra.mrb[4].mxu0 %v1631_v48 }
 0x180   : > { %v1292_v49 = vpop.f32.mrb[0].mxu1 }
 0x181   : > { %v1398_v51 = vpop.f32.mrb[0].mxu0  ;;  %v1294_v53 = vpop.f32.mrb[1].mxu1 }
 0x182   : > { %v1768_v52 = vadd.f32 %v1398_v51, %v1292_v49  ;;  %v1400_v55 = vpop.f32.mrb[1].mxu0  ;;  %v1296_v57 = vpop.f32.mrb[2].mxu1 }
 0x183   : > { %v1769_v56 = vadd.f32 %v1400_v55, %v1294_v53  ;;  %v1402_v59 = vpop.f32.mrb[2].mxu0  ;;  %v1298_v62 = vpop.f32.mrb[3].mxu1 }
 0x184   : > { %v1417_v60 = vadd.f32 %v1768_v52, %v333_v50  ;;  %v1770_v61 = vadd.f32 %v1402_v59, %v1296_v57  ;;  %v1404_v0 = vpop.f32.mrb[3].mxu0 }
 0x185   : > { %v1418_v1 = vadd.f32 %v1769_v56, %v334_v54  ;;  %v1771_v2 = vadd.f32 %v1404_v0, %v1298_v62 }
 0x186   : > { %1425 = vst [vmem:[%s2461_s3] sm:$0xff] %v1417_v60  ;;  %v1419_v3 = vadd.f32 %v1770_v61, %v335_v58 }
 0x187   : > { %1426 = vst [vmem:[%s2461_s3 + $0x8] sm:$0xff] %v1418_v1  ;;  %v1420_v4 = vadd.f32 %v1771_v2, %v336_v63 }
 0x188   : > { %1427 = vst [vmem:[%s2461_s3 + $0x10] sm:$0xff] %v1419_v3  ;;  %v1302_v5 = vpop.f32.mrb[4].mxu1 }
 0x189   : > { %1428 = vst [vmem:[%s2461_s3 + $0x18] sm:$0xff] %v1420_v4  ;;  %v1408_v7 = vpop.f32.mrb[4].mxu0  ;;  %v1304_v9 = vpop.f32.mrb[5].mxu1 }
 0x18a   : > { %v1772_v8 = vadd.f32 %v1408_v7, %v1302_v5  ;;  %v1410_v11 = vpop.f32.mrb[5].mxu0  ;;  %v1306_v13 = vpop.f32.mrb[6].mxu1 }
 0x18b   : > { %v1773_v12 = vadd.f32 %v1410_v11, %v1304_v9  ;;  %v1412_v15 = vpop.f32.mrb[6].mxu0  ;;  %v1308_v18 = vpop.f32.mrb[7].mxu1  ;;  %1436 = sbr.rel (%p1761_p11) target bundleno = 414 (0x19e), region = 63 }
 0x18c   : > { %v1421_v16 = vadd.f32 %v1772_v8, %v337_v6  ;;  %v1774_v17 = vadd.f32 %v1412_v15, %v1306_v13  ;;  %v1414_v20 = vpop.f32.mrb[7].mxu0 }
 0x18d   : > { %v1422_v21 = vadd.f32 %v1773_v12, %v338_v10  ;;  %v1775_v22 = vadd.f32 %v1414_v20, %v1308_v18  ;;  %v1437_v28 = vld [vmem:[%s2461_s3] sm:$0xff] (!%p1761_p11) }
 0x18e   : > { %1429 = vst [vmem:[%s2461_s3 + $0x20] sm:$0xff] %v1421_v16  ;;  %v1423_v23 = vadd.f32 %v1774_v17, %v339_v14  ;;  %v1438_v30 = vld [vmem:[%s2461_s3 + $0x8] sm:$0xff] (!%p1761_p11)  ;;  %v1457_v40 = vadd.f32 (!%p1761_p11), %v1450_v35, %v1437_v28 }
 0x18f   : > { %1430 = vst [vmem:[%s2461_s3 + $0x28] sm:$0xff] %v1422_v21  ;;  %v1424_v24 = vadd.f32 %v1775_v22, %v340_v19  ;;  %v1439_v32 = vld [vmem:[%s2461_s3 + $0x10] sm:$0xff] (!%p1761_p11)  ;;  %v1458_v41 = vadd.f32 (!%p1761_p11), %v1454_v36, %v1438_v30 }
 0x190   : > { %1431 = vst [vmem:[%s2461_s3 + $0x30] sm:$0xff] %v1423_v23  ;;  %v1440_v33 = vld [vmem:[%s2461_s3 + $0x18] sm:$0xff] (!%p1761_p11)  ;;  %v1459_v42 = vadd.f32 (!%p1761_p11), %v1450_v35, %v1439_v32  ;;  %v1465_v48 = vmax.f32 (!%p1761_p11), %v1457_v40, 0.0 }
 0x191   : > { %1432 = vst [vmem:[%s2461_s3 + $0x38] sm:$0xff] %v1424_v24  ;;  %v1460_v43 = vadd.f32 (!%p1761_p11), %v1454_v36, %v1440_v33  ;;  %v1466_v49 = vmax.f32 (!%p1761_p11), %v1458_v41, 0.0 }
 0x192   : > { %v1467_v50 = vmax.f32 %v1459_v42, 0.0  ;;  %1473 = vst [vmem:[%s2461_s3] sm:$0xff] %v1465_v48 }
 0x193   : > { %v1468_v51 = vmax.f32 %v1460_v43, 0.0  ;;  %1474 = vst [vmem:[%s2461_s3 + $0x8] sm:$0xff] %v1466_v49 }
 0x194   : > { %1475 = vst [vmem:[%s2461_s3 + $0x10] sm:$0xff] %v1467_v50 }
 0x195   : > { %v1441_v34 = vld [vmem:[%s2461_s3 + $0x20] sm:$0xff]  ;;  %1476 = vst [vmem:[%s2461_s3 + $0x18] sm:$0xff] %v1468_v51 }
 0x196   : > { %v1442_v37 = vld [vmem:[%s2461_s3 + $0x28] sm:$0xff]  ;;  %v1461_v44 = vadd.f32 %v1450_v35, %v1441_v34 }
 0x197   : > { %v1443_v38 = vld [vmem:[%s2461_s3 + $0x30] sm:$0xff]  ;;  %v1462_v45 = vadd.f32 %v1454_v36, %v1442_v37 }
 0x198   : > { %v1444_v39 = vld [vmem:[%s2461_s3 + $0x38] sm:$0xff]  ;;  %v1463_v46 = vadd.f32 %v1450_v35, %v1443_v38  ;;  %v1469_v52 = vmax.f32 %v1461_v44, 0.0 }
 0x199   : > { %v1464_v47 = vadd.f32 %v1454_v36, %v1444_v39  ;;  %v1470_v53 = vmax.f32 %v1462_v45, 0.0 }
 0x19a   : > { %v1471_v54 = vmax.f32 %v1463_v46, 0.0  ;;  %1477 = vst [vmem:[%s2461_s3 + $0x20] sm:$0xff] %v1469_v52 }
 0x19b   : > { %v1472_v55 = vmax.f32 %v1464_v47, 0.0  ;;  %1478 = vst [vmem:[%s2461_s3 + $0x28] sm:$0xff] %v1470_v53 }
 0x19c   : > { %1479 = vst [vmem:[%s2461_s3 + $0x30] sm:$0xff] %v1471_v54 }
 0x19d   : > { %1480 = vst [vmem:[%s2461_s3 + $0x38] sm:$0xff] %v1472_v55 }
 0x19e PF: > { %s13_s16 = sadd.s32 1, %s2063_s16   ;;  %s2462_s12 = smov %s2051_s13 }
 0x19f   : > { %p10_p12 = scmp.ge.s32.totalorder %s13_s16, 5   ;;  %s2463_s13 = smov %s2121_s20 }
 0x1a0   : > { %s2464_s14 = smov %s2059_s15  ;;  %s2465_s15 = smov %s2467_s17 }
 0x1a1   :  { %12 = sbr.rel (!%p10_p12) target bundleno = 3 (0x3), region = 104 }

// kernel: net_conv_forward.19
= control target key start
LH: loop header
LB: loop body
LE: loop exit
PB: predicated region body
PF: predicated region fallthrough
CT: control target
= control target key end

     0   :  { %s118_s0 = inlined_call_operand.vmem [shape: f32[9,8,256], index: 0, kind: input, shape index: {}]   ;;  %s119_s1 = inlined_call_operand.vmem [shape: f32[8,256], index: 1, kind: output, shape index: {}]  }
   0x1   :  { %v8_v0 = vld [vmem:[%s118_s0] sm:$0xff]  ;;  %v10_v1 = vld [vmem:[%s118_s0 + $0x10] sm:$0xff]  ;;  %v9_v12 = vld [vmem:[%s118_s0 + $0x8] sm:$0xff] }
   0x2   :  { %v12_v2 = vld [vmem:[%s118_s0 + $0x20] sm:$0xff]  ;;  %v14_v3 = vld [vmem:[%s118_s0 + $0x30] sm:$0xff]  ;;  %v11_v13 = vld [vmem:[%s118_s0 + $0x18] sm:$0xff] }
   0x3   :  { %v16_v4 = vld [vmem:[%s118_s0 + $0x40] sm:$0xff]  ;;  %v18_v5 = vld [vmem:[%s118_s0 + $0x50] sm:$0xff]  ;;  %v26_v6 = vmax.f32 %v8_v0, %v12_v2  ;;  %v27_v10 = vmax.f32 %v10_v1, %v14_v3  ;;  %v13_v14 = vld [vmem:[%s118_s0 + $0x28] sm:$0xff] }
   0x4   :  { %v20_v7 = vld [vmem:[%s118_s0 + $0x60] sm:$0xff]  ;;  %v22_v8 = vld [vmem:[%s118_s0 + $0x70] sm:$0xff]  ;;  %v15_v16 = vld [vmem:[%s118_s0 + $0x38] sm:$0xff]  ;;  %v34_v19 = vmax.f32 %v9_v12, %v13_v14 }
   0x5   :  { %v24_v9 = vld [vmem:[%s118_s0 + $0x80] sm:$0xff]  ;;  %v28_v11 = vmax.f32 %v26_v6, %v16_v4  ;;  %v29_v15 = vmax.f32 %v27_v10, %v18_v5  ;;  %v17_v17 = vld [vmem:[%s118_s0 + $0x48] sm:$0xff]  ;;  %v19_v18 = vld [vmem:[%s118_s0 + $0x58] sm:$0xff]  ;;  %v35_v22 = vmax.f32 %v11_v13, %v15_v16 }
   0x6   :  { %v21_v21 = vld [vmem:[%s118_s0 + $0x68] sm:$0xff]  ;;  %v23_v24 = vld [vmem:[%s118_s0 + $0x78] sm:$0xff]  ;;  %v36_v25 = vmax.f32 %v34_v19, %v17_v17 }
   0x7   :  { %v30_v20 = vmax.f32 %v28_v11, %v20_v7  ;;  %v31_v23 = vmax.f32 %v29_v15, %v22_v8  ;;  %v25_v27 = vld [vmem:[%s118_s0 + $0x88] sm:$0xff]  ;;  %v37_v28 = vmax.f32 %v35_v22, %v19_v18 }
   0x8   :  { %v38_v29 = vmax.f32 %v36_v25, %v21_v21 }
   0x9   :  { %v32_v26 = vmax.f32 %v30_v20, %v24_v9  ;;  %v39_v31 = vmax.f32 %v37_v28, %v23_v24 }
   0xa   :  { %v40_v32 = vmax.f32 %v38_v29, %v25_v27 }
   0xb   :  { %v33_v30 = vmax.f32 %v32_v26, %v31_v23 }
   0xc   :  { %v41_v33 = vmax.f32 %v40_v32, %v39_v31 }
   0xd   :  { %42 = vst [vmem:[%s119_s1] sm:$0xff] %v33_v30 }
   0xe   :  { %43 = vst [vmem:[%s119_s1 + $0x8] sm:$0xff] %v41_v33 }

// kernel: net_conv_forward.20
= control target key start
LH: loop header
LB: loop body
LE: loop exit
PB: predicated region body
PF: predicated region fallthrough
CT: control target
= control target key end

     0   :  { %s4373_s0 = inlined_call_operand.hbm [shape: bf16[16,9216], index: 0, kind: input, shape index: {}]   ;;  %s4374_s1 = inlined_call_operand.hbm [shape: bf16[9216,4096], index: 1, kind: input, shape index: {}]   ;;  %s4375_s2 = inlined_call_operand.hbm [shape: f32[1,4096], index: 2, kind: input, shape index: {}]   ;;  %s4376_s3 = inlined_call_operand.hbm [shape: f32[16,4096], index: 3, kind: output, shape index: {}]  }
   0x1   :  { %4386 = sst [smem:[#allocation18_spill]] %s4373_s0 }
   0x2   :  { %4387 = sst [smem:[#allocation19_spill]] %s4374_s1 }
   0x3   :  { %4388 = sst [smem:[#allocation20_spill]] %s4376_s3 }
   0x4   :  { %8 = vsyncpa [#allocation3], 0 }
   0x5   :  { %10 = vsyncpa [#allocation3 + $0x1], 0 }
   0x6   :  { %11 = vsyncpa [#allocation6], 0 }
   0x7   :  { %13 = vsyncpa [#allocation6 + $0x1], 0 }
   0x8   :  { %14 = vsyncpa [#allocation4], 0 }
   0x9   :  { %16 = vsyncpa [#allocation4 + $0x1], 0  ;;  %s3609_s12 = smov 0   ;;  %s3611_s13 = smov 0  }
   0xa   :  { %s3613_s14 = smov 0   ;;  %s3615_s15 = smov 0  }
   0xb   :  { %s3617_s16 = smov 0   ;;  %s3619_s17 = smov 0  }
   0xc   :  { %s3621_s18 = smov 0   ;;  %s3623_s19 = smov 0  }
   0xd   :  { %s3625_s20 = smov 0   ;;  %s3627_s21 = smov 0  }
   0xe   :  { %s3629_s22 = smov 0   ;;  %s3631_s23 = smov 0  }
   0xf   :  { %s3633_s24 = smov 0   ;;  %s3635_s25 = smov 0  }
  0x10 LB: > { %4389 = sst [smem:[#allocation13_spill]] %s3561_s22  ;;  %s34_s26 = sadd.s32 1, %s3565_s23  ;;  %s3573_s25 = sphi %s3635_s25, %s22_s25   ;;  %s3569_s24 = sphi %s3633_s24, %s4441_s24   ;;  %s3565_s23 = sphi %s3631_s23, %s4428_s23   ;;  %s3561_s22 = sphi %s3629_s22, %s4440_s22   ;;  %s3557_s21 = sphi %s3627_s21, %s4427_s21   ;;  %s3553_s20 = sphi %s3625_s20, %s4439_s20   ;;  %s3549_s19 = sphi %s3623_s19, %s4438_s19   ;;  %s3545_s18 = sphi %s3621_s18, %s4437_s18   ;;  %s3541_s17 = sphi %s3619_s17, %s4436_s17   ;;  %s3537_s16 = sphi %s3617_s16, %s4435_s16   ;;  %s3533_s15 = sphi %s3615_s15, %s4434_s15   ;;  %s3529_s14 = sphi %s3613_s14, %s4433_s14   ;;  %s3525_s13 = sphi %s3611_s13, %s4432_s13   ;;  %s3521_s12 = sphi %s3609_s12, %s4431_s12  }
  0x11   : > { %4390 = sst [smem:[#allocation14_spill]] %s3565_s23  ;;  %p3681_p0 = scmp.ge.s32.totalorder %s34_s26, 9 }
  0x12   : > { %p4380_p1 = scmp.eq.s32.totalorder %s3573_s25, 0  ;;  %p85_p2 = scmp.ne.s32.totalorder %s3541_s17, %s3537_s16 }
  0x13   : > { %s4443_s26 = smov (%p3681_p0, %s34_s26), 0  ;;  %p4379_p6 = scmp.lt.s32.totalorder %s3573_s25, 72 }
  0x14   : > { %4392 = sst [smem:[#allocation15_spill]] %s4443_s26  ;;  %p3695_p3 = por %p85_p2, %p4380_p1 }
  0x15   : > { %s3703_s4 = ssub.s32 %s3565_s23, %s4443_s26  ;;  %s193_s5 = sand.u32 1, %s3573_s25  }
  0x16   : > { %s195_s6 = sand.u32 1, %s3541_s17   ;;  %s2489_s8 = sshll.u32 %s3569_s24, 2 }
  0x17   : > { %s2487_s7 = sshll.u32 %s195_s6, 11  ;;  %s2772_s9 = sshll.u32 %s3565_s23, 12 }
  0x18   : > { %s197_s10 = scalar_lea.vmem [#allocation5], %s2487_s7  ;;  %s204_s29 = sadd.s32 %s2772_s9, %s2489_s8 }
  0x19   : > { %s207_s11 = sshll.u32 %s197_s10, 4  ;;  %s2491_s27 = sshll.u32 %s204_s29, 6  ;;  %s3711_s11 = int_to_ptr.vmem [resolvable:$true] %s207_s11 }
  0x1a   : > { %p3717_p7 = pnand %p4379_p6, %p3695_p3  ;;  %s4395_s1 = sld [smem:[#allocation19_spill]] }
  0x1b   : > { %s3727_s7 = scalar_lea.sflag [#allocation6], %s193_s5 }
  0x1c   : > { %p3331_p10 = pneg %p3717_p7 }
  0x20   : > { %s3724_s6 = scalar_lea.hbm %s4395_s1, %s2491_s27  ;;  %s3334_s27 = scalar_lea.hbm %s4395_s1, 2359296 }
  0x21   : > { %s3329_s29 = scalar_lea.hbm %s3724_s6, 32768  ;;  %p3335_p13 = scmp.lt.u32.totalorder %s3724_s6, %s4395_s1 }
  0x22   : > { %p3330_p9 = scmp.ne.s32.totalorder %s3724_s6, %s3329_s29  ;;  %p3336_p2 = scmp.lt.u32.totalorder %s3334_s27, %s3329_s29 }
  0x23   : > { %p3338_p4 = scmp.lt.u32.totalorder %s3329_s29, %s3724_s6 }
  0x24   : > { %p3332_p11 = pnand %p3331_p10, %p3330_p9  ;;  %p3337_p3 = por %p3336_p2, %p3335_p13 }
  0x26   : > { %p3333_p12 = pneg %p3332_p11  ;;  %p3339_p6 = por %p3338_p4, %p3337_p3 }
  0x28   : > { %p3340_p1 = pnand %p3339_p6, %p3333_p12 }
  0x2a   : > { %3343 = shalt.err (!%p3340_p1)
}
  0x2b   : > { %s3344_s5 = scalar_lea.vmem %s3711_s11, 32768  ;;  %s3575_s9 = smov [#allocation5]  }
  0x2c   : > { %p3345_p9 = scmp.ne.s32.totalorder %s3711_s11, %s3344_s5  ;;  %s3349_s10 = sshll.u32 %s3575_s9, 4  ;;  %s3350_s10 = int_to_ptr.vmem [resolvable:$false] %s3349_s10 }
  0x2d   : > { %s3351_s22 = scalar_lea.vmem %s3350_s10, 65536  ;;  %p3352_p8 = scmp.lt.s32.totalorder %s3711_s11, %s3350_s10 }
  0x2e   : > { %p3347_p11 = pnand %p3345_p9, %p3331_p10  ;;  %p3353_p13 = scmp.lt.s32.totalorder %s3351_s22, %s3344_s5 }
  0x30   : > { %p3348_p5 = pneg %p3347_p11  ;;  %p3354_p2 = por %p3353_p13, %p3352_p8 }
  0x32   : > { %p3355_p4 = pnand %p3354_p2, %p3348_p5 }
  0x34   : > { %3358 = shalt.err (!%p3355_p4)
}
  0x35   : > { %s3576_s29 = smov 2048   ;;  %s3577_s26 = smov 256  }
  0x36   : > { %s3578_s27 = smov 16   ;;  %p234_p1 = scmp.lt.s32.totalorder %s3573_s25, 73 }
  0x37   : > { %2813 = dma.hbm_to_vmem [thread:$0]  (!%p3717_p7), %s3724_s6, 32768, %s3711_s11, %s3727_s7, %s3576_s29, %s3577_s26, %s3578_s27  }
  0x38   : > { %p4396_p5 = scmp.ge.s32.totalorder %s3573_s25, 1  ;;  %s50_s8 = sadd.s32 1, %s3553_s20 }
  0x39   : > { %p57_p8 = scmp.ne.s32.totalorder %s3553_s20, %s3549_s19  ;;  %p4398_p10 = scmp.eq.s32.totalorder %s3703_s4, 0 }
  0x3a   : > { %p3758_p6 = pnand %p4396_p5, %p234_p1  ;;  %p4400_p12 = scmp.eq.s32.totalorder %s3573_s25, 0 }
  0x3b   : > { %s3768_s5 = scalar_select %p4398_p10, %s3553_s20, %s50_s8  }
  0x3c   : > { %s4397_s30 = scalar_select %p3758_p6, 1, 0 }
  0x3d   : > { %4399 = sst [smem:[#allocation16_spill]] %s3768_s5  ;;  %p59_p3 = por %p4400_p12, %p57_p8 }
  0x3e   : > { %s169_s9 = sand.u32 1, %s3553_s20   ;;  %s2771_s10 = sshll.u32 %s3565_s23, 9 }
  0x3f   : > { %s2484_s22 = sshll.u32 %s169_s9, 6  ;;  %s4401_s0 = sld [smem:[#allocation18_spill]] }
  0x40   : > { %s173_s6 = scalar_lea.vmem [#allocation2], %s2484_s22  ;;  %p4402_p7 = scmp.lt.s32.totalorder %s3573_s25, 72 }
  0x41   : > { %s183_s29 = sshll.u32 %s173_s6, 4  ;;  %s3789_s27 = scalar_lea.sflag [#allocation3], %s169_s9  ;;  %s3787_s29 = int_to_ptr.vmem [resolvable:$true] %s183_s29 }
  0x42   : > { %p3783_p11 = pnand %p4402_p7, %p59_p3 }
  0x44   : > { %p3361_p2 = pneg %p3783_p11 }
  0x45   : > { %s3779_s11 = scalar_lea.hbm %s4401_s0, %s2771_s10  ;;  %s3364_s22 = scalar_lea.hbm %s4401_s0, 9216 }
  0x46   : > { %s3359_s1 = scalar_lea.hbm %s3779_s11, 1024  ;;  %p3365_p5 = scmp.lt.u32.totalorder %s3779_s11, %s4401_s0 }
  0x47   : > { %p3360_p13 = scmp.ne.s32.totalorder %s3779_s11, %s3359_s1  ;;  %p3366_p8 = scmp.lt.u32.totalorder %s3364_s22, %s3359_s1 }
  0x48   : > { %p3368_p12 = scmp.lt.u32.totalorder %s3359_s1, %s3779_s11 }
  0x49   : > { %p3362_p4 = pnand %p3361_p2, %p3360_p13  ;;  %p3367_p10 = por %p3366_p8, %p3365_p5 }
  0x4b   : > { %p3363_p1 = pneg %p3362_p4  ;;  %p3369_p3 = por %p3368_p12, %p3367_p10 }
  0x4d   : > { %p3370_p7 = pnand %p3369_p3, %p3363_p1 }
  0x4f   : > { %3373 = shalt.err (!%p3370_p7)
}
  0x50   : > { %s3374_s9 = scalar_lea.vmem %s3787_s29, 1024  ;;  %s3579_s8 = smov [#allocation2]  }
  0x51   : > { %p3375_p13 = scmp.ne.s32.totalorder %s3787_s29, %s3374_s9  ;;  %s3379_s10 = sshll.u32 %s3579_s8, 4  ;;  %s3380_s10 = int_to_ptr.vmem [resolvable:$false] %s3379_s10 }
  0x52   : > { %s3381_s3 = scalar_lea.vmem %s3380_s10, 2048  ;;  %p3382_p6 = scmp.lt.s32.totalorder %s3787_s29, %s3380_s10 }
  0x53   : > { %p3377_p4 = pnand %p3375_p13, %p3361_p2  ;;  %p3383_p5 = scmp.lt.s32.totalorder %s3381_s3, %s3374_s9 }
  0x55   : > { %p3378_p9 = pneg %p3377_p4  ;;  %p3384_p8 = por %p3383_p5, %p3382_p6 }
  0x57   : > { %p3385_p10 = pnand %p3384_p8, %p3378_p9 }
  0x59   : > { %3388 = shalt.err (!%p3385_p10)
}
  0x5a   : > { %s3580_s1 = smov 4608   ;;  %s3581_s22 = smov 512  }
  0x5b   : > { %s3582_s6 = smov 32   ;;  %s3818_s9 = sadd.s32 4294967295, %s3573_s25  }
  0x5c   : > { %2810 = dma.hbm_to_vmem [thread:$0]  (!%p3783_p11), %s3779_s11, 1024, %s3787_s29, %s3789_s27, %s3580_s1, %s3581_s22, %s3582_s6  }
  0x5d   : > { %s2481_s8 = sadd.s32 4294967294, %s3573_s25   ;;  %p64_p6 = scmp.eq.s32.totalorder %s3818_s9, 0 }
  0x5e   : > { %s4404_s10 = sadd.s32 1, %s3569_s24  ;;  %p4405_p9 = scmp.ne.s32.totalorder %s3549_s19, %s3545_s18 }
  0x5f   : > { %s4445_s10 = smov (!%p3681_p0, %s4404_s10), %s3569_s24  ;;  %p4407_p1 = scmp.ne.s32.totalorder %s3537_s16, %s3533_s15 }
  0x60   : > { %p3830_p2 = por %p64_p6, %p4405_p9  ;;  %p39_p12 = scmp.ge.s32.totalorder %s4445_s10, 8 }
  0x61   : > { %p3837_p11 = por %p4407_p1, %p64_p6  ;;  %s104_s29 = sadd.s32 1, %s3529_s14 }
  0x62   : > { %p111_p3 = scmp.ne.s32.totalorder %s3529_s14, %s3525_s13  ;;  %p117_p7 = scmp.ne.s32.totalorder %s3525_s13, %s3521_s12 }
  0x63   : > { %s4408_s11 = scalar_select %p3837_p11, 1, 0 }
  0x64   : > { %s4447_s10 = smov (%p39_p12, %s4445_s10), 0  ;;  %p4410_p0 = scmp.eq.s32.totalorder %s3573_s25, 0 }
  0x65   : > { %4409 = sst [smem:[#allocation17_spill]] %s4447_s10  ;;  %p3857_p4 = por %p117_p7, %p64_p6 }
  0x66   : > { %p3850_p13 = por %p111_p3, %p4410_p0  ;;  %s74_s28 = ssub.s32 %s3569_s24, %s4447_s10 }
  0x67   : > { %s4412_s18 = scalar_select %p3857_p4, 1, 0 }
  0x68   : > { %p143_p5 = scmp.eq.s32.totalorder %s3818_s9, 71  ;;  %s75_s26 = sor.u32 %s74_s28, %s3703_s4 }
  0x69   : > { %p102_p8 = scmp.eq.s32.totalorder %s74_s28, 0  ;;  %p76_p10 = scmp.eq.s32.totalorder %s75_s26, 0 }
  0x6a   : > { %p3865_p9 = por %p143_p5, %p111_p3  ;;  %s4414_s22 = sadd.s32 1, %s3541_s17 }
  0x6b   : > { %s3870_s1 = scalar_select %p102_p8, %s3529_s14, %s104_s29  }
  0x6c   : > { %s4413_s27 = scalar_select %p3865_p9, 1, 0 }
  0x6d   : > { %s3875_s6 = scalar_select %p76_p10, %s3541_s17, %s4414_s22  }
  0x6e   : > { %p149_p6 = scmp.eq.s32.totalorder %s2481_s8, 71  ;;  %s219_s0 = sand.u32 1, %s3529_s14  }
  0x6f   : > { %s2492_s23 = sshll.u32 %s219_s0, 2  ;;  %s2773_s5 = sshll.u32 %s3569_s24, 6 }
  0x70   : > { %p3882_p1 = por %p149_p6, %p117_p7  ;;  %s3889_s26 = scalar_lea.hbm %s4375_s2, %s2773_s5 }
  0x71   : > { %s221_s29 = scalar_lea.vmem [#allocation7], %s2492_s23  ;;  %p4416_p12 = scmp.lt.s32.totalorder %s3573_s25, 72 }
  0x72   : > { %s4415_s10 = scalar_select %p3882_p1, 1, 0 }
  0x73   : > { %s229_s22 = sshll.u32 %s221_s29, 4  ;;  %p3897_p3 = pnand %p4416_p12, %p3850_p13  ;;  %s3891_s22 = int_to_ptr.vmem [resolvable:$true] %s229_s22 }
  0x74   : > { %s3389_s8 = scalar_lea.hbm %s3889_s26, 64  ;;  %s3394_s4 = scalar_lea.hbm %s4375_s2, 512 }
  0x75   : > { %p3390_p7 = scmp.ne.s32.totalorder %s3889_s26, %s3389_s8  ;;  %p3391_p0 = pneg %p3897_p3 }
  0x76   : > { %p3395_p13 = scmp.lt.u32.totalorder %s3889_s26, %s4375_s2  ;;  %p3396_p10 = scmp.lt.u32.totalorder %s3394_s4, %s3389_s8 }
  0x77   : > { %p3392_p5 = pnand %p3391_p0, %p3390_p7  ;;  %p3398_p12 = scmp.lt.u32.totalorder %s3389_s8, %s3889_s26 }
  0x78   : > { %p3397_p6 = por %p3396_p10, %p3395_p13 }
  0x79   : > { %p3393_p8 = pneg %p3392_p5 }
  0x7a   : > { %p3399_p1 = por %p3398_p12, %p3397_p6 }
  0x7c   : > { %p3400_p9 = pnand %p3399_p1, %p3393_p8 }
  0x7e   : > { %3403 = shalt.err (!%p3400_p9)
}
  0x7f   : > { %s3404_s29 = scalar_lea.vmem %s3891_s22, 64  ;;  %s3583_s23 = smov [#allocation7]  }
  0x80   : > { %p3405_p7 = scmp.ne.s32.totalorder %s3891_s22, %s3404_s29  ;;  %s3409_s5 = sshll.u32 %s3583_s23, 4  ;;  %s3410_s5 = int_to_ptr.vmem [resolvable:$false] %s3409_s5 }
  0x81   : > { %s3411_s15 = scalar_lea.vmem %s3410_s5, 128  ;;  %p3412_p11 = scmp.lt.s32.totalorder %s3891_s22, %s3410_s5 }
  0x82   : > { %p3407_p5 = pnand %p3405_p7, %p3391_p0  ;;  %p3413_p13 = scmp.lt.s32.totalorder %s3411_s15, %s3404_s29 }
  0x84   : > { %p3408_p4 = pneg %p3407_p5  ;;  %p3414_p10 = por %p3413_p13, %p3412_p11 }
  0x86   : > { %p3415_p6 = pnand %p3414_p10, %p3408_p4 }
  0x88   : > { %3418 = shalt.err (!%p3415_p6)
}
  0x89   : > { %2816 = dma.hbm_to_vmem [thread:$0]  (!%p3897_p3), %s3889_s26, 64, %s3891_s22, %s3727_s7  }
  0x8a   : > { %p4418_p9 = scmp.ne.s32.totalorder %s4397_s30, 0 }
  0x8b   : > { %s240_s8 = sand.u32 (!%p4418_p9), 1, %s3549_s19  }
  0x8c   : > { %238 = sbr.rel (%p4418_p9) target bundleno = 682 (0x2aa), region = 32  ;;  %s2496_s4 = sshll.u32 (!%p4418_p9), %s240_s8, 6 }
  0x8d   : > { %s241_s28 = scalar_lea.sflag (!%p4418_p9), [#allocation3], %s240_s8  ;;  %s3930_s23 = scalar_lea.vmem (!%p4418_p9), [#allocation2], %s2496_s4 }
  0x93   : > { %3504 = dma.done.wait (%p3830_p2), %s241_s28, 1024  }
  0x94   : > { %3506 = vsyncadd (%p3830_p2), %s241_s28, 4294966272  ;;  %s249_s0 = sand.u32 1, %s3818_s9   ;;  %s251_s7 = sand.u32 1, %s3537_s16  }
  0x95   : > { %s2497_s26 = sshll.u32 %s251_s7, 11  ;;  %s250_s30 = scalar_lea.sflag [#allocation6], %s249_s0 }
  0x96   : > { %s3938_s22 = scalar_lea.vmem [#allocation5], %s2497_s26  ;;  %p4419_p11 = scmp.ne.s32.totalorder %s4408_s11, 0 }
  0x98   : > { %3508 = dma.done.wait (%p4419_p11), %s250_s30, 32768  }
  0x99   : > { %3510 = vsyncadd (%p4419_p11), %s250_s30, 4294934528  ;;  %s3945_s29 = sand.u32 1, %s3525_s13   ;;  %p4420_p2 = scmp.ne.s32.totalorder %s4412_s18, 0 }
  0x9a   : > { %s2498_s3 = sshll.u32 %s3945_s29, 2 }
  0x9b   : > { %s3948_s5 = scalar_lea.vmem [#allocation7], %s2498_s3 }
  0x9c   : > { %3512 = dma.done.wait (%p4420_p2), %s250_s30, 64  }
  0x9d   : > { %3514 = vsyncadd (%p4420_p2), %s250_s30, 4294967232  ;;  %s2499_s9 = sshll.u32 %s3945_s29, 6  ;;  %p2500_p4 = scmp.ne.s32.totalorder %s3557_s21, 0 }
  0x9e   : > { %s3955_s15 = scalar_lea.vmem [#allocation8], %s2499_s9  ;;  %v3584_v0 = vmov (!%p2500_p4), 0.0  }
  0x9f   : > { %305 = sbr.rel (%p2500_p4) target bundleno = 166 (0xa6), region = 48  ;;  %306 = vst [vmem:[%s3955_s15] sm:$0xff] (!%p2500_p4), %v3584_v0  ;;  %307 = vst [vmem:[%s3955_s15 + $0x8] sm:$0xff] (!%p2500_p4), %v3584_v0 }
  0xa0   : > { %308 = vst [vmem:[%s3955_s15 + $0x10] sm:$0xff] (!%p2500_p4), %v3584_v0  ;;  %309 = vst [vmem:[%s3955_s15 + $0x18] sm:$0xff] (!%p2500_p4), %v3584_v0 }
  0xa1   : > { %310 = vst [vmem:[%s3955_s15 + $0x20] sm:$0xff] (!%p2500_p4), %v3584_v0  ;;  %311 = vst [vmem:[%s3955_s15 + $0x28] sm:$0xff] (!%p2500_p4), %v3584_v0 }
  0xa2   : > { %312 = vst [vmem:[%s3955_s15 + $0x30] sm:$0xff] (!%p2500_p4), %v3584_v0  ;;  %313 = vst [vmem:[%s3955_s15 + $0x38] sm:$0xff] (!%p2500_p4), %v3584_v0 }
  0xa6 PF: > { %v2945_v1 = vld [vmem:[%s3938_s22 + $0x4] ss:$16 sps:$4 sm:$0xff]   ;;  %v2947_v2 = vld [vmem:[%s3938_s22 + $0xc] ss:$16 sps:$4 sm:$0xff]   ;;  %v2949_v3 = vld [vmem:[%s3938_s22] ss:$16 sps:$4 sm:$0xff]  }
  0xa7   : > { %1906 = vmatprep.subr.bf16.mxu0 %v2945_v1  ;;  %v2950_v4 = vld [vmem:[%s3938_s22 + $0x8] ss:$16 sps:$4 sm:$0xff]   ;;  %2078 = vmatprep.subr.bf16.mxu1 %v2947_v2  ;;  %v2951_v5 = vld [vmem:[%s3938_s22 + $0x24] ss:$16 sps:$4 sm:$0xff]   ;;  %v2953_v6 = vld [vmem:[%s3938_s22 + $0x2c] ss:$16 sps:$4 sm:$0xff]  }
  0xa8   : > { %1907 = vmatpush1.bf16.msra.mxu0 %v2949_v3  ;;  %2079 = vmatpush1.bf16.msra.mxu1 %v2950_v4  ;;  %v2955_v7 = vld [vmem:[%s3938_s22 + $0x20] ss:$16 sps:$4 sm:$0xff]   ;;  %v2956_v8 = vld [vmem:[%s3938_s22 + $0x28] ss:$16 sps:$4 sm:$0xff]   ;;  %v2957_v9 = vld [vmem:[%s3938_s22 + $0x44] ss:$16 sps:$4 sm:$0xff]  }
  0xa9   : > { %1908 = vmatprep.subr.bf16.mxu0 %v2951_v5  ;;  %2080 = vmatprep.subr.bf16.mxu1 %v2953_v6  ;;  %v2959_v10 = vld [vmem:[%s3938_s22 + $0x4c] ss:$16 sps:$4 sm:$0xff]   ;;  %v2961_v11 = vld [vmem:[%s3938_s22 + $0x40] ss:$16 sps:$4 sm:$0xff]   ;;  %v2962_v12 = vld [vmem:[%s3938_s22 + $0x48] ss:$16 sps:$4 sm:$0xff]  }
  0xaa   : > { %v2963_v13 = vld [vmem:[%s3938_s22 + $0x64] ss:$16 sps:$4 sm:$0xff]   ;;  %v2965_v14 = vld [vmem:[%s3938_s22 + $0x6c] ss:$16 sps:$4 sm:$0xff]   ;;  %v2967_v15 = vld [vmem:[%s3938_s22 + $0x60] ss:$16 sps:$4 sm:$0xff]  }
  0xab   : > { %v2968_v16 = vld [vmem:[%s3938_s22 + $0x68] ss:$16 sps:$4 sm:$0xff]   ;;  %v2969_v17 = vld [vmem:[%s3938_s22 + $0x84] ss:$16 sps:$4 sm:$0xff]   ;;  %v2971_v18 = vld [vmem:[%s3938_s22 + $0x8c] ss:$16 sps:$4 sm:$0xff]  }
  0xac   : > { %1909 = vmatpush1.bf16.msra.mxu0 %v2955_v7  ;;  %2081 = vmatpush1.bf16.msra.mxu1 %v2956_v8  ;;  %v2973_v19 = vld [vmem:[%s3938_s22 + $0x80] ss:$16 sps:$4 sm:$0xff]   ;;  %v2974_v20 = vld [vmem:[%s3938_s22 + $0x88] ss:$16 sps:$4 sm:$0xff]   ;;  %v2975_v21 = vld [vmem:[%s3938_s22 + $0xa4] ss:$16 sps:$4 sm:$0xff]  }
  0xad   : > { %1910 = vmatprep.subr.bf16.mxu0 %v2957_v9  ;;  %2082 = vmatprep.subr.bf16.mxu1 %v2959_v10  ;;  %v2977_v22 = vld [vmem:[%s3938_s22 + $0xac] ss:$16 sps:$4 sm:$0xff]   ;;  %v2979_v23 = vld [vmem:[%s3938_s22 + $0xa0] ss:$16 sps:$4 sm:$0xff]   ;;  %v2980_v24 = vld [vmem:[%s3938_s22 + $0xa8] ss:$16 sps:$4 sm:$0xff]  }
  0xae   : > { %v2981_v25 = vld [vmem:[%s3938_s22 + $0xc4] ss:$16 sps:$4 sm:$0xff]   ;;  %v2983_v26 = vld [vmem:[%s3938_s22 + $0xcc] ss:$16 sps:$4 sm:$0xff]   ;;  %v2985_v27 = vld [vmem:[%s3938_s22 + $0xc0] ss:$16 sps:$4 sm:$0xff]  }
  0xaf   : > { %v2986_v28 = vld [vmem:[%s3938_s22 + $0xc8] ss:$16 sps:$4 sm:$0xff]   ;;  %v2987_v29 = vld [vmem:[%s3938_s22 + $0xe4] ss:$16 sps:$4 sm:$0xff]   ;;  %v2989_v30 = vld [vmem:[%s3938_s22 + $0xec] ss:$16 sps:$4 sm:$0xff]  }
  0xb0   : > { %1911 = vmatpush1.bf16.msra.mxu0 %v2961_v11  ;;  %2083 = vmatpush1.bf16.msra.mxu1 %v2962_v12  ;;  %v2991_v31 = vld [vmem:[%s3938_s22 + $0xe0] ss:$16 sps:$4 sm:$0xff]   ;;  %v2992_v32 = vld [vmem:[%s3938_s22 + $0xe8] ss:$16 sps:$4 sm:$0xff]   ;;  %v2993_v33 = vld [vmem:[%s3938_s22 + $0x104] ss:$16 sps:$4 sm:$0xff]  }
  0xb1   : > { %1912 = vmatprep.subr.bf16.mxu0 %v2963_v13  ;;  %2084 = vmatprep.subr.bf16.mxu1 %v2965_v14  ;;  %v2995_v34 = vld [vmem:[%s3938_s22 + $0x10c] ss:$16 sps:$4 sm:$0xff]   ;;  %v2997_v35 = vld [vmem:[%s3938_s22 + $0x100] ss:$16 sps:$4 sm:$0xff]   ;;  %v2998_v36 = vld [vmem:[%s3938_s22 + $0x108] ss:$16 sps:$4 sm:$0xff]  }
  0xb2   : > { %v2999_v37 = vld [vmem:[%s3938_s22 + $0x124] ss:$16 sps:$4 sm:$0xff]   ;;  %v3001_v38 = vld [vmem:[%s3938_s22 + $0x12c] ss:$16 sps:$4 sm:$0xff]   ;;  %v3003_v39 = vld [vmem:[%s3938_s22 + $0x120] ss:$16 sps:$4 sm:$0xff]  }
  0xb3   : > { %v3004_v40 = vld [vmem:[%s3938_s22 + $0x128] ss:$16 sps:$4 sm:$0xff]   ;;  %v3005_v41 = vld [vmem:[%s3938_s22 + $0x144] ss:$16 sps:$4 sm:$0xff]   ;;  %v3007_v42 = vld [vmem:[%s3938_s22 + $0x14c] ss:$16 sps:$4 sm:$0xff]  }
  0xb4   : > { %1913 = vmatpush1.bf16.msra.mxu0 %v2967_v15  ;;  %2085 = vmatpush1.bf16.msra.mxu1 %v2968_v16  ;;  %v3009_v43 = vld [vmem:[%s3938_s22 + $0x140] ss:$16 sps:$4 sm:$0xff]   ;;  %v3010_v44 = vld [vmem:[%s3938_s22 + $0x148] ss:$16 sps:$4 sm:$0xff]   ;;  %v3011_v45 = vld [vmem:[%s3938_s22 + $0x164] ss:$16 sps:$4 sm:$0xff]  }
  0xb5   : > { %1914 = vmatprep.subr.bf16.mxu0 %v2969_v17  ;;  %2086 = vmatprep.subr.bf16.mxu1 %v2971_v18  ;;  %v3013_v46 = vld [vmem:[%s3938_s22 + $0x16c] ss:$16 sps:$4 sm:$0xff]   ;;  %v322_v47 = vld [vmem:[%s3930_s23] sm:$0xff]  ;;  %v3016_v50 = vld [vmem:[%s3938_s22 + $0x168] ss:$16 sps:$4 sm:$0xff]   ;;  %p2765_p1 = scmp.ne.s32.totalorder %s3557_s21, 8 }
  0xb6   : > { %v326_v48 = vld [vmem:[%s3930_s23 + $0x20] sm:$0xff]  ;;  %v3019_v53 = vld [vmem:[%s3938_s22 + $0x18c] ss:$16 sps:$4 sm:$0xff]   ;;  %v3022_v55 = vld [vmem:[%s3938_s22 + $0x188] ss:$16 sps:$4 sm:$0xff]  }
  0xb7   : > { %v3015_v49 = vld [vmem:[%s3938_s22 + $0x160] ss:$16 sps:$4 sm:$0xff]   ;;  %v2502_v51 = vcombine.high %v322_v47, %v326_v48  ;;  %v3017_v52 = vld [vmem:[%s3938_s22 + $0x184] ss:$16 sps:$4 sm:$0xff]   ;;  %v3025_v57 = vld [vmem:[%s3938_s22 + $0x1ac] ss:$16 sps:$4 sm:$0xff]   ;;  %v2501_v6 = vcombine.low %v322_v47, %v326_v48 }
  0xb8   : > { %1915 = vmatpush1.bf16.msra.mxu0 %v2973_v19  ;;  %2087 = vmatpush1.bf16.msra.mxu1 %v2974_v20  ;;  %v3021_v54 = vld [vmem:[%s3938_s22 + $0x180] ss:$16 sps:$4 sm:$0xff]   ;;  %v3023_v56 = vld [vmem:[%s3938_s22 + $0x1a4] ss:$16 sps:$4 sm:$0xff]   ;;  %v3028_v59 = vld [vmem:[%s3938_s22 + $0x1a8] ss:$16 sps:$4 sm:$0xff]  }
  0xb9   : > { %1916 = vmatprep.subr.bf16.mxu0 %v2975_v21  ;;  %2088 = vmatprep.subr.bf16.mxu1 %v2977_v22  ;;  %v3027_v58 = vld [vmem:[%s3938_s22 + $0x1a0] ss:$16 sps:$4 sm:$0xff]   ;;  %v3029_v60 = vld [vmem:[%s3938_s22 + $0x1c4] ss:$16 sps:$4 sm:$0xff]   ;;  %v3031_v61 = vld [vmem:[%s3938_s22 + $0x1cc] ss:$16 sps:$4 sm:$0xff]  }
  0xba   : > { %1938 = vmatprep.mubr.bf16.mxu0 %v2502_v51  ;;  %2110 = vmatprep.mubr.bf16.mxu1 %v2502_v51  ;;  %v3033_v62 = vld [vmem:[%s3938_s22 + $0x1c0] ss:$16 sps:$4 sm:$0xff]   ;;  %v3034_v63 = vld [vmem:[%s3938_s22 + $0x1c8] ss:$16 sps:$4 sm:$0xff]   ;;  %v3035_v0 = vld [vmem:[%s3938_s22 + $0x1e4] ss:$16 sps:$4 sm:$0xff]  }
  0xbb   : > { %v3037_v1 = vld [vmem:[%s3938_s22 + $0x1ec] ss:$16 sps:$4 sm:$0xff]   ;;  %v3039_v2 = vld [vmem:[%s3938_s22 + $0x1e0] ss:$16 sps:$4 sm:$0xff]   ;;  %v3040_v3 = vld [vmem:[%s3938_s22 + $0x1e8] ss:$16 sps:$4 sm:$0xff]  }
  0xbc   : > { %1917 = vmatpush1.bf16.msra.mxu0 %v2979_v23  ;;  %2089 = vmatpush1.bf16.msra.mxu1 %v2980_v24  ;;  %v3043_v4 = vld [vmem:[%s3938_s22 + $0x204] ss:$16 sps:$4 sm:$0xff]   ;;  %v3046_v5 = vld [vmem:[%s3938_s22 + $0x20c] ss:$16 sps:$4 sm:$0xff]   ;;  %v3041_v7 = vld [vmem:[%s3938_s22 + $0x200] ss:$16 sps:$4 sm:$0xff]  }
  0xbd   : > { %1918 = vmatprep.subr.bf16.mxu0 %v2981_v25  ;;  %2090 = vmatprep.subr.bf16.mxu1 %v2983_v26  ;;  %v3044_v8 = vld [vmem:[%s3938_s22 + $0x208] ss:$16 sps:$4 sm:$0xff]   ;;  %v3049_v9 = vld [vmem:[%s3938_s22 + $0x224] ss:$16 sps:$4 sm:$0xff]   ;;  %v3052_v10 = vld [vmem:[%s3938_s22 + $0x22c] ss:$16 sps:$4 sm:$0xff]  }
  0xbe   : > { %v3047_v11 = vld [vmem:[%s3938_s22 + $0x220] ss:$16 sps:$4 sm:$0xff]   ;;  %v3050_v12 = vld [vmem:[%s3938_s22 + $0x228] ss:$16 sps:$4 sm:$0xff]   ;;  %v3055_v13 = vld [vmem:[%s3938_s22 + $0x244] ss:$16 sps:$4 sm:$0xff]  }
  0xbf   : > { %v3058_v14 = vld [vmem:[%s3938_s22 + $0x24c] ss:$16 sps:$4 sm:$0xff]   ;;  %v3053_v15 = vld [vmem:[%s3938_s22 + $0x240] ss:$16 sps:$4 sm:$0xff]   ;;  %v3056_v16 = vld [vmem:[%s3938_s22 + $0x248] ss:$16 sps:$4 sm:$0xff]  }
  0xc0   : > { %1919 = vmatpush1.bf16.msra.mxu0 %v2985_v27  ;;  %2091 = vmatpush1.bf16.msra.mxu1 %v2986_v28  ;;  %v3061_v17 = vld [vmem:[%s3938_s22 + $0x264] ss:$16 sps:$4 sm:$0xff]   ;;  %v3064_v18 = vld [vmem:[%s3938_s22 + $0x26c] ss:$16 sps:$4 sm:$0xff]   ;;  %v3059_v19 = vld [vmem:[%s3938_s22 + $0x260] ss:$16 sps:$4 sm:$0xff]  }
  0xc1   : > { %1920 = vmatprep.subr.bf16.mxu0 %v2987_v29  ;;  %2092 = vmatprep.subr.bf16.mxu1 %v2989_v30  ;;  %v3062_v20 = vld [vmem:[%s3938_s22 + $0x268] ss:$16 sps:$4 sm:$0xff]   ;;  %v3067_v21 = vld [vmem:[%s3938_s22 + $0x284] ss:$16 sps:$4 sm:$0xff]   ;;  %v3070_v22 = vld [vmem:[%s3938_s22 + $0x28c] ss:$16 sps:$4 sm:$0xff]  }
  0xc2   : > { %v3065_v23 = vld [vmem:[%s3938_s22 + $0x280] ss:$16 sps:$4 sm:$0xff]   ;;  %v3068_v24 = vld [vmem:[%s3938_s22 + $0x288] ss:$16 sps:$4 sm:$0xff]   ;;  %v3073_v25 = vld [vmem:[%s3938_s22 + $0x2a4] ss:$16 sps:$4 sm:$0xff]  }
  0xc3   : > { %v3076_v26 = vld [vmem:[%s3938_s22 + $0x2ac] ss:$16 sps:$4 sm:$0xff]   ;;  %v3071_v27 = vld [vmem:[%s3938_s22 + $0x2a0] ss:$16 sps:$4 sm:$0xff]   ;;  %v3074_v28 = vld [vmem:[%s3938_s22 + $0x2a8] ss:$16 sps:$4 sm:$0xff]  }
  0xc4   : > { %1921 = vmatpush1.bf16.msra.mxu0 %v2991_v31  ;;  %2093 = vmatpush1.bf16.msra.mxu1 %v2992_v32  ;;  %v3079_v29 = vld [vmem:[%s3938_s22 + $0x2c4] ss:$16 sps:$4 sm:$0xff]   ;;  %v3082_v30 = vld [vmem:[%s3938_s22 + $0x2cc] ss:$16 sps:$4 sm:$0xff]   ;;  %v3098_v47 = vld [vmem:[%s3938_s22 + $0x328] ss:$16 sps:$4 sm:$0xff]  }
  0xc5   : > { %1922 = vmatprep.subr.bf16.mxu0 %v2993_v33  ;;  %2094 = vmatprep.subr.bf16.mxu1 %v2995_v34  ;;  %v4059_v31 = vld [vmem:[%s3930_s23 + $0x8] sm:$0xff]  ;;  %v3077_v33 = vld [vmem:[%s3938_s22 + $0x2c0] ss:$16 sps:$4 sm:$0xff]   ;;  %v3103_v48 = vld [vmem:[%s3938_s22 + $0x344] ss:$16 sps:$4 sm:$0xff]  }
  0xc6   : > { %v4062_v32 = vld [vmem:[%s3930_s23 + $0x28] sm:$0xff] }
  0xc7   : > { %v3080_v34 = vld [vmem:[%s3938_s22 + $0x2c8] ss:$16 sps:$4 sm:$0xff]  }
  0xc8   : > { %1923 = vmatpush1.bf16.msra.mxu0 %v2997_v35  ;;  %2095 = vmatpush1.bf16.msra.mxu1 %v2998_v36  ;;  %v2504_v35 = vcombine.high %v4059_v31, %v4062_v32  ;;  %v3085_v36 = vld [vmem:[%s3938_s22 + $0x2e4] ss:$16 sps:$4 sm:$0xff]   ;;  %v3104_v51 = vld [vmem:[%s3938_s22 + $0x348] ss:$16 sps:$4 sm:$0xff]  }
  0xc9   : > { %1924 = vmatprep.subr.bf16.mxu0 %v2999_v37  ;;  %2096 = vmatprep.subr.bf16.mxu1 %v3001_v38  ;;  %v3088_v37 = vld [vmem:[%s3938_s22 + $0x2ec] ss:$16 sps:$4 sm:$0xff]   ;;  %v3083_v38 = vld [vmem:[%s3938_s22 + $0x2e0] ss:$16 sps:$4 sm:$0xff]  }
  0xcc   : > { %1925 = vmatpush1.bf16.msra.mxu0 %v3003_v39  ;;  %2097 = vmatpush1.bf16.msra.mxu1 %v3004_v40  ;;  %v3086_v39 = vld [vmem:[%s3938_s22 + $0x2e8] ss:$16 sps:$4 sm:$0xff]   ;;  %v3091_v40 = vld [vmem:[%s3938_s22 + $0x304] ss:$16 sps:$4 sm:$0xff]  }
  0xcd   : > { %1926 = vmatprep.subr.bf16.mxu0 %v3005_v41  ;;  %2098 = vmatprep.subr.bf16.mxu1 %v3007_v42  ;;  %v3094_v41 = vld [vmem:[%s3938_s22 + $0x30c] ss:$16 sps:$4 sm:$0xff]   ;;  %v3089_v42 = vld [vmem:[%s3938_s22 + $0x300] ss:$16 sps:$4 sm:$0xff]  }
  0xd0   : > { %1927 = vmatpush1.bf16.msra.mxu0 %v3009_v43  ;;  %2099 = vmatpush1.bf16.msra.mxu1 %v3010_v44  ;;  %v3092_v43 = vld [vmem:[%s3938_s22 + $0x308] ss:$16 sps:$4 sm:$0xff]   ;;  %v3097_v44 = vld [vmem:[%s3938_s22 + $0x324] ss:$16 sps:$4 sm:$0xff]  }
  0xd1   : > { %1928 = vmatprep.subr.bf16.mxu0 %v3011_v45  ;;  %2100 = vmatprep.subr.bf16.mxu1 %v3013_v46  ;;  %v3100_v45 = vld [vmem:[%s3938_s22 + $0x32c] ss:$16 sps:$4 sm:$0xff]   ;;  %v3095_v46 = vld [vmem:[%s3938_s22 + $0x320] ss:$16 sps:$4 sm:$0xff]  }
  0xd4   : > { %1929 = vmatpush1.bf16.msra.mxu0 %v3015_v49  ;;  %2101 = vmatpush1.bf16.msra.mxu1 %v3016_v50  ;;  %v3106_v49 = vld [vmem:[%s3938_s22 + $0x34c] ss:$16 sps:$4 sm:$0xff]   ;;  %v3101_v50 = vld [vmem:[%s3938_s22 + $0x340] ss:$16 sps:$4 sm:$0xff]  }
  0xd5   : > { %1930 = vmatprep.subr.bf16.mxu0 %v3017_v52  ;;  %2102 = vmatprep.subr.bf16.mxu1 %v3019_v53  ;;  %v3109_v52 = vld [vmem:[%s3938_s22 + $0x364] ss:$16 sps:$4 sm:$0xff]   ;;  %v3112_v53 = vld [vmem:[%s3938_s22 + $0x36c] ss:$16 sps:$4 sm:$0xff]  }
  0xd8   : > { %1931 = vmatpush1.bf16.msra.mxu0 %v3021_v54  ;;  %2103 = vmatpush1.bf16.msra.mxu1 %v3022_v55  ;;  %v3107_v54 = vld [vmem:[%s3938_s22 + $0x360] ss:$16 sps:$4 sm:$0xff]   ;;  %v3110_v55 = vld [vmem:[%s3938_s22 + $0x368] ss:$16 sps:$4 sm:$0xff]  }
  0xd9   : > { %1932 = vmatprep.subr.bf16.mxu0 %v3023_v56  ;;  %2104 = vmatprep.subr.bf16.mxu1 %v3025_v57  ;;  %v3115_v56 = vld [vmem:[%s3938_s22 + $0x384] ss:$16 sps:$4 sm:$0xff]   ;;  %v3118_v57 = vld [vmem:[%s3938_s22 + $0x38c] ss:$16 sps:$4 sm:$0xff]  }
  0xdc   : > { %1933 = vmatpush1.bf16.msra.mxu0 %v3027_v58  ;;  %2105 = vmatpush1.bf16.msra.mxu1 %v3028_v59  ;;  %v3113_v58 = vld [vmem:[%s3938_s22 + $0x380] ss:$16 sps:$4 sm:$0xff]   ;;  %v3116_v59 = vld [vmem:[%s3938_s22 + $0x388] ss:$16 sps:$4 sm:$0xff]  }
  0xdd   : > { %1934 = vmatprep.subr.bf16.mxu0 %v3029_v60  ;;  %2106 = vmatprep.subr.bf16.mxu1 %v3031_v61  ;;  %v3121_v60 = vld [vmem:[%s3938_s22 + $0x3a4] ss:$16 sps:$4 sm:$0xff]   ;;  %v3124_v61 = vld [vmem:[%s3938_s22 + $0x3ac] ss:$16 sps:$4 sm:$0xff]  }
  0xe0   : > { %1935 = vmatpush1.bf16.msra.mxu0 %v3033_v62  ;;  %2107 = vmatpush1.bf16.msra.mxu1 %v3034_v63  ;;  %v3119_v62 = vld [vmem:[%s3938_s22 + $0x3a0] ss:$16 sps:$4 sm:$0xff]   ;;  %v3122_v63 = vld [vmem:[%s3938_s22 + $0x3a8] ss:$16 sps:$4 sm:$0xff]  }
  0xe1   : > { %1936 = vmatprep.subr.bf16.mxu0 %v3035_v0  ;;  %2108 = vmatprep.subr.bf16.mxu1 %v3037_v1  ;;  %v3127_v0 = vld [vmem:[%s3938_s22 + $0x3c4] ss:$16 sps:$4 sm:$0xff]   ;;  %v3130_v1 = vld [vmem:[%s3938_s22 + $0x3cc] ss:$16 sps:$4 sm:$0xff]  }
  0xe4   : > { %1937 = vmatpush1.bf16.msra.mxu0 %v3039_v2  ;;  %2109 = vmatpush1.bf16.msra.mxu1 %v3040_v3  ;;  %v3125_v2 = vld [vmem:[%s3938_s22 + $0x3c0] ss:$16 sps:$4 sm:$0xff]   ;;  %v3128_v3 = vld [vmem:[%s3938_s22 + $0x3c8] ss:$16 sps:$4 sm:$0xff]  }
  0xe5   : > { %1949 = vmatprep.subr.bf16.mxu0 %v3043_v4  ;;  %2121 = vmatprep.subr.bf16.mxu1 %v3046_v5  ;;  %v3133_v4 = vld [vmem:[%s3938_s22 + $0x3e4] ss:$16 sps:$4 sm:$0xff]   ;;  %v3136_v5 = vld [vmem:[%s3938_s22 + $0x3ec] ss:$16 sps:$4 sm:$0xff]  }
  0xe7   : > { %1939 = vmatmul.mubr.bf16.vlgmr.msra.gmra.mrb[0].mxu0 %v2501_v6  ;;  %2111 = vmatmul.mubr.bf16.vlgmr.msra.gmra.mrb[0].mxu1 %v2501_v6  ;;  %v3131_v6 = vld [vmem:[%s3938_s22 + $0x3e0] ss:$16 sps:$4 sm:$0xff]  }
  0xe8   : > { %1950 = vmatpush1.bf16.msra.mxu0 %v3041_v7  ;;  %2122 = vmatpush1.bf16.msra.mxu1 %v3044_v8  ;;  %v3134_v7 = vld [vmem:[%s3938_s22 + $0x3e8] ss:$16 sps:$4 sm:$0xff]   ;;  %v3139_v8 = vld [vmem:[%s3938_s22 + $0x404] ss:$16 sps:$4 sm:$0xff]  }
  0xe9   : > { %1951 = vmatprep.subr.bf16.mxu0 %v3049_v9  ;;  %2123 = vmatprep.subr.bf16.mxu1 %v3052_v10  ;;  %v3142_v9 = vld [vmem:[%s3938_s22 + $0x40c] ss:$16 sps:$4 sm:$0xff]   ;;  %v2503_v10 = vcombine.low %v4059_v31, %v4062_v32  ;;  %v3164_v31 = vld [vmem:[%s3938_s22 + $0x488] ss:$16 sps:$4 sm:$0xff]   ;;  %v3169_v32 = vld [vmem:[%s3938_s22 + $0x4a4] ss:$16 sps:$4 sm:$0xff]  }
  0xea   : > { %1981 = vmatprep.mubr.bf16.mxu0 %v2504_v35  ;;  %2153 = vmatprep.mubr.bf16.mxu1 %v2504_v35  ;;  %v3170_v35 = vld [vmem:[%s3938_s22 + $0x4a8] ss:$16 sps:$4 sm:$0xff]  }
  0xec   : > { %1952 = vmatpush1.bf16.msra.mxu0 %v3047_v11  ;;  %2124 = vmatpush1.bf16.msra.mxu1 %v3050_v12  ;;  %v3137_v11 = vld [vmem:[%s3938_s22 + $0x400] ss:$16 sps:$4 sm:$0xff]   ;;  %v3140_v12 = vld [vmem:[%s3938_s22 + $0x408] ss:$16 sps:$4 sm:$0xff]  }
  0xed   : > { %1953 = vmatprep.subr.bf16.mxu0 %v3055_v13  ;;  %2125 = vmatprep.subr.bf16.mxu1 %v3058_v14  ;;  %v3145_v13 = vld [vmem:[%s3938_s22 + $0x424] ss:$16 sps:$4 sm:$0xff]   ;;  %v3148_v14 = vld [vmem:[%s3938_s22 + $0x42c] ss:$16 sps:$4 sm:$0xff]  }
  0xf0   : > { %1954 = vmatpush1.bf16.msra.mxu0 %v3053_v15  ;;  %2126 = vmatpush1.bf16.msra.mxu1 %v3056_v16  ;;  %v4113_v15 = vld [vmem:[%s3930_s23 + $0x10] sm:$0xff] }
  0xf1   : > { %1955 = vmatprep.subr.bf16.mxu0 %v3061_v17  ;;  %2127 = vmatprep.subr.bf16.mxu1 %v3064_v18  ;;  %v4116_v16 = vld [vmem:[%s3930_s23 + $0x30] sm:$0xff] }
  0xf2   : > { %v2506_v17 = vcombine.high %v4113_v15, %v4116_v16  ;;  %v3143_v18 = vld [vmem:[%s3938_s22 + $0x420] ss:$16 sps:$4 sm:$0xff]  }
  0xf4   : > { %1956 = vmatpush1.bf16.msra.mxu0 %v3059_v19  ;;  %2128 = vmatpush1.bf16.msra.mxu1 %v3062_v20  ;;  %v3146_v19 = vld [vmem:[%s3938_s22 + $0x428] ss:$16 sps:$4 sm:$0xff]   ;;  %v3151_v20 = vld [vmem:[%s3938_s22 + $0x444] ss:$16 sps:$4 sm:$0xff]  }
  0xf5   : > { %1957 = vmatprep.subr.bf16.mxu0 %v3067_v21  ;;  %2129 = vmatprep.subr.bf16.mxu1 %v3070_v22  ;;  %v3154_v21 = vld [vmem:[%s3938_s22 + $0x44c] ss:$16 sps:$4 sm:$0xff]   ;;  %v3149_v22 = vld [vmem:[%s3938_s22 + $0x440] ss:$16 sps:$4 sm:$0xff]  }
  0xf8   : > { %1958 = vmatpush1.bf16.msra.mxu0 %v3065_v23  ;;  %2130 = vmatpush1.bf16.msra.mxu1 %v3068_v24  ;;  %v3152_v23 = vld [vmem:[%s3938_s22 + $0x448] ss:$16 sps:$4 sm:$0xff]   ;;  %v3157_v24 = vld [vmem:[%s3938_s22 + $0x464] ss:$16 sps:$4 sm:$0xff]  }
  0xf9   : > { %1959 = vmatprep.subr.bf16.mxu0 %v3073_v25  ;;  %2131 = vmatprep.subr.bf16.mxu1 %v3076_v26  ;;  %v3160_v25 = vld [vmem:[%s3938_s22 + $0x46c] ss:$16 sps:$4 sm:$0xff]   ;;  %v3155_v26 = vld [vmem:[%s3938_s22 + $0x460] ss:$16 sps:$4 sm:$0xff]  }
  0xfc   : > { %1960 = vmatpush1.bf16.msra.mxu0 %v3071_v27  ;;  %2132 = vmatpush1.bf16.msra.mxu1 %v3074_v28  ;;  %v3158_v27 = vld [vmem:[%s3938_s22 + $0x468] ss:$16 sps:$4 sm:$0xff]   ;;  %v3163_v28 = vld [vmem:[%s3938_s22 + $0x484] ss:$16 sps:$4 sm:$0xff]  }
  0xfd   : > { %1961 = vmatprep.subr.bf16.mxu0 %v3079_v29  ;;  %2133 = vmatprep.subr.bf16.mxu1 %v3082_v30  ;;  %v3166_v29 = vld [vmem:[%s3938_s22 + $0x48c] ss:$16 sps:$4 sm:$0xff]   ;;  %v3161_v30 = vld [vmem:[%s3938_s22 + $0x480] ss:$16 sps:$4 sm:$0xff]  }
 0x100   : > { %1962 = vmatpush1.bf16.msra.mxu0 %v3077_v33  ;;  %2134 = vmatpush1.bf16.msra.mxu1 %v3080_v34  ;;  %v3172_v33 = vld [vmem:[%s3938_s22 + $0x4ac] ss:$16 sps:$4 sm:$0xff]   ;;  %v3167_v34 = vld [vmem:[%s3938_s22 + $0x4a0] ss:$16 sps:$4 sm:$0xff]  }
 0x101   : > { %1963 = vmatprep.subr.bf16.mxu0 %v3085_v36  ;;  %2135 = vmatprep.subr.bf16.mxu1 %v3088_v37  ;;  %v3175_v36 = vld [vmem:[%s3938_s22 + $0x4c4] ss:$16 sps:$4 sm:$0xff]   ;;  %v3178_v37 = vld [vmem:[%s3938_s22 + $0x4cc] ss:$16 sps:$4 sm:$0xff]  }
 0x104   : > { %1964 = vmatpush1.bf16.msra.mxu0 %v3083_v38  ;;  %2136 = vmatpush1.bf16.msra.mxu1 %v3086_v39  ;;  %v3173_v38 = vld [vmem:[%s3938_s22 + $0x4c0] ss:$16 sps:$4 sm:$0xff]   ;;  %v3176_v39 = vld [vmem:[%s3938_s22 + $0x4c8] ss:$16 sps:$4 sm:$0xff]  }
 0x105   : > { %1965 = vmatprep.subr.bf16.mxu0 %v3091_v40  ;;  %2137 = vmatprep.subr.bf16.mxu1 %v3094_v41  ;;  %v3181_v40 = vld [vmem:[%s3938_s22 + $0x4e4] ss:$16 sps:$4 sm:$0xff]   ;;  %v3184_v41 = vld [vmem:[%s3938_s22 + $0x4ec] ss:$16 sps:$4 sm:$0xff]  }
 0x108   : > { %1966 = vmatpush1.bf16.msra.mxu0 %v3089_v42  ;;  %2138 = vmatpush1.bf16.msra.mxu1 %v3092_v43  ;;  %v3179_v42 = vld [vmem:[%s3938_s22 + $0x4e0] ss:$16 sps:$4 sm:$0xff]   ;;  %v3182_v43 = vld [vmem:[%s3938_s22 + $0x4e8] ss:$16 sps:$4 sm:$0xff]  }
 0x109   : > { %1967 = vmatprep.subr.bf16.mxu0 %v3097_v44  ;;  %2139 = vmatprep.subr.bf16.mxu1 %v3100_v45  ;;  %v3187_v44 = vld [vmem:[%s3938_s22 + $0x504] ss:$16 sps:$4 sm:$0xff]   ;;  %v3190_v45 = vld [vmem:[%s3938_s22 + $0x50c] ss:$16 sps:$4 sm:$0xff]  }
 0x10c   : > { %1968 = vmatpush1.bf16.msra.mxu0 %v3095_v46  ;;  %2140 = vmatpush1.bf16.msra.mxu1 %v3098_v47  ;;  %v3185_v46 = vld [vmem:[%s3938_s22 + $0x500] ss:$16 sps:$4 sm:$0xff]   ;;  %v3188_v47 = vld [vmem:[%s3938_s22 + $0x508] ss:$16 sps:$4 sm:$0xff]  }
 0x10d   : > { %1969 = vmatprep.subr.bf16.mxu0 %v3103_v48  ;;  %2141 = vmatprep.subr.bf16.mxu1 %v3106_v49  ;;  %v3193_v48 = vld [vmem:[%s3938_s22 + $0x524] ss:$16 sps:$4 sm:$0xff]   ;;  %v3196_v49 = vld [vmem:[%s3938_s22 + $0x52c] ss:$16 sps:$4 sm:$0xff]  }
 0x110   : > { %1970 = vmatpush1.bf16.msra.mxu0 %v3101_v50  ;;  %2142 = vmatpush1.bf16.msra.mxu1 %v3104_v51  ;;  %v3191_v50 = vld [vmem:[%s3938_s22 + $0x520] ss:$16 sps:$4 sm:$0xff]   ;;  %v3194_v51 = vld [vmem:[%s3938_s22 + $0x528] ss:$16 sps:$4 sm:$0xff]  }
 0x111   : > { %1971 = vmatprep.subr.bf16.mxu0 %v3109_v52  ;;  %2143 = vmatprep.subr.bf16.mxu1 %v3112_v53  ;;  %v3199_v52 = vld [vmem:[%s3938_s22 + $0x544] ss:$16 sps:$4 sm:$0xff]   ;;  %v3202_v53 = vld [vmem:[%s3938_s22 + $0x54c] ss:$16 sps:$4 sm:$0xff]  }
 0x114   : > { %1972 = vmatpush1.bf16.msra.mxu0 %v3107_v54  ;;  %2144 = vmatpush1.bf16.msra.mxu1 %v3110_v55  ;;  %v3197_v54 = vld [vmem:[%s3938_s22 + $0x540] ss:$16 sps:$4 sm:$0xff]   ;;  %v3200_v55 = vld [vmem:[%s3938_s22 + $0x548] ss:$16 sps:$4 sm:$0xff]  }
 0x115   : > { %1973 = vmatprep.subr.bf16.mxu0 %v3115_v56  ;;  %2145 = vmatprep.subr.bf16.mxu1 %v3118_v57  ;;  %v3205_v56 = vld [vmem:[%s3938_s22 + $0x564] ss:$16 sps:$4 sm:$0xff]   ;;  %v3208_v57 = vld [vmem:[%s3938_s22 + $0x56c] ss:$16 sps:$4 sm:$0xff]  }
 0x118   : > { %1974 = vmatpush1.bf16.msra.mxu0 %v3113_v58  ;;  %2146 = vmatpush1.bf16.msra.mxu1 %v3116_v59  ;;  %v3203_v58 = vld [vmem:[%s3938_s22 + $0x560] ss:$16 sps:$4 sm:$0xff]   ;;  %v3206_v59 = vld [vmem:[%s3938_s22 + $0x568] ss:$16 sps:$4 sm:$0xff]  }
 0x119   : > { %1975 = vmatprep.subr.bf16.mxu0 %v3121_v60  ;;  %2147 = vmatprep.subr.bf16.mxu1 %v3124_v61  ;;  %v3211_v60 = vld [vmem:[%s3938_s22 + $0x584] ss:$16 sps:$4 sm:$0xff]   ;;  %v3214_v61 = vld [vmem:[%s3938_s22 + $0x58c] ss:$16 sps:$4 sm:$0xff]  }
 0x11c   : > { %1976 = vmatpush1.bf16.msra.mxu0 %v3119_v62  ;;  %2148 = vmatpush1.bf16.msra.mxu1 %v3122_v63  ;;  %v3209_v62 = vld [vmem:[%s3938_s22 + $0x580] ss:$16 sps:$4 sm:$0xff]   ;;  %v3212_v63 = vld [vmem:[%s3938_s22 + $0x588] ss:$16 sps:$4 sm:$0xff]  }
 0x11d   : > { %1977 = vmatprep.subr.bf16.mxu0 %v3127_v0  ;;  %2149 = vmatprep.subr.bf16.mxu1 %v3130_v1  ;;  %v3217_v0 = vld [vmem:[%s3938_s22 + $0x5a4] ss:$16 sps:$4 sm:$0xff]   ;;  %v3220_v1 = vld [vmem:[%s3938_s22 + $0x5ac] ss:$16 sps:$4 sm:$0xff]  }
 0x120   : > { %1978 = vmatpush1.bf16.msra.mxu0 %v3125_v2  ;;  %2150 = vmatpush1.bf16.msra.mxu1 %v3128_v3  ;;  %v3215_v2 = vld [vmem:[%s3938_s22 + $0x5a0] ss:$16 sps:$4 sm:$0xff]   ;;  %v3218_v3 = vld [vmem:[%s3938_s22 + $0x5a8] ss:$16 sps:$4 sm:$0xff]  }
 0x121   : > { %1979 = vmatprep.subr.bf16.mxu0 %v3133_v4  ;;  %2151 = vmatprep.subr.bf16.mxu1 %v3136_v5  ;;  %v3223_v4 = vld [vmem:[%s3938_s22 + $0x5c4] ss:$16 sps:$4 sm:$0xff]   ;;  %v3226_v5 = vld [vmem:[%s3938_s22 + $0x5cc] ss:$16 sps:$4 sm:$0xff]  }
 0x124   : > { %1980 = vmatpush1.bf16.msra.mxu0 %v3131_v6  ;;  %2152 = vmatpush1.bf16.msra.mxu1 %v3134_v7  ;;  %v3221_v6 = vld [vmem:[%s3938_s22 + $0x5c0] ss:$16 sps:$4 sm:$0xff]   ;;  %v3224_v7 = vld [vmem:[%s3938_s22 + $0x5c8] ss:$16 sps:$4 sm:$0xff]  }
 0x125   : > { %1992 = vmatprep.subr.bf16.mxu0 %v3139_v8  ;;  %2164 = vmatprep.subr.bf16.mxu1 %v3142_v9  ;;  %v3229_v8 = vld [vmem:[%s3938_s22 + $0x5e4] ss:$16 sps:$4 sm:$0xff]   ;;  %v3232_v9 = vld [vmem:[%s3938_s22 + $0x5ec] ss:$16 sps:$4 sm:$0xff]  }
 0x127   : > { %1982 = vmatmul.mubr.bf16.vlgmr.msra.gmra.mrb[0].mxu0 %v2503_v10  ;;  %2154 = vmatmul.mubr.bf16.vlgmr.msra.gmra.mrb[0].mxu1 %v2503_v10  ;;  %v3227_v10 = vld [vmem:[%s3938_s22 + $0x5e0] ss:$16 sps:$4 sm:$0xff]  }
 0x128   : > { %1993 = vmatpush1.bf16.msra.mxu0 %v3137_v11  ;;  %2165 = vmatpush1.bf16.msra.mxu1 %v3140_v12  ;;  %v3230_v11 = vld [vmem:[%s3938_s22 + $0x5e8] ss:$16 sps:$4 sm:$0xff]   ;;  %v3235_v12 = vld [vmem:[%s3938_s22 + $0x604] ss:$16 sps:$4 sm:$0xff]  }
 0x129   : > { %1994 = vmatprep.subr.bf16.mxu0 %v3145_v13  ;;  %2166 = vmatprep.subr.bf16.mxu1 %v3148_v14  ;;  %v3238_v13 = vld [vmem:[%s3938_s22 + $0x60c] ss:$16 sps:$4 sm:$0xff]   ;;  %v2505_v14 = vcombine.low %v4113_v15, %v4116_v16  ;;  %v3239_v16 = vld [vmem:[%s3938_s22 + $0x620] ss:$16 sps:$4 sm:$0xff]  }
 0x12a   : > { %2024 = vmatprep.mubr.bf16.mxu0 %v2506_v17  ;;  %2196 = vmatprep.mubr.bf16.mxu1 %v2506_v17  ;;  %v4183_v17 = vld [vmem:[%s3930_s23 + $0x18] sm:$0xff] }
 0x12c   : > { %1995 = vmatpush1.bf16.msra.mxu0 %v3143_v18  ;;  %2167 = vmatpush1.bf16.msra.mxu1 %v3146_v19  ;;  %v4186_v18 = vld [vmem:[%s3930_s23 + $0x38] sm:$0xff]  ;;  %v3233_v19 = vld [vmem:[%s3938_s22 + $0x600] ss:$16 sps:$4 sm:$0xff]  }
 0x12d   : > { %1996 = vmatprep.subr.bf16.mxu0 %v3151_v20  ;;  %2168 = vmatprep.subr.bf16.mxu1 %v3154_v21  ;;  %v3236_v20 = vld [vmem:[%s3938_s22 + $0x608] ss:$16 sps:$4 sm:$0xff]   ;;  %v3241_v21 = vld [vmem:[%s3938_s22 + $0x624] ss:$16 sps:$4 sm:$0xff]   ;;  %v2508_v15 = vcombine.high %v4183_v17, %v4186_v18 }
 0x130   : > { %1997 = vmatpush1.bf16.msra.mxu0 %v3149_v22  ;;  %2169 = vmatpush1.bf16.msra.mxu1 %v3152_v23  ;;  %v3244_v22 = vld [vmem:[%s3938_s22 + $0x62c] ss:$16 sps:$4 sm:$0xff]   ;;  %v3242_v23 = vld [vmem:[%s3938_s22 + $0x628] ss:$16 sps:$4 sm:$0xff]  }
 0x131   : > { %1998 = vmatprep.subr.bf16.mxu0 %v3157_v24  ;;  %2170 = vmatprep.subr.bf16.mxu1 %v3160_v25  ;;  %v3247_v24 = vld [vmem:[%s3938_s22 + $0x644] ss:$16 sps:$4 sm:$0xff]   ;;  %v3250_v25 = vld [vmem:[%s3938_s22 + $0x64c] ss:$16 sps:$4 sm:$0xff]  }
 0x134   : > { %1999 = vmatpush1.bf16.msra.mxu0 %v3155_v26  ;;  %2171 = vmatpush1.bf16.msra.mxu1 %v3158_v27  ;;  %v3245_v26 = vld [vmem:[%s3938_s22 + $0x640] ss:$16 sps:$4 sm:$0xff]   ;;  %v3248_v27 = vld [vmem:[%s3938_s22 + $0x648] ss:$16 sps:$4 sm:$0xff]  }
 0x135   : > { %2000 = vmatprep.subr.bf16.mxu0 %v3163_v28  ;;  %2172 = vmatprep.subr.bf16.mxu1 %v3166_v29  ;;  %v3253_v28 = vld [vmem:[%s3938_s22 + $0x664] ss:$16 sps:$4 sm:$0xff]   ;;  %v3256_v29 = vld [vmem:[%s3938_s22 + $0x66c] ss:$16 sps:$4 sm:$0xff]  }
 0x138   : > { %2001 = vmatpush1.bf16.msra.mxu0 %v3161_v30  ;;  %2173 = vmatpush1.bf16.msra.mxu1 %v3164_v31  ;;  %v3251_v30 = vld [vmem:[%s3938_s22 + $0x660] ss:$16 sps:$4 sm:$0xff]   ;;  %v3254_v31 = vld [vmem:[%s3938_s22 + $0x668] ss:$16 sps:$4 sm:$0xff]  }
 0x139   : > { %2002 = vmatprep.subr.bf16.mxu0 %v3169_v32  ;;  %2174 = vmatprep.subr.bf16.mxu1 %v3172_v33  ;;  %v3259_v32 = vld [vmem:[%s3938_s22 + $0x684] ss:$16 sps:$4 sm:$0xff]   ;;  %v3262_v33 = vld [vmem:[%s3938_s22 + $0x68c] ss:$16 sps:$4 sm:$0xff]  }
 0x13c   : > { %2003 = vmatpush1.bf16.msra.mxu0 %v3167_v34  ;;  %2175 = vmatpush1.bf16.msra.mxu1 %v3170_v35  ;;  %v3257_v34 = vld [vmem:[%s3938_s22 + $0x680] ss:$16 sps:$4 sm:$0xff]   ;;  %v3260_v35 = vld [vmem:[%s3938_s22 + $0x688] ss:$16 sps:$4 sm:$0xff]  }
 0x13d   : > { %2004 = vmatprep.subr.bf16.mxu0 %v3175_v36  ;;  %2176 = vmatprep.subr.bf16.mxu1 %v3178_v37  ;;  %v3265_v36 = vld [vmem:[%s3938_s22 + $0x6a4] ss:$16 sps:$4 sm:$0xff]   ;;  %v3268_v37 = vld [vmem:[%s3938_s22 + $0x6ac] ss:$16 sps:$4 sm:$0xff]  }
 0x140   : > { %2005 = vmatpush1.bf16.msra.mxu0 %v3173_v38  ;;  %2177 = vmatpush1.bf16.msra.mxu1 %v3176_v39  ;;  %v3263_v38 = vld [vmem:[%s3938_s22 + $0x6a0] ss:$16 sps:$4 sm:$0xff]   ;;  %v3266_v39 = vld [vmem:[%s3938_s22 + $0x6a8] ss:$16 sps:$4 sm:$0xff]  }
 0x141   : > { %2006 = vmatprep.subr.bf16.mxu0 %v3181_v40  ;;  %2178 = vmatprep.subr.bf16.mxu1 %v3184_v41  ;;  %v3271_v40 = vld [vmem:[%s3938_s22 + $0x6c4] ss:$16 sps:$4 sm:$0xff]   ;;  %v3274_v41 = vld [vmem:[%s3938_s22 + $0x6cc] ss:$16 sps:$4 sm:$0xff]  }
 0x144   : > { %2007 = vmatpush1.bf16.msra.mxu0 %v3179_v42  ;;  %2179 = vmatpush1.bf16.msra.mxu1 %v3182_v43  ;;  %v3269_v42 = vld [vmem:[%s3938_s22 + $0x6c0] ss:$16 sps:$4 sm:$0xff]   ;;  %v3272_v43 = vld [vmem:[%s3938_s22 + $0x6c8] ss:$16 sps:$4 sm:$0xff]  }
 0x145   : > { %2008 = vmatprep.subr.bf16.mxu0 %v3187_v44  ;;  %2180 = vmatprep.subr.bf16.mxu1 %v3190_v45  ;;  %v3277_v44 = vld [vmem:[%s3938_s22 + $0x6e4] ss:$16 sps:$4 sm:$0xff]   ;;  %v3280_v45 = vld [vmem:[%s3938_s22 + $0x6ec] ss:$16 sps:$4 sm:$0xff]  }
 0x148   : > { %2009 = vmatpush1.bf16.msra.mxu0 %v3185_v46  ;;  %2181 = vmatpush1.bf16.msra.mxu1 %v3188_v47  ;;  %v3275_v46 = vld [vmem:[%s3938_s22 + $0x6e0] ss:$16 sps:$4 sm:$0xff]   ;;  %v3278_v47 = vld [vmem:[%s3938_s22 + $0x6e8] ss:$16 sps:$4 sm:$0xff]  }
 0x149   : > { %2010 = vmatprep.subr.bf16.mxu0 %v3193_v48  ;;  %2182 = vmatprep.subr.bf16.mxu1 %v3196_v49  ;;  %v3283_v48 = vld [vmem:[%s3938_s22 + $0x704] ss:$16 sps:$4 sm:$0xff]   ;;  %v3286_v49 = vld [vmem:[%s3938_s22 + $0x70c] ss:$16 sps:$4 sm:$0xff]  }
 0x14c   : > { %2011 = vmatpush1.bf16.msra.mxu0 %v3191_v50  ;;  %2183 = vmatpush1.bf16.msra.mxu1 %v3194_v51  ;;  %v3281_v50 = vld [vmem:[%s3938_s22 + $0x700] ss:$16 sps:$4 sm:$0xff]   ;;  %v3284_v51 = vld [vmem:[%s3938_s22 + $0x708] ss:$16 sps:$4 sm:$0xff]  }
 0x14d   : > { %2012 = vmatprep.subr.bf16.mxu0 %v3199_v52  ;;  %2184 = vmatprep.subr.bf16.mxu1 %v3202_v53  ;;  %v3289_v52 = vld [vmem:[%s3938_s22 + $0x724] ss:$16 sps:$4 sm:$0xff]   ;;  %v3292_v53 = vld [vmem:[%s3938_s22 + $0x72c] ss:$16 sps:$4 sm:$0xff]  }
 0x150   : > { %2013 = vmatpush1.bf16.msra.mxu0 %v3197_v54  ;;  %2185 = vmatpush1.bf16.msra.mxu1 %v3200_v55  ;;  %v3287_v54 = vld [vmem:[%s3938_s22 + $0x720] ss:$16 sps:$4 sm:$0xff]   ;;  %v3290_v55 = vld [vmem:[%s3938_s22 + $0x728] ss:$16 sps:$4 sm:$0xff]  }
 0x151   : > { %2014 = vmatprep.subr.bf16.mxu0 %v3205_v56  ;;  %2186 = vmatprep.subr.bf16.mxu1 %v3208_v57  ;;  %v3295_v56 = vld [vmem:[%s3938_s22 + $0x744] ss:$16 sps:$4 sm:$0xff]   ;;  %v3298_v57 = vld [vmem:[%s3938_s22 + $0x74c] ss:$16 sps:$4 sm:$0xff]  }
 0x154   : > { %2015 = vmatpush1.bf16.msra.mxu0 %v3203_v58  ;;  %2187 = vmatpush1.bf16.msra.mxu1 %v3206_v59  ;;  %v3293_v58 = vld [vmem:[%s3938_s22 + $0x740] ss:$16 sps:$4 sm:$0xff]   ;;  %v3296_v59 = vld [vmem:[%s3938_s22 + $0x748] ss:$16 sps:$4 sm:$0xff]  }
 0x155   : > { %2016 = vmatprep.subr.bf16.mxu0 %v3211_v60  ;;  %2188 = vmatprep.subr.bf16.mxu1 %v3214_v61  ;;  %v3301_v60 = vld [vmem:[%s3938_s22 + $0x764] ss:$16 sps:$4 sm:$0xff]   ;;  %v3304_v61 = vld [vmem:[%s3938_s22 + $0x76c] ss:$16 sps:$4 sm:$0xff]  }
 0x158   : > { %2017 = vmatpush1.bf16.msra.mxu0 %v3209_v62  ;;  %2189 = vmatpush1.bf16.msra.mxu1 %v3212_v63  ;;  %v3299_v62 = vld [vmem:[%s3938_s22 + $0x760] ss:$16 sps:$4 sm:$0xff]   ;;  %v3302_v63 = vld [vmem:[%s3938_s22 + $0x768] ss:$16 sps:$4 sm:$0xff]  }
 0x159   : > { %2018 = vmatprep.subr.bf16.mxu0 %v3217_v0  ;;  %2190 = vmatprep.subr.bf16.mxu1 %v3220_v1  ;;  %v3307_v0 = vld [vmem:[%s3938_s22 + $0x784] ss:$16 sps:$4 sm:$0xff]   ;;  %v3310_v1 = vld [vmem:[%s3938_s22 + $0x78c] ss:$16 sps:$4 sm:$0xff]  }
 0x15c   : > { %2019 = vmatpush1.bf16.msra.mxu0 %v3215_v2  ;;  %2191 = vmatpush1.bf16.msra.mxu1 %v3218_v3  ;;  %v3305_v2 = vld [vmem:[%s3938_s22 + $0x780] ss:$16 sps:$4 sm:$0xff]   ;;  %v3308_v3 = vld [vmem:[%s3938_s22 + $0x788] ss:$16 sps:$4 sm:$0xff]  }
 0x15d   : > { %2020 = vmatprep.subr.bf16.mxu0 %v3223_v4  ;;  %2192 = vmatprep.subr.bf16.mxu1 %v3226_v5  ;;  %v3313_v4 = vld [vmem:[%s3938_s22 + $0x7a4] ss:$16 sps:$4 sm:$0xff]   ;;  %v3316_v5 = vld [vmem:[%s3938_s22 + $0x7ac] ss:$16 sps:$4 sm:$0xff]  }
 0x160   : > { %2021 = vmatpush1.bf16.msra.mxu0 %v3221_v6  ;;  %2193 = vmatpush1.bf16.msra.mxu1 %v3224_v7  ;;  %v3311_v6 = vld [vmem:[%s3938_s22 + $0x7a0] ss:$16 sps:$4 sm:$0xff]   ;;  %v3314_v7 = vld [vmem:[%s3938_s22 + $0x7a8] ss:$16 sps:$4 sm:$0xff]  }
 0x161   : > { %2022 = vmatprep.subr.bf16.mxu0 %v3229_v8  ;;  %2194 = vmatprep.subr.bf16.mxu1 %v3232_v9  ;;  %v3319_v8 = vld [vmem:[%s3938_s22 + $0x7c4] ss:$16 sps:$4 sm:$0xff]   ;;  %v3322_v9 = vld [vmem:[%s3938_s22 + $0x7cc] ss:$16 sps:$4 sm:$0xff]  }
 0x164   : > { %2023 = vmatpush1.bf16.msra.mxu0 %v3227_v10  ;;  %2195 = vmatpush1.bf16.msra.mxu1 %v3230_v11  ;;  %v3317_v10 = vld [vmem:[%s3938_s22 + $0x7c0] ss:$16 sps:$4 sm:$0xff]   ;;  %v3320_v11 = vld [vmem:[%s3938_s22 + $0x7c8] ss:$16 sps:$4 sm:$0xff]  }
 0x165   : > { %2035 = vmatprep.subr.bf16.mxu0 %v3235_v12  ;;  %2207 = vmatprep.subr.bf16.mxu1 %v3238_v13  ;;  %v3325_v12 = vld [vmem:[%s3938_s22 + $0x7e4] ss:$16 sps:$4 sm:$0xff]   ;;  %v3328_v13 = vld [vmem:[%s3938_s22 + $0x7ec] ss:$16 sps:$4 sm:$0xff]  }
 0x167   : > { %2025 = vmatmul.mubr.bf16.vlgmr.msra.gmra.mrb[0].mxu0 %v2505_v14  ;;  %2197 = vmatmul.mubr.bf16.vlgmr.msra.gmra.mrb[0].mxu1 %v2505_v14  ;;  %v3323_v14 = vld [vmem:[%s3938_s22 + $0x7e0] ss:$16 sps:$4 sm:$0xff]  }
 0x168   : > { %2036 = vmatpush1.bf16.msra.mxu0 %v3233_v19  ;;  %2208 = vmatpush1.bf16.msra.mxu1 %v3236_v20  ;;  %v3326_v19 = vld [vmem:[%s3938_s22 + $0x7e8] ss:$16 sps:$4 sm:$0xff]   ;;  %v2507_v20 = vcombine.low %v4183_v17, %v4186_v18 }
 0x169   : > { %2037 = vmatprep.subr.bf16.mxu0 %v3241_v21  ;;  %2209 = vmatprep.subr.bf16.mxu1 %v3244_v22  ;;  %v314_v21 = vld [vmem:[%s3955_s15] sm:$0xff]  ;;  %v316_v22 = vld [vmem:[%s3955_s15 + $0x10] sm:$0xff] }
 0x16a   : > { %2067 = vmatprep.mubr.bf16.mxu0 %v2508_v15  ;;  %2239 = vmatprep.mubr.bf16.mxu1 %v2508_v15  ;;  %v315_v15 = vld [vmem:[%s3955_s15 + $0x8] sm:$0xff] }
 0x16c   : > { %2038 = vmatpush1.bf16.msra.mxu0 %v3239_v16  ;;  %2210 = vmatpush1.bf16.msra.mxu1 %v3242_v23  ;;  %v317_v16 = vld [vmem:[%s3955_s15 + $0x18] sm:$0xff] }
 0x16d   : > { %2039 = vmatprep.subr.bf16.mxu0 %v3247_v24  ;;  %2211 = vmatprep.subr.bf16.mxu1 %v3250_v25  ;;  %v318_v25 = vld [vmem:[%s3955_s15 + $0x20] sm:$0xff] }
 0x170   : > { %2040 = vmatpush1.bf16.msra.mxu0 %v3245_v26  ;;  %2212 = vmatpush1.bf16.msra.mxu1 %v3248_v27  ;;  %v320_v26 = vld [vmem:[%s3955_s15 + $0x30] sm:$0xff] }
 0x171   : > { %2041 = vmatprep.subr.bf16.mxu0 %v3253_v28  ;;  %2213 = vmatprep.subr.bf16.mxu1 %v3256_v29  ;;  %v319_v29 = vld [vmem:[%s3955_s15 + $0x28] sm:$0xff] }
 0x174   : > { %2042 = vmatpush1.bf16.msra.mxu0 %v3251_v30  ;;  %2214 = vmatpush1.bf16.msra.mxu1 %v3254_v31  ;;  %v321_v30 = vld [vmem:[%s3955_s15 + $0x38] sm:$0xff] }
 0x175   : > { %2043 = vmatprep.subr.bf16.mxu0 %v3259_v32  ;;  %2215 = vmatprep.subr.bf16.mxu1 %v3262_v33 }
 0x178   : > { %2044 = vmatpush1.bf16.msra.mxu0 %v3257_v34  ;;  %2216 = vmatpush1.bf16.msra.mxu1 %v3260_v35 }
 0x179   : > { %2045 = vmatprep.subr.bf16.mxu0 %v3265_v36  ;;  %2217 = vmatprep.subr.bf16.mxu1 %v3268_v37 }
 0x17c   : > { %2046 = vmatpush1.bf16.msra.mxu0 %v3263_v38  ;;  %2218 = vmatpush1.bf16.msra.mxu1 %v3266_v39 }
 0x17d   : > { %2047 = vmatprep.subr.bf16.mxu0 %v3271_v40  ;;  %2219 = vmatprep.subr.bf16.mxu1 %v3274_v41  ;;  %v2280_v41 = vlaneseq (!%p2765_p1) }
 0x180   : > { %2048 = vmatpush1.bf16.msra.mxu0 %v3269_v42  ;;  %2220 = vmatpush1.bf16.msra.mxu1 %v3272_v43  ;;  %v2281_v42 = vshrl.u32 (!%p2765_p1), %v2280_v41, 7  ;;  %v2278_v43 = vld [vmem:[%s3948_s5] sm:$0xf] (!%p2765_p1) }
 0x181   : > { %2049 = vmatprep.subr.bf16.mxu0 %v3277_v44  ;;  %2221 = vmatprep.subr.bf16.mxu1 %v3280_v45 }
 0x182   : > { %v2282_v45 = vsub.s32 (!%p2765_p1), 0, %v2281_v42 }
 0x184   : > { %2050 = vmatpush1.bf16.msra.mxu0 %v3275_v46  ;;  %2222 = vmatpush1.bf16.msra.mxu1 %v3278_v47  ;;  %v2286_v47 = vsub.s32 (!%p2765_p1), 1, %v2281_v42 }
 0x185   : > { %2051 = vmatprep.subr.bf16.mxu0 %v3283_v48  ;;  %2223 = vmatprep.subr.bf16.mxu1 %v3286_v49  ;;  %v2290_v48 = vsub.s32 (!%p2765_p1), 2, %v2281_v42  ;;  %v2294_v49 = vsub.s32 (!%p2765_p1), 3, %v2281_v42 }
 0x188   : > { %2052 = vmatpush1.bf16.msra.mxu0 %v3281_v50  ;;  %2224 = vmatpush1.bf16.msra.mxu1 %v3284_v51 }
 0x189   : > { %2053 = vmatprep.subr.bf16.mxu0 %v3289_v52  ;;  %2225 = vmatprep.subr.bf16.mxu1 %v3292_v53  ;;  %v2283_v53 = vrot.slane (!%p2765_p1), %v2278_v43, %v2282_v45 }
 0x18c   : > { %2054 = vmatpush1.bf16.msra.mxu0 %v3287_v54  ;;  %2226 = vmatpush1.bf16.msra.mxu1 %v3290_v55  ;;  %v2287_v54 = vrot.slane (!%p2765_p1), %v2278_v43, %v2286_v47  ;;  %v2291_v55 = vrot.slane (!%p2765_p1), %v2278_v43, %v2290_v48 }
 0x18d   : > { %2055 = vmatprep.subr.bf16.mxu0 %v3295_v56  ;;  %2227 = vmatprep.subr.bf16.mxu1 %v3298_v57  ;;  %v2295_v56 = vrot.slane (!%p2765_p1), %v2278_v43, %v2294_v49 }
 0x190   : > { %2056 = vmatpush1.bf16.msra.mxu0 %v3293_v58  ;;  %2228 = vmatpush1.bf16.msra.mxu1 %v3296_v59 }
 0x191   : > { %2057 = vmatprep.subr.bf16.mxu0 %v3301_v60  ;;  %2229 = vmatprep.subr.bf16.mxu1 %v3304_v61 }
 0x194   : > { %2058 = vmatpush1.bf16.msra.mxu0 %v3299_v62  ;;  %2230 = vmatpush1.bf16.msra.mxu1 %v3302_v63 }
 0x195   : > { %2059 = vmatprep.subr.bf16.mxu0 %v3307_v0  ;;  %2231 = vmatprep.subr.bf16.mxu1 %v3310_v1 }
 0x198   : > { %2060 = vmatpush1.bf16.msra.mxu0 %v3305_v2  ;;  %2232 = vmatpush1.bf16.msra.mxu1 %v3308_v3 }
 0x199   : > { %2061 = vmatprep.subr.bf16.mxu0 %v3313_v4  ;;  %2233 = vmatprep.subr.bf16.mxu1 %v3316_v5 }
 0x19c   : > { %2062 = vmatpush1.bf16.msra.mxu0 %v3311_v6  ;;  %2234 = vmatpush1.bf16.msra.mxu1 %v3314_v7 }
 0x19d   : > { %2063 = vmatprep.subr.bf16.mxu0 %v3319_v8  ;;  %2235 = vmatprep.subr.bf16.mxu1 %v3322_v9 }
 0x1a0   : > { %2064 = vmatpush1.bf16.msra.mxu0 %v3317_v10  ;;  %2236 = vmatpush1.bf16.msra.mxu1 %v3320_v11 }
 0x1a1   : > { %2065 = vmatprep.subr.bf16.mxu0 %v3325_v12  ;;  %2237 = vmatprep.subr.bf16.mxu1 %v3328_v13 }
 0x1a4   : > { %2066 = vmatpush1.bf16.msra.mxu0 %v3323_v14  ;;  %2238 = vmatpush1.bf16.msra.mxu1 %v3326_v19 }
 0x1a7   : > { %2068 = vmatmul.mubr.bf16.vlgmr.msra.gmra.mrb[0].mxu0 %v2507_v20  ;;  %2240 = vmatmul.mubr.bf16.vlgmr.msra.gmra.mrb[0].mxu1 %v2507_v20 }
 0x27a   : > { %v2069_v23 = vpop.f32.mrb[0].mxu0  ;;  %v2241_v24 = vpop.f32.mrb[0].mxu1  ;;  %2269 = sbr.rel (%p2765_p1) target bundleno = 653 (0x28d), region = 52 }
 0x27b   : > { %v2250_v27 = vadd.f32 %v2069_v23, %v314_v21  ;;  %v2252_v28 = vadd.f32 %v2241_v24, %v316_v22  ;;  %v2071_v17 = vpop.f32.mrb[1].mxu0  ;;  %v2243_v18 = vpop.f32.mrb[1].mxu1 }
 0x27c   : > { %v2251_v31 = vadd.f32 %v2071_v17, %v315_v15  ;;  %v2253_v32 = vadd.f32 %v2243_v18, %v317_v16  ;;  %v2073_v33 = vpop.f32.mrb[2].mxu0  ;;  %v2245_v34 = vpop.f32.mrb[2].mxu1 }
 0x27d   : > { %2258 = vst [vmem:[%s3955_s15] sm:$0xff] %v2250_v27  ;;  %2260 = vst [vmem:[%s3955_s15 + $0x10] sm:$0xff] %v2252_v28  ;;  %v2254_v35 = vadd.f32 %v2073_v33, %v318_v25  ;;  %v2256_v36 = vadd.f32 %v2245_v34, %v320_v26  ;;  %v2075_v37 = vpop.f32.mrb[3].mxu0  ;;  %v2247_v38 = vpop.f32.mrb[3].mxu1 }
 0x27e   : > { %2259 = vst [vmem:[%s3955_s15 + $0x8] sm:$0xff] %v2251_v31  ;;  %2261 = vst [vmem:[%s3955_s15 + $0x18] sm:$0xff] %v2253_v32  ;;  %v2255_v39 = vadd.f32 %v2075_v37, %v319_v29  ;;  %v2257_v40 = vadd.f32 %v2247_v38, %v321_v30 }
 0x27f   : > { %2262 = vst [vmem:[%s3955_s15 + $0x20] sm:$0xff] %v2254_v35  ;;  %2264 = vst [vmem:[%s3955_s15 + $0x30] sm:$0xff] %v2256_v36 }
 0x280   : > { %2263 = vst [vmem:[%s3955_s15 + $0x28] sm:$0xff] %v2255_v39  ;;  %2265 = vst [vmem:[%s3955_s15 + $0x38] sm:$0xff] %v2257_v40 }
 0x284   : > { %v2270_v44 = vld [vmem:[%s3955_s15] sm:$0xff]  ;;  %v2272_v50 = vld [vmem:[%s3955_s15 + $0x10] sm:$0xff] }
 0x285   : > { %v2271_v46 = vld [vmem:[%s3955_s15 + $0x8] sm:$0xff]  ;;  %v2273_v51 = vld [vmem:[%s3955_s15 + $0x18] sm:$0xff]  ;;  %v2300_v60 = vadd.f32 %v2283_v53, %v2270_v44  ;;  %v2302_v62 = vadd.f32 %v2291_v55, %v2272_v50 }
 0x286   : > { %v2274_v52 = vld [vmem:[%s3955_s15 + $0x20] sm:$0xff]  ;;  %v2276_v58 = vld [vmem:[%s3955_s15 + $0x30] sm:$0xff]  ;;  %v2301_v61 = vadd.f32 %v2287_v54, %v2271_v46  ;;  %v2303_v63 = vadd.f32 %v2295_v56, %v2273_v51 }
 0x287   : > { %v2275_v57 = vld [vmem:[%s3955_s15 + $0x28] sm:$0xff]  ;;  %v2277_v59 = vld [vmem:[%s3955_s15 + $0x38] sm:$0xff]  ;;  %v2304_v0 = vadd.f32 %v2283_v53, %v2274_v52  ;;  %v2306_v2 = vadd.f32 %v2291_v55, %v2276_v58  ;;  %v2308_v4 = vmax.f32 %v2300_v60, 0.0  ;;  %v2310_v6 = vmax.f32 %v2302_v62, 0.0 }
 0x288   : > { %v2305_v1 = vadd.f32 %v2287_v54, %v2275_v57  ;;  %v2307_v3 = vadd.f32 %v2295_v56, %v2277_v59  ;;  %v2309_v5 = vmax.f32 %v2301_v61, 0.0  ;;  %v2311_v7 = vmax.f32 %v2303_v63, 0.0 }
 0x289   : > { %v2312_v8 = vmax.f32 %v2304_v0, 0.0  ;;  %v2314_v10 = vmax.f32 %v2306_v2, 0.0  ;;  %2316 = vst [vmem:[%s3955_s15] sm:$0xff] %v2308_v4  ;;  %2318 = vst [vmem:[%s3955_s15 + $0x10] sm:$0xff] %v2310_v6 }
 0x28a   : > { %v2313_v9 = vmax.f32 %v2305_v1, 0.0  ;;  %v2315_v11 = vmax.f32 %v2307_v3, 0.0  ;;  %2317 = vst [vmem:[%s3955_s15 + $0x8] sm:$0xff] %v2309_v5  ;;  %2319 = vst [vmem:[%s3955_s15 + $0x18] sm:$0xff] %v2311_v7 }
 0x28b   : > { %2320 = vst [vmem:[%s3955_s15 + $0x20] sm:$0xff] %v2312_v8  ;;  %2322 = vst [vmem:[%s3955_s15 + $0x30] sm:$0xff] %v2314_v10 }
 0x28c   : > { %2321 = vst [vmem:[%s3955_s15 + $0x28] sm:$0xff] %v2313_v9  ;;  %2323 = vst [vmem:[%s3955_s15 + $0x38] sm:$0xff] %v2315_v11 }
 0x28d PF: > { %s4421_s21 = sld [smem:[#allocation13_spill]]  ;;  %s4422_s4 = sld [smem:[#allocation20_spill]] }
 0x28e   : > { %s2341_s23 = sshll.u32 %s3955_s15, 4  ;;  %s2325_s0 = scalar_lea.sflag [#allocation4], %s3945_s29  ;;  %s4295_s23 = int_to_ptr.vmem [resolvable:$true] %s2341_s23 }
 0x28f   : > { %s3419_s7 = scalar_lea.vmem %s4295_s23, 1024  ;;  %p4423_p0 = scmp.ne.s32.totalorder %s4413_s27, 0 }
 0x290   : > { %p3420_p3 = scmp.ne.s32.totalorder %s4295_s23, %s3419_s7  ;;  %s3585_s26 = smov [#allocation8]  }
 0x291   : > { %s3423_s30 = sshll.u32 %s3585_s26, 4  ;;  %s3424_s30 = int_to_ptr.vmem [resolvable:$false] %s3423_s30 }
 0x292   : > { %p3421_p8 = pnand %p3420_p3, %p4423_p0  ;;  %s3425_s22 = scalar_lea.vmem %s3424_s30, 2048 }
 0x293   : > { %s2774_s11 = sshll.u32 %s4421_s21, 9  ;;  %p3426_p7 = scmp.lt.s32.totalorder %s4295_s23, %s3424_s30 }
 0x294   : > { %s4292_s28 = scalar_lea.hbm %s4422_s4, %s2774_s11  ;;  %p3422_p12 = pneg %p3421_p8 }
 0x295   : > { %p3427_p5 = scmp.lt.s32.totalorder %s3425_s22, %s3419_s7 }
 0x297   : > { %p3428_p13 = por %p3427_p5, %p3426_p7 }
 0x299   : > { %p3429_p10 = pnand %p3428_p13, %p3422_p12 }
 0x29b   : > { %3432 = shalt.err (!%p3429_p10)
}
 0x29c   : > { %s3433_s3 = scalar_lea.hbm %s4292_s28, 1024  ;;  %s3437_s15 = scalar_lea.hbm %s4422_s4, 8192 }
 0x29d   : > { %p3434_p6 = scmp.ne.s32.totalorder %s4292_s28, %s3433_s3  ;;  %p3438_p2 = scmp.lt.u32.totalorder %s4292_s28, %s4422_s4 }
 0x29e   : > { %p3439_p4 = scmp.lt.u32.totalorder %s3437_s15, %s3433_s3  ;;  %p3441_p3 = scmp.lt.u32.totalorder %s3433_s3, %s4292_s28 }
 0x29f   : > { %p3435_p9 = pnand %p3434_p6, %p4423_p0 }
 0x2a0   : > { %p3440_p1 = por %p3439_p4, %p3438_p2 }
 0x2a1   : > { %p3436_p11 = pneg %p3435_p9 }
 0x2a2   : > { %p3442_p8 = por %p3441_p3, %p3440_p1 }
 0x2a4   : > { %p3443_p12 = pnand %p3442_p8, %p3436_p11 }
 0x2a6   : > { %3446 = shalt.err (!%p3443_p12)
}
 0x2a7   : > { %s3586_s18 = smov 512   ;;  %s3587_s8 = smov 4096  }
 0x2a8   : > { %s3588_s7 = smov 32  }
 0x2a9   : > { %2805 = dma.vmem_to_hbm [thread:$0]  (%p4423_p0), %s4295_s23, 1024, %s4292_s28, %s2325_s0, %s3586_s18, %s3587_s8, %s3588_s7  }
 0x2aa PF: > { %p2822_p7 = scmp.ge.s32.totalorder %s3573_s25, 2  ;;  %s2356_s26 = sand.u32 1, %s3521_s12  }
 0x2ab   : > { %p4424_p5 = scmp.ne.s32.totalorder %s4415_s10, 0  ;;  %s2357_s30 = scalar_lea.sflag [#allocation4], %s2356_s26 }
 0x2ad   : > { %p2818_p13 = pnand %p2822_p7, %p4424_p5 }
 0x2af   : > { %3516 = dma.done.wait (!%p2818_p13), %s2357_s30, 1024  }
 0x2b0   : > { %3518 = vsyncadd (!%p2818_p13), %s2357_s30, 4294966272  ;;  %s22_s25 = sadd.s32 1, %s3573_s25   ;;  %s4426_s27 = sld [smem:[#allocation16_spill]] }
 0x2b1   : > { %p4326_p10 = scmp.ge.s32.totalorder %s22_s25, 74   ;;  %s4427_s21 = sld [smem:[#allocation14_spill]] }
 0x2b2   : > { %s4428_s23 = sld [smem:[#allocation15_spill]]  ;;  %s4429_s10 = sld [smem:[#allocation17_spill]] }
 0x2b3   : > { %s4431_s12 = smov %s3525_s13  ;;  %s4432_s13 = smov %s3529_s14 }
 0x2b4   : > { %s4433_s14 = smov %s3870_s1  ;;  %s4434_s15 = smov %s3537_s16 }
 0x2b5   : > { %s4435_s16 = smov %s3541_s17  ;;  %s4436_s17 = smov %s3875_s6 }
 0x2b6   : > { %s4437_s18 = smov %s3549_s19  ;;  %s4438_s19 = smov %s3553_s20 }
 0x2b7   : > { %s4439_s20 = smov %s4426_s27  ;;  %s4440_s22 = smov %s3569_s24 }
 0x2b8   : > { %s4441_s24 = smov %s4429_s10  ;;  %21 = sbr.rel (!%p4326_p10) target bundleno = 16 (0x10), region = 109 }
 0x2bf   :  { %2362 = vsyncpa [#allocation3], 1 }
 0x2c0   :  { %2364 = vsyncpa [#allocation3 + $0x1], 1 }
 0x2c1   :  { %2365 = vsyncpa [#allocation6], 1 }
 0x2c2   :  { %2367 = vsyncpa [#allocation6 + $0x1], 1 }
 0x2c3   :  { %2368 = vsyncpa [#allocation4], 1 }
 0x2c4   :  { %2370 = vsyncpa [#allocation4 + $0x1], 1 }

// kernel: net_conv_forward.21
= control target key start
LH: loop header
LB: loop body
LE: loop exit
PB: predicated region body
PF: predicated region fallthrough
CT: control target
= control target key end

     0   :  { %s5213_s0 = inlined_call_operand.hbm [shape: bf16[16,4096], index: 0, kind: input, shape index: {}]   ;;  %s5214_s1 = inlined_call_operand.vmem [shape: bf16[4096,4096], index: 1, kind: input, shape index: {}]   ;;  %s5215_s2 = inlined_call_operand.hbm [shape: f32[1,4096], index: 2, kind: input, shape index: {}]   ;;  %s5216_s3 = inlined_call_operand.hbm [shape: f32[16,4096], index: 3, kind: output, shape index: {}]  }
   0x1   :  { %5230 = sst [smem:[#allocation22_spill]] %s5213_s0 }
   0x2   :  { %5231 = sst [smem:[#allocation23_spill]] %s5216_s3 }
   0x3   :  { %8 = vsyncpa [#allocation3], 0 }
   0x4   :  { %10 = vsyncpa [#allocation3 + $0x1], 0 }
   0x5   :  { %11 = vsyncpa [#allocation7], 0 }
   0x6   :  { %13 = vsyncpa [#allocation7 + $0x1], 0 }
   0x7   :  { %14 = vsyncpa [#allocation4], 0 }
   0x8   :  { %16 = vsyncpa [#allocation4 + $0x1], 0  ;;  %s4046_s12 = smov 0   ;;  %s4048_s13 = smov 0  }
   0x9   :  { %s4050_s14 = smov 0   ;;  %s4052_s15 = smov 0  }
   0xa   :  { %s4054_s16 = smov 0   ;;  %s4056_s17 = smov 0  }
   0xb   :  { %s4058_s18 = smov 0   ;;  %s4060_s19 = smov 0  }
   0xc   :  { %s4062_s20 = smov 0   ;;  %s4064_s21 = smov 0  }
   0xd   :  { %s4066_s22 = smov 0   ;;  %s4068_s23 = smov 0  }
   0xe   :  { %s4070_s24 = smov 0  }
   0xf LB: > { %5232 = sst [smem:[#allocation12_spill]] %s3966_s12  ;;  %s5217_s25 = sadd.s32 4294967295, %s4014_s24   ;;  %s4014_s24 = sphi %s4070_s24, %s22_s24   ;;  %s4010_s23 = sphi %s4068_s23, %s5280_s23   ;;  %s4006_s22 = sphi %s4066_s22, %s5279_s22   ;;  %s4002_s21 = sphi %s4064_s21, %s5278_s21   ;;  %s3998_s20 = sphi %s4062_s20, %s5277_s20   ;;  %s3994_s19 = sphi %s4060_s19, %s5267_s19   ;;  %s3990_s18 = sphi %s4058_s18, %s5276_s18   ;;  %s3986_s17 = sphi %s4056_s17, %s5275_s17   ;;  %s3982_s16 = sphi %s4054_s16, %s5274_s16   ;;  %s3978_s15 = sphi %s4052_s15, %s5273_s15   ;;  %s3974_s14 = sphi %s4050_s14, %s5272_s14   ;;  %s3970_s13 = sphi %s4048_s13, %s5271_s13   ;;  %s3966_s12 = sphi %s4046_s12, %s5270_s12  }
  0x10   : > { %5233 = sst [smem:[#allocation13_spill]] %s3994_s19  ;;  %s34_s27 = sadd.s32 1, %s4006_s22 }
  0x11   : > { %5234 = sst [smem:[#allocation14_spill]] %s4002_s21  ;;  %s37_s28 = sadd.s32 1, %s4010_s23 }
  0x12   : > { %p35_p0 = scmp.ge.s32.totalorder %s34_s27, 4  ;;  %s50_s29 = sadd.s32 1, %s3994_s19 }
  0x13   : > { %p57_p1 = scmp.ne.s32.totalorder %s3994_s19, %s3990_s18  ;;  %p58_p2 = scmp.eq.s32.totalorder %s4014_s24, 0 }
  0x14   : > { %s5282_s27 = smov (%p35_p0, %s34_s27), 0  ;;  %s5284_s28 = smov (!%p35_p0, %s37_s28), %s4010_s23 }
  0x15   : > { %5235 = sst [smem:[#allocation15_spill]] %s5282_s27  ;;  %s46_s30 = ssub.s32 %s4006_s22, %s5282_s27 }
  0x16   : > { %p4124_p3 = por %p58_p2, %p57_p1  ;;  %p39_p4 = scmp.ge.s32.totalorder %s5284_s28, 8 }
  0x17   : > { %p48_p5 = scmp.eq.s32.totalorder %s46_s30, 0  ;;  %p63_p6 = scmp.ne.s32.totalorder %s3990_s18, %s3986_s17 }
  0x18   : > { %p4131_p7 = scmp.eq.s32.totalorder %s5217_s25, 0  ;;  %s5286_s28 = smov (%p39_p4, %s5284_s28), 0 }
  0x19   : > { %5238 = sst [smem:[#allocation16_spill]] %s5286_s28  ;;  %s74_s8 = ssub.s32 %s4010_s23, %s5286_s28 }
  0x1a   : > { %s4138_s6 = scalar_select %p48_p5, %s3994_s19, %s50_s29  }
  0x1b   : > { %p4142_p8 = por %p4131_p7, %p63_p6  ;;  %s75_s9 = sor.u32 %s74_s8, %s46_s30 }
  0x1c   : > { %5239 = sst [smem:[#allocation17_spill]] %s4138_s6  ;;  %s78_s10 = sadd.s32 1, %s3982_s16 }
  0x1d   : > { %s5240_s7 = scalar_select %p4142_p8, 1, 0 }
  0x1e   : > { %p76_p9 = scmp.eq.s32.totalorder %s75_s9, 0  ;;  %p85_p10 = scmp.ne.s32.totalorder %s3982_s16, %s3978_s15 }
  0x1f   : > { %p102_p11 = scmp.eq.s32.totalorder %s74_s8, 0  ;;  %s104_s11 = sadd.s32 1, %s3974_s14 }
  0x20   : > { %s4153_s17 = scalar_select %p76_p9, %s3982_s16, %s78_s10  }
  0x21   : > { %p4157_p12 = por %p85_p10, %p58_p2  ;;  %p111_p13 = scmp.ne.s32.totalorder %s3974_s14, %s3970_s13 }
  0x22   : > { %5241 = sst [smem:[#allocation18_spill]] %s4153_s17  ;;  %p117_p1 = scmp.ne.s32.totalorder %s3970_s13, %s3966_s12 }
  0x23   : > { %s4164_s26 = scalar_select %p102_p11, %s3974_s14, %s104_s11  }
  0x24   : > { %p4168_p0 = por %p111_p13, %p58_p2  ;;  %s5245_s30 = sadd.s32 4294967295, %s4014_s24  }
  0x25   : > { %5243 = sst [smem:[#allocation19_spill]] %s4164_s26  ;;  %p143_p4 = scmp.eq.s32.totalorder %s5245_s30, 31 }
  0x26   : > { %s5244_s25 = scalar_select %p4168_p0, 1, 0 }
  0x27   : > { %s5246_s8 = sadd.s32 4294967294, %s4014_s24   ;;  %p4180_p6 = por %p117_p1, %p4131_p7 }
  0x28   : > { %p149_p5 = scmp.eq.s32.totalorder %s5246_s8, 31  ;;  %p4184_p9 = por %p143_p4, %p111_p13 }
  0x29   : > { %s5247_s9 = scalar_select %p4180_p6, 1, 0 }
  0x2a   : > { %s5248_s10 = scalar_select %p4184_p9, 1, 0 }
  0x2b   : > { %p4188_p10 = por %p149_p5, %p117_p1  ;;  %p2994_p2 = scmp.ge.s32.totalorder %s4014_s24, 32 }
  0x2c   : > { %5249 = sst [smem:[#allocation20_spill]] %s5248_s10  ;;  %s169_s30 = sand.u32 (!%p2994_p2), 1, %s3994_s19  }
  0x2d   : > { %s5250_s11 = scalar_select %p4188_p10, 1, 0 }
  0x2e   : > { %165 = sbr.rel (%p2994_p2) target bundleno = 238 (0xee), region = 16  ;;  %s3282_s5 = sshll.u32 (!%p2994_p2), %s4006_s22, 9 }
  0x2f   : > { %5251 = sst [smem:[#allocation21_spill]] %s5250_s11  ;;  %s2995_s8 = sshll.u32 (!%p2994_p2), %s169_s30, 6 }
  0x30   : > { %s5252_s0 = sld [smem:[#allocation22_spill]] (!%p2994_p2)  ;;  %s173_s17 = scalar_lea.vmem (!%p2994_p2), [#allocation2], %s2995_s8 }
  0x31   : > { %s183_s26 = sshll.u32 (!%p2994_p2), %s173_s17, 4  ;;  %s4202_s11 = scalar_lea.sflag (!%p2994_p2), [#allocation3], %s169_s30  ;;  %s4200_s26 = int_to_ptr.vmem [resolvable:$true] %s183_s26 }
  0x36   : > { %s4198_s6 = scalar_lea.hbm %s5252_s0, %s3282_s5  ;;  %s3820_s27 = scalar_lea.hbm %s5252_s0, 4096 }
  0x37   : > { %s3816_s12 = scalar_lea.hbm %s4198_s6, 1024  ;;  %p3821_p1 = scmp.lt.u32.totalorder %s4198_s6, %s5252_s0 }
  0x38   : > { %p3817_p7 = scmp.ne.s32.totalorder %s4198_s6, %s3816_s12  ;;  %p3822_p4 = scmp.lt.u32.totalorder %s3820_s27, %s3816_s12 }
  0x39   : > { %p3824_p2 = scmp.lt.u32.totalorder %s3816_s12, %s4198_s6 }
  0x3a   : > { %p3818_p11 = pnand %p3817_p7, %p4124_p3  ;;  %p3823_p5 = por %p3822_p4, %p3821_p1 }
  0x3c   : > { %p3819_p13 = pneg %p3818_p11  ;;  %p3825_p10 = por %p3824_p2, %p3823_p5 }
  0x3e   : > { %p3826_p9 = pnand %p3825_p10, %p3819_p13 }
  0x40   : > { %3829 = shalt.err (!%p3826_p9)
}
  0x41   : > { %s3830_s17 = scalar_lea.vmem %s4200_s26, 1024  ;;  %s4016_s3 = smov [#allocation2]  }
  0x42   : > { %p3831_p7 = scmp.ne.s32.totalorder %s4200_s26, %s3830_s17  ;;  %s3834_s19 = sshll.u32 %s4016_s3, 4  ;;  %s3835_s19 = int_to_ptr.vmem [resolvable:$false] %s3834_s19 }
  0x43   : > { %s3836_s30 = scalar_lea.vmem %s3835_s19, 2048  ;;  %p3837_p8 = scmp.lt.s32.totalorder %s4200_s26, %s3835_s19 }
  0x44   : > { %p3832_p11 = pnand %p3831_p7, %p4124_p3  ;;  %p3838_p0 = scmp.lt.s32.totalorder %s3836_s30, %s3830_s17 }
  0x46   : > { %p3833_p6 = pneg %p3832_p11  ;;  %p3839_p1 = por %p3838_p0, %p3837_p8 }
  0x48   : > { %p3840_p4 = pnand %p3839_p1, %p3833_p6 }
  0x4a   : > { %3843 = shalt.err (!%p3840_p4)
}
  0x4b   : > { %s4017_s12 = smov 2048   ;;  %s4018_s8 = smov 512  }
  0x4c   : > { %s4019_s27 = smov 32   ;;  %192 = sbr.rel (!%p4157_p12) target bundleno = 212 (0xd4), region = 24 }
  0x4d   : > { %3310 = dma.hbm_to_vmem [thread:$0]  (%p4124_p3), %s4198_s6, 1024, %s4200_s26, %s4202_s11, %s4017_s12, %s4018_s8, %s4019_s27  }
  0x4e   : > { %s194_s28 = sand.u32 (%p4157_p12), 1, %s3982_s16   ;;  %s3000_s5 = sshll.u32 (%p4157_p12), %s4010_s23, 2 }
  0x4f   : > { %s2998_s17 = sshll.u32 (%p4157_p12), %s194_s28, 11  ;;  %s3283_s3 = sshll.u32 (%p4157_p12), %s4006_s22, 12 }
  0x50   : > { %s200_s19 = sadd.s32 (%p4157_p12), %s3283_s3, %s3000_s5  ;;  %s4239_s26 = scalar_lea.vmem (%p4157_p12), [#allocation5], %s2998_s17 }
  0x51   : > { %s3002_s30 = sshll.u32 (%p4157_p12), %s200_s19, 2 }
  0x52   : > { %s4234_s21 = scalar_lea.vmem (%p4157_p12), %s5214_s1, %s3002_s30 }
  0x53   : > { %v215_v0 = vld [vmem:[%s4234_s21] sm:$0xff]  ;;  %v217_v1 = vld [vmem:[%s4234_s21 + $0x8] sm:$0xff] }
  0x54   : > { %v219_v2 = vld [vmem:[%s4234_s21 + $0x80] sm:$0xff]  ;;  %216 = vst [vmem:[%s4239_s26] sm:$0xff] %v215_v0  ;;  %218 = vst [vmem:[%s4239_s26 + $0x8] sm:$0xff] %v217_v1  ;;  %v221_v3 = vld [vmem:[%s4234_s21 + $0x88] sm:$0xff] }
  0x55   : > { %220 = vst [vmem:[%s4239_s26 + $0x10] sm:$0xff] %v219_v2  ;;  %v223_v4 = vld [vmem:[%s4234_s21 + $0x100] sm:$0xff]  ;;  %v225_v5 = vld [vmem:[%s4234_s21 + $0x108] sm:$0xff]  ;;  %222 = vst [vmem:[%s4239_s26 + $0x18] sm:$0xff] %v221_v3 }
  0x56   : > { %224 = vst [vmem:[%s4239_s26 + $0x20] sm:$0xff] %v223_v4  ;;  %226 = vst [vmem:[%s4239_s26 + $0x28] sm:$0xff] %v225_v5  ;;  %v227_v6 = vld [vmem:[%s4234_s21 + $0x180] sm:$0xff]  ;;  %v229_v7 = vld [vmem:[%s4234_s21 + $0x188] sm:$0xff] }
  0x57   : > { %v231_v8 = vld [vmem:[%s4234_s21 + $0x200] sm:$0xff]  ;;  %228 = vst [vmem:[%s4239_s26 + $0x30] sm:$0xff] %v227_v6  ;;  %230 = vst [vmem:[%s4239_s26 + $0x38] sm:$0xff] %v229_v7  ;;  %v233_v9 = vld [vmem:[%s4234_s21 + $0x208] sm:$0xff] }
  0x58   : > { %232 = vst [vmem:[%s4239_s26 + $0x40] sm:$0xff] %v231_v8  ;;  %v235_v10 = vld [vmem:[%s4234_s21 + $0x280] sm:$0xff]  ;;  %v237_v11 = vld [vmem:[%s4234_s21 + $0x288] sm:$0xff]  ;;  %234 = vst [vmem:[%s4239_s26 + $0x48] sm:$0xff] %v233_v9 }
  0x59   : > { %236 = vst [vmem:[%s4239_s26 + $0x50] sm:$0xff] %v235_v10  ;;  %238 = vst [vmem:[%s4239_s26 + $0x58] sm:$0xff] %v237_v11  ;;  %v239_v12 = vld [vmem:[%s4234_s21 + $0x300] sm:$0xff]  ;;  %v241_v13 = vld [vmem:[%s4234_s21 + $0x308] sm:$0xff] }
  0x5a   : > { %v243_v14 = vld [vmem:[%s4234_s21 + $0x380] sm:$0xff]  ;;  %240 = vst [vmem:[%s4239_s26 + $0x60] sm:$0xff] %v239_v12  ;;  %242 = vst [vmem:[%s4239_s26 + $0x68] sm:$0xff] %v241_v13  ;;  %v245_v15 = vld [vmem:[%s4234_s21 + $0x388] sm:$0xff] }
  0x5b   : > { %244 = vst [vmem:[%s4239_s26 + $0x70] sm:$0xff] %v243_v14  ;;  %v247_v16 = vld [vmem:[%s4234_s21 + $0x400] sm:$0xff]  ;;  %v249_v17 = vld [vmem:[%s4234_s21 + $0x408] sm:$0xff]  ;;  %246 = vst [vmem:[%s4239_s26 + $0x78] sm:$0xff] %v245_v15 }
  0x5c   : > { %248 = vst [vmem:[%s4239_s26 + $0x80] sm:$0xff] %v247_v16  ;;  %250 = vst [vmem:[%s4239_s26 + $0x88] sm:$0xff] %v249_v17  ;;  %v251_v18 = vld [vmem:[%s4234_s21 + $0x480] sm:$0xff]  ;;  %v253_v19 = vld [vmem:[%s4234_s21 + $0x488] sm:$0xff] }
  0x5d   : > { %v255_v20 = vld [vmem:[%s4234_s21 + $0x500] sm:$0xff]  ;;  %252 = vst [vmem:[%s4239_s26 + $0x90] sm:$0xff] %v251_v18  ;;  %254 = vst [vmem:[%s4239_s26 + $0x98] sm:$0xff] %v253_v19  ;;  %v257_v21 = vld [vmem:[%s4234_s21 + $0x508] sm:$0xff] }
  0x5e   : > { %256 = vst [vmem:[%s4239_s26 + $0xa0] sm:$0xff] %v255_v20  ;;  %v259_v22 = vld [vmem:[%s4234_s21 + $0x580] sm:$0xff]  ;;  %v261_v23 = vld [vmem:[%s4234_s21 + $0x588] sm:$0xff]  ;;  %258 = vst [vmem:[%s4239_s26 + $0xa8] sm:$0xff] %v257_v21 }
  0x5f   : > { %260 = vst [vmem:[%s4239_s26 + $0xb0] sm:$0xff] %v259_v22  ;;  %262 = vst [vmem:[%s4239_s26 + $0xb8] sm:$0xff] %v261_v23  ;;  %v263_v24 = vld [vmem:[%s4234_s21 + $0x600] sm:$0xff]  ;;  %v265_v25 = vld [vmem:[%s4234_s21 + $0x608] sm:$0xff] }
  0x60   : > { %v267_v26 = vld [vmem:[%s4234_s21 + $0x680] sm:$0xff]  ;;  %264 = vst [vmem:[%s4239_s26 + $0xc0] sm:$0xff] %v263_v24  ;;  %266 = vst [vmem:[%s4239_s26 + $0xc8] sm:$0xff] %v265_v25  ;;  %v269_v27 = vld [vmem:[%s4234_s21 + $0x688] sm:$0xff] }
  0x61   : > { %268 = vst [vmem:[%s4239_s26 + $0xd0] sm:$0xff] %v267_v26  ;;  %v271_v28 = vld [vmem:[%s4234_s21 + $0x700] sm:$0xff]  ;;  %v273_v29 = vld [vmem:[%s4234_s21 + $0x708] sm:$0xff]  ;;  %270 = vst [vmem:[%s4239_s26 + $0xd8] sm:$0xff] %v269_v27 }
  0x62   : > { %272 = vst [vmem:[%s4239_s26 + $0xe0] sm:$0xff] %v271_v28  ;;  %274 = vst [vmem:[%s4239_s26 + $0xe8] sm:$0xff] %v273_v29  ;;  %v275_v30 = vld [vmem:[%s4234_s21 + $0x780] sm:$0xff]  ;;  %v277_v31 = vld [vmem:[%s4234_s21 + $0x788] sm:$0xff] }
  0x63   : > { %v279_v32 = vld [vmem:[%s4234_s21 + $0x800] sm:$0xff]  ;;  %276 = vst [vmem:[%s4239_s26 + $0xf0] sm:$0xff] %v275_v30  ;;  %278 = vst [vmem:[%s4239_s26 + $0xf8] sm:$0xff] %v277_v31  ;;  %v281_v33 = vld [vmem:[%s4234_s21 + $0x808] sm:$0xff] }
  0x64   : > { %280 = vst [vmem:[%s4239_s26 + $0x100] sm:$0xff] %v279_v32  ;;  %v283_v34 = vld [vmem:[%s4234_s21 + $0x880] sm:$0xff]  ;;  %v285_v35 = vld [vmem:[%s4234_s21 + $0x888] sm:$0xff]  ;;  %282 = vst [vmem:[%s4239_s26 + $0x108] sm:$0xff] %v281_v33 }
  0x65   : > { %284 = vst [vmem:[%s4239_s26 + $0x110] sm:$0xff] %v283_v34  ;;  %286 = vst [vmem:[%s4239_s26 + $0x118] sm:$0xff] %v285_v35  ;;  %v287_v36 = vld [vmem:[%s4234_s21 + $0x900] sm:$0xff]  ;;  %v289_v37 = vld [vmem:[%s4234_s21 + $0x908] sm:$0xff] }
  0x66   : > { %v291_v38 = vld [vmem:[%s4234_s21 + $0x980] sm:$0xff]  ;;  %288 = vst [vmem:[%s4239_s26 + $0x120] sm:$0xff] %v287_v36  ;;  %290 = vst [vmem:[%s4239_s26 + $0x128] sm:$0xff] %v289_v37  ;;  %v293_v39 = vld [vmem:[%s4234_s21 + $0x988] sm:$0xff] }
  0x67   : > { %292 = vst [vmem:[%s4239_s26 + $0x130] sm:$0xff] %v291_v38  ;;  %v295_v40 = vld [vmem:[%s4234_s21 + $0xa00] sm:$0xff]  ;;  %v297_v41 = vld [vmem:[%s4234_s21 + $0xa08] sm:$0xff]  ;;  %294 = vst [vmem:[%s4239_s26 + $0x138] sm:$0xff] %v293_v39 }
  0x68   : > { %296 = vst [vmem:[%s4239_s26 + $0x140] sm:$0xff] %v295_v40  ;;  %298 = vst [vmem:[%s4239_s26 + $0x148] sm:$0xff] %v297_v41  ;;  %v299_v42 = vld [vmem:[%s4234_s21 + $0xa80] sm:$0xff]  ;;  %v301_v43 = vld [vmem:[%s4234_s21 + $0xa88] sm:$0xff] }
  0x69   : > { %v303_v44 = vld [vmem:[%s4234_s21 + $0xb00] sm:$0xff]  ;;  %300 = vst [vmem:[%s4239_s26 + $0x150] sm:$0xff] %v299_v42  ;;  %302 = vst [vmem:[%s4239_s26 + $0x158] sm:$0xff] %v301_v43  ;;  %v305_v45 = vld [vmem:[%s4234_s21 + $0xb08] sm:$0xff] }
  0x6a   : > { %304 = vst [vmem:[%s4239_s26 + $0x160] sm:$0xff] %v303_v44  ;;  %v307_v46 = vld [vmem:[%s4234_s21 + $0xb80] sm:$0xff]  ;;  %v309_v47 = vld [vmem:[%s4234_s21 + $0xb88] sm:$0xff]  ;;  %306 = vst [vmem:[%s4239_s26 + $0x168] sm:$0xff] %v305_v45 }
  0x6b   : > { %308 = vst [vmem:[%s4239_s26 + $0x170] sm:$0xff] %v307_v46  ;;  %310 = vst [vmem:[%s4239_s26 + $0x178] sm:$0xff] %v309_v47  ;;  %v311_v48 = vld [vmem:[%s4234_s21 + $0xc00] sm:$0xff]  ;;  %v313_v49 = vld [vmem:[%s4234_s21 + $0xc08] sm:$0xff] }
  0x6c   : > { %v315_v50 = vld [vmem:[%s4234_s21 + $0xc80] sm:$0xff]  ;;  %312 = vst [vmem:[%s4239_s26 + $0x180] sm:$0xff] %v311_v48  ;;  %314 = vst [vmem:[%s4239_s26 + $0x188] sm:$0xff] %v313_v49  ;;  %v317_v51 = vld [vmem:[%s4234_s21 + $0xc88] sm:$0xff] }
  0x6d   : > { %316 = vst [vmem:[%s4239_s26 + $0x190] sm:$0xff] %v315_v50  ;;  %v319_v52 = vld [vmem:[%s4234_s21 + $0xd00] sm:$0xff]  ;;  %v321_v53 = vld [vmem:[%s4234_s21 + $0xd08] sm:$0xff]  ;;  %318 = vst [vmem:[%s4239_s26 + $0x198] sm:$0xff] %v317_v51 }
  0x6e   : > { %320 = vst [vmem:[%s4239_s26 + $0x1a0] sm:$0xff] %v319_v52  ;;  %322 = vst [vmem:[%s4239_s26 + $0x1a8] sm:$0xff] %v321_v53  ;;  %v323_v54 = vld [vmem:[%s4234_s21 + $0xd80] sm:$0xff]  ;;  %v325_v55 = vld [vmem:[%s4234_s21 + $0xd88] sm:$0xff] }
  0x6f   : > { %v327_v56 = vld [vmem:[%s4234_s21 + $0xe00] sm:$0xff]  ;;  %324 = vst [vmem:[%s4239_s26 + $0x1b0] sm:$0xff] %v323_v54  ;;  %326 = vst [vmem:[%s4239_s26 + $0x1b8] sm:$0xff] %v325_v55  ;;  %v329_v57 = vld [vmem:[%s4234_s21 + $0xe08] sm:$0xff] }
  0x70   : > { %328 = vst [vmem:[%s4239_s26 + $0x1c0] sm:$0xff] %v327_v56  ;;  %v331_v58 = vld [vmem:[%s4234_s21 + $0xe80] sm:$0xff]  ;;  %v333_v59 = vld [vmem:[%s4234_s21 + $0xe88] sm:$0xff]  ;;  %330 = vst [vmem:[%s4239_s26 + $0x1c8] sm:$0xff] %v329_v57 }
  0x71   : > { %332 = vst [vmem:[%s4239_s26 + $0x1d0] sm:$0xff] %v331_v58  ;;  %334 = vst [vmem:[%s4239_s26 + $0x1d8] sm:$0xff] %v333_v59  ;;  %v335_v60 = vld [vmem:[%s4234_s21 + $0xf00] sm:$0xff]  ;;  %v337_v61 = vld [vmem:[%s4234_s21 + $0xf08] sm:$0xff] }
  0x72   : > { %v339_v62 = vld [vmem:[%s4234_s21 + $0xf80] sm:$0xff]  ;;  %336 = vst [vmem:[%s4239_s26 + $0x1e0] sm:$0xff] %v335_v60  ;;  %338 = vst [vmem:[%s4239_s26 + $0x1e8] sm:$0xff] %v337_v61  ;;  %v341_v63 = vld [vmem:[%s4234_s21 + $0xf88] sm:$0xff] }
  0x73   : > { %340 = vst [vmem:[%s4239_s26 + $0x1f0] sm:$0xff] %v339_v62  ;;  %v343_v0 = vld [vmem:[%s4234_s21 + $0x1000] sm:$0xff]  ;;  %v345_v1 = vld [vmem:[%s4234_s21 + $0x1008] sm:$0xff]  ;;  %342 = vst [vmem:[%s4239_s26 + $0x1f8] sm:$0xff] %v341_v63 }
  0x74   : > { %344 = vst [vmem:[%s4239_s26 + $0x200] sm:$0xff] %v343_v0  ;;  %346 = vst [vmem:[%s4239_s26 + $0x208] sm:$0xff] %v345_v1  ;;  %v347_v2 = vld [vmem:[%s4234_s21 + $0x1080] sm:$0xff]  ;;  %v349_v3 = vld [vmem:[%s4234_s21 + $0x1088] sm:$0xff] }
  0x75   : > { %v351_v4 = vld [vmem:[%s4234_s21 + $0x1100] sm:$0xff]  ;;  %348 = vst [vmem:[%s4239_s26 + $0x210] sm:$0xff] %v347_v2  ;;  %350 = vst [vmem:[%s4239_s26 + $0x218] sm:$0xff] %v349_v3  ;;  %v353_v5 = vld [vmem:[%s4234_s21 + $0x1108] sm:$0xff] }
  0x76   : > { %352 = vst [vmem:[%s4239_s26 + $0x220] sm:$0xff] %v351_v4  ;;  %v355_v6 = vld [vmem:[%s4234_s21 + $0x1180] sm:$0xff]  ;;  %v357_v7 = vld [vmem:[%s4234_s21 + $0x1188] sm:$0xff]  ;;  %354 = vst [vmem:[%s4239_s26 + $0x228] sm:$0xff] %v353_v5 }
  0x77   : > { %356 = vst [vmem:[%s4239_s26 + $0x230] sm:$0xff] %v355_v6  ;;  %358 = vst [vmem:[%s4239_s26 + $0x238] sm:$0xff] %v357_v7  ;;  %v359_v8 = vld [vmem:[%s4234_s21 + $0x1200] sm:$0xff]  ;;  %v361_v9 = vld [vmem:[%s4234_s21 + $0x1208] sm:$0xff] }
  0x78   : > { %v363_v10 = vld [vmem:[%s4234_s21 + $0x1280] sm:$0xff]  ;;  %360 = vst [vmem:[%s4239_s26 + $0x240] sm:$0xff] %v359_v8  ;;  %362 = vst [vmem:[%s4239_s26 + $0x248] sm:$0xff] %v361_v9  ;;  %v365_v11 = vld [vmem:[%s4234_s21 + $0x1288] sm:$0xff] }
  0x79   : > { %364 = vst [vmem:[%s4239_s26 + $0x250] sm:$0xff] %v363_v10  ;;  %v367_v12 = vld [vmem:[%s4234_s21 + $0x1300] sm:$0xff]  ;;  %v369_v13 = vld [vmem:[%s4234_s21 + $0x1308] sm:$0xff]  ;;  %366 = vst [vmem:[%s4239_s26 + $0x258] sm:$0xff] %v365_v11 }
  0x7a   : > { %368 = vst [vmem:[%s4239_s26 + $0x260] sm:$0xff] %v367_v12  ;;  %370 = vst [vmem:[%s4239_s26 + $0x268] sm:$0xff] %v369_v13  ;;  %v371_v14 = vld [vmem:[%s4234_s21 + $0x1380] sm:$0xff]  ;;  %v373_v15 = vld [vmem:[%s4234_s21 + $0x1388] sm:$0xff] }
  0x7b   : > { %v375_v16 = vld [vmem:[%s4234_s21 + $0x1400] sm:$0xff]  ;;  %372 = vst [vmem:[%s4239_s26 + $0x270] sm:$0xff] %v371_v14  ;;  %374 = vst [vmem:[%s4239_s26 + $0x278] sm:$0xff] %v373_v15  ;;  %v377_v17 = vld [vmem:[%s4234_s21 + $0x1408] sm:$0xff] }
  0x7c   : > { %376 = vst [vmem:[%s4239_s26 + $0x280] sm:$0xff] %v375_v16  ;;  %v379_v18 = vld [vmem:[%s4234_s21 + $0x1480] sm:$0xff]  ;;  %v381_v19 = vld [vmem:[%s4234_s21 + $0x1488] sm:$0xff]  ;;  %378 = vst [vmem:[%s4239_s26 + $0x288] sm:$0xff] %v377_v17 }
  0x7d   : > { %380 = vst [vmem:[%s4239_s26 + $0x290] sm:$0xff] %v379_v18  ;;  %382 = vst [vmem:[%s4239_s26 + $0x298] sm:$0xff] %v381_v19  ;;  %v383_v20 = vld [vmem:[%s4234_s21 + $0x1500] sm:$0xff]  ;;  %v385_v21 = vld [vmem:[%s4234_s21 + $0x1508] sm:$0xff] }
  0x7e   : > { %v387_v22 = vld [vmem:[%s4234_s21 + $0x1580] sm:$0xff]  ;;  %384 = vst [vmem:[%s4239_s26 + $0x2a0] sm:$0xff] %v383_v20  ;;  %386 = vst [vmem:[%s4239_s26 + $0x2a8] sm:$0xff] %v385_v21  ;;  %v389_v23 = vld [vmem:[%s4234_s21 + $0x1588] sm:$0xff] }
  0x7f   : > { %388 = vst [vmem:[%s4239_s26 + $0x2b0] sm:$0xff] %v387_v22  ;;  %v391_v24 = vld [vmem:[%s4234_s21 + $0x1600] sm:$0xff]  ;;  %v393_v25 = vld [vmem:[%s4234_s21 + $0x1608] sm:$0xff]  ;;  %390 = vst [vmem:[%s4239_s26 + $0x2b8] sm:$0xff] %v389_v23 }
  0x80   : > { %392 = vst [vmem:[%s4239_s26 + $0x2c0] sm:$0xff] %v391_v24  ;;  %394 = vst [vmem:[%s4239_s26 + $0x2c8] sm:$0xff] %v393_v25  ;;  %v395_v26 = vld [vmem:[%s4234_s21 + $0x1680] sm:$0xff]  ;;  %v397_v27 = vld [vmem:[%s4234_s21 + $0x1688] sm:$0xff] }
  0x81   : > { %v399_v28 = vld [vmem:[%s4234_s21 + $0x1700] sm:$0xff]  ;;  %396 = vst [vmem:[%s4239_s26 + $0x2d0] sm:$0xff] %v395_v26  ;;  %398 = vst [vmem:[%s4239_s26 + $0x2d8] sm:$0xff] %v397_v27  ;;  %v401_v29 = vld [vmem:[%s4234_s21 + $0x1708] sm:$0xff] }
  0x82   : > { %400 = vst [vmem:[%s4239_s26 + $0x2e0] sm:$0xff] %v399_v28  ;;  %v403_v30 = vld [vmem:[%s4234_s21 + $0x1780] sm:$0xff]  ;;  %v405_v31 = vld [vmem:[%s4234_s21 + $0x1788] sm:$0xff]  ;;  %402 = vst [vmem:[%s4239_s26 + $0x2e8] sm:$0xff] %v401_v29 }
  0x83   : > { %404 = vst [vmem:[%s4239_s26 + $0x2f0] sm:$0xff] %v403_v30  ;;  %406 = vst [vmem:[%s4239_s26 + $0x2f8] sm:$0xff] %v405_v31  ;;  %v407_v32 = vld [vmem:[%s4234_s21 + $0x1800] sm:$0xff]  ;;  %v409_v33 = vld [vmem:[%s4234_s21 + $0x1808] sm:$0xff] }
  0x84   : > { %v411_v34 = vld [vmem:[%s4234_s21 + $0x1880] sm:$0xff]  ;;  %408 = vst [vmem:[%s4239_s26 + $0x300] sm:$0xff] %v407_v32  ;;  %410 = vst [vmem:[%s4239_s26 + $0x308] sm:$0xff] %v409_v33  ;;  %v413_v35 = vld [vmem:[%s4234_s21 + $0x1888] sm:$0xff] }
  0x85   : > { %412 = vst [vmem:[%s4239_s26 + $0x310] sm:$0xff] %v411_v34  ;;  %v415_v36 = vld [vmem:[%s4234_s21 + $0x1900] sm:$0xff]  ;;  %v417_v37 = vld [vmem:[%s4234_s21 + $0x1908] sm:$0xff]  ;;  %414 = vst [vmem:[%s4239_s26 + $0x318] sm:$0xff] %v413_v35 }
  0x86   : > { %416 = vst [vmem:[%s4239_s26 + $0x320] sm:$0xff] %v415_v36  ;;  %418 = vst [vmem:[%s4239_s26 + $0x328] sm:$0xff] %v417_v37  ;;  %v419_v38 = vld [vmem:[%s4234_s21 + $0x1980] sm:$0xff]  ;;  %v421_v39 = vld [vmem:[%s4234_s21 + $0x1988] sm:$0xff] }
  0x87   : > { %v423_v40 = vld [vmem:[%s4234_s21 + $0x1a00] sm:$0xff]  ;;  %420 = vst [vmem:[%s4239_s26 + $0x330] sm:$0xff] %v419_v38  ;;  %422 = vst [vmem:[%s4239_s26 + $0x338] sm:$0xff] %v421_v39  ;;  %v425_v41 = vld [vmem:[%s4234_s21 + $0x1a08] sm:$0xff] }
  0x88   : > { %424 = vst [vmem:[%s4239_s26 + $0x340] sm:$0xff] %v423_v40  ;;  %v427_v42 = vld [vmem:[%s4234_s21 + $0x1a80] sm:$0xff]  ;;  %v429_v43 = vld [vmem:[%s4234_s21 + $0x1a88] sm:$0xff]  ;;  %426 = vst [vmem:[%s4239_s26 + $0x348] sm:$0xff] %v425_v41 }
  0x89   : > { %428 = vst [vmem:[%s4239_s26 + $0x350] sm:$0xff] %v427_v42  ;;  %430 = vst [vmem:[%s4239_s26 + $0x358] sm:$0xff] %v429_v43  ;;  %v431_v44 = vld [vmem:[%s4234_s21 + $0x1b00] sm:$0xff]  ;;  %v433_v45 = vld [vmem:[%s4234_s21 + $0x1b08] sm:$0xff] }
  0x8a   : > { %v435_v46 = vld [vmem:[%s4234_s21 + $0x1b80] sm:$0xff]  ;;  %432 = vst [vmem:[%s4239_s26 + $0x360] sm:$0xff] %v431_v44  ;;  %434 = vst [vmem:[%s4239_s26 + $0x368] sm:$0xff] %v433_v45  ;;  %v437_v47 = vld [vmem:[%s4234_s21 + $0x1b88] sm:$0xff] }
  0x8b   : > { %436 = vst [vmem:[%s4239_s26 + $0x370] sm:$0xff] %v435_v46  ;;  %v439_v48 = vld [vmem:[%s4234_s21 + $0x1c00] sm:$0xff]  ;;  %v441_v49 = vld [vmem:[%s4234_s21 + $0x1c08] sm:$0xff]  ;;  %438 = vst [vmem:[%s4239_s26 + $0x378] sm:$0xff] %v437_v47 }
  0x8c   : > { %440 = vst [vmem:[%s4239_s26 + $0x380] sm:$0xff] %v439_v48  ;;  %442 = vst [vmem:[%s4239_s26 + $0x388] sm:$0xff] %v441_v49  ;;  %v443_v50 = vld [vmem:[%s4234_s21 + $0x1c80] sm:$0xff]  ;;  %v445_v51 = vld [vmem:[%s4234_s21 + $0x1c88] sm:$0xff] }
  0x8d   : > { %v447_v52 = vld [vmem:[%s4234_s21 + $0x1d00] sm:$0xff]  ;;  %444 = vst [vmem:[%s4239_s26 + $0x390] sm:$0xff] %v443_v50  ;;  %446 = vst [vmem:[%s4239_s26 + $0x398] sm:$0xff] %v445_v51  ;;  %v449_v53 = vld [vmem:[%s4234_s21 + $0x1d08] sm:$0xff] }
  0x8e   : > { %448 = vst [vmem:[%s4239_s26 + $0x3a0] sm:$0xff] %v447_v52  ;;  %v451_v54 = vld [vmem:[%s4234_s21 + $0x1d80] sm:$0xff]  ;;  %v453_v55 = vld [vmem:[%s4234_s21 + $0x1d88] sm:$0xff]  ;;  %450 = vst [vmem:[%s4239_s26 + $0x3a8] sm:$0xff] %v449_v53 }
  0x8f   : > { %452 = vst [vmem:[%s4239_s26 + $0x3b0] sm:$0xff] %v451_v54  ;;  %454 = vst [vmem:[%s4239_s26 + $0x3b8] sm:$0xff] %v453_v55  ;;  %v455_v56 = vld [vmem:[%s4234_s21 + $0x1e00] sm:$0xff]  ;;  %v457_v57 = vld [vmem:[%s4234_s21 + $0x1e08] sm:$0xff] }
  0x90   : > { %v459_v58 = vld [vmem:[%s4234_s21 + $0x1e80] sm:$0xff]  ;;  %456 = vst [vmem:[%s4239_s26 + $0x3c0] sm:$0xff] %v455_v56  ;;  %458 = vst [vmem:[%s4239_s26 + $0x3c8] sm:$0xff] %v457_v57  ;;  %v461_v59 = vld [vmem:[%s4234_s21 + $0x1e88] sm:$0xff] }
  0x91   : > { %460 = vst [vmem:[%s4239_s26 + $0x3d0] sm:$0xff] %v459_v58  ;;  %v463_v60 = vld [vmem:[%s4234_s21 + $0x1f00] sm:$0xff]  ;;  %v465_v61 = vld [vmem:[%s4234_s21 + $0x1f08] sm:$0xff]  ;;  %462 = vst [vmem:[%s4239_s26 + $0x3d8] sm:$0xff] %v461_v59 }
  0x92   : > { %464 = vst [vmem:[%s4239_s26 + $0x3e0] sm:$0xff] %v463_v60  ;;  %466 = vst [vmem:[%s4239_s26 + $0x3e8] sm:$0xff] %v465_v61  ;;  %v467_v62 = vld [vmem:[%s4234_s21 + $0x1f80] sm:$0xff]  ;;  %v469_v63 = vld [vmem:[%s4234_s21 + $0x1f88] sm:$0xff] }
  0x93   : > { %v471_v0 = vld [vmem:[%s4234_s21 + $0x2000] sm:$0xff]  ;;  %468 = vst [vmem:[%s4239_s26 + $0x3f0] sm:$0xff] %v467_v62  ;;  %470 = vst [vmem:[%s4239_s26 + $0x3f8] sm:$0xff] %v469_v63  ;;  %v473_v1 = vld [vmem:[%s4234_s21 + $0x2008] sm:$0xff] }
  0x94   : > { %472 = vst [vmem:[%s4239_s26 + $0x400] sm:$0xff] %v471_v0  ;;  %v475_v2 = vld [vmem:[%s4234_s21 + $0x2080] sm:$0xff]  ;;  %v477_v3 = vld [vmem:[%s4234_s21 + $0x2088] sm:$0xff]  ;;  %474 = vst [vmem:[%s4239_s26 + $0x408] sm:$0xff] %v473_v1 }
  0x95   : > { %476 = vst [vmem:[%s4239_s26 + $0x410] sm:$0xff] %v475_v2  ;;  %478 = vst [vmem:[%s4239_s26 + $0x418] sm:$0xff] %v477_v3  ;;  %v479_v4 = vld [vmem:[%s4234_s21 + $0x2100] sm:$0xff]  ;;  %v481_v5 = vld [vmem:[%s4234_s21 + $0x2108] sm:$0xff] }
  0x96   : > { %v483_v6 = vld [vmem:[%s4234_s21 + $0x2180] sm:$0xff]  ;;  %480 = vst [vmem:[%s4239_s26 + $0x420] sm:$0xff] %v479_v4  ;;  %482 = vst [vmem:[%s4239_s26 + $0x428] sm:$0xff] %v481_v5  ;;  %v485_v7 = vld [vmem:[%s4234_s21 + $0x2188] sm:$0xff] }
  0x97   : > { %484 = vst [vmem:[%s4239_s26 + $0x430] sm:$0xff] %v483_v6  ;;  %v487_v8 = vld [vmem:[%s4234_s21 + $0x2200] sm:$0xff]  ;;  %v489_v9 = vld [vmem:[%s4234_s21 + $0x2208] sm:$0xff]  ;;  %486 = vst [vmem:[%s4239_s26 + $0x438] sm:$0xff] %v485_v7 }
  0x98   : > { %488 = vst [vmem:[%s4239_s26 + $0x440] sm:$0xff] %v487_v8  ;;  %490 = vst [vmem:[%s4239_s26 + $0x448] sm:$0xff] %v489_v9  ;;  %v491_v10 = vld [vmem:[%s4234_s21 + $0x2280] sm:$0xff]  ;;  %v493_v11 = vld [vmem:[%s4234_s21 + $0x2288] sm:$0xff] }
  0x99   : > { %v495_v12 = vld [vmem:[%s4234_s21 + $0x2300] sm:$0xff]  ;;  %492 = vst [vmem:[%s4239_s26 + $0x450] sm:$0xff] %v491_v10  ;;  %494 = vst [vmem:[%s4239_s26 + $0x458] sm:$0xff] %v493_v11  ;;  %v497_v13 = vld [vmem:[%s4234_s21 + $0x2308] sm:$0xff] }
  0x9a   : > { %496 = vst [vmem:[%s4239_s26 + $0x460] sm:$0xff] %v495_v12  ;;  %v499_v14 = vld [vmem:[%s4234_s21 + $0x2380] sm:$0xff]  ;;  %v501_v15 = vld [vmem:[%s4234_s21 + $0x2388] sm:$0xff]  ;;  %498 = vst [vmem:[%s4239_s26 + $0x468] sm:$0xff] %v497_v13 }
  0x9b   : > { %500 = vst [vmem:[%s4239_s26 + $0x470] sm:$0xff] %v499_v14  ;;  %502 = vst [vmem:[%s4239_s26 + $0x478] sm:$0xff] %v501_v15  ;;  %v503_v16 = vld [vmem:[%s4234_s21 + $0x2400] sm:$0xff]  ;;  %v505_v17 = vld [vmem:[%s4234_s21 + $0x2408] sm:$0xff] }
  0x9c   : > { %v507_v18 = vld [vmem:[%s4234_s21 + $0x2480] sm:$0xff]  ;;  %504 = vst [vmem:[%s4239_s26 + $0x480] sm:$0xff] %v503_v16  ;;  %506 = vst [vmem:[%s4239_s26 + $0x488] sm:$0xff] %v505_v17  ;;  %v509_v19 = vld [vmem:[%s4234_s21 + $0x2488] sm:$0xff] }
  0x9d   : > { %508 = vst [vmem:[%s4239_s26 + $0x490] sm:$0xff] %v507_v18  ;;  %v511_v20 = vld [vmem:[%s4234_s21 + $0x2500] sm:$0xff]  ;;  %v513_v21 = vld [vmem:[%s4234_s21 + $0x2508] sm:$0xff]  ;;  %510 = vst [vmem:[%s4239_s26 + $0x498] sm:$0xff] %v509_v19 }
  0x9e   : > { %512 = vst [vmem:[%s4239_s26 + $0x4a0] sm:$0xff] %v511_v20  ;;  %514 = vst [vmem:[%s4239_s26 + $0x4a8] sm:$0xff] %v513_v21  ;;  %v515_v22 = vld [vmem:[%s4234_s21 + $0x2580] sm:$0xff]  ;;  %v517_v23 = vld [vmem:[%s4234_s21 + $0x2588] sm:$0xff] }
  0x9f   : > { %v519_v24 = vld [vmem:[%s4234_s21 + $0x2600] sm:$0xff]  ;;  %516 = vst [vmem:[%s4239_s26 + $0x4b0] sm:$0xff] %v515_v22  ;;  %518 = vst [vmem:[%s4239_s26 + $0x4b8] sm:$0xff] %v517_v23  ;;  %v521_v25 = vld [vmem:[%s4234_s21 + $0x2608] sm:$0xff] }
  0xa0   : > { %520 = vst [vmem:[%s4239_s26 + $0x4c0] sm:$0xff] %v519_v24  ;;  %v523_v26 = vld [vmem:[%s4234_s21 + $0x2680] sm:$0xff]  ;;  %v525_v27 = vld [vmem:[%s4234_s21 + $0x2688] sm:$0xff]  ;;  %522 = vst [vmem:[%s4239_s26 + $0x4c8] sm:$0xff] %v521_v25 }
  0xa1   : > { %524 = vst [vmem:[%s4239_s26 + $0x4d0] sm:$0xff] %v523_v26  ;;  %526 = vst [vmem:[%s4239_s26 + $0x4d8] sm:$0xff] %v525_v27  ;;  %v527_v28 = vld [vmem:[%s4234_s21 + $0x2700] sm:$0xff]  ;;  %v529_v29 = vld [vmem:[%s4234_s21 + $0x2708] sm:$0xff] }
  0xa2   : > { %v531_v30 = vld [vmem:[%s4234_s21 + $0x2780] sm:$0xff]  ;;  %528 = vst [vmem:[%s4239_s26 + $0x4e0] sm:$0xff] %v527_v28  ;;  %530 = vst [vmem:[%s4239_s26 + $0x4e8] sm:$0xff] %v529_v29  ;;  %v533_v31 = vld [vmem:[%s4234_s21 + $0x2788] sm:$0xff] }
  0xa3   : > { %532 = vst [vmem:[%s4239_s26 + $0x4f0] sm:$0xff] %v531_v30  ;;  %v535_v32 = vld [vmem:[%s4234_s21 + $0x2800] sm:$0xff]  ;;  %v537_v33 = vld [vmem:[%s4234_s21 + $0x2808] sm:$0xff]  ;;  %534 = vst [vmem:[%s4239_s26 + $0x4f8] sm:$0xff] %v533_v31 }
  0xa4   : > { %536 = vst [vmem:[%s4239_s26 + $0x500] sm:$0xff] %v535_v32  ;;  %538 = vst [vmem:[%s4239_s26 + $0x508] sm:$0xff] %v537_v33  ;;  %v539_v34 = vld [vmem:[%s4234_s21 + $0x2880] sm:$0xff]  ;;  %v541_v35 = vld [vmem:[%s4234_s21 + $0x2888] sm:$0xff] }
  0xa5   : > { %v543_v36 = vld [vmem:[%s4234_s21 + $0x2900] sm:$0xff]  ;;  %540 = vst [vmem:[%s4239_s26 + $0x510] sm:$0xff] %v539_v34  ;;  %542 = vst [vmem:[%s4239_s26 + $0x518] sm:$0xff] %v541_v35  ;;  %v545_v37 = vld [vmem:[%s4234_s21 + $0x2908] sm:$0xff] }
  0xa6   : > { %544 = vst [vmem:[%s4239_s26 + $0x520] sm:$0xff] %v543_v36  ;;  %v547_v38 = vld [vmem:[%s4234_s21 + $0x2980] sm:$0xff]  ;;  %v549_v39 = vld [vmem:[%s4234_s21 + $0x2988] sm:$0xff]  ;;  %546 = vst [vmem:[%s4239_s26 + $0x528] sm:$0xff] %v545_v37 }
  0xa7   : > { %548 = vst [vmem:[%s4239_s26 + $0x530] sm:$0xff] %v547_v38  ;;  %550 = vst [vmem:[%s4239_s26 + $0x538] sm:$0xff] %v549_v39  ;;  %v551_v40 = vld [vmem:[%s4234_s21 + $0x2a00] sm:$0xff]  ;;  %v553_v41 = vld [vmem:[%s4234_s21 + $0x2a08] sm:$0xff] }
  0xa8   : > { %v555_v42 = vld [vmem:[%s4234_s21 + $0x2a80] sm:$0xff]  ;;  %552 = vst [vmem:[%s4239_s26 + $0x540] sm:$0xff] %v551_v40  ;;  %554 = vst [vmem:[%s4239_s26 + $0x548] sm:$0xff] %v553_v41  ;;  %v557_v43 = vld [vmem:[%s4234_s21 + $0x2a88] sm:$0xff] }
  0xa9   : > { %556 = vst [vmem:[%s4239_s26 + $0x550] sm:$0xff] %v555_v42  ;;  %v559_v44 = vld [vmem:[%s4234_s21 + $0x2b00] sm:$0xff]  ;;  %v561_v45 = vld [vmem:[%s4234_s21 + $0x2b08] sm:$0xff]  ;;  %558 = vst [vmem:[%s4239_s26 + $0x558] sm:$0xff] %v557_v43 }
  0xaa   : > { %560 = vst [vmem:[%s4239_s26 + $0x560] sm:$0xff] %v559_v44  ;;  %562 = vst [vmem:[%s4239_s26 + $0x568] sm:$0xff] %v561_v45  ;;  %v563_v46 = vld [vmem:[%s4234_s21 + $0x2b80] sm:$0xff]  ;;  %v565_v47 = vld [vmem:[%s4234_s21 + $0x2b88] sm:$0xff] }
  0xab   : > { %v567_v48 = vld [vmem:[%s4234_s21 + $0x2c00] sm:$0xff]  ;;  %564 = vst [vmem:[%s4239_s26 + $0x570] sm:$0xff] %v563_v46  ;;  %566 = vst [vmem:[%s4239_s26 + $0x578] sm:$0xff] %v565_v47  ;;  %v569_v49 = vld [vmem:[%s4234_s21 + $0x2c08] sm:$0xff] }
  0xac   : > { %568 = vst [vmem:[%s4239_s26 + $0x580] sm:$0xff] %v567_v48  ;;  %v571_v50 = vld [vmem:[%s4234_s21 + $0x2c80] sm:$0xff]  ;;  %v573_v51 = vld [vmem:[%s4234_s21 + $0x2c88] sm:$0xff]  ;;  %570 = vst [vmem:[%s4239_s26 + $0x588] sm:$0xff] %v569_v49 }
  0xad   : > { %572 = vst [vmem:[%s4239_s26 + $0x590] sm:$0xff] %v571_v50  ;;  %574 = vst [vmem:[%s4239_s26 + $0x598] sm:$0xff] %v573_v51  ;;  %v575_v52 = vld [vmem:[%s4234_s21 + $0x2d00] sm:$0xff]  ;;  %v577_v53 = vld [vmem:[%s4234_s21 + $0x2d08] sm:$0xff] }
  0xae   : > { %v579_v54 = vld [vmem:[%s4234_s21 + $0x2d80] sm:$0xff]  ;;  %576 = vst [vmem:[%s4239_s26 + $0x5a0] sm:$0xff] %v575_v52  ;;  %578 = vst [vmem:[%s4239_s26 + $0x5a8] sm:$0xff] %v577_v53  ;;  %v581_v55 = vld [vmem:[%s4234_s21 + $0x2d88] sm:$0xff] }
  0xaf   : > { %580 = vst [vmem:[%s4239_s26 + $0x5b0] sm:$0xff] %v579_v54  ;;  %v583_v56 = vld [vmem:[%s4234_s21 + $0x2e00] sm:$0xff]  ;;  %v585_v57 = vld [vmem:[%s4234_s21 + $0x2e08] sm:$0xff]  ;;  %582 = vst [vmem:[%s4239_s26 + $0x5b8] sm:$0xff] %v581_v55 }
  0xb0   : > { %584 = vst [vmem:[%s4239_s26 + $0x5c0] sm:$0xff] %v583_v56  ;;  %586 = vst [vmem:[%s4239_s26 + $0x5c8] sm:$0xff] %v585_v57  ;;  %v587_v58 = vld [vmem:[%s4234_s21 + $0x2e80] sm:$0xff]  ;;  %v589_v59 = vld [vmem:[%s4234_s21 + $0x2e88] sm:$0xff] }
  0xb1   : > { %v591_v60 = vld [vmem:[%s4234_s21 + $0x2f00] sm:$0xff]  ;;  %588 = vst [vmem:[%s4239_s26 + $0x5d0] sm:$0xff] %v587_v58  ;;  %590 = vst [vmem:[%s4239_s26 + $0x5d8] sm:$0xff] %v589_v59  ;;  %v593_v61 = vld [vmem:[%s4234_s21 + $0x2f08] sm:$0xff] }
  0xb2   : > { %592 = vst [vmem:[%s4239_s26 + $0x5e0] sm:$0xff] %v591_v60  ;;  %v595_v62 = vld [vmem:[%s4234_s21 + $0x2f80] sm:$0xff]  ;;  %v597_v63 = vld [vmem:[%s4234_s21 + $0x2f88] sm:$0xff]  ;;  %594 = vst [vmem:[%s4239_s26 + $0x5e8] sm:$0xff] %v593_v61 }
  0xb3   : > { %596 = vst [vmem:[%s4239_s26 + $0x5f0] sm:$0xff] %v595_v62  ;;  %598 = vst [vmem:[%s4239_s26 + $0x5f8] sm:$0xff] %v597_v63  ;;  %v599_v0 = vld [vmem:[%s4234_s21 + $0x3000] sm:$0xff]  ;;  %v601_v1 = vld [vmem:[%s4234_s21 + $0x3008] sm:$0xff] }
  0xb4   : > { %v603_v2 = vld [vmem:[%s4234_s21 + $0x3080] sm:$0xff]  ;;  %600 = vst [vmem:[%s4239_s26 + $0x600] sm:$0xff] %v599_v0  ;;  %602 = vst [vmem:[%s4239_s26 + $0x608] sm:$0xff] %v601_v1  ;;  %v605_v3 = vld [vmem:[%s4234_s21 + $0x3088] sm:$0xff] }
  0xb5   : > { %604 = vst [vmem:[%s4239_s26 + $0x610] sm:$0xff] %v603_v2  ;;  %v607_v4 = vld [vmem:[%s4234_s21 + $0x3100] sm:$0xff]  ;;  %v609_v5 = vld [vmem:[%s4234_s21 + $0x3108] sm:$0xff]  ;;  %606 = vst [vmem:[%s4239_s26 + $0x618] sm:$0xff] %v605_v3 }
  0xb6   : > { %608 = vst [vmem:[%s4239_s26 + $0x620] sm:$0xff] %v607_v4  ;;  %610 = vst [vmem:[%s4239_s26 + $0x628] sm:$0xff] %v609_v5  ;;  %v611_v6 = vld [vmem:[%s4234_s21 + $0x3180] sm:$0xff]  ;;  %v613_v7 = vld [vmem:[%s4234_s21 + $0x3188] sm:$0xff] }
  0xb7   : > { %v615_v8 = vld [vmem:[%s4234_s21 + $0x3200] sm:$0xff]  ;;  %612 = vst [vmem:[%s4239_s26 + $0x630] sm:$0xff] %v611_v6  ;;  %614 = vst [vmem:[%s4239_s26 + $0x638] sm:$0xff] %v613_v7  ;;  %v617_v9 = vld [vmem:[%s4234_s21 + $0x3208] sm:$0xff] }
  0xb8   : > { %616 = vst [vmem:[%s4239_s26 + $0x640] sm:$0xff] %v615_v8  ;;  %v619_v10 = vld [vmem:[%s4234_s21 + $0x3280] sm:$0xff]  ;;  %v621_v11 = vld [vmem:[%s4234_s21 + $0x3288] sm:$0xff]  ;;  %618 = vst [vmem:[%s4239_s26 + $0x648] sm:$0xff] %v617_v9 }
  0xb9   : > { %620 = vst [vmem:[%s4239_s26 + $0x650] sm:$0xff] %v619_v10  ;;  %622 = vst [vmem:[%s4239_s26 + $0x658] sm:$0xff] %v621_v11  ;;  %v623_v12 = vld [vmem:[%s4234_s21 + $0x3300] sm:$0xff]  ;;  %v625_v13 = vld [vmem:[%s4234_s21 + $0x3308] sm:$0xff] }
  0xba   : > { %v627_v14 = vld [vmem:[%s4234_s21 + $0x3380] sm:$0xff]  ;;  %624 = vst [vmem:[%s4239_s26 + $0x660] sm:$0xff] %v623_v12  ;;  %626 = vst [vmem:[%s4239_s26 + $0x668] sm:$0xff] %v625_v13  ;;  %v629_v15 = vld [vmem:[%s4234_s21 + $0x3388] sm:$0xff] }
  0xbb   : > { %628 = vst [vmem:[%s4239_s26 + $0x670] sm:$0xff] %v627_v14  ;;  %v631_v16 = vld [vmem:[%s4234_s21 + $0x3400] sm:$0xff]  ;;  %v633_v17 = vld [vmem:[%s4234_s21 + $0x3408] sm:$0xff]  ;;  %630 = vst [vmem:[%s4239_s26 + $0x678] sm:$0xff] %v629_v15 }
  0xbc   : > { %632 = vst [vmem:[%s4239_s26 + $0x680] sm:$0xff] %v631_v16  ;;  %634 = vst [vmem:[%s4239_s26 + $0x688] sm:$0xff] %v633_v17  ;;  %v635_v18 = vld [vmem:[%s4234_s21 + $0x3480] sm:$0xff]  ;;  %v637_v19 = vld [vmem:[%s4234_s21 + $0x3488] sm:$0xff] }
  0xbd   : > { %v639_v20 = vld [vmem:[%s4234_s21 + $0x3500] sm:$0xff]  ;;  %636 = vst [vmem:[%s4239_s26 + $0x690] sm:$0xff] %v635_v18  ;;  %638 = vst [vmem:[%s4239_s26 + $0x698] sm:$0xff] %v637_v19  ;;  %v641_v21 = vld [vmem:[%s4234_s21 + $0x3508] sm:$0xff] }
  0xbe   : > { %640 = vst [vmem:[%s4239_s26 + $0x6a0] sm:$0xff] %v639_v20  ;;  %v643_v22 = vld [vmem:[%s4234_s21 + $0x3580] sm:$0xff]  ;;  %v645_v23 = vld [vmem:[%s4234_s21 + $0x3588] sm:$0xff]  ;;  %642 = vst [vmem:[%s4239_s26 + $0x6a8] sm:$0xff] %v641_v21 }
  0xbf   : > { %644 = vst [vmem:[%s4239_s26 + $0x6b0] sm:$0xff] %v643_v22  ;;  %646 = vst [vmem:[%s4239_s26 + $0x6b8] sm:$0xff] %v645_v23  ;;  %v647_v24 = vld [vmem:[%s4234_s21 + $0x3600] sm:$0xff]  ;;  %v649_v25 = vld [vmem:[%s4234_s21 + $0x3608] sm:$0xff] }
  0xc0   : > { %v651_v26 = vld [vmem:[%s4234_s21 + $0x3680] sm:$0xff]  ;;  %648 = vst [vmem:[%s4239_s26 + $0x6c0] sm:$0xff] %v647_v24  ;;  %650 = vst [vmem:[%s4239_s26 + $0x6c8] sm:$0xff] %v649_v25  ;;  %v653_v27 = vld [vmem:[%s4234_s21 + $0x3688] sm:$0xff] }
  0xc1   : > { %652 = vst [vmem:[%s4239_s26 + $0x6d0] sm:$0xff] %v651_v26  ;;  %v655_v28 = vld [vmem:[%s4234_s21 + $0x3700] sm:$0xff]  ;;  %v657_v29 = vld [vmem:[%s4234_s21 + $0x3708] sm:$0xff]  ;;  %654 = vst [vmem:[%s4239_s26 + $0x6d8] sm:$0xff] %v653_v27 }
  0xc2   : > { %656 = vst [vmem:[%s4239_s26 + $0x6e0] sm:$0xff] %v655_v28  ;;  %658 = vst [vmem:[%s4239_s26 + $0x6e8] sm:$0xff] %v657_v29  ;;  %v659_v30 = vld [vmem:[%s4234_s21 + $0x3780] sm:$0xff]  ;;  %v661_v31 = vld [vmem:[%s4234_s21 + $0x3788] sm:$0xff] }
  0xc3   : > { %v663_v32 = vld [vmem:[%s4234_s21 + $0x3800] sm:$0xff]  ;;  %660 = vst [vmem:[%s4239_s26 + $0x6f0] sm:$0xff] %v659_v30  ;;  %662 = vst [vmem:[%s4239_s26 + $0x6f8] sm:$0xff] %v661_v31  ;;  %v665_v33 = vld [vmem:[%s4234_s21 + $0x3808] sm:$0xff] }
  0xc4   : > { %664 = vst [vmem:[%s4239_s26 + $0x700] sm:$0xff] %v663_v32  ;;  %v667_v34 = vld [vmem:[%s4234_s21 + $0x3880] sm:$0xff]  ;;  %v669_v35 = vld [vmem:[%s4234_s21 + $0x3888] sm:$0xff]  ;;  %666 = vst [vmem:[%s4239_s26 + $0x708] sm:$0xff] %v665_v33 }
  0xc5   : > { %668 = vst [vmem:[%s4239_s26 + $0x710] sm:$0xff] %v667_v34  ;;  %670 = vst [vmem:[%s4239_s26 + $0x718] sm:$0xff] %v669_v35  ;;  %v671_v36 = vld [vmem:[%s4234_s21 + $0x3900] sm:$0xff]  ;;  %v673_v37 = vld [vmem:[%s4234_s21 + $0x3908] sm:$0xff] }
  0xc6   : > { %v675_v38 = vld [vmem:[%s4234_s21 + $0x3980] sm:$0xff]  ;;  %672 = vst [vmem:[%s4239_s26 + $0x720] sm:$0xff] %v671_v36  ;;  %674 = vst [vmem:[%s4239_s26 + $0x728] sm:$0xff] %v673_v37  ;;  %v677_v39 = vld [vmem:[%s4234_s21 + $0x3988] sm:$0xff] }
  0xc7   : > { %676 = vst [vmem:[%s4239_s26 + $0x730] sm:$0xff] %v675_v38  ;;  %v679_v40 = vld [vmem:[%s4234_s21 + $0x3a00] sm:$0xff]  ;;  %v681_v41 = vld [vmem:[%s4234_s21 + $0x3a08] sm:$0xff]  ;;  %678 = vst [vmem:[%s4239_s26 + $0x738] sm:$0xff] %v677_v39 }
  0xc8   : > { %680 = vst [vmem:[%s4239_s26 + $0x740] sm:$0xff] %v679_v40  ;;  %682 = vst [vmem:[%s4239_s26 + $0x748] sm:$0xff] %v681_v41  ;;  %v683_v42 = vld [vmem:[%s4234_s21 + $0x3a80] sm:$0xff]  ;;  %v685_v43 = vld [vmem:[%s4234_s21 + $0x3a88] sm:$0xff] }
  0xc9   : > { %v687_v44 = vld [vmem:[%s4234_s21 + $0x3b00] sm:$0xff]  ;;  %684 = vst [vmem:[%s4239_s26 + $0x750] sm:$0xff] %v683_v42  ;;  %686 = vst [vmem:[%s4239_s26 + $0x758] sm:$0xff] %v685_v43  ;;  %v689_v45 = vld [vmem:[%s4234_s21 + $0x3b08] sm:$0xff] }
  0xca   : > { %688 = vst [vmem:[%s4239_s26 + $0x760] sm:$0xff] %v687_v44  ;;  %v691_v46 = vld [vmem:[%s4234_s21 + $0x3b80] sm:$0xff]  ;;  %v693_v47 = vld [vmem:[%s4234_s21 + $0x3b88] sm:$0xff]  ;;  %690 = vst [vmem:[%s4239_s26 + $0x768] sm:$0xff] %v689_v45 }
  0xcb   : > { %692 = vst [vmem:[%s4239_s26 + $0x770] sm:$0xff] %v691_v46  ;;  %694 = vst [vmem:[%s4239_s26 + $0x778] sm:$0xff] %v693_v47  ;;  %v695_v48 = vld [vmem:[%s4234_s21 + $0x3c00] sm:$0xff]  ;;  %v697_v49 = vld [vmem:[%s4234_s21 + $0x3c08] sm:$0xff] }
  0xcc   : > { %v699_v50 = vld [vmem:[%s4234_s21 + $0x3c80] sm:$0xff]  ;;  %696 = vst [vmem:[%s4239_s26 + $0x780] sm:$0xff] %v695_v48  ;;  %698 = vst [vmem:[%s4239_s26 + $0x788] sm:$0xff] %v697_v49  ;;  %v701_v51 = vld [vmem:[%s4234_s21 + $0x3c88] sm:$0xff] }
  0xcd   : > { %700 = vst [vmem:[%s4239_s26 + $0x790] sm:$0xff] %v699_v50  ;;  %v703_v52 = vld [vmem:[%s4234_s21 + $0x3d00] sm:$0xff]  ;;  %v705_v53 = vld [vmem:[%s4234_s21 + $0x3d08] sm:$0xff]  ;;  %702 = vst [vmem:[%s4239_s26 + $0x798] sm:$0xff] %v701_v51 }
  0xce   : > { %704 = vst [vmem:[%s4239_s26 + $0x7a0] sm:$0xff] %v703_v52  ;;  %706 = vst [vmem:[%s4239_s26 + $0x7a8] sm:$0xff] %v705_v53  ;;  %v707_v54 = vld [vmem:[%s4234_s21 + $0x3d80] sm:$0xff]  ;;  %v709_v55 = vld [vmem:[%s4234_s21 + $0x3d88] sm:$0xff] }
  0xcf   : > { %v711_v56 = vld [vmem:[%s4234_s21 + $0x3e00] sm:$0xff]  ;;  %708 = vst [vmem:[%s4239_s26 + $0x7b0] sm:$0xff] %v707_v54  ;;  %710 = vst [vmem:[%s4239_s26 + $0x7b8] sm:$0xff] %v709_v55  ;;  %v713_v57 = vld [vmem:[%s4234_s21 + $0x3e08] sm:$0xff] }
  0xd0   : > { %712 = vst [vmem:[%s4239_s26 + $0x7c0] sm:$0xff] %v711_v56  ;;  %v715_v58 = vld [vmem:[%s4234_s21 + $0x3e80] sm:$0xff]  ;;  %v717_v59 = vld [vmem:[%s4234_s21 + $0x3e88] sm:$0xff]  ;;  %714 = vst [vmem:[%s4239_s26 + $0x7c8] sm:$0xff] %v713_v57 }
  0xd1   : > { %716 = vst [vmem:[%s4239_s26 + $0x7d0] sm:$0xff] %v715_v58  ;;  %718 = vst [vmem:[%s4239_s26 + $0x7d8] sm:$0xff] %v717_v59  ;;  %v719_v60 = vld [vmem:[%s4234_s21 + $0x3f00] sm:$0xff]  ;;  %v721_v61 = vld [vmem:[%s4234_s21 + $0x3f08] sm:$0xff] }
  0xd2   : > { %v723_v62 = vld [vmem:[%s4234_s21 + $0x3f80] sm:$0xff]  ;;  %720 = vst [vmem:[%s4239_s26 + $0x7e0] sm:$0xff] %v719_v60  ;;  %722 = vst [vmem:[%s4239_s26 + $0x7e8] sm:$0xff] %v721_v61  ;;  %v725_v63 = vld [vmem:[%s4234_s21 + $0x3f88] sm:$0xff] }
  0xd3   : > { %724 = vst [vmem:[%s4239_s26 + $0x7f0] sm:$0xff] %v723_v62  ;;  %726 = vst [vmem:[%s4239_s26 + $0x7f8] sm:$0xff] %v725_v63 }
  0xd4 PF: > { %s733_s0 = sand.u32 1, %s3974_s14   ;;  %s3284_s4 = sshll.u32 %s4010_s23, 6 }
  0xd5   : > { %s3003_s6 = sshll.u32 %s733_s0, 2  ;;  %s4755_s11 = scalar_lea.hbm %s5215_s2, %s3284_s4 }
  0xd6   : > { %s737_s12 = scalar_lea.vmem [#allocation6], %s3003_s6  ;;  %s734_s21 = scalar_lea.sflag [#allocation7], %s733_s0 }
  0xd7   : > { %s745_s8 = sshll.u32 %s737_s12, 4  ;;  %s3844_s27 = scalar_lea.hbm %s4755_s11, 64  ;;  %s746_s8 = int_to_ptr.vmem [resolvable:$true] %s745_s8 }
  0xd8   : > { %p3845_p3 = scmp.ne.s32.totalorder %s4755_s11, %s3844_s27  ;;  %p5253_p8 = scmp.ne.s32.totalorder %s5244_s25, 0 }
  0xd9   : > { %s3848_s17 = scalar_lea.hbm %s5215_s2, 512  ;;  %p3849_p6 = scmp.lt.u32.totalorder %s4755_s11, %s5215_s2 }
  0xda   : > { %p3846_p12 = pnand %p3845_p3, %p5253_p8  ;;  %p3850_p9 = scmp.lt.u32.totalorder %s3848_s17, %s3844_s27 }
  0xdb   : > { %p3852_p13 = scmp.lt.u32.totalorder %s3844_s27, %s4755_s11 }
  0xdc   : > { %p3847_p0 = pneg %p3846_p12  ;;  %p3851_p10 = por %p3850_p9, %p3849_p6 }
  0xde   : > { %p3853_p5 = por %p3852_p13, %p3851_p10 }
  0xe0   : > { %p3854_p2 = pnand %p3853_p5, %p3847_p0 }
  0xe2   : > { %3857 = shalt.err (!%p3854_p2)
}
  0xe3   : > { %s3858_s30 = scalar_lea.vmem %s746_s8, 64  ;;  %s4020_s26 = smov [#allocation6]  }
  0xe4   : > { %p3859_p7 = scmp.ne.s32.totalorder %s746_s8, %s3858_s30  ;;  %s3862_s0 = sshll.u32 %s4020_s26, 4  ;;  %s3863_s0 = int_to_ptr.vmem [resolvable:$false] %s3862_s0 }
  0xe5   : > { %s3864_s4 = scalar_lea.vmem %s3863_s0, 128  ;;  %p3865_p4 = scmp.lt.s32.totalorder %s746_s8, %s3863_s0 }
  0xe6   : > { %p3860_p11 = pnand %p3859_p7, %p5253_p8  ;;  %p3866_p3 = scmp.lt.s32.totalorder %s3864_s4, %s3858_s30 }
  0xe8   : > { %p3861_p1 = pneg %p3860_p11  ;;  %p3867_p12 = por %p3866_p3, %p3865_p4 }
  0xea   : > { %p3868_p6 = pnand %p3867_p12, %p3861_p1 }
  0xec   : > { %3871 = shalt.err (!%p3868_p6)
}
  0xed   : > { %3311 = dma.hbm_to_vmem [thread:$0]  (%p5253_p8), %s4755_s11, 64, %s746_s8, %s734_s21  }
  0xee PF: > { %p3006_p0 = scmp.ge.s32.totalorder %s4014_s24, 1  ;;  %p750_p9 = scmp.lt.s32.totalorder %s4014_s24, 33 }
  0xf0   : > { %p751_p10 = pnand %p3006_p0, %p750_p9 }
  0xf1   : > { %s756_s6 = sand.u32 (!%p751_p10), 1, %s3990_s18   ;;  %p5254_p13 = scmp.ne.s32.totalorder (!%p751_p10), %s5240_s7, 0 }
  0xf2   : > { %754 = sbr.rel (%p751_p10) target bundleno = 781 (0x30d), region = 51  ;;  %s3007_s29 = sshll.u32 (!%p751_p10), %s756_s6, 6 }
  0xf3   : > { %s757_s10 = scalar_lea.sflag (!%p751_p10), [#allocation3], %s756_s6  ;;  %s4777_s12 = scalar_lea.vmem (!%p751_p10), [#allocation2], %s3007_s29 }
  0xf9   : > { %3953 = dma.done.wait (%p5254_p13), %s757_s10, 1024  }
  0xfa   : > { %3955 = vsyncadd (%p5254_p13), %s757_s10, 4294966272  ;;  %s766_s25 = sand.u32 1, %s3978_s15   ;;  %s4785_s11 = sand.u32 1, %s3970_s13  }
  0xfb   : > { %s3008_s8 = sshll.u32 %s766_s25, 11  ;;  %s3009_s21 = sshll.u32 %s4785_s11, 2 }
  0xfc   : > { %s4788_s27 = scalar_lea.vmem [#allocation5], %s3008_s8  ;;  %s773_s28 = scalar_lea.sflag [#allocation7], %s4785_s11 }
  0xfd   : > { %s4791_s5 = scalar_lea.vmem [#allocation6], %s3009_s21  ;;  %p5255_p8 = scmp.ne.s32.totalorder %s5247_s9, 0 }
  0xff   : > { %3957 = dma.done.wait (%p5255_p8), %s773_s28, 64  }
 0x100   : > { %3959 = vsyncadd (%p5255_p8), %s773_s28, 4294967232  ;;  %s3010_s7 = sshll.u32 %s4785_s11, 6  ;;  %p3011_p5 = scmp.ne.s32.totalorder %s3998_s20, 0 }
 0x101   : > { %s4798_s17 = scalar_lea.vmem [#allocation8], %s3010_s7  ;;  %v4021_v0 = vmov (!%p3011_p5), 0.0  }
 0x102   : > { %818 = sbr.rel (%p3011_p5) target bundleno = 265 (0x109), region = 67  ;;  %819 = vst [vmem:[%s4798_s17] sm:$0xff] (!%p3011_p5), %v4021_v0  ;;  %820 = vst [vmem:[%s4798_s17 + $0x8] sm:$0xff] (!%p3011_p5), %v4021_v0 }
 0x103   : > { %821 = vst [vmem:[%s4798_s17 + $0x10] sm:$0xff] (!%p3011_p5), %v4021_v0  ;;  %822 = vst [vmem:[%s4798_s17 + $0x18] sm:$0xff] (!%p3011_p5), %v4021_v0 }
 0x104   : > { %823 = vst [vmem:[%s4798_s17 + $0x20] sm:$0xff] (!%p3011_p5), %v4021_v0  ;;  %824 = vst [vmem:[%s4798_s17 + $0x28] sm:$0xff] (!%p3011_p5), %v4021_v0 }
 0x105   : > { %825 = vst [vmem:[%s4798_s17 + $0x30] sm:$0xff] (!%p3011_p5), %v4021_v0  ;;  %826 = vst [vmem:[%s4798_s17 + $0x38] sm:$0xff] (!%p3011_p5), %v4021_v0 }
 0x109 PF: > { %v3432_v1 = vld [vmem:[%s4788_s27 + $0x4] ss:$16 sps:$4 sm:$0xff]   ;;  %v3434_v2 = vld [vmem:[%s4788_s27 + $0xc] ss:$16 sps:$4 sm:$0xff]   ;;  %v3436_v3 = vld [vmem:[%s4788_s27] ss:$16 sps:$4 sm:$0xff]  }
 0x10a   : > { %2419 = vmatprep.subr.bf16.mxu0 %v3432_v1  ;;  %v3437_v4 = vld [vmem:[%s4788_s27 + $0x8] ss:$16 sps:$4 sm:$0xff]   ;;  %2591 = vmatprep.subr.bf16.mxu1 %v3434_v2  ;;  %v3438_v5 = vld [vmem:[%s4788_s27 + $0x24] ss:$16 sps:$4 sm:$0xff]   ;;  %v3440_v6 = vld [vmem:[%s4788_s27 + $0x2c] ss:$16 sps:$4 sm:$0xff]  }
 0x10b   : > { %2420 = vmatpush1.bf16.msra.mxu0 %v3436_v3  ;;  %2592 = vmatpush1.bf16.msra.mxu1 %v3437_v4  ;;  %v3442_v7 = vld [vmem:[%s4788_s27 + $0x20] ss:$16 sps:$4 sm:$0xff]   ;;  %v3443_v8 = vld [vmem:[%s4788_s27 + $0x28] ss:$16 sps:$4 sm:$0xff]   ;;  %v3444_v9 = vld [vmem:[%s4788_s27 + $0x44] ss:$16 sps:$4 sm:$0xff]  }
 0x10c   : > { %2421 = vmatprep.subr.bf16.mxu0 %v3438_v5  ;;  %2593 = vmatprep.subr.bf16.mxu1 %v3440_v6  ;;  %v3446_v10 = vld [vmem:[%s4788_s27 + $0x4c] ss:$16 sps:$4 sm:$0xff]   ;;  %v3448_v11 = vld [vmem:[%s4788_s27 + $0x40] ss:$16 sps:$4 sm:$0xff]   ;;  %v3449_v12 = vld [vmem:[%s4788_s27 + $0x48] ss:$16 sps:$4 sm:$0xff]  }
 0x10d   : > { %v3450_v13 = vld [vmem:[%s4788_s27 + $0x64] ss:$16 sps:$4 sm:$0xff]   ;;  %v3452_v14 = vld [vmem:[%s4788_s27 + $0x6c] ss:$16 sps:$4 sm:$0xff]   ;;  %v3454_v15 = vld [vmem:[%s4788_s27 + $0x60] ss:$16 sps:$4 sm:$0xff]  }
 0x10e   : > { %v3455_v16 = vld [vmem:[%s4788_s27 + $0x68] ss:$16 sps:$4 sm:$0xff]   ;;  %v3456_v17 = vld [vmem:[%s4788_s27 + $0x84] ss:$16 sps:$4 sm:$0xff]   ;;  %v3458_v18 = vld [vmem:[%s4788_s27 + $0x8c] ss:$16 sps:$4 sm:$0xff]  }
 0x10f   : > { %2422 = vmatpush1.bf16.msra.mxu0 %v3442_v7  ;;  %2594 = vmatpush1.bf16.msra.mxu1 %v3443_v8  ;;  %v3460_v19 = vld [vmem:[%s4788_s27 + $0x80] ss:$16 sps:$4 sm:$0xff]   ;;  %v3461_v20 = vld [vmem:[%s4788_s27 + $0x88] ss:$16 sps:$4 sm:$0xff]   ;;  %v3462_v21 = vld [vmem:[%s4788_s27 + $0xa4] ss:$16 sps:$4 sm:$0xff]  }
 0x110   : > { %2423 = vmatprep.subr.bf16.mxu0 %v3444_v9  ;;  %2595 = vmatprep.subr.bf16.mxu1 %v3446_v10  ;;  %v3464_v22 = vld [vmem:[%s4788_s27 + $0xac] ss:$16 sps:$4 sm:$0xff]   ;;  %v3466_v23 = vld [vmem:[%s4788_s27 + $0xa0] ss:$16 sps:$4 sm:$0xff]   ;;  %v3467_v24 = vld [vmem:[%s4788_s27 + $0xa8] ss:$16 sps:$4 sm:$0xff]  }
 0x111   : > { %v3468_v25 = vld [vmem:[%s4788_s27 + $0xc4] ss:$16 sps:$4 sm:$0xff]   ;;  %v3470_v26 = vld [vmem:[%s4788_s27 + $0xcc] ss:$16 sps:$4 sm:$0xff]   ;;  %v3472_v27 = vld [vmem:[%s4788_s27 + $0xc0] ss:$16 sps:$4 sm:$0xff]  }
 0x112   : > { %v3473_v28 = vld [vmem:[%s4788_s27 + $0xc8] ss:$16 sps:$4 sm:$0xff]   ;;  %v3474_v29 = vld [vmem:[%s4788_s27 + $0xe4] ss:$16 sps:$4 sm:$0xff]   ;;  %v3476_v30 = vld [vmem:[%s4788_s27 + $0xec] ss:$16 sps:$4 sm:$0xff]  }
 0x113   : > { %2424 = vmatpush1.bf16.msra.mxu0 %v3448_v11  ;;  %2596 = vmatpush1.bf16.msra.mxu1 %v3449_v12  ;;  %v3478_v31 = vld [vmem:[%s4788_s27 + $0xe0] ss:$16 sps:$4 sm:$0xff]   ;;  %v3479_v32 = vld [vmem:[%s4788_s27 + $0xe8] ss:$16 sps:$4 sm:$0xff]   ;;  %v3480_v33 = vld [vmem:[%s4788_s27 + $0x104] ss:$16 sps:$4 sm:$0xff]  }
 0x114   : > { %2425 = vmatprep.subr.bf16.mxu0 %v3450_v13  ;;  %2597 = vmatprep.subr.bf16.mxu1 %v3452_v14  ;;  %v3482_v34 = vld [vmem:[%s4788_s27 + $0x10c] ss:$16 sps:$4 sm:$0xff]   ;;  %v3484_v35 = vld [vmem:[%s4788_s27 + $0x100] ss:$16 sps:$4 sm:$0xff]   ;;  %v3485_v36 = vld [vmem:[%s4788_s27 + $0x108] ss:$16 sps:$4 sm:$0xff]  }
 0x115   : > { %v3486_v37 = vld [vmem:[%s4788_s27 + $0x124] ss:$16 sps:$4 sm:$0xff]   ;;  %v3488_v38 = vld [vmem:[%s4788_s27 + $0x12c] ss:$16 sps:$4 sm:$0xff]   ;;  %v3490_v39 = vld [vmem:[%s4788_s27 + $0x120] ss:$16 sps:$4 sm:$0xff]  }
 0x116   : > { %v3491_v40 = vld [vmem:[%s4788_s27 + $0x128] ss:$16 sps:$4 sm:$0xff]   ;;  %v3492_v41 = vld [vmem:[%s4788_s27 + $0x144] ss:$16 sps:$4 sm:$0xff]   ;;  %v3494_v42 = vld [vmem:[%s4788_s27 + $0x14c] ss:$16 sps:$4 sm:$0xff]  }
 0x117   : > { %2426 = vmatpush1.bf16.msra.mxu0 %v3454_v15  ;;  %2598 = vmatpush1.bf16.msra.mxu1 %v3455_v16  ;;  %v3496_v43 = vld [vmem:[%s4788_s27 + $0x140] ss:$16 sps:$4 sm:$0xff]   ;;  %v3497_v44 = vld [vmem:[%s4788_s27 + $0x148] ss:$16 sps:$4 sm:$0xff]   ;;  %v3498_v45 = vld [vmem:[%s4788_s27 + $0x164] ss:$16 sps:$4 sm:$0xff]  }
 0x118   : > { %2427 = vmatprep.subr.bf16.mxu0 %v3456_v17  ;;  %2599 = vmatprep.subr.bf16.mxu1 %v3458_v18  ;;  %v3500_v46 = vld [vmem:[%s4788_s27 + $0x16c] ss:$16 sps:$4 sm:$0xff]   ;;  %v835_v47 = vld [vmem:[%s4777_s12] sm:$0xff]  ;;  %v3503_v50 = vld [vmem:[%s4788_s27 + $0x168] ss:$16 sps:$4 sm:$0xff]   ;;  %p3276_p2 = scmp.ne.s32.totalorder %s3998_s20, 3 }
 0x119   : > { %v839_v48 = vld [vmem:[%s4777_s12 + $0x20] sm:$0xff]  ;;  %v3506_v53 = vld [vmem:[%s4788_s27 + $0x18c] ss:$16 sps:$4 sm:$0xff]   ;;  %v3509_v55 = vld [vmem:[%s4788_s27 + $0x188] ss:$16 sps:$4 sm:$0xff]  }
 0x11a   : > { %v3502_v49 = vld [vmem:[%s4788_s27 + $0x160] ss:$16 sps:$4 sm:$0xff]   ;;  %v3013_v51 = vcombine.high %v835_v47, %v839_v48  ;;  %v3504_v52 = vld [vmem:[%s4788_s27 + $0x184] ss:$16 sps:$4 sm:$0xff]   ;;  %v3512_v57 = vld [vmem:[%s4788_s27 + $0x1ac] ss:$16 sps:$4 sm:$0xff]   ;;  %v3012_v6 = vcombine.low %v835_v47, %v839_v48 }
 0x11b   : > { %2428 = vmatpush1.bf16.msra.mxu0 %v3460_v19  ;;  %2600 = vmatpush1.bf16.msra.mxu1 %v3461_v20  ;;  %v3508_v54 = vld [vmem:[%s4788_s27 + $0x180] ss:$16 sps:$4 sm:$0xff]   ;;  %v3510_v56 = vld [vmem:[%s4788_s27 + $0x1a4] ss:$16 sps:$4 sm:$0xff]   ;;  %v3515_v59 = vld [vmem:[%s4788_s27 + $0x1a8] ss:$16 sps:$4 sm:$0xff]  }
 0x11c   : > { %2429 = vmatprep.subr.bf16.mxu0 %v3462_v21  ;;  %2601 = vmatprep.subr.bf16.mxu1 %v3464_v22  ;;  %v3514_v58 = vld [vmem:[%s4788_s27 + $0x1a0] ss:$16 sps:$4 sm:$0xff]   ;;  %v3516_v60 = vld [vmem:[%s4788_s27 + $0x1c4] ss:$16 sps:$4 sm:$0xff]   ;;  %v3518_v61 = vld [vmem:[%s4788_s27 + $0x1cc] ss:$16 sps:$4 sm:$0xff]  }
 0x11d   : > { %2451 = vmatprep.mubr.bf16.mxu0 %v3013_v51  ;;  %2623 = vmatprep.mubr.bf16.mxu1 %v3013_v51  ;;  %v3520_v62 = vld [vmem:[%s4788_s27 + $0x1c0] ss:$16 sps:$4 sm:$0xff]   ;;  %v3521_v63 = vld [vmem:[%s4788_s27 + $0x1c8] ss:$16 sps:$4 sm:$0xff]   ;;  %v3522_v0 = vld [vmem:[%s4788_s27 + $0x1e4] ss:$16 sps:$4 sm:$0xff]  }
 0x11e   : > { %v3524_v1 = vld [vmem:[%s4788_s27 + $0x1ec] ss:$16 sps:$4 sm:$0xff]   ;;  %v3526_v2 = vld [vmem:[%s4788_s27 + $0x1e0] ss:$16 sps:$4 sm:$0xff]   ;;  %v3527_v3 = vld [vmem:[%s4788_s27 + $0x1e8] ss:$16 sps:$4 sm:$0xff]  }
 0x11f   : > { %2430 = vmatpush1.bf16.msra.mxu0 %v3466_v23  ;;  %2602 = vmatpush1.bf16.msra.mxu1 %v3467_v24  ;;  %v3530_v4 = vld [vmem:[%s4788_s27 + $0x204] ss:$16 sps:$4 sm:$0xff]   ;;  %v3533_v5 = vld [vmem:[%s4788_s27 + $0x20c] ss:$16 sps:$4 sm:$0xff]   ;;  %v3528_v7 = vld [vmem:[%s4788_s27 + $0x200] ss:$16 sps:$4 sm:$0xff]  }
 0x120   : > { %2431 = vmatprep.subr.bf16.mxu0 %v3468_v25  ;;  %2603 = vmatprep.subr.bf16.mxu1 %v3470_v26  ;;  %v3531_v8 = vld [vmem:[%s4788_s27 + $0x208] ss:$16 sps:$4 sm:$0xff]   ;;  %v3536_v9 = vld [vmem:[%s4788_s27 + $0x224] ss:$16 sps:$4 sm:$0xff]   ;;  %v3539_v10 = vld [vmem:[%s4788_s27 + $0x22c] ss:$16 sps:$4 sm:$0xff]  }
 0x121   : > { %v3534_v11 = vld [vmem:[%s4788_s27 + $0x220] ss:$16 sps:$4 sm:$0xff]   ;;  %v3537_v12 = vld [vmem:[%s4788_s27 + $0x228] ss:$16 sps:$4 sm:$0xff]   ;;  %v3542_v13 = vld [vmem:[%s4788_s27 + $0x244] ss:$16 sps:$4 sm:$0xff]  }
 0x122   : > { %v3545_v14 = vld [vmem:[%s4788_s27 + $0x24c] ss:$16 sps:$4 sm:$0xff]   ;;  %v3540_v15 = vld [vmem:[%s4788_s27 + $0x240] ss:$16 sps:$4 sm:$0xff]   ;;  %v3543_v16 = vld [vmem:[%s4788_s27 + $0x248] ss:$16 sps:$4 sm:$0xff]  }
 0x123   : > { %2432 = vmatpush1.bf16.msra.mxu0 %v3472_v27  ;;  %2604 = vmatpush1.bf16.msra.mxu1 %v3473_v28  ;;  %v3548_v17 = vld [vmem:[%s4788_s27 + $0x264] ss:$16 sps:$4 sm:$0xff]   ;;  %v3551_v18 = vld [vmem:[%s4788_s27 + $0x26c] ss:$16 sps:$4 sm:$0xff]   ;;  %v3546_v19 = vld [vmem:[%s4788_s27 + $0x260] ss:$16 sps:$4 sm:$0xff]  }
 0x124   : > { %2433 = vmatprep.subr.bf16.mxu0 %v3474_v29  ;;  %2605 = vmatprep.subr.bf16.mxu1 %v3476_v30  ;;  %v3549_v20 = vld [vmem:[%s4788_s27 + $0x268] ss:$16 sps:$4 sm:$0xff]   ;;  %v3554_v21 = vld [vmem:[%s4788_s27 + $0x284] ss:$16 sps:$4 sm:$0xff]   ;;  %v3557_v22 = vld [vmem:[%s4788_s27 + $0x28c] ss:$16 sps:$4 sm:$0xff]  }
 0x125   : > { %v3552_v23 = vld [vmem:[%s4788_s27 + $0x280] ss:$16 sps:$4 sm:$0xff]   ;;  %v3555_v24 = vld [vmem:[%s4788_s27 + $0x288] ss:$16 sps:$4 sm:$0xff]   ;;  %v3560_v25 = vld [vmem:[%s4788_s27 + $0x2a4] ss:$16 sps:$4 sm:$0xff]  }
 0x126   : > { %v3563_v26 = vld [vmem:[%s4788_s27 + $0x2ac] ss:$16 sps:$4 sm:$0xff]   ;;  %v3558_v27 = vld [vmem:[%s4788_s27 + $0x2a0] ss:$16 sps:$4 sm:$0xff]   ;;  %v3561_v28 = vld [vmem:[%s4788_s27 + $0x2a8] ss:$16 sps:$4 sm:$0xff]  }
 0x127   : > { %2434 = vmatpush1.bf16.msra.mxu0 %v3478_v31  ;;  %2606 = vmatpush1.bf16.msra.mxu1 %v3479_v32  ;;  %v3566_v29 = vld [vmem:[%s4788_s27 + $0x2c4] ss:$16 sps:$4 sm:$0xff]   ;;  %v3569_v30 = vld [vmem:[%s4788_s27 + $0x2cc] ss:$16 sps:$4 sm:$0xff]   ;;  %v3585_v47 = vld [vmem:[%s4788_s27 + $0x328] ss:$16 sps:$4 sm:$0xff]  }
 0x128   : > { %2435 = vmatprep.subr.bf16.mxu0 %v3480_v33  ;;  %2607 = vmatprep.subr.bf16.mxu1 %v3482_v34  ;;  %v4902_v31 = vld [vmem:[%s4777_s12 + $0x8] sm:$0xff]  ;;  %v3564_v33 = vld [vmem:[%s4788_s27 + $0x2c0] ss:$16 sps:$4 sm:$0xff]   ;;  %v3590_v48 = vld [vmem:[%s4788_s27 + $0x344] ss:$16 sps:$4 sm:$0xff]  }
 0x129   : > { %v4905_v32 = vld [vmem:[%s4777_s12 + $0x28] sm:$0xff] }
 0x12a   : > { %v3567_v34 = vld [vmem:[%s4788_s27 + $0x2c8] ss:$16 sps:$4 sm:$0xff]  }
 0x12b   : > { %2436 = vmatpush1.bf16.msra.mxu0 %v3484_v35  ;;  %2608 = vmatpush1.bf16.msra.mxu1 %v3485_v36  ;;  %v3015_v35 = vcombine.high %v4902_v31, %v4905_v32  ;;  %v3572_v36 = vld [vmem:[%s4788_s27 + $0x2e4] ss:$16 sps:$4 sm:$0xff]   ;;  %v3591_v51 = vld [vmem:[%s4788_s27 + $0x348] ss:$16 sps:$4 sm:$0xff]  }
 0x12c   : > { %2437 = vmatprep.subr.bf16.mxu0 %v3486_v37  ;;  %2609 = vmatprep.subr.bf16.mxu1 %v3488_v38  ;;  %v3575_v37 = vld [vmem:[%s4788_s27 + $0x2ec] ss:$16 sps:$4 sm:$0xff]   ;;  %v3570_v38 = vld [vmem:[%s4788_s27 + $0x2e0] ss:$16 sps:$4 sm:$0xff]  }
 0x12f   : > { %2438 = vmatpush1.bf16.msra.mxu0 %v3490_v39  ;;  %2610 = vmatpush1.bf16.msra.mxu1 %v3491_v40  ;;  %v3573_v39 = vld [vmem:[%s4788_s27 + $0x2e8] ss:$16 sps:$4 sm:$0xff]   ;;  %v3578_v40 = vld [vmem:[%s4788_s27 + $0x304] ss:$16 sps:$4 sm:$0xff]  }
 0x130   : > { %2439 = vmatprep.subr.bf16.mxu0 %v3492_v41  ;;  %2611 = vmatprep.subr.bf16.mxu1 %v3494_v42  ;;  %v3581_v41 = vld [vmem:[%s4788_s27 + $0x30c] ss:$16 sps:$4 sm:$0xff]   ;;  %v3576_v42 = vld [vmem:[%s4788_s27 + $0x300] ss:$16 sps:$4 sm:$0xff]  }
 0x133   : > { %2440 = vmatpush1.bf16.msra.mxu0 %v3496_v43  ;;  %2612 = vmatpush1.bf16.msra.mxu1 %v3497_v44  ;;  %v3579_v43 = vld [vmem:[%s4788_s27 + $0x308] ss:$16 sps:$4 sm:$0xff]   ;;  %v3584_v44 = vld [vmem:[%s4788_s27 + $0x324] ss:$16 sps:$4 sm:$0xff]  }
 0x134   : > { %2441 = vmatprep.subr.bf16.mxu0 %v3498_v45  ;;  %2613 = vmatprep.subr.bf16.mxu1 %v3500_v46  ;;  %v3587_v45 = vld [vmem:[%s4788_s27 + $0x32c] ss:$16 sps:$4 sm:$0xff]   ;;  %v3582_v46 = vld [vmem:[%s4788_s27 + $0x320] ss:$16 sps:$4 sm:$0xff]  }
 0x137   : > { %2442 = vmatpush1.bf16.msra.mxu0 %v3502_v49  ;;  %2614 = vmatpush1.bf16.msra.mxu1 %v3503_v50  ;;  %v3593_v49 = vld [vmem:[%s4788_s27 + $0x34c] ss:$16 sps:$4 sm:$0xff]   ;;  %v3588_v50 = vld [vmem:[%s4788_s27 + $0x340] ss:$16 sps:$4 sm:$0xff]  }
 0x138   : > { %2443 = vmatprep.subr.bf16.mxu0 %v3504_v52  ;;  %2615 = vmatprep.subr.bf16.mxu1 %v3506_v53  ;;  %v3596_v52 = vld [vmem:[%s4788_s27 + $0x364] ss:$16 sps:$4 sm:$0xff]   ;;  %v3599_v53 = vld [vmem:[%s4788_s27 + $0x36c] ss:$16 sps:$4 sm:$0xff]  }
 0x13b   : > { %2444 = vmatpush1.bf16.msra.mxu0 %v3508_v54  ;;  %2616 = vmatpush1.bf16.msra.mxu1 %v3509_v55  ;;  %v3594_v54 = vld [vmem:[%s4788_s27 + $0x360] ss:$16 sps:$4 sm:$0xff]   ;;  %v3597_v55 = vld [vmem:[%s4788_s27 + $0x368] ss:$16 sps:$4 sm:$0xff]  }
 0x13c   : > { %2445 = vmatprep.subr.bf16.mxu0 %v3510_v56  ;;  %2617 = vmatprep.subr.bf16.mxu1 %v3512_v57  ;;  %v3602_v56 = vld [vmem:[%s4788_s27 + $0x384] ss:$16 sps:$4 sm:$0xff]   ;;  %v3605_v57 = vld [vmem:[%s4788_s27 + $0x38c] ss:$16 sps:$4 sm:$0xff]  }
 0x13f   : > { %2446 = vmatpush1.bf16.msra.mxu0 %v3514_v58  ;;  %2618 = vmatpush1.bf16.msra.mxu1 %v3515_v59  ;;  %v3600_v58 = vld [vmem:[%s4788_s27 + $0x380] ss:$16 sps:$4 sm:$0xff]   ;;  %v3603_v59 = vld [vmem:[%s4788_s27 + $0x388] ss:$16 sps:$4 sm:$0xff]  }
 0x140   : > { %2447 = vmatprep.subr.bf16.mxu0 %v3516_v60  ;;  %2619 = vmatprep.subr.bf16.mxu1 %v3518_v61  ;;  %v3608_v60 = vld [vmem:[%s4788_s27 + $0x3a4] ss:$16 sps:$4 sm:$0xff]   ;;  %v3611_v61 = vld [vmem:[%s4788_s27 + $0x3ac] ss:$16 sps:$4 sm:$0xff]  }
 0x143   : > { %2448 = vmatpush1.bf16.msra.mxu0 %v3520_v62  ;;  %2620 = vmatpush1.bf16.msra.mxu1 %v3521_v63  ;;  %v3606_v62 = vld [vmem:[%s4788_s27 + $0x3a0] ss:$16 sps:$4 sm:$0xff]   ;;  %v3609_v63 = vld [vmem:[%s4788_s27 + $0x3a8] ss:$16 sps:$4 sm:$0xff]  }
 0x144   : > { %2449 = vmatprep.subr.bf16.mxu0 %v3522_v0  ;;  %2621 = vmatprep.subr.bf16.mxu1 %v3524_v1  ;;  %v3614_v0 = vld [vmem:[%s4788_s27 + $0x3c4] ss:$16 sps:$4 sm:$0xff]   ;;  %v3617_v1 = vld [vmem:[%s4788_s27 + $0x3cc] ss:$16 sps:$4 sm:$0xff]  }
 0x147   : > { %2450 = vmatpush1.bf16.msra.mxu0 %v3526_v2  ;;  %2622 = vmatpush1.bf16.msra.mxu1 %v3527_v3  ;;  %v3612_v2 = vld [vmem:[%s4788_s27 + $0x3c0] ss:$16 sps:$4 sm:$0xff]   ;;  %v3615_v3 = vld [vmem:[%s4788_s27 + $0x3c8] ss:$16 sps:$4 sm:$0xff]  }
 0x148   : > { %2462 = vmatprep.subr.bf16.mxu0 %v3530_v4  ;;  %2634 = vmatprep.subr.bf16.mxu1 %v3533_v5  ;;  %v3620_v4 = vld [vmem:[%s4788_s27 + $0x3e4] ss:$16 sps:$4 sm:$0xff]   ;;  %v3623_v5 = vld [vmem:[%s4788_s27 + $0x3ec] ss:$16 sps:$4 sm:$0xff]  }
 0x14a   : > { %2452 = vmatmul.mubr.bf16.vlgmr.msra.gmra.mrb[0].mxu0 %v3012_v6  ;;  %2624 = vmatmul.mubr.bf16.vlgmr.msra.gmra.mrb[0].mxu1 %v3012_v6  ;;  %v3618_v6 = vld [vmem:[%s4788_s27 + $0x3e0] ss:$16 sps:$4 sm:$0xff]  }
 0x14b   : > { %2463 = vmatpush1.bf16.msra.mxu0 %v3528_v7  ;;  %2635 = vmatpush1.bf16.msra.mxu1 %v3531_v8  ;;  %v3621_v7 = vld [vmem:[%s4788_s27 + $0x3e8] ss:$16 sps:$4 sm:$0xff]   ;;  %v3626_v8 = vld [vmem:[%s4788_s27 + $0x404] ss:$16 sps:$4 sm:$0xff]  }
 0x14c   : > { %2464 = vmatprep.subr.bf16.mxu0 %v3536_v9  ;;  %2636 = vmatprep.subr.bf16.mxu1 %v3539_v10  ;;  %v3629_v9 = vld [vmem:[%s4788_s27 + $0x40c] ss:$16 sps:$4 sm:$0xff]   ;;  %v3014_v10 = vcombine.low %v4902_v31, %v4905_v32  ;;  %v3651_v31 = vld [vmem:[%s4788_s27 + $0x488] ss:$16 sps:$4 sm:$0xff]   ;;  %v3656_v32 = vld [vmem:[%s4788_s27 + $0x4a4] ss:$16 sps:$4 sm:$0xff]  }
 0x14d   : > { %2494 = vmatprep.mubr.bf16.mxu0 %v3015_v35  ;;  %2666 = vmatprep.mubr.bf16.mxu1 %v3015_v35  ;;  %v3657_v35 = vld [vmem:[%s4788_s27 + $0x4a8] ss:$16 sps:$4 sm:$0xff]  }
 0x14f   : > { %2465 = vmatpush1.bf16.msra.mxu0 %v3534_v11  ;;  %2637 = vmatpush1.bf16.msra.mxu1 %v3537_v12  ;;  %v3624_v11 = vld [vmem:[%s4788_s27 + $0x400] ss:$16 sps:$4 sm:$0xff]   ;;  %v3627_v12 = vld [vmem:[%s4788_s27 + $0x408] ss:$16 sps:$4 sm:$0xff]  }
 0x150   : > { %2466 = vmatprep.subr.bf16.mxu0 %v3542_v13  ;;  %2638 = vmatprep.subr.bf16.mxu1 %v3545_v14  ;;  %v3632_v13 = vld [vmem:[%s4788_s27 + $0x424] ss:$16 sps:$4 sm:$0xff]   ;;  %v3635_v14 = vld [vmem:[%s4788_s27 + $0x42c] ss:$16 sps:$4 sm:$0xff]  }
 0x153   : > { %2467 = vmatpush1.bf16.msra.mxu0 %v3540_v15  ;;  %2639 = vmatpush1.bf16.msra.mxu1 %v3543_v16  ;;  %v4956_v15 = vld [vmem:[%s4777_s12 + $0x10] sm:$0xff] }
 0x154   : > { %2468 = vmatprep.subr.bf16.mxu0 %v3548_v17  ;;  %2640 = vmatprep.subr.bf16.mxu1 %v3551_v18  ;;  %v4959_v16 = vld [vmem:[%s4777_s12 + $0x30] sm:$0xff] }
 0x155   : > { %v3017_v17 = vcombine.high %v4956_v15, %v4959_v16  ;;  %v3630_v18 = vld [vmem:[%s4788_s27 + $0x420] ss:$16 sps:$4 sm:$0xff]  }
 0x157   : > { %2469 = vmatpush1.bf16.msra.mxu0 %v3546_v19  ;;  %2641 = vmatpush1.bf16.msra.mxu1 %v3549_v20  ;;  %v3633_v19 = vld [vmem:[%s4788_s27 + $0x428] ss:$16 sps:$4 sm:$0xff]   ;;  %v3638_v20 = vld [vmem:[%s4788_s27 + $0x444] ss:$16 sps:$4 sm:$0xff]  }
 0x158   : > { %2470 = vmatprep.subr.bf16.mxu0 %v3554_v21  ;;  %2642 = vmatprep.subr.bf16.mxu1 %v3557_v22  ;;  %v3641_v21 = vld [vmem:[%s4788_s27 + $0x44c] ss:$16 sps:$4 sm:$0xff]   ;;  %v3636_v22 = vld [vmem:[%s4788_s27 + $0x440] ss:$16 sps:$4 sm:$0xff]  }
 0x15b   : > { %2471 = vmatpush1.bf16.msra.mxu0 %v3552_v23  ;;  %2643 = vmatpush1.bf16.msra.mxu1 %v3555_v24  ;;  %v3639_v23 = vld [vmem:[%s4788_s27 + $0x448] ss:$16 sps:$4 sm:$0xff]   ;;  %v3644_v24 = vld [vmem:[%s4788_s27 + $0x464] ss:$16 sps:$4 sm:$0xff]  }
 0x15c   : > { %2472 = vmatprep.subr.bf16.mxu0 %v3560_v25  ;;  %2644 = vmatprep.subr.bf16.mxu1 %v3563_v26  ;;  %v3647_v25 = vld [vmem:[%s4788_s27 + $0x46c] ss:$16 sps:$4 sm:$0xff]   ;;  %v3642_v26 = vld [vmem:[%s4788_s27 + $0x460] ss:$16 sps:$4 sm:$0xff]  }
 0x15f   : > { %2473 = vmatpush1.bf16.msra.mxu0 %v3558_v27  ;;  %2645 = vmatpush1.bf16.msra.mxu1 %v3561_v28  ;;  %v3645_v27 = vld [vmem:[%s4788_s27 + $0x468] ss:$16 sps:$4 sm:$0xff]   ;;  %v3650_v28 = vld [vmem:[%s4788_s27 + $0x484] ss:$16 sps:$4 sm:$0xff]  }
 0x160   : > { %2474 = vmatprep.subr.bf16.mxu0 %v3566_v29  ;;  %2646 = vmatprep.subr.bf16.mxu1 %v3569_v30  ;;  %v3653_v29 = vld [vmem:[%s4788_s27 + $0x48c] ss:$16 sps:$4 sm:$0xff]   ;;  %v3648_v30 = vld [vmem:[%s4788_s27 + $0x480] ss:$16 sps:$4 sm:$0xff]  }
 0x163   : > { %2475 = vmatpush1.bf16.msra.mxu0 %v3564_v33  ;;  %2647 = vmatpush1.bf16.msra.mxu1 %v3567_v34  ;;  %v3659_v33 = vld [vmem:[%s4788_s27 + $0x4ac] ss:$16 sps:$4 sm:$0xff]   ;;  %v3654_v34 = vld [vmem:[%s4788_s27 + $0x4a0] ss:$16 sps:$4 sm:$0xff]  }
 0x164   : > { %2476 = vmatprep.subr.bf16.mxu0 %v3572_v36  ;;  %2648 = vmatprep.subr.bf16.mxu1 %v3575_v37  ;;  %v3662_v36 = vld [vmem:[%s4788_s27 + $0x4c4] ss:$16 sps:$4 sm:$0xff]   ;;  %v3665_v37 = vld [vmem:[%s4788_s27 + $0x4cc] ss:$16 sps:$4 sm:$0xff]  }
 0x167   : > { %2477 = vmatpush1.bf16.msra.mxu0 %v3570_v38  ;;  %2649 = vmatpush1.bf16.msra.mxu1 %v3573_v39  ;;  %v3660_v38 = vld [vmem:[%s4788_s27 + $0x4c0] ss:$16 sps:$4 sm:$0xff]   ;;  %v3663_v39 = vld [vmem:[%s4788_s27 + $0x4c8] ss:$16 sps:$4 sm:$0xff]  }
 0x168   : > { %2478 = vmatprep.subr.bf16.mxu0 %v3578_v40  ;;  %2650 = vmatprep.subr.bf16.mxu1 %v3581_v41  ;;  %v3668_v40 = vld [vmem:[%s4788_s27 + $0x4e4] ss:$16 sps:$4 sm:$0xff]   ;;  %v3671_v41 = vld [vmem:[%s4788_s27 + $0x4ec] ss:$16 sps:$4 sm:$0xff]  }
 0x16b   : > { %2479 = vmatpush1.bf16.msra.mxu0 %v3576_v42  ;;  %2651 = vmatpush1.bf16.msra.mxu1 %v3579_v43  ;;  %v3666_v42 = vld [vmem:[%s4788_s27 + $0x4e0] ss:$16 sps:$4 sm:$0xff]   ;;  %v3669_v43 = vld [vmem:[%s4788_s27 + $0x4e8] ss:$16 sps:$4 sm:$0xff]  }
 0x16c   : > { %2480 = vmatprep.subr.bf16.mxu0 %v3584_v44  ;;  %2652 = vmatprep.subr.bf16.mxu1 %v3587_v45  ;;  %v3674_v44 = vld [vmem:[%s4788_s27 + $0x504] ss:$16 sps:$4 sm:$0xff]   ;;  %v3677_v45 = vld [vmem:[%s4788_s27 + $0x50c] ss:$16 sps:$4 sm:$0xff]  }
 0x16f   : > { %2481 = vmatpush1.bf16.msra.mxu0 %v3582_v46  ;;  %2653 = vmatpush1.bf16.msra.mxu1 %v3585_v47  ;;  %v3672_v46 = vld [vmem:[%s4788_s27 + $0x500] ss:$16 sps:$4 sm:$0xff]   ;;  %v3675_v47 = vld [vmem:[%s4788_s27 + $0x508] ss:$16 sps:$4 sm:$0xff]  }
 0x170   : > { %2482 = vmatprep.subr.bf16.mxu0 %v3590_v48  ;;  %2654 = vmatprep.subr.bf16.mxu1 %v3593_v49  ;;  %v3680_v48 = vld [vmem:[%s4788_s27 + $0x524] ss:$16 sps:$4 sm:$0xff]   ;;  %v3683_v49 = vld [vmem:[%s4788_s27 + $0x52c] ss:$16 sps:$4 sm:$0xff]  }
 0x173   : > { %2483 = vmatpush1.bf16.msra.mxu0 %v3588_v50  ;;  %2655 = vmatpush1.bf16.msra.mxu1 %v3591_v51  ;;  %v3678_v50 = vld [vmem:[%s4788_s27 + $0x520] ss:$16 sps:$4 sm:$0xff]   ;;  %v3681_v51 = vld [vmem:[%s4788_s27 + $0x528] ss:$16 sps:$4 sm:$0xff]  }
 0x174   : > { %2484 = vmatprep.subr.bf16.mxu0 %v3596_v52  ;;  %2656 = vmatprep.subr.bf16.mxu1 %v3599_v53  ;;  %v3686_v52 = vld [vmem:[%s4788_s27 + $0x544] ss:$16 sps:$4 sm:$0xff]   ;;  %v3689_v53 = vld [vmem:[%s4788_s27 + $0x54c] ss:$16 sps:$4 sm:$0xff]  }
 0x177   : > { %2485 = vmatpush1.bf16.msra.mxu0 %v3594_v54  ;;  %2657 = vmatpush1.bf16.msra.mxu1 %v3597_v55  ;;  %v3684_v54 = vld [vmem:[%s4788_s27 + $0x540] ss:$16 sps:$4 sm:$0xff]   ;;  %v3687_v55 = vld [vmem:[%s4788_s27 + $0x548] ss:$16 sps:$4 sm:$0xff]  }
 0x178   : > { %2486 = vmatprep.subr.bf16.mxu0 %v3602_v56  ;;  %2658 = vmatprep.subr.bf16.mxu1 %v3605_v57  ;;  %v3692_v56 = vld [vmem:[%s4788_s27 + $0x564] ss:$16 sps:$4 sm:$0xff]   ;;  %v3695_v57 = vld [vmem:[%s4788_s27 + $0x56c] ss:$16 sps:$4 sm:$0xff]  }
 0x17b   : > { %2487 = vmatpush1.bf16.msra.mxu0 %v3600_v58  ;;  %2659 = vmatpush1.bf16.msra.mxu1 %v3603_v59  ;;  %v3690_v58 = vld [vmem:[%s4788_s27 + $0x560] ss:$16 sps:$4 sm:$0xff]   ;;  %v3693_v59 = vld [vmem:[%s4788_s27 + $0x568] ss:$16 sps:$4 sm:$0xff]  }
 0x17c   : > { %2488 = vmatprep.subr.bf16.mxu0 %v3608_v60  ;;  %2660 = vmatprep.subr.bf16.mxu1 %v3611_v61  ;;  %v3698_v60 = vld [vmem:[%s4788_s27 + $0x584] ss:$16 sps:$4 sm:$0xff]   ;;  %v3701_v61 = vld [vmem:[%s4788_s27 + $0x58c] ss:$16 sps:$4 sm:$0xff]  }
 0x17f   : > { %2489 = vmatpush1.bf16.msra.mxu0 %v3606_v62  ;;  %2661 = vmatpush1.bf16.msra.mxu1 %v3609_v63  ;;  %v3696_v62 = vld [vmem:[%s4788_s27 + $0x580] ss:$16 sps:$4 sm:$0xff]   ;;  %v3699_v63 = vld [vmem:[%s4788_s27 + $0x588] ss:$16 sps:$4 sm:$0xff]  }
 0x180   : > { %2490 = vmatprep.subr.bf16.mxu0 %v3614_v0  ;;  %2662 = vmatprep.subr.bf16.mxu1 %v3617_v1  ;;  %v3704_v0 = vld [vmem:[%s4788_s27 + $0x5a4] ss:$16 sps:$4 sm:$0xff]   ;;  %v3707_v1 = vld [vmem:[%s4788_s27 + $0x5ac] ss:$16 sps:$4 sm:$0xff]  }
 0x183   : > { %2491 = vmatpush1.bf16.msra.mxu0 %v3612_v2  ;;  %2663 = vmatpush1.bf16.msra.mxu1 %v3615_v3  ;;  %v3702_v2 = vld [vmem:[%s4788_s27 + $0x5a0] ss:$16 sps:$4 sm:$0xff]   ;;  %v3705_v3 = vld [vmem:[%s4788_s27 + $0x5a8] ss:$16 sps:$4 sm:$0xff]  }
 0x184   : > { %2492 = vmatprep.subr.bf16.mxu0 %v3620_v4  ;;  %2664 = vmatprep.subr.bf16.mxu1 %v3623_v5  ;;  %v3710_v4 = vld [vmem:[%s4788_s27 + $0x5c4] ss:$16 sps:$4 sm:$0xff]   ;;  %v3713_v5 = vld [vmem:[%s4788_s27 + $0x5cc] ss:$16 sps:$4 sm:$0xff]  }
 0x187   : > { %2493 = vmatpush1.bf16.msra.mxu0 %v3618_v6  ;;  %2665 = vmatpush1.bf16.msra.mxu1 %v3621_v7  ;;  %v3708_v6 = vld [vmem:[%s4788_s27 + $0x5c0] ss:$16 sps:$4 sm:$0xff]   ;;  %v3711_v7 = vld [vmem:[%s4788_s27 + $0x5c8] ss:$16 sps:$4 sm:$0xff]  }
 0x188   : > { %2505 = vmatprep.subr.bf16.mxu0 %v3626_v8  ;;  %2677 = vmatprep.subr.bf16.mxu1 %v3629_v9  ;;  %v3716_v8 = vld [vmem:[%s4788_s27 + $0x5e4] ss:$16 sps:$4 sm:$0xff]   ;;  %v3719_v9 = vld [vmem:[%s4788_s27 + $0x5ec] ss:$16 sps:$4 sm:$0xff]  }
 0x18a   : > { %2495 = vmatmul.mubr.bf16.vlgmr.msra.gmra.mrb[0].mxu0 %v3014_v10  ;;  %2667 = vmatmul.mubr.bf16.vlgmr.msra.gmra.mrb[0].mxu1 %v3014_v10  ;;  %v3714_v10 = vld [vmem:[%s4788_s27 + $0x5e0] ss:$16 sps:$4 sm:$0xff]  }
 0x18b   : > { %2506 = vmatpush1.bf16.msra.mxu0 %v3624_v11  ;;  %2678 = vmatpush1.bf16.msra.mxu1 %v3627_v12  ;;  %v3717_v11 = vld [vmem:[%s4788_s27 + $0x5e8] ss:$16 sps:$4 sm:$0xff]   ;;  %v3722_v12 = vld [vmem:[%s4788_s27 + $0x604] ss:$16 sps:$4 sm:$0xff]  }
 0x18c   : > { %2507 = vmatprep.subr.bf16.mxu0 %v3632_v13  ;;  %2679 = vmatprep.subr.bf16.mxu1 %v3635_v14  ;;  %v3725_v13 = vld [vmem:[%s4788_s27 + $0x60c] ss:$16 sps:$4 sm:$0xff]   ;;  %v3016_v14 = vcombine.low %v4956_v15, %v4959_v16  ;;  %v3726_v16 = vld [vmem:[%s4788_s27 + $0x620] ss:$16 sps:$4 sm:$0xff]  }
 0x18d   : > { %2537 = vmatprep.mubr.bf16.mxu0 %v3017_v17  ;;  %2709 = vmatprep.mubr.bf16.mxu1 %v3017_v17  ;;  %v5026_v17 = vld [vmem:[%s4777_s12 + $0x18] sm:$0xff] }
 0x18f   : > { %2508 = vmatpush1.bf16.msra.mxu0 %v3630_v18  ;;  %2680 = vmatpush1.bf16.msra.mxu1 %v3633_v19  ;;  %v5029_v18 = vld [vmem:[%s4777_s12 + $0x38] sm:$0xff]  ;;  %v3720_v19 = vld [vmem:[%s4788_s27 + $0x600] ss:$16 sps:$4 sm:$0xff]  }
 0x190   : > { %2509 = vmatprep.subr.bf16.mxu0 %v3638_v20  ;;  %2681 = vmatprep.subr.bf16.mxu1 %v3641_v21  ;;  %v3723_v20 = vld [vmem:[%s4788_s27 + $0x608] ss:$16 sps:$4 sm:$0xff]   ;;  %v3728_v21 = vld [vmem:[%s4788_s27 + $0x624] ss:$16 sps:$4 sm:$0xff]   ;;  %v3019_v15 = vcombine.high %v5026_v17, %v5029_v18 }
 0x193   : > { %2510 = vmatpush1.bf16.msra.mxu0 %v3636_v22  ;;  %2682 = vmatpush1.bf16.msra.mxu1 %v3639_v23  ;;  %v3731_v22 = vld [vmem:[%s4788_s27 + $0x62c] ss:$16 sps:$4 sm:$0xff]   ;;  %v3729_v23 = vld [vmem:[%s4788_s27 + $0x628] ss:$16 sps:$4 sm:$0xff]  }
 0x194   : > { %2511 = vmatprep.subr.bf16.mxu0 %v3644_v24  ;;  %2683 = vmatprep.subr.bf16.mxu1 %v3647_v25  ;;  %v3734_v24 = vld [vmem:[%s4788_s27 + $0x644] ss:$16 sps:$4 sm:$0xff]   ;;  %v3737_v25 = vld [vmem:[%s4788_s27 + $0x64c] ss:$16 sps:$4 sm:$0xff]  }
 0x197   : > { %2512 = vmatpush1.bf16.msra.mxu0 %v3642_v26  ;;  %2684 = vmatpush1.bf16.msra.mxu1 %v3645_v27  ;;  %v3732_v26 = vld [vmem:[%s4788_s27 + $0x640] ss:$16 sps:$4 sm:$0xff]   ;;  %v3735_v27 = vld [vmem:[%s4788_s27 + $0x648] ss:$16 sps:$4 sm:$0xff]  }
 0x198   : > { %2513 = vmatprep.subr.bf16.mxu0 %v3650_v28  ;;  %2685 = vmatprep.subr.bf16.mxu1 %v3653_v29  ;;  %v3740_v28 = vld [vmem:[%s4788_s27 + $0x664] ss:$16 sps:$4 sm:$0xff]   ;;  %v3743_v29 = vld [vmem:[%s4788_s27 + $0x66c] ss:$16 sps:$4 sm:$0xff]  }
 0x19b   : > { %2514 = vmatpush1.bf16.msra.mxu0 %v3648_v30  ;;  %2686 = vmatpush1.bf16.msra.mxu1 %v3651_v31  ;;  %v3738_v30 = vld [vmem:[%s4788_s27 + $0x660] ss:$16 sps:$4 sm:$0xff]   ;;  %v3741_v31 = vld [vmem:[%s4788_s27 + $0x668] ss:$16 sps:$4 sm:$0xff]  }
 0x19c   : > { %2515 = vmatprep.subr.bf16.mxu0 %v3656_v32  ;;  %2687 = vmatprep.subr.bf16.mxu1 %v3659_v33  ;;  %v3746_v32 = vld [vmem:[%s4788_s27 + $0x684] ss:$16 sps:$4 sm:$0xff]   ;;  %v3749_v33 = vld [vmem:[%s4788_s27 + $0x68c] ss:$16 sps:$4 sm:$0xff]  }
 0x19f   : > { %2516 = vmatpush1.bf16.msra.mxu0 %v3654_v34  ;;  %2688 = vmatpush1.bf16.msra.mxu1 %v3657_v35  ;;  %v3744_v34 = vld [vmem:[%s4788_s27 + $0x680] ss:$16 sps:$4 sm:$0xff]   ;;  %v3747_v35 = vld [vmem:[%s4788_s27 + $0x688] ss:$16 sps:$4 sm:$0xff]  }
 0x1a0   : > { %2517 = vmatprep.subr.bf16.mxu0 %v3662_v36  ;;  %2689 = vmatprep.subr.bf16.mxu1 %v3665_v37  ;;  %v3752_v36 = vld [vmem:[%s4788_s27 + $0x6a4] ss:$16 sps:$4 sm:$0xff]   ;;  %v3755_v37 = vld [vmem:[%s4788_s27 + $0x6ac] ss:$16 sps:$4 sm:$0xff]  }
 0x1a3   : > { %2518 = vmatpush1.bf16.msra.mxu0 %v3660_v38  ;;  %2690 = vmatpush1.bf16.msra.mxu1 %v3663_v39  ;;  %v3750_v38 = vld [vmem:[%s4788_s27 + $0x6a0] ss:$16 sps:$4 sm:$0xff]   ;;  %v3753_v39 = vld [vmem:[%s4788_s27 + $0x6a8] ss:$16 sps:$4 sm:$0xff]  }
 0x1a4   : > { %2519 = vmatprep.subr.bf16.mxu0 %v3668_v40  ;;  %2691 = vmatprep.subr.bf16.mxu1 %v3671_v41  ;;  %v3758_v40 = vld [vmem:[%s4788_s27 + $0x6c4] ss:$16 sps:$4 sm:$0xff]   ;;  %v3761_v41 = vld [vmem:[%s4788_s27 + $0x6cc] ss:$16 sps:$4 sm:$0xff]  }
 0x1a7   : > { %2520 = vmatpush1.bf16.msra.mxu0 %v3666_v42  ;;  %2692 = vmatpush1.bf16.msra.mxu1 %v3669_v43  ;;  %v3756_v42 = vld [vmem:[%s4788_s27 + $0x6c0] ss:$16 sps:$4 sm:$0xff]   ;;  %v3759_v43 = vld [vmem:[%s4788_s27 + $0x6c8] ss:$16 sps:$4 sm:$0xff]  }
 0x1a8   : > { %2521 = vmatprep.subr.bf16.mxu0 %v3674_v44  ;;  %2693 = vmatprep.subr.bf16.mxu1 %v3677_v45  ;;  %v3764_v44 = vld [vmem:[%s4788_s27 + $0x6e4] ss:$16 sps:$4 sm:$0xff]   ;;  %v3767_v45 = vld [vmem:[%s4788_s27 + $0x6ec] ss:$16 sps:$4 sm:$0xff]  }
 0x1ab   : > { %2522 = vmatpush1.bf16.msra.mxu0 %v3672_v46  ;;  %2694 = vmatpush1.bf16.msra.mxu1 %v3675_v47  ;;  %v3762_v46 = vld [vmem:[%s4788_s27 + $0x6e0] ss:$16 sps:$4 sm:$0xff]   ;;  %v3765_v47 = vld [vmem:[%s4788_s27 + $0x6e8] ss:$16 sps:$4 sm:$0xff]  }
 0x1ac   : > { %2523 = vmatprep.subr.bf16.mxu0 %v3680_v48  ;;  %2695 = vmatprep.subr.bf16.mxu1 %v3683_v49  ;;  %v3770_v48 = vld [vmem:[%s4788_s27 + $0x704] ss:$16 sps:$4 sm:$0xff]   ;;  %v3773_v49 = vld [vmem:[%s4788_s27 + $0x70c] ss:$16 sps:$4 sm:$0xff]  }
 0x1af   : > { %2524 = vmatpush1.bf16.msra.mxu0 %v3678_v50  ;;  %2696 = vmatpush1.bf16.msra.mxu1 %v3681_v51  ;;  %v3768_v50 = vld [vmem:[%s4788_s27 + $0x700] ss:$16 sps:$4 sm:$0xff]   ;;  %v3771_v51 = vld [vmem:[%s4788_s27 + $0x708] ss:$16 sps:$4 sm:$0xff]  }
 0x1b0   : > { %2525 = vmatprep.subr.bf16.mxu0 %v3686_v52  ;;  %2697 = vmatprep.subr.bf16.mxu1 %v3689_v53  ;;  %v3776_v52 = vld [vmem:[%s4788_s27 + $0x724] ss:$16 sps:$4 sm:$0xff]   ;;  %v3779_v53 = vld [vmem:[%s4788_s27 + $0x72c] ss:$16 sps:$4 sm:$0xff]  }
 0x1b3   : > { %2526 = vmatpush1.bf16.msra.mxu0 %v3684_v54  ;;  %2698 = vmatpush1.bf16.msra.mxu1 %v3687_v55  ;;  %v3774_v54 = vld [vmem:[%s4788_s27 + $0x720] ss:$16 sps:$4 sm:$0xff]   ;;  %v3777_v55 = vld [vmem:[%s4788_s27 + $0x728] ss:$16 sps:$4 sm:$0xff]  }
 0x1b4   : > { %2527 = vmatprep.subr.bf16.mxu0 %v3692_v56  ;;  %2699 = vmatprep.subr.bf16.mxu1 %v3695_v57  ;;  %v3782_v56 = vld [vmem:[%s4788_s27 + $0x744] ss:$16 sps:$4 sm:$0xff]   ;;  %v3785_v57 = vld [vmem:[%s4788_s27 + $0x74c] ss:$16 sps:$4 sm:$0xff]  }
 0x1b7   : > { %2528 = vmatpush1.bf16.msra.mxu0 %v3690_v58  ;;  %2700 = vmatpush1.bf16.msra.mxu1 %v3693_v59  ;;  %v3780_v58 = vld [vmem:[%s4788_s27 + $0x740] ss:$16 sps:$4 sm:$0xff]   ;;  %v3783_v59 = vld [vmem:[%s4788_s27 + $0x748] ss:$16 sps:$4 sm:$0xff]  }
 0x1b8   : > { %2529 = vmatprep.subr.bf16.mxu0 %v3698_v60  ;;  %2701 = vmatprep.subr.bf16.mxu1 %v3701_v61  ;;  %v3788_v60 = vld [vmem:[%s4788_s27 + $0x764] ss:$16 sps:$4 sm:$0xff]   ;;  %v3791_v61 = vld [vmem:[%s4788_s27 + $0x76c] ss:$16 sps:$4 sm:$0xff]  }
 0x1bb   : > { %2530 = vmatpush1.bf16.msra.mxu0 %v3696_v62  ;;  %2702 = vmatpush1.bf16.msra.mxu1 %v3699_v63  ;;  %v3786_v62 = vld [vmem:[%s4788_s27 + $0x760] ss:$16 sps:$4 sm:$0xff]   ;;  %v3789_v63 = vld [vmem:[%s4788_s27 + $0x768] ss:$16 sps:$4 sm:$0xff]  }
 0x1bc   : > { %2531 = vmatprep.subr.bf16.mxu0 %v3704_v0  ;;  %2703 = vmatprep.subr.bf16.mxu1 %v3707_v1  ;;  %v3794_v0 = vld [vmem:[%s4788_s27 + $0x784] ss:$16 sps:$4 sm:$0xff]   ;;  %v3797_v1 = vld [vmem:[%s4788_s27 + $0x78c] ss:$16 sps:$4 sm:$0xff]  }
 0x1bf   : > { %2532 = vmatpush1.bf16.msra.mxu0 %v3702_v2  ;;  %2704 = vmatpush1.bf16.msra.mxu1 %v3705_v3  ;;  %v3792_v2 = vld [vmem:[%s4788_s27 + $0x780] ss:$16 sps:$4 sm:$0xff]   ;;  %v3795_v3 = vld [vmem:[%s4788_s27 + $0x788] ss:$16 sps:$4 sm:$0xff]  }
 0x1c0   : > { %2533 = vmatprep.subr.bf16.mxu0 %v3710_v4  ;;  %2705 = vmatprep.subr.bf16.mxu1 %v3713_v5  ;;  %v3800_v4 = vld [vmem:[%s4788_s27 + $0x7a4] ss:$16 sps:$4 sm:$0xff]   ;;  %v3803_v5 = vld [vmem:[%s4788_s27 + $0x7ac] ss:$16 sps:$4 sm:$0xff]  }
 0x1c3   : > { %2534 = vmatpush1.bf16.msra.mxu0 %v3708_v6  ;;  %2706 = vmatpush1.bf16.msra.mxu1 %v3711_v7  ;;  %v3798_v6 = vld [vmem:[%s4788_s27 + $0x7a0] ss:$16 sps:$4 sm:$0xff]   ;;  %v3801_v7 = vld [vmem:[%s4788_s27 + $0x7a8] ss:$16 sps:$4 sm:$0xff]  }
 0x1c4   : > { %2535 = vmatprep.subr.bf16.mxu0 %v3716_v8  ;;  %2707 = vmatprep.subr.bf16.mxu1 %v3719_v9  ;;  %v3806_v8 = vld [vmem:[%s4788_s27 + $0x7c4] ss:$16 sps:$4 sm:$0xff]   ;;  %v3809_v9 = vld [vmem:[%s4788_s27 + $0x7cc] ss:$16 sps:$4 sm:$0xff]  }
 0x1c7   : > { %2536 = vmatpush1.bf16.msra.mxu0 %v3714_v10  ;;  %2708 = vmatpush1.bf16.msra.mxu1 %v3717_v11  ;;  %v3804_v10 = vld [vmem:[%s4788_s27 + $0x7c0] ss:$16 sps:$4 sm:$0xff]   ;;  %v3807_v11 = vld [vmem:[%s4788_s27 + $0x7c8] ss:$16 sps:$4 sm:$0xff]  }
 0x1c8   : > { %2548 = vmatprep.subr.bf16.mxu0 %v3722_v12  ;;  %2720 = vmatprep.subr.bf16.mxu1 %v3725_v13  ;;  %v3812_v12 = vld [vmem:[%s4788_s27 + $0x7e4] ss:$16 sps:$4 sm:$0xff]   ;;  %v3815_v13 = vld [vmem:[%s4788_s27 + $0x7ec] ss:$16 sps:$4 sm:$0xff]  }
 0x1ca   : > { %2538 = vmatmul.mubr.bf16.vlgmr.msra.gmra.mrb[0].mxu0 %v3016_v14  ;;  %2710 = vmatmul.mubr.bf16.vlgmr.msra.gmra.mrb[0].mxu1 %v3016_v14  ;;  %v3810_v14 = vld [vmem:[%s4788_s27 + $0x7e0] ss:$16 sps:$4 sm:$0xff]  }
 0x1cb   : > { %2549 = vmatpush1.bf16.msra.mxu0 %v3720_v19  ;;  %2721 = vmatpush1.bf16.msra.mxu1 %v3723_v20  ;;  %v3813_v19 = vld [vmem:[%s4788_s27 + $0x7e8] ss:$16 sps:$4 sm:$0xff]   ;;  %v3018_v20 = vcombine.low %v5026_v17, %v5029_v18 }
 0x1cc   : > { %2550 = vmatprep.subr.bf16.mxu0 %v3728_v21  ;;  %2722 = vmatprep.subr.bf16.mxu1 %v3731_v22  ;;  %v827_v21 = vld [vmem:[%s4798_s17] sm:$0xff]  ;;  %v829_v22 = vld [vmem:[%s4798_s17 + $0x10] sm:$0xff] }
 0x1cd   : > { %2580 = vmatprep.mubr.bf16.mxu0 %v3019_v15  ;;  %2752 = vmatprep.mubr.bf16.mxu1 %v3019_v15  ;;  %v828_v15 = vld [vmem:[%s4798_s17 + $0x8] sm:$0xff] }
 0x1cf   : > { %2551 = vmatpush1.bf16.msra.mxu0 %v3726_v16  ;;  %2723 = vmatpush1.bf16.msra.mxu1 %v3729_v23  ;;  %v830_v16 = vld [vmem:[%s4798_s17 + $0x18] sm:$0xff] }
 0x1d0   : > { %2552 = vmatprep.subr.bf16.mxu0 %v3734_v24  ;;  %2724 = vmatprep.subr.bf16.mxu1 %v3737_v25  ;;  %v831_v25 = vld [vmem:[%s4798_s17 + $0x20] sm:$0xff] }
 0x1d3   : > { %2553 = vmatpush1.bf16.msra.mxu0 %v3732_v26  ;;  %2725 = vmatpush1.bf16.msra.mxu1 %v3735_v27  ;;  %v833_v26 = vld [vmem:[%s4798_s17 + $0x30] sm:$0xff] }
 0x1d4   : > { %2554 = vmatprep.subr.bf16.mxu0 %v3740_v28  ;;  %2726 = vmatprep.subr.bf16.mxu1 %v3743_v29  ;;  %v832_v29 = vld [vmem:[%s4798_s17 + $0x28] sm:$0xff] }
 0x1d7   : > { %2555 = vmatpush1.bf16.msra.mxu0 %v3738_v30  ;;  %2727 = vmatpush1.bf16.msra.mxu1 %v3741_v31  ;;  %v834_v30 = vld [vmem:[%s4798_s17 + $0x38] sm:$0xff] }
 0x1d8   : > { %2556 = vmatprep.subr.bf16.mxu0 %v3746_v32  ;;  %2728 = vmatprep.subr.bf16.mxu1 %v3749_v33 }
 0x1db   : > { %2557 = vmatpush1.bf16.msra.mxu0 %v3744_v34  ;;  %2729 = vmatpush1.bf16.msra.mxu1 %v3747_v35 }
 0x1dc   : > { %2558 = vmatprep.subr.bf16.mxu0 %v3752_v36  ;;  %2730 = vmatprep.subr.bf16.mxu1 %v3755_v37 }
 0x1df   : > { %2559 = vmatpush1.bf16.msra.mxu0 %v3750_v38  ;;  %2731 = vmatpush1.bf16.msra.mxu1 %v3753_v39 }
 0x1e0   : > { %2560 = vmatprep.subr.bf16.mxu0 %v3758_v40  ;;  %2732 = vmatprep.subr.bf16.mxu1 %v3761_v41  ;;  %v2793_v41 = vlaneseq (!%p3276_p2) }
 0x1e3   : > { %2561 = vmatpush1.bf16.msra.mxu0 %v3756_v42  ;;  %2733 = vmatpush1.bf16.msra.mxu1 %v3759_v43  ;;  %v2794_v42 = vshrl.u32 (!%p3276_p2), %v2793_v41, 7  ;;  %v2791_v43 = vld [vmem:[%s4791_s5] sm:$0xf] (!%p3276_p2) }
 0x1e4   : > { %2562 = vmatprep.subr.bf16.mxu0 %v3764_v44  ;;  %2734 = vmatprep.subr.bf16.mxu1 %v3767_v45 }
 0x1e5   : > { %v2795_v45 = vsub.s32 (!%p3276_p2), 0, %v2794_v42 }
 0x1e7   : > { %2563 = vmatpush1.bf16.msra.mxu0 %v3762_v46  ;;  %2735 = vmatpush1.bf16.msra.mxu1 %v3765_v47  ;;  %v2799_v47 = vsub.s32 (!%p3276_p2), 1, %v2794_v42 }
 0x1e8   : > { %2564 = vmatprep.subr.bf16.mxu0 %v3770_v48  ;;  %2736 = vmatprep.subr.bf16.mxu1 %v3773_v49  ;;  %v2803_v48 = vsub.s32 (!%p3276_p2), 2, %v2794_v42  ;;  %v2807_v49 = vsub.s32 (!%p3276_p2), 3, %v2794_v42 }
 0x1eb   : > { %2565 = vmatpush1.bf16.msra.mxu0 %v3768_v50  ;;  %2737 = vmatpush1.bf16.msra.mxu1 %v3771_v51 }
 0x1ec   : > { %2566 = vmatprep.subr.bf16.mxu0 %v3776_v52  ;;  %2738 = vmatprep.subr.bf16.mxu1 %v3779_v53  ;;  %v2796_v53 = vrot.slane (!%p3276_p2), %v2791_v43, %v2795_v45 }
 0x1ef   : > { %2567 = vmatpush1.bf16.msra.mxu0 %v3774_v54  ;;  %2739 = vmatpush1.bf16.msra.mxu1 %v3777_v55  ;;  %v2800_v54 = vrot.slane (!%p3276_p2), %v2791_v43, %v2799_v47  ;;  %v2804_v55 = vrot.slane (!%p3276_p2), %v2791_v43, %v2803_v48 }
 0x1f0   : > { %2568 = vmatprep.subr.bf16.mxu0 %v3782_v56  ;;  %2740 = vmatprep.subr.bf16.mxu1 %v3785_v57  ;;  %v2808_v56 = vrot.slane (!%p3276_p2), %v2791_v43, %v2807_v49 }
 0x1f3   : > { %2569 = vmatpush1.bf16.msra.mxu0 %v3780_v58  ;;  %2741 = vmatpush1.bf16.msra.mxu1 %v3783_v59 }
 0x1f4   : > { %2570 = vmatprep.subr.bf16.mxu0 %v3788_v60  ;;  %2742 = vmatprep.subr.bf16.mxu1 %v3791_v61 }
 0x1f7   : > { %2571 = vmatpush1.bf16.msra.mxu0 %v3786_v62  ;;  %2743 = vmatpush1.bf16.msra.mxu1 %v3789_v63 }
 0x1f8   : > { %2572 = vmatprep.subr.bf16.mxu0 %v3794_v0  ;;  %2744 = vmatprep.subr.bf16.mxu1 %v3797_v1 }
 0x1fb   : > { %2573 = vmatpush1.bf16.msra.mxu0 %v3792_v2  ;;  %2745 = vmatpush1.bf16.msra.mxu1 %v3795_v3 }
 0x1fc   : > { %2574 = vmatprep.subr.bf16.mxu0 %v3800_v4  ;;  %2746 = vmatprep.subr.bf16.mxu1 %v3803_v5 }
 0x1ff   : > { %2575 = vmatpush1.bf16.msra.mxu0 %v3798_v6  ;;  %2747 = vmatpush1.bf16.msra.mxu1 %v3801_v7 }
 0x200   : > { %2576 = vmatprep.subr.bf16.mxu0 %v3806_v8  ;;  %2748 = vmatprep.subr.bf16.mxu1 %v3809_v9 }
 0x203   : > { %2577 = vmatpush1.bf16.msra.mxu0 %v3804_v10  ;;  %2749 = vmatpush1.bf16.msra.mxu1 %v3807_v11 }
 0x204   : > { %2578 = vmatprep.subr.bf16.mxu0 %v3812_v12  ;;  %2750 = vmatprep.subr.bf16.mxu1 %v3815_v13 }
 0x207   : > { %2579 = vmatpush1.bf16.msra.mxu0 %v3810_v14  ;;  %2751 = vmatpush1.bf16.msra.mxu1 %v3813_v19 }
 0x20a   : > { %2581 = vmatmul.mubr.bf16.vlgmr.msra.gmra.mrb[0].mxu0 %v3018_v20  ;;  %2753 = vmatmul.mubr.bf16.vlgmr.msra.gmra.mrb[0].mxu1 %v3018_v20 }
 0x2dd   : > { %v2582_v23 = vpop.f32.mrb[0].mxu0  ;;  %v2754_v24 = vpop.f32.mrb[0].mxu1  ;;  %2782 = sbr.rel (%p3276_p2) target bundleno = 752 (0x2f0), region = 71 }
 0x2de   : > { %v2763_v27 = vadd.f32 %v2582_v23, %v827_v21  ;;  %v2765_v28 = vadd.f32 %v2754_v24, %v829_v22  ;;  %v2584_v17 = vpop.f32.mrb[1].mxu0  ;;  %v2756_v18 = vpop.f32.mrb[1].mxu1 }
 0x2df   : > { %v2764_v31 = vadd.f32 %v2584_v17, %v828_v15  ;;  %v2766_v32 = vadd.f32 %v2756_v18, %v830_v16  ;;  %v2586_v33 = vpop.f32.mrb[2].mxu0  ;;  %v2758_v34 = vpop.f32.mrb[2].mxu1 }
 0x2e0   : > { %2771 = vst [vmem:[%s4798_s17] sm:$0xff] %v2763_v27  ;;  %2773 = vst [vmem:[%s4798_s17 + $0x10] sm:$0xff] %v2765_v28  ;;  %v2767_v35 = vadd.f32 %v2586_v33, %v831_v25  ;;  %v2769_v36 = vadd.f32 %v2758_v34, %v833_v26  ;;  %v2588_v37 = vpop.f32.mrb[3].mxu0  ;;  %v2760_v38 = vpop.f32.mrb[3].mxu1 }
 0x2e1   : > { %2772 = vst [vmem:[%s4798_s17 + $0x8] sm:$0xff] %v2764_v31  ;;  %2774 = vst [vmem:[%s4798_s17 + $0x18] sm:$0xff] %v2766_v32  ;;  %v2768_v39 = vadd.f32 %v2588_v37, %v832_v29  ;;  %v2770_v40 = vadd.f32 %v2760_v38, %v834_v30 }
 0x2e2   : > { %2775 = vst [vmem:[%s4798_s17 + $0x20] sm:$0xff] %v2767_v35  ;;  %2777 = vst [vmem:[%s4798_s17 + $0x30] sm:$0xff] %v2769_v36 }
 0x2e3   : > { %2776 = vst [vmem:[%s4798_s17 + $0x28] sm:$0xff] %v2768_v39  ;;  %2778 = vst [vmem:[%s4798_s17 + $0x38] sm:$0xff] %v2770_v40 }
 0x2e7   : > { %v2783_v44 = vld [vmem:[%s4798_s17] sm:$0xff]  ;;  %v2785_v50 = vld [vmem:[%s4798_s17 + $0x10] sm:$0xff] }
 0x2e8   : > { %v2784_v46 = vld [vmem:[%s4798_s17 + $0x8] sm:$0xff]  ;;  %v2786_v51 = vld [vmem:[%s4798_s17 + $0x18] sm:$0xff]  ;;  %v2813_v60 = vadd.f32 %v2796_v53, %v2783_v44  ;;  %v2815_v62 = vadd.f32 %v2804_v55, %v2785_v50 }
 0x2e9   : > { %v2787_v52 = vld [vmem:[%s4798_s17 + $0x20] sm:$0xff]  ;;  %v2789_v58 = vld [vmem:[%s4798_s17 + $0x30] sm:$0xff]  ;;  %v2814_v61 = vadd.f32 %v2800_v54, %v2784_v46  ;;  %v2816_v63 = vadd.f32 %v2808_v56, %v2786_v51 }
 0x2ea   : > { %v2788_v57 = vld [vmem:[%s4798_s17 + $0x28] sm:$0xff]  ;;  %v2790_v59 = vld [vmem:[%s4798_s17 + $0x38] sm:$0xff]  ;;  %v2817_v0 = vadd.f32 %v2796_v53, %v2787_v52  ;;  %v2819_v2 = vadd.f32 %v2804_v55, %v2789_v58  ;;  %v2821_v4 = vmax.f32 %v2813_v60, 0.0  ;;  %v2823_v6 = vmax.f32 %v2815_v62, 0.0 }
 0x2eb   : > { %v2818_v1 = vadd.f32 %v2800_v54, %v2788_v57  ;;  %v2820_v3 = vadd.f32 %v2808_v56, %v2790_v59  ;;  %v2822_v5 = vmax.f32 %v2814_v61, 0.0  ;;  %v2824_v7 = vmax.f32 %v2816_v63, 0.0 }
 0x2ec   : > { %v2825_v8 = vmax.f32 %v2817_v0, 0.0  ;;  %v2827_v10 = vmax.f32 %v2819_v2, 0.0  ;;  %2829 = vst [vmem:[%s4798_s17] sm:$0xff] %v2821_v4  ;;  %2831 = vst [vmem:[%s4798_s17 + $0x10] sm:$0xff] %v2823_v6 }
 0x2ed   : > { %v2826_v9 = vmax.f32 %v2818_v1, 0.0  ;;  %v2828_v11 = vmax.f32 %v2820_v3, 0.0  ;;  %2830 = vst [vmem:[%s4798_s17 + $0x8] sm:$0xff] %v2822_v5  ;;  %2832 = vst [vmem:[%s4798_s17 + $0x18] sm:$0xff] %v2824_v7 }
 0x2ee   : > { %2833 = vst [vmem:[%s4798_s17 + $0x20] sm:$0xff] %v2825_v8  ;;  %2835 = vst [vmem:[%s4798_s17 + $0x30] sm:$0xff] %v2827_v10 }
 0x2ef   : > { %2834 = vst [vmem:[%s4798_s17 + $0x28] sm:$0xff] %v2826_v9  ;;  %2836 = vst [vmem:[%s4798_s17 + $0x38] sm:$0xff] %v2828_v11 }
 0x2f0 PF: > { %s5256_s15 = sld [smem:[#allocation14_spill]]  ;;  %s5257_s20 = sld [smem:[#allocation20_spill]] }
 0x2f1   : > { %s5258_s30 = sld [smem:[#allocation23_spill]]  ;;  %s2854_s0 = sshll.u32 %s4798_s17, 4  ;;  %s5138_s0 = int_to_ptr.vmem [resolvable:$true] %s2854_s0 }
 0x2f2   : > { %s2838_s4 = scalar_lea.sflag [#allocation4], %s4785_s11  ;;  %s3872_s6 = scalar_lea.vmem %s5138_s0, 1024 }
 0x2f3   : > { %p3873_p7 = scmp.ne.s32.totalorder %s5138_s0, %s3872_s6  ;;  %s4022_s29 = smov [#allocation8]  }
 0x2f4   : > { %s3876_s10 = sshll.u32 %s4022_s29, 4  ;;  %s3877_s10 = int_to_ptr.vmem [resolvable:$false] %s3876_s10 }
 0x2f5   : > { %s3878_s12 = scalar_lea.vmem %s3877_s10, 2048  ;;  %p3879_p3 = scmp.lt.s32.totalorder %s5138_s0, %s3877_s10 }
 0x2f6   : > { %s3285_s9 = sshll.u32 %s5256_s15, 9  ;;  %p5259_p11 = scmp.ne.s32.totalorder %s5257_s20, 0 }
 0x2f7   : > { %s5135_s26 = scalar_lea.hbm %s5258_s30, %s3285_s9  ;;  %p3880_p12 = scmp.lt.s32.totalorder %s3878_s12, %s3872_s6 }
 0x2f8   : > { %p3874_p1 = pnand %p3873_p7, %p5259_p11 }
 0x2f9   : > { %p3881_p6 = por %p3880_p12, %p3879_p3 }
 0x2fa   : > { %p3875_p4 = pneg %p3874_p1 }
 0x2fc   : > { %p3882_p0 = pnand %p3881_p6, %p3875_p4 }
 0x2fe   : > { %3885 = shalt.err (!%p3882_p0)
}
 0x2ff   : > { %s3886_s25 = scalar_lea.hbm %s5135_s26, 1024  ;;  %s3890_s27 = scalar_lea.hbm %s5258_s30, 8192 }
 0x300   : > { %p3887_p9 = scmp.ne.s32.totalorder %s5135_s26, %s3886_s25  ;;  %p3891_p8 = scmp.lt.u32.totalorder %s5135_s26, %s5258_s30 }
 0x301   : > { %p3892_p5 = scmp.lt.u32.totalorder %s3890_s27, %s3886_s25  ;;  %p3894_p7 = scmp.lt.u32.totalorder %s3886_s25, %s5135_s26 }
 0x302   : > { %p3888_p10 = pnand %p3887_p9, %p5259_p11 }
 0x303   : > { %p3893_p2 = por %p3892_p5, %p3891_p8 }
 0x304   : > { %p3889_p13 = pneg %p3888_p10 }
 0x305   : > { %p3895_p1 = por %p3894_p7, %p3893_p2 }
 0x307   : > { %p3896_p4 = pnand %p3895_p1, %p3889_p13 }
 0x309   : > { %3899 = shalt.err (!%p3896_p4)
}
 0x30a   : > { %s4023_s7 = smov 512   ;;  %s4024_s17 = smov 4096  }
 0x30b   : > { %s4025_s15 = smov 32  }
 0x30c   : > { %3314 = dma.vmem_to_hbm [thread:$0]  (%p5259_p11), %s5138_s0, 1024, %s5135_s26, %s2838_s4, %s4023_s7, %s4024_s17, %s4025_s15  }
 0x30d PF: > { %s5260_s9 = sld [smem:[#allocation12_spill]]  ;;  %s5261_s3 = sld [smem:[#allocation21_spill]] }
 0x30e   : > { %p3320_p3 = scmp.ge.s32.totalorder %s4014_s24, 2 }
 0x313   : > { %s2869_s19 = sand.u32 1, %s5260_s9   ;;  %p5262_p12 = scmp.ne.s32.totalorder %s5261_s3, 0 }
 0x314   : > { %s2870_s6 = scalar_lea.sflag [#allocation4], %s2869_s19 }
 0x315   : > { %p3317_p6 = pnand %p3320_p3, %p5262_p12 }
 0x317   : > { %3961 = dma.done.wait (!%p3317_p6), %s2870_s6, 1024  }
 0x318   : > { %3963 = vsyncadd (!%p3317_p6), %s2870_s6, 4294966272  ;;  %s22_s24 = sadd.s32 1, %s4014_s24   ;;  %s5264_s11 = sld [smem:[#allocation19_spill]] }
 0x319   : > { %p5169_p0 = scmp.ge.s32.totalorder %s22_s24, 34   ;;  %s5265_s20 = sld [smem:[#allocation18_spill]] }
 0x31a   : > { %s5266_s26 = sld [smem:[#allocation13_spill]]  ;;  %s5267_s19 = sld [smem:[#allocation17_spill]] }
 0x31b   : > { %s5268_s0 = sld [smem:[#allocation15_spill]]  ;;  %s5269_s4 = sld [smem:[#allocation16_spill]] }
 0x31c   : > { %s5270_s12 = smov %s3970_s13  ;;  %s5271_s13 = smov %s3974_s14 }
 0x31d   : > { %s5273_s15 = smov %s3982_s16  ;;  %s5275_s17 = smov %s3990_s18 }
 0x31e   : > { %s5272_s14 = smov %s5264_s11  ;;  %s5278_s21 = smov %s4010_s23 }
 0x31f   : > { %s5274_s16 = smov %s5265_s20  ;;  %s5277_s20 = smov %s4006_s22 }
 0x320   : > { %s5276_s18 = smov %s5266_s26  ;;  %21 = sbr.rel (!%p5169_p0) target bundleno = 15 (0xf), region = 129 }
 0x321   : > { %s5279_s22 = smov %s5268_s0  ;;  %s5280_s23 = smov %s5269_s4 }
 0x327   :  { %2875 = vsyncpa [#allocation3], 1 }
 0x328   :  { %2877 = vsyncpa [#allocation3 + $0x1], 1 }
 0x329   :  { %2878 = vsyncpa [#allocation7], 1 }
 0x32a   :  { %2880 = vsyncpa [#allocation7 + $0x1], 1 }
 0x32b   :  { %2881 = vsyncpa [#allocation4], 1 }
 0x32c   :  { %2883 = vsyncpa [#allocation4 + $0x1], 1 }

// kernel: net_conv_forward.22
= control target key start
LH: loop header
LB: loop body
LE: loop exit
PB: predicated region body
PF: predicated region fallthrough
CT: control target
= control target key end

     0   :  { %8 = vsyncpa [#allocation4], 0  ;;  %s1891_s0 = inlined_call_operand.vmem [shape: bf16[16,4096], index: 0, kind: input, shape index: {}]   ;;  %s1892_s1 = inlined_call_operand.hbm [shape: bf16[4096,128], index: 1, kind: input, shape index: {}]   ;;  %s1893_s2 = inlined_call_operand.hbm [shape: f32[1,128], index: 2, kind: input, shape index: {}]   ;;  %s1894_s3 = inlined_call_operand.vmem [shape: f32[16,128], index: 3, kind: output, shape index: {}]  }
   0x1   :  { %10 = vsyncpa [#allocation4 + $0x1], 0 }
   0x2   :  { %11 = vsyncpa [#allocation6], 0  ;;  %s1627_s12 = smov 0   ;;  %s1629_s13 = smov 0  }
   0x3   :  { %s1631_s14 = smov 0   ;;  %s1633_s15 = smov 0  }
   0x4   :  { %s1635_s16 = smov 0   ;;  %s1637_s17 = smov 0  }
   0x5 LB: > { %s1179_s18 = sadd.s32 4294967295, %s1600_s17   ;;  %s29_s19 = sadd.s32 1, %s1596_s16  ;;  %s1600_s17 = sphi %s1637_s17, %s17_s17   ;;  %s1596_s16 = sphi %s1635_s16, %s1914_s16   ;;  %s1592_s15 = sphi %s1633_s15, %s1913_s15   ;;  %s1588_s14 = sphi %s1631_s14, %s1912_s14   ;;  %s1584_s13 = sphi %s1629_s13, %s1911_s13   ;;  %s1580_s12 = sphi %s1627_s12, %s1910_s12  }
   0x6   : > { %p30_p0 = scmp.ge.s32.totalorder %s29_s19, 4  ;;  %s45_s20 = sadd.s32 1, %s1588_s14 }
   0x7   : > { %p52_p1 = scmp.ne.s32.totalorder %s1588_s14, %s1584_s13  ;;  %p53_p2 = scmp.eq.s32.totalorder %s1600_s17, 0 }
   0x8   : > { %s1916_s19 = smov (%p30_p0, %s29_s19), 0  ;;  %p86_p4 = scmp.ne.s32.totalorder %s1584_s13, %s1580_s12 }
   0x9   : > { %p1663_p3 = por %p53_p2, %p52_p1  ;;  %s41_s22 = ssub.s32 %s1596_s16, %s1916_s19 }
   0xa   : > { %p1670_p5 = scmp.eq.s32.totalorder %s1179_s18, 0  ;;  %p43_p6 = scmp.eq.s32.totalorder %s41_s22, 0 }
   0xb   : > { %s1900_s21 = scalar_select %p1663_p3, 1, 0 }
   0xc   : > { %s1901_s23 = scalar_select %p1670_p5, 1, 0 }
   0xd   : > { %p1180_p7 = scmp.ge.s32.totalorder %s1600_s17, 1  ;;  %p1677_p8 = por %p1670_p5, %p86_p4 }
   0xe   : > { %p151_p9 = scmp.lt.s32.totalorder %s1600_s17, 5  ;;  %s1602_s27 = smov [#allocation5]  }
   0xf   : > { %s1902_s24 = scalar_select %p1677_p8, 1, 0 }
  0x10   : > { %s1683_s25 = scalar_select %p43_p6, %s1588_s14, %s45_s20  }
  0x11   : > { %p1685_p10 = pnand %p1180_p7, %p151_p9  ;;  %s166_s28 = sshll.u32 %s1602_s27, 4  ;;  %s167_s28 = int_to_ptr.vmem [resolvable:$true] %s166_s28 }
  0x12   : > { %s1490_s5 = scalar_lea.hbm %s1893_s2, 16 }
  0x13   : > { %s1903_s26 = scalar_select %p1685_p10, 1, 0 }
  0x14   : > { %p1368_p11 = pneg %p1685_p10  ;;  %p1491_p13 = scmp.ne.s32.totalorder %s1893_s2, %s1490_s5 }
  0x15   : > { %p1497_p4 = scmp.lt.u32.totalorder %s1490_s5, %s1893_s2 }
  0x16   : > { %p1693_p12 = pnand %p1368_p11, %p1670_p5 }
  0x18   : > { %p1492_p0 = pneg %p1693_p12 }
  0x1a   : > { %p1493_p1 = pnand %p1492_p0, %p1491_p13 }
  0x1c   : > { %p1494_p2 = pneg %p1493_p1 }
  0x1e   : > { %p1499_p6 = pnand %p1497_p4, %p1494_p2 }
  0x20   : > { %1502 = shalt.err (!%p1499_p6)
}
  0x21   : > { %s1503_s10 = scalar_lea.vmem %s167_s28, 16  ;;  %s1510_s11 = scalar_lea.vmem %s167_s28, 32 }
  0x22   : > { %p1504_p7 = scmp.ne.s32.totalorder %s167_s28, %s1503_s10  ;;  %p1511_p5 = scmp.lt.s32.totalorder %s167_s28, %s167_s28 }
  0x23   : > { %p1512_p8 = scmp.lt.s32.totalorder %s1510_s11, %s1503_s10 }
  0x24   : > { %p1506_p9 = pnand %p1504_p7, %p1492_p0 }
  0x25   : > { %p1513_p10 = por %p1512_p8, %p1511_p5 }
  0x26   : > { %p1507_p11 = pneg %p1506_p9 }
  0x28   : > { %p1514_p3 = pnand %p1513_p10, %p1507_p11 }
  0x2a   : > { %1517 = shalt.err (!%p1514_p3)
}
  0x2b   : > { %1371 = dma.hbm_to_vmem [thread:$0]  (!%p1693_p12), %s1893_s2, 16, %s167_s28, [#allocation6]  }
  0x2c   : > { %p1182_p13 = scmp.ge.s32.totalorder %s1600_s17, 4 }
  0x2d   : > { %p1905_p1 = scmp.ne.s32.totalorder (!%p1182_p13), %s1900_s21, 0 }
  0x2e   : > { %173 = sbr.rel (%p1182_p13) target bundleno = 88 (0x58), region = 20 }
  0x35   : > { %176 = sbr.rel (!%p1905_p1) target bundleno = 61 (0x3d), region = 24  ;;  %s178_s20 = sand.u32 (%p1905_p1), 1, %s1588_s14  }
  0x36   : > { %s1272_s22 = sshll.u32 (%p1905_p1), %s1596_s16, 5  ;;  %s1183_s27 = sshll.u32 (%p1905_p1), %s178_s20, 6 }
  0x37   : > { %s186_s5 = scalar_lea.vmem (%p1905_p1), %s1891_s0, %s1272_s22  ;;  %s180_s29 = scalar_lea.vmem (%p1905_p1), [#allocation2], %s1183_s27 }
  0x38   : > { %v199_v0 = vld [vmem:[%s186_s5] sm:$0xff] (%p1905_p1)  ;;  %v201_v1 = vld [vmem:[%s186_s5 + $0x8] sm:$0xff] (%p1905_p1)  ;;  %v203_v2 = vld [vmem:[%s186_s5 + $0x10] sm:$0xff] (%p1905_p1) }
  0x39   : > { %200 = vst [vmem:[%s180_s29] sm:$0xff] (%p1905_p1), %v199_v0  ;;  %202 = vst [vmem:[%s180_s29 + $0x8] sm:$0xff] (%p1905_p1), %v201_v1  ;;  %v205_v3 = vld [vmem:[%s186_s5 + $0x18] sm:$0xff] (%p1905_p1)  ;;  %v207_v4 = vld [vmem:[%s186_s5 + $0x80] sm:$0xff] (%p1905_p1) }
  0x3a   : > { %204 = vst [vmem:[%s180_s29 + $0x10] sm:$0xff] (%p1905_p1), %v203_v2  ;;  %v209_v5 = vld [vmem:[%s186_s5 + $0x88] sm:$0xff] (%p1905_p1)  ;;  %206 = vst [vmem:[%s180_s29 + $0x18] sm:$0xff] (%p1905_p1), %v205_v3  ;;  %v211_v6 = vld [vmem:[%s186_s5 + $0x90] sm:$0xff] (%p1905_p1) }
  0x3b   : > { %208 = vst [vmem:[%s180_s29 + $0x20] sm:$0xff] (%p1905_p1), %v207_v4  ;;  %210 = vst [vmem:[%s180_s29 + $0x28] sm:$0xff] (%p1905_p1), %v209_v5  ;;  %v213_v7 = vld [vmem:[%s186_s5 + $0x98] sm:$0xff] (%p1905_p1) }
  0x3c   : > { %212 = vst [vmem:[%s180_s29 + $0x30] sm:$0xff] %v211_v6  ;;  %214 = vst [vmem:[%s180_s29 + $0x38] sm:$0xff] %v213_v7 }
  0x3d PF: > { %s221_s28 = sand.u32 1, %s1588_s14   ;;  %s1273_s6 = sshll.u32 %s1596_s16, 13 }
  0x3e   : > { %s1186_s7 = sshll.u32 %s221_s28, 9  ;;  %s1726_s10 = scalar_lea.hbm %s1892_s1, %s1273_s6 }
  0x3f   : > { %s225_s11 = scalar_lea.vmem [#allocation3], %s1186_s7  ;;  %s1730_s18 = scalar_lea.sflag [#allocation4], %s221_s28 }
  0x40   : > { %s233_s12 = sshll.u32 %s225_s11, 4  ;;  %s1518_s20 = scalar_lea.hbm %s1726_s10, 8192  ;;  %s1728_s12 = int_to_ptr.vmem [resolvable:$true] %s233_s12 }
  0x41   : > { %p1519_p3 = scmp.ne.s32.totalorder %s1726_s10, %s1518_s20  ;;  %p1906_p5 = scmp.ne.s32.totalorder %s1900_s21, 0 }
  0x42   : > { %s1522_s30 = scalar_lea.hbm %s1892_s1, 32768  ;;  %p1523_p12 = scmp.lt.u32.totalorder %s1726_s10, %s1892_s1 }
  0x43   : > { %p1520_p8 = pnand %p1519_p3, %p1906_p5  ;;  %p1524_p0 = scmp.lt.u32.totalorder %s1522_s30, %s1518_s20 }
  0x44   : > { %p1526_p4 = scmp.lt.u32.totalorder %s1518_s20, %s1726_s10 }
  0x45   : > { %p1521_p10 = pneg %p1520_p8  ;;  %p1525_p2 = por %p1524_p0, %p1523_p12 }
  0x47   : > { %p1527_p6 = por %p1526_p4, %p1525_p2 }
  0x49   : > { %p1528_p7 = pnand %p1527_p6, %p1521_p10 }
  0x4b   : > { %1531 = shalt.err (!%p1528_p7)
}
  0x4c   : > { %s1532_s29 = scalar_lea.vmem %s1728_s12, 8192  ;;  %s1603_s28 = smov [#allocation3]  }
  0x4d   : > { %p1533_p9 = scmp.ne.s32.totalorder %s1728_s12, %s1532_s29  ;;  %s1536_s6 = sshll.u32 %s1603_s28, 4  ;;  %s1537_s6 = int_to_ptr.vmem [resolvable:$false] %s1536_s6 }
  0x4e   : > { %s1538_s7 = scalar_lea.vmem %s1537_s6, 16384  ;;  %p1539_p1 = scmp.lt.s32.totalorder %s1728_s12, %s1537_s6 }
  0x4f   : > { %p1534_p11 = pnand %p1533_p9, %p1906_p5  ;;  %p1540_p3 = scmp.lt.s32.totalorder %s1538_s7, %s1532_s29 }
  0x51   : > { %p1535_p13 = pneg %p1534_p11  ;;  %p1541_p8 = por %p1540_p3, %p1539_p1 }
  0x53   : > { %p1542_p12 = pnand %p1541_p8, %p1535_p13 }
  0x55   : > { %1545 = shalt.err (!%p1542_p12)
}
  0x56   : > { %s1604_s8 = smov 64   ;;  %s1605_s9 = smov 4  }
  0x57   : > { %1364 = dma.hbm_to_vmem [thread:$0]  (%p1906_p5), %s1726_s10, 8192, %s1728_s12, %s1730_s18, %s1604_s8, %s1604_s8, %s1605_s9  }
  0x58 PF: > { %p1907_p10 = scmp.ne.s32.totalorder %s1903_s26, 0 }
  0x59   : > { %s248_s11 = sand.u32 (!%p1907_p10), 1, %s1584_s13   ;;  %p1908_p0 = scmp.ne.s32.totalorder (!%p1907_p10), %s1902_s24, 0 }
  0x5a   : > { %245 = sbr.rel (%p1907_p10) target bundleno = 410 (0x19a), region = 51  ;;  %s1190_s20 = sshll.u32 (!%p1907_p10), %s248_s11, 6 }
  0x5b   : > { %s1191_s22 = sshll.u32 (!%p1907_p10), %s248_s11, 9  ;;  %s1757_s27 = scalar_lea.vmem (!%p1907_p10), [#allocation2], %s1190_s20 }
  0x5c   : > { %s255_s30 = scalar_lea.sflag (!%p1907_p10), [#allocation4], %s248_s11  ;;  %s1759_s4 = scalar_lea.vmem (!%p1907_p10), [#allocation3], %s1191_s22 }
  0x61   : > { %1571 = dma.done.wait (%p1908_p0), %s255_s30, 8192  }
  0x62   : > { %1573 = vsyncadd (%p1908_p0), %s255_s30, 4294959104  ;;  %p1909_p5 = scmp.ne.s32.totalorder %s1901_s23, 0 }
  0x64   : > { %1575 = dma.done.wait (%p1909_p5), [#allocation6], 16  }
  0x65   : > { %1577 = vsyncadd (%p1909_p5), [#allocation6], 4294967280  ;;  %p1193_p2 = scmp.ne.s32.totalorder %s1592_s15, 0 }
  0x66   : > { %v1606_v8 = vmov (!%p1193_p2), 0.0  }
  0x67   : > { %308 = sbr.rel (%p1193_p2) target bundleno = 110 (0x6e), region = 67  ;;  %309 = vst [vmem:[%s1894_s3] sm:$0xff] (!%p1193_p2), %v1606_v8  ;;  %310 = vst [vmem:[%s1894_s3 + $0x8] sm:$0xff] (!%p1193_p2), %v1606_v8 }
  0x6e PF: > { %v1426_v9 = vld [vmem:[%s1759_s4 + $0x40] sm:$0xff]   ;;  %v1430_v13 = vld [vmem:[%s1759_s4 + $0x48] sm:$0xff]   ;;  %v1434_v17 = vld [vmem:[%s1759_s4 + $0x50] sm:$0xff]   ;;  %p1266_p4 = scmp.ne.s32.totalorder %s1592_s15, 3 }
  0x6f   : > { %v1427_v10 = vld [vmem:[%s1759_s4 + $0xc0] sm:$0xff]   ;;  %1274 = vmatprep.subr.bf16.mxu0 %v1426_v9  ;;  %v1431_v14 = vld [vmem:[%s1759_s4 + $0xc8] sm:$0xff]   ;;  %v1435_v18 = vld [vmem:[%s1759_s4 + $0xd0] sm:$0xff]  }
  0x70   : > { %v1428_v11 = vld [vmem:[%s1759_s4] sm:$0xff]   ;;  %1296 = vmatprep.subr.bf16.mxu1 %v1427_v10  ;;  %v1432_v15 = vld [vmem:[%s1759_s4 + $0x8] sm:$0xff]   ;;  %v1436_v19 = vld [vmem:[%s1759_s4 + $0x10] sm:$0xff]  }
  0x71   : > { %v1429_v12 = vld [vmem:[%s1759_s4 + $0x80] sm:$0xff]   ;;  %1275 = vmatpush3.bf16.msra.mxu0 %v1428_v11  ;;  %v1433_v16 = vld [vmem:[%s1759_s4 + $0x88] sm:$0xff]   ;;  %v1437_v20 = vld [vmem:[%s1759_s4 + $0x90] sm:$0xff]  }
  0x72   : > { %1297 = vmatpush3.bf16.msra.mxu1 %v1429_v12  ;;  %1276 = vmatprep.subr.bf16.mxu0 %v1430_v13  ;;  %v1438_v21 = vld [vmem:[%s1759_s4 + $0x58] sm:$0xff]   ;;  %v1442_v25 = vld [vmem:[%s1759_s4 + $0x60] sm:$0xff]   ;;  %v1446_v29 = vld [vmem:[%s1759_s4 + $0x68] sm:$0xff]  }
  0x73   : > { %1298 = vmatprep.subr.bf16.mxu1 %v1431_v14  ;;  %v1439_v22 = vld [vmem:[%s1759_s4 + $0xd8] sm:$0xff]   ;;  %v1443_v26 = vld [vmem:[%s1759_s4 + $0xe0] sm:$0xff]   ;;  %v1447_v30 = vld [vmem:[%s1759_s4 + $0xe8] sm:$0xff]  }
  0x74   : > { %v1440_v23 = vld [vmem:[%s1759_s4 + $0x18] sm:$0xff]   ;;  %v1444_v27 = vld [vmem:[%s1759_s4 + $0x20] sm:$0xff]   ;;  %v1448_v31 = vld [vmem:[%s1759_s4 + $0x28] sm:$0xff]  }
  0x75   : > { %1277 = vmatpush3.bf16.msra.mxu0 %v1432_v15  ;;  %v1441_v24 = vld [vmem:[%s1759_s4 + $0x98] sm:$0xff]   ;;  %v1445_v28 = vld [vmem:[%s1759_s4 + $0xa0] sm:$0xff]   ;;  %v1449_v32 = vld [vmem:[%s1759_s4 + $0xa8] sm:$0xff]  }
  0x76   : > { %1299 = vmatpush3.bf16.msra.mxu1 %v1433_v16  ;;  %1278 = vmatprep.subr.bf16.mxu0 %v1434_v17  ;;  %v1450_v33 = vld [vmem:[%s1759_s4 + $0x70] sm:$0xff]   ;;  %v1454_v37 = vld [vmem:[%s1759_s4 + $0x78] sm:$0xff]   ;;  %v313_v41 = vld [vmem:[%s1757_s27] sm:$0xff] }
  0x77   : > { %1300 = vmatprep.subr.bf16.mxu1 %v1435_v18  ;;  %v1451_v34 = vld [vmem:[%s1759_s4 + $0xf0] sm:$0xff]   ;;  %v1455_v38 = vld [vmem:[%s1759_s4 + $0xf8] sm:$0xff]   ;;  %v317_v42 = vld [vmem:[%s1757_s27 + $0x20] sm:$0xff] }
  0x78   : > { %v1452_v35 = vld [vmem:[%s1759_s4 + $0x30] sm:$0xff]   ;;  %v1456_v39 = vld [vmem:[%s1759_s4 + $0x38] sm:$0xff]   ;;  %v314_v43 = vld [vmem:[%s1757_s27 + $0x8] sm:$0xff]  ;;  %v1194_v44 = vcombine.low %v313_v41, %v317_v42  ;;  %v1195_v45 = vcombine.high %v313_v41, %v317_v42 }
  0x79   : > { %1279 = vmatpush3.bf16.msra.mxu0 %v1436_v19  ;;  %v1453_v36 = vld [vmem:[%s1759_s4 + $0xb0] sm:$0xff]   ;;  %v1457_v40 = vld [vmem:[%s1759_s4 + $0xb8] sm:$0xff]   ;;  %v318_v46 = vld [vmem:[%s1757_s27 + $0x28] sm:$0xff] }
  0x7a   : > { %1301 = vmatpush3.bf16.msra.mxu1 %v1437_v20  ;;  %1280 = vmatprep.subr.bf16.mxu0 %v1438_v21  ;;  %v1196_v47 = vcombine.low %v314_v43, %v318_v46  ;;  %v1197_v48 = vcombine.high %v314_v43, %v318_v46  ;;  %v1458_v49 = vld [vmem:[%s1759_s4 + $0x140] sm:$0xff]   ;;  %v1462_v53 = vld [vmem:[%s1759_s4 + $0x148] sm:$0xff]   ;;  %v1466_v57 = vld [vmem:[%s1759_s4 + $0x150] sm:$0xff]  }
  0x7b   : > { %1302 = vmatprep.subr.bf16.mxu1 %v1439_v22  ;;  %905 = vmatprep.mubr.bf16.mxu0 %v1195_v45  ;;  %v1459_v50 = vld [vmem:[%s1759_s4 + $0x1c0] sm:$0xff]   ;;  %v1463_v54 = vld [vmem:[%s1759_s4 + $0x1c8] sm:$0xff]   ;;  %v1467_v58 = vld [vmem:[%s1759_s4 + $0x1d0] sm:$0xff]  }
  0x7c   : > { %946 = vmatprep.mubr.bf16.mxu1 %v1197_v48  ;;  %v1460_v51 = vld [vmem:[%s1759_s4 + $0x100] sm:$0xff]   ;;  %v1464_v55 = vld [vmem:[%s1759_s4 + $0x108] sm:$0xff]   ;;  %v1468_v59 = vld [vmem:[%s1759_s4 + $0x110] sm:$0xff]  }
  0x7d   : > { %1281 = vmatpush3.bf16.msra.mxu0 %v1440_v23  ;;  %v1461_v52 = vld [vmem:[%s1759_s4 + $0x180] sm:$0xff]   ;;  %v1465_v56 = vld [vmem:[%s1759_s4 + $0x188] sm:$0xff]   ;;  %v1469_v60 = vld [vmem:[%s1759_s4 + $0x190] sm:$0xff]  }
  0x7e   : > { %1303 = vmatpush3.bf16.msra.mxu1 %v1441_v24  ;;  %1282 = vmatprep.subr.bf16.mxu0 %v1442_v25  ;;  %v1470_v61 = vld [vmem:[%s1759_s4 + $0x158] sm:$0xff]   ;;  %v1474_v1 = vld [vmem:[%s1759_s4 + $0x160] sm:$0xff]   ;;  %v1478_v5 = vld [vmem:[%s1759_s4 + $0x168] sm:$0xff]  }
  0x7f   : > { %1304 = vmatprep.subr.bf16.mxu1 %v1443_v26  ;;  %v1471_v62 = vld [vmem:[%s1759_s4 + $0x1d8] sm:$0xff]   ;;  %v1475_v2 = vld [vmem:[%s1759_s4 + $0x1e0] sm:$0xff]   ;;  %v1479_v6 = vld [vmem:[%s1759_s4 + $0x1e8] sm:$0xff]  }
  0x80   : > { %v1472_v63 = vld [vmem:[%s1759_s4 + $0x118] sm:$0xff]   ;;  %v1476_v3 = vld [vmem:[%s1759_s4 + $0x120] sm:$0xff]   ;;  %v1480_v7 = vld [vmem:[%s1759_s4 + $0x128] sm:$0xff]  }
  0x81   : > { %1283 = vmatpush3.bf16.msra.mxu0 %v1444_v27  ;;  %v1473_v0 = vld [vmem:[%s1759_s4 + $0x198] sm:$0xff]   ;;  %v1477_v4 = vld [vmem:[%s1759_s4 + $0x1a0] sm:$0xff]   ;;  %v1481_v8 = vld [vmem:[%s1759_s4 + $0x1a8] sm:$0xff]  }
  0x82   : > { %1305 = vmatpush3.bf16.msra.mxu1 %v1445_v28  ;;  %1284 = vmatprep.subr.bf16.mxu0 %v1446_v29  ;;  %v1482_v9 = vld [vmem:[%s1759_s4 + $0x170] sm:$0xff]   ;;  %v1486_v13 = vld [vmem:[%s1759_s4 + $0x178] sm:$0xff]  }
  0x83   : > { %1306 = vmatprep.subr.bf16.mxu1 %v1447_v30  ;;  %v1483_v10 = vld [vmem:[%s1759_s4 + $0x1f0] sm:$0xff]   ;;  %v1487_v14 = vld [vmem:[%s1759_s4 + $0x1f8] sm:$0xff]  }
  0x84   : > { %v1484_v11 = vld [vmem:[%s1759_s4 + $0x130] sm:$0xff]   ;;  %v1488_v15 = vld [vmem:[%s1759_s4 + $0x138] sm:$0xff]  }
  0x85   : > { %1285 = vmatpush3.bf16.msra.mxu0 %v1448_v31  ;;  %v1485_v12 = vld [vmem:[%s1759_s4 + $0x1b0] sm:$0xff]   ;;  %v1489_v16 = vld [vmem:[%s1759_s4 + $0x1b8] sm:$0xff]  }
  0x86   : > { %1307 = vmatpush3.bf16.msra.mxu1 %v1449_v32  ;;  %1286 = vmatprep.subr.bf16.mxu0 %v1450_v33  ;;  %v315_v17 = vld [vmem:[%s1757_s27 + $0x10] sm:$0xff]  ;;  %v316_v21 = vld [vmem:[%s1757_s27 + $0x18] sm:$0xff] }
  0x87   : > { %1308 = vmatprep.subr.bf16.mxu1 %v1451_v34  ;;  %v319_v18 = vld [vmem:[%s1757_s27 + $0x30] sm:$0xff]  ;;  %v320_v22 = vld [vmem:[%s1757_s27 + $0x38] sm:$0xff] }
  0x88   : > { %v1198_v19 = vcombine.low %v315_v17, %v319_v18  ;;  %v1199_v20 = vcombine.high %v315_v17, %v319_v18  ;;  %v1200_v23 = vcombine.low %v316_v21, %v320_v22  ;;  %v1201_v24 = vcombine.high %v316_v21, %v320_v22 }
  0x89   : > { %1287 = vmatpush3.bf16.msra.mxu0 %v1452_v35 }
  0x8a   : > { %1309 = vmatpush3.bf16.msra.mxu1 %v1453_v36  ;;  %1288 = vmatprep.subr.bf16.mxu0 %v1454_v37 }
  0x8b   : > { %1310 = vmatprep.subr.bf16.mxu1 %v1455_v38 }
  0x8d   : > { %1289 = vmatpush3.bf16.msra.mxu0 %v1456_v39 }
  0x8e   : > { %1311 = vmatpush3.bf16.msra.mxu1 %v1457_v40  ;;  %1318 = vmatprep.subr.bf16.mxu0 %v1458_v49 }
  0x8f   : > { %1340 = vmatprep.subr.bf16.mxu1 %v1459_v50 }
  0x90   : > { %906 = vmatmul.mubr.bf16.vlgmr.msra.gmra.mrb[0].mxu0 %v1194_v44 }
  0x91   : > { %947 = vmatmul.mubr.bf16.vlgmr.msra.gmra.mrb[0].mxu1 %v1196_v47  ;;  %1319 = vmatpush3.bf16.msra.mxu0 %v1460_v51  ;;  %v311_v51 = vld [vmem:[%s1894_s3] sm:$0xff] }
  0x92   : > { %1341 = vmatpush3.bf16.msra.mxu1 %v1461_v52  ;;  %1320 = vmatprep.subr.bf16.mxu0 %v1462_v53 }
  0x93   : > { %1342 = vmatprep.subr.bf16.mxu1 %v1463_v54  ;;  %987 = vmatprep.mubr.bf16.mxu0 %v1199_v20 }
  0x94   : > { %1028 = vmatprep.mubr.bf16.mxu1 %v1201_v24 }
  0x95   : > { %1321 = vmatpush3.bf16.msra.mxu0 %v1464_v55  ;;  %v312_v55 = vld [vmem:[%s1894_s3 + $0x8] sm:$0xff] }
  0x96   : > { %1343 = vmatpush3.bf16.msra.mxu1 %v1465_v56  ;;  %1322 = vmatprep.subr.bf16.mxu0 %v1466_v57 }
  0x97   : > { %1344 = vmatprep.subr.bf16.mxu1 %v1467_v58 }
  0x99   : > { %1323 = vmatpush3.bf16.msra.mxu0 %v1468_v59 }
  0x9a   : > { %1345 = vmatpush3.bf16.msra.mxu1 %v1469_v60  ;;  %1324 = vmatprep.subr.bf16.mxu0 %v1470_v61  ;;  %v1267_v60 = vld [vmem:[#allocation5] ss:$0 sm:$0xff] (!%p1266_p4) }
  0x9b   : > { %1346 = vmatprep.subr.bf16.mxu1 %v1471_v62 }
  0x9d   : > { %1325 = vmatpush3.bf16.msra.mxu0 %v1472_v63 }
  0x9e   : > { %1347 = vmatpush3.bf16.msra.mxu1 %v1473_v0  ;;  %1326 = vmatprep.subr.bf16.mxu0 %v1474_v1 }
  0x9f   : > { %1348 = vmatprep.subr.bf16.mxu1 %v1475_v2 }
  0xa1   : > { %1327 = vmatpush3.bf16.msra.mxu0 %v1476_v3 }
  0xa2   : > { %1349 = vmatpush3.bf16.msra.mxu1 %v1477_v4  ;;  %1328 = vmatprep.subr.bf16.mxu0 %v1478_v5 }
  0xa3   : > { %1350 = vmatprep.subr.bf16.mxu1 %v1479_v6 }
  0xa5   : > { %1329 = vmatpush3.bf16.msra.mxu0 %v1480_v7 }
  0xa6   : > { %1351 = vmatpush3.bf16.msra.mxu1 %v1481_v8  ;;  %1330 = vmatprep.subr.bf16.mxu0 %v1482_v9 }
  0xa7   : > { %1352 = vmatprep.subr.bf16.mxu1 %v1483_v10 }
  0xa9   : > { %1331 = vmatpush3.bf16.msra.mxu0 %v1484_v11 }
  0xaa   : > { %1353 = vmatpush3.bf16.msra.mxu1 %v1485_v12  ;;  %1332 = vmatprep.subr.bf16.mxu0 %v1486_v13 }
  0xab   : > { %1354 = vmatprep.subr.bf16.mxu1 %v1487_v14 }
  0xad   : > { %1333 = vmatpush3.bf16.msra.mxu0 %v1488_v15 }
  0xae   : > { %1355 = vmatpush3.bf16.msra.mxu1 %v1489_v16 }
  0xb0   : > { %988 = vmatmul.mubr.bf16.vlgmr.msra.gmra.mrb[4].mxu0 %v1198_v19 }
  0xb1   : > { %1029 = vmatmul.mubr.bf16.vlgmr.msra.gmra.mrb[4].mxu1 %v1200_v23 }
 0x163   : > { %v1290_v25 = vpop.f32.mrb[0].mxu0 }
 0x164   : > { %v1312_v26 = vpop.f32.mrb[0].mxu1  ;;  %v1291_v27 = vpop.f32.mrb[1].mxu0 }
 0x165   : > { %v1292_v28 = vadd.f32 %v1291_v27, %v1290_v25  ;;  %v1313_v29 = vpop.f32.mrb[1].mxu1  ;;  %v1293_v30 = vpop.f32.mrb[2].mxu0 }
 0x166   : > { %v1314_v31 = vadd.f32 %v1313_v29, %v1312_v26  ;;  %v1315_v32 = vpop.f32.mrb[2].mxu1  ;;  %v1294_v33 = vpop.f32.mrb[3].mxu0 }
 0x167   : > { %v1295_v34 = vadd.f32 %v1294_v33, %v1293_v30  ;;  %v1316_v35 = vpop.f32.mrb[3].mxu1 }
 0x168   : > { %v949_v36 = vadd.f32 %v1314_v31, %v1292_v28  ;;  %v1317_v37 = vadd.f32 %v1316_v35, %v1315_v32 }
 0x16a   : > { %v952_v38 = vadd.f32 %v1317_v37, %v1295_v34 }
 0x183   : > { %v1334_v39 = vpop.f32.mrb[4].mxu0 }
 0x184   : > { %v1356_v40 = vpop.f32.mrb[4].mxu1  ;;  %v1335_v41 = vpop.f32.mrb[5].mxu0 }
 0x185   : > { %v1336_v42 = vadd.f32 %v1335_v41, %v1334_v39  ;;  %v1357_v43 = vpop.f32.mrb[5].mxu1  ;;  %v1337_v44 = vpop.f32.mrb[6].mxu0 }
 0x186   : > { %v1358_v45 = vadd.f32 %v1357_v43, %v1356_v40  ;;  %v1359_v46 = vpop.f32.mrb[6].mxu1  ;;  %v1338_v47 = vpop.f32.mrb[7].mxu0 }
 0x187   : > { %v990_v48 = vadd.f32 %v1336_v42, %v949_v36  ;;  %v1339_v49 = vadd.f32 %v1338_v47, %v1337_v44  ;;  %v1360_v50 = vpop.f32.mrb[7].mxu1 }
 0x188   : > { %v1361_v52 = vadd.f32 %v1360_v50, %v1359_v46 }
 0x189   : > { %v1031_v53 = vadd.f32 %v1358_v45, %v990_v48  ;;  %v993_v54 = vadd.f32 %v1339_v49, %v952_v38  ;;  %1044 = sbr.rel (%p1266_p4) target bundleno = 410 (0x19a), region = 71 }
 0x18b   : > { %v1037_v56 = vadd.f32 %v1031_v53, %v311_v51  ;;  %v1034_v57 = vadd.f32 %v1361_v52, %v993_v54 }
 0x18d   : > { %1039 = vst [vmem:[%s1894_s3] sm:$0xff] %v1037_v56  ;;  %v1038_v58 = vadd.f32 %v1034_v57, %v312_v55 }
 0x18f   : > { %1040 = vst [vmem:[%s1894_s3 + $0x8] sm:$0xff] %v1038_v58 }
 0x194   : > { %v1045_v59 = vld [vmem:[%s1894_s3] sm:$0xff] }
 0x195   : > { %v1054_v62 = vadd.f32 %v1267_v60, %v1045_v59 }
 0x196   : > { %v1046_v61 = vld [vmem:[%s1894_s3 + $0x8] sm:$0xff] }
 0x197   : > { %v1055_v63 = vadd.f32 %v1267_v60, %v1046_v61  ;;  %1056 = vst [vmem:[%s1894_s3] sm:$0xff] %v1054_v62 }
 0x199   : > { %1057 = vst [vmem:[%s1894_s3 + $0x8] sm:$0xff] %v1055_v63 }
 0x19a PF: > { %s17_s17 = sadd.s32 1, %s1600_s17   ;;  %s1910_s12 = smov %s1584_s13 }
 0x19b   : > { %p14_p6 = scmp.ge.s32.totalorder %s17_s17, 6   ;;  %s1911_s13 = smov %s1588_s14 }
 0x19c   : > { %s1912_s14 = smov %s1683_s25  ;;  %s1913_s15 = smov %s1596_s16 }
 0x19d   : > { %s1914_s16 = smov %s1916_s19  ;;  %16 = sbr.rel (!%p14_p6) target bundleno = 5 (0x5), region = 116 }
 0x1a4   :  { %1086 = vsyncpa [#allocation4], 1 }
 0x1a5   :  { %1088 = vsyncpa [#allocation4 + $0x1], 1 }
 0x1a6   :  { %1089 = vsyncpa [#allocation6], 1 }

// kernel: net_conv_forward.23
= control target key start
LH: loop header
LB: loop body
LE: loop exit
PB: predicated region body
PF: predicated region fallthrough
CT: control target
= control target key end

     0   :  { %vm10_vm0 = vcmask 74752   ;;  %s96_s0 = inlined_call_operand.vmem [shape: f32[2,10], index: 0, kind: input, shape index: {}]   ;;  %s97_s1 = inlined_call_operand.hbm [shape: f32[2,10], index: 1, kind: output, shape index: {}]  }
   0x1   :  { %v9_v0 = vld [vmem:[%s96_s0] sm:$0x3] }
   0x2   :  { %6 = vsyncpa [#allocation3], 0  ;;  %v11_v1 = vsel %vm10_vm0, %v9_v0, -inf  ;;  %s67_s8 = smov [#allocation2]  }
   0x3   :  { %12 = vmax.xlane.f32.xlu0 %v11_v1  ;;  %s30_s9 = sshll.u32 %s67_s8, 4  ;;  %s31_s9 = int_to_ptr.vmem [resolvable:$true] %s30_s9 }
   0x4   :  { %s43_s0 = scalar_lea.vmem %s31_s9, 32  ;;  %p48_p1 = scmp.lt.s32.totalorder %s31_s9, %s31_s9 }
   0x5   :  { %p44_p0 = scmp.ne.s32.totalorder %s31_s9, %s43_s0  ;;  %p49_p2 = scmp.lt.s32.totalorder %s43_s0, %s43_s0 }
   0x7   :  { %p50_p3 = por %p49_p2, %p48_p1 }
   0x9   :  { %p51_p4 = pnand %p50_p3, %p44_p0 }
  0x90   :  { %v13_v2 = vpop.xlane.xlu0 %12 }
  0x91   :  { %v14_v3 = vsub.f32 %v9_v0, %v13_v2 }
  0x93   :  { %v15_v4 = vmul.f32 1.442695, %v14_v3 }
  0x95   :  { %39 = vpow2.f32 %v15_v4 }
  0x9f   :  { %v40_v5 = vpop.eup %39 }
  0xa0   :  { %v17_v6 = vsel %vm10_vm0, %v40_v5, 0.0 }
  0xa1   :  { %18 = vadd.xlane.f32.xlu0 %v17_v6 }
 0x12e   :  { %v19_v7 = vpop.xlane.xlu0 %18 }
 0x12f   :  { %41 = vlog2.f32 %v19_v7 }
 0x139   :  { %v42_v8 = vpop.eup %41 }
 0x13a   :  { %v21_v9 = vmul.f32 0.6931472, %v42_v8 }
 0x13c   :  { %v22_v10 = vsub.f32 %v14_v3, %v21_v9 }
 0x13e   :  { %23 = vst.msk [vmem:[#allocation2] sm:$0x3] %vm10_vm0, %v22_v10 }
 0x13f   :  { %54 = shalt.err (!%p51_p4)
}
 0x140   :  { %s55_s12 = scalar_lea.hbm %s97_s1, 32 }
 0x141   :  { %p56_p5 = scmp.ne.s32.totalorder %s97_s1, %s55_s12  ;;  %p59_p6 = scmp.lt.u32.totalorder %s55_s12, %s97_s1 }
 0x143   :  { %p61_p7 = pnand %p59_p6, %p56_p5 }
 0x145   :  { %64 = shalt.err (!%p61_p7)
}
 0x146   :  { %33 = dma.vmem_to_hbm [thread:$0]  %s31_s9, 32, %s97_s1, [#allocation3]  }
 0x147   :  { %65 = dma.done.wait [#allocation3], 32  }
 0x148   :  { %66 = vsyncadd [#allocation3], 4294967264 }
 0x149   :  { %37 = vsyncpa [#allocation3], 1 }

</bundles_post_ra>
